<compile_context>
chip_gen: v7x
topology: tpu7x:2x2x1
jax: 0.10.0
libtpu: 0.0.40
codegen_flags: <defaults>
</compile_context>

<pallas_src>
import numpy as np
import jax
import jax.numpy as jnp
from jax.experimental import pallas as pl
from jax.experimental.pallas import tpu as pltpu

# Fixed architecture constants (from the PyTorch module).
C1, C2, C3 = 32, 128, 524
K1, K2, K3 = 3, 5, 7
S1, S2, S3 = 1, 2, 3
P1, P2, P3 = 1, 2, 3
HID = 1024


def _dims(in_seq_dim):
    """Padded / output lengths of the 3 conv stages (replaces util_md.compute_output_shape)."""
    lp1 = in_seq_dim + 2 * P1
    lo1 = (lp1 - K1) // S1 + 1
    lp2 = lo1 + 2 * P2
    lo2 = (lp2 - K2) // S2 + 1
    lp3 = lo2 + 2 * P3
    lo3 = (lp3 - K3) // S3 + 1
    return lp1, lo1, lp2, lo2, lp3, lo3


# ------------------------------ fused kernel ------------------------------- #

def _make_kernel(n, out_dim, lp1, lo1, lp2, lo2, lp3, lo3):
    """Whole network, one grid axis = head index (0: clas, 1: reg)."""

    def kernel(x_ref, w1_ref, b1_ref, w2_ref, b2_ref, w3_ref, b3_ref,
               wl1_ref, bl1_ref, wl2_ref, bl2_ref,
               o_ref, a2_ref, a3_ref):

        def cat(parts):
            return parts[0] if len(parts) == 1 else jnp.concatenate(parts, axis=0)

        # ---- conv1 (Cin=1, k=3, s=1): broadcast-multiply taps --------------
        y1 = None
        for j in range(K1):
            tap = cat([x_ref[pl.ds(b * lp1 + j, lo1), :] for b in range(n)])   # (n*lo1, 1)
            term = tap * w1_ref[j]                                             # (n*lo1, C1)
            y1 = term if y1 is None else y1 + term
        y1 = jnp.maximum(y1 + b1_ref[...], 0.0)

        # ---- replication pad (2,2) into VMEM scratch (layout (n*lp2, C1)) --
        for b in range(n):
            yb = y1[b * lo1:(b + 1) * lo1, :]
            base = b * lp2
            a2_ref[base + P2: base + P2 + lo1, :] = yb
            a2_ref[base: base + P2, :] = jnp.broadcast_to(yb[0:1, :], (P2, C1))
            a2_ref[base + P2 + lo1: base + lp2, :] = (
                jnp.broadcast_to(yb[lo1 - 1:lo1, :], (P2, C1)))

        # ---- conv2 (k=5, s=2): sum of strided-tap matmuls -------------------
        y2 = None
        for j in range(K2):
            tap = cat([a2_ref[pl.ds(b * lp2 + j, lo2, stride=S2), :]
                       for b in range(n)])                                     # (n*lo2, C1)
            term = jnp.dot(tap, w2_ref[j], preferred_element_type=jnp.float32)
            y2 = term if y2 is None else y2 + term
        y2 = jnp.maximum(y2 + b2_ref[...], 0.0)

        # ---- replication pad (3,3) into VMEM scratch (layout (n*lp3, C2)) --
        for b in range(n):
            yb = y2[b * lo2:(b + 1) * lo2, :]
            base = b * lp3
            a3_ref[base + P3: base + P3 + lo2, :] = yb
            a3_ref[base: base + P3, :] = jnp.broadcast_to(yb[0:1, :], (P3, C2))
            a3_ref[base + P3 + lo2: base + lp3, :] = (
                jnp.broadcast_to(yb[lo2 - 1:lo2, :], (P3, C2)))

        # ---- conv3 (k=7, s=3) -----------------------------------------------
        y3 = None
        for j in range(K3):
            tap = cat([a3_ref[pl.ds(b * lp3 + j, lo3, stride=S3), :]
                       for b in range(n)])                                     # (n*lo3, C2)
            term = jnp.dot(tap, w3_ref[j], preferred_element_type=jnp.float32)
            y3 = term if y3 is None else y3 + term
        y3 = jnp.maximum(y3 + b3_ref[...], 0.0)                                # (n*lo3, C3)

        # ---- per-time-step activations (avoids in-kernel transpose/reshape) -
        yts = []
        for t in range(lo3):
            yt = cat([y3[b * lo3 + t: b * lo3 + t + 1, :] for b in range(n)])  # (n, C3)
            yts.append(yt.astype(jnp.bfloat16))

        # ---- this grid step's head: Linear(flatten,1024)+ReLU, Linear(1024,out)
        hidden = None
        for t in range(lo3):
            term = jnp.dot(yts[t], wl1_ref[0, t, :, :],
                           preferred_element_type=jnp.float32)                 # (n, HID)
            hidden = term if hidden is None else hidden + term
        hidden = jnp.maximum(hidden + bl1_ref[0], 0.0)                         # (n, HID)

        w2h = wl2_ref[0]                                                       # (out_dim, HID)
        cols = [jnp.sum(hidden * w2h[o:o + 1, :], axis=1, keepdims=True)
                for o in range(out_dim)]                                       # each (n, 1)
        out = cols[0] if out_dim == 1 else jnp.concatenate(cols, axis=1)       # (n, out_dim)
        o_ref[0, :, :] = out + bl2_ref[0]

    return kernel


# ------------------------------ wrapper ------------------------------------ #

def prepare_kernel_params(p, in_seq_dim):
    """One-time re-layout of canonical parameters into kernel-friendly layouts."""
    _, _, _, _, _, lo3 = _dims(in_seq_dim)

    def conv_w(w):                 # (Cout, Cin, k) -> (k, Cin, Cout)
        return jnp.transpose(w, (2, 1, 0))

    def head_w1(w):                # (C3*lo3, HID), row c*lo3+t  ->  (lo3, C3, HID)[t, c]
        return jnp.transpose(w.reshape(C3, lo3, HID), (1, 0, 2))

    return dict(
        w1=conv_w(p["w1"]), b1=p["b1"].reshape(1, C1),
        w2=conv_w(p["w2"]), b2=p["b2"].reshape(1, C2),
        w3=conv_w(p["w3"]), b3=p["b3"].reshape(1, C3),
        wl1=jnp.stack([head_w1(p["wl1_clas"]), head_w1(p["wl1_reg"])]),        # (2, lo3, C3, HID) bf16
        bl1=jnp.stack([p["bl1_clas"].reshape(1, HID),
                       p["bl1_reg"].reshape(1, HID)]),                         # (2, 1, HID)
        wl2=jnp.stack([p["wl2_clas"].T, p["wl2_reg"].T]),                      # (2, out, HID)
        bl2=jnp.stack([p["bl2_clas"].reshape(1, -1),
                       p["bl2_reg"].reshape(1, -1)]),                          # (2, 1, out)
    )


def forward_pallas(x, kp):
    """x: (N, 1, L) -> (clas, reg), each (N, out_dim). One fused pallas_call."""
    n, cin, L = x.shape
    assert cin == 1
    lp1, lo1, lp2, lo2, lp3, lo3 = _dims(L)
    out_dim = kp["wl2"].shape[1]

    # Only host-side glue: edge-pad the tiny raw input and lay it out as a
    # (n*lp1, 1) column so the kernel reads conv-1 taps with static slices.
    x_col = jnp.pad(x, ((0, 0), (0, 0), (P1, P1)), mode="edge").reshape(n * lp1, 1)

    kernel = _make_kernel(n, out_dim, lp1, lo1, lp2, lo2, lp3, lo3)

    outs = pl.pallas_call(
        kernel,
        out_shape=jax.ShapeDtypeStruct((2, n, out_dim), jnp.float32),
        grid=(2,),   # head axis: 0 = clas, 1 = reg
        in_specs=[
            pl.BlockSpec((n * lp1, 1), lambda h: (0, 0)),
            pl.BlockSpec((K1, 1, C1), lambda h: (0, 0, 0)),
            pl.BlockSpec((1, C1), lambda h: (0, 0)),
            pl.BlockSpec((K2, C1, C2), lambda h: (0, 0, 0)),
            pl.BlockSpec((1, C2), lambda h: (0, 0)),
            pl.BlockSpec((K3, C2, C3), lambda h: (0, 0, 0)),
            pl.BlockSpec((1, C3), lambda h: (0, 0)),
            pl.BlockSpec((1, lo3, C3, HID), lambda h: (h, 0, 0, 0)),
            pl.BlockSpec((1, 1, HID), lambda h: (h, 0, 0)),
            pl.BlockSpec((1, out_dim, HID), lambda h: (h, 0, 0)),
            pl.BlockSpec((1, 1, out_dim), lambda h: (h, 0, 0)),
        ],
        out_specs=pl.BlockSpec((1, n, out_dim), lambda h: (h, 0, 0)),
        scratch_shapes=[
            pltpu.VMEM((n * lp2, C1), jnp.float32),   # padded conv-2 input
            pltpu.VMEM((n * lp3, C2), jnp.float32),   # padded conv-3 input
        ],
        compiler_params=pltpu.CompilerParams(
            dimension_semantics=("parallel",),         # v7x: one head per TensorCore
            vmem_limit_bytes=32 * 1024 * 1024,
        ),
    )(x_col, kp["w1"], kp["b1"], kp["w2"], kp["b2"], kp["w3"], kp["b3"],
      kp["wl1"], kp["bl1"], kp["wl2"], kp["bl2"])

    return outs[0], outs[1]


# ------------------------------ params / ref -------------------------------- #

def init_params(key, in_seq_dim, out_seq_dim=1):
    _, _, _, _, _, lo3 = _dims(in_seq_dim)
    flatten = C3 * lo3
    ks = jax.random.split(key, 14)

    def uinit(kw, kb, fan_in, w_shape, b_shape, w_dtype=jnp.float32):
        bound = 1.0 / float(np.sqrt(fan_in))
        w = jax.random.uniform(kw, w_shape, jnp.float32, -bound, bound).astype(w_dtype)
        b = jax.random.uniform(kb, b_shape, jnp.float32, -bound, bound)
        return w, b

    w1, b1 = uinit(ks[0], ks[1], 1 * K1, (C1, 1, K1), (C1,))
    w2, b2 = uinit(ks[2], ks[3], C1 * K2, (C2, C1, K2), (C2,))
    w3, b3 = uinit(ks[4], ks[5], C2 * K3, (C3, C2, K3), (C3,))
    # The two dominant (flatten, 1024) weights are stored in bf16; accumulation stays f32.
    wl1c, bl1c = uinit(ks[6], ks[7], flatten, (flatten, HID), (HID,), jnp.bfloat16)
    wl2c, bl2c = uinit(ks[8], ks[9], HID, (HID, out_seq_dim), (out_seq_dim,))
    wl1r, bl1r = uinit(ks[10], ks[11], flatten, (flatten, HID), (HID,), jnp.bfloat16)
    wl2r, bl2r = uinit(ks[12], ks[13], HID, (HID, out_seq_dim), (out_seq_dim,))
    return dict(w1=w1, b1=b1, w2=w2, b2=b2, w3=w3, b3=b3,
                wl1_clas=wl1c, bl1_clas=bl1c, wl2_clas=wl2c, bl2_clas=bl2c,
                wl1_reg=wl1r, bl1_reg=bl1r, wl2_reg=wl2r, bl2_reg=bl2r)


def replication_pad1d(x, pad):
    lo, hi = pad
    return jnp.pad(x, ((0, 0), (0, 0), (lo, hi)), mode="edge")


def forward_ref(x, p):
    """Pure-JAX reference mirroring the PyTorch forward (including the bf16 head weights)."""
    def conv(x, w, b, stride):
        y = jax.lax.conv_general_dilated(
            x, w, (stride,), "VALID", dimension_numbers=("NCH", "OIH", "NCH"))
        return y + b[None, :, None]

    x = replication_pad1d(x, (P1, P1)); x = jax.nn.relu(conv(x, p["w1"], p["b1"], S1))
    x = replication_pad1d(x, (P2, P2)); x = jax.nn.relu(conv(x, p["w2"], p["b2"], S2))
    x = replication_pad1d(x, (P3, P3)); x = jax.nn.relu(conv(x, p["w3"], p["b3"], S3))
    flat = x.reshape(x.shape[0], -1)   # channel-major flatten, same as torch .view

    def head(wl1, bl1, wl2, bl2):
        h = jnp.dot(flat.astype(jnp.bfloat16), wl1,
                    preferred_element_type=jnp.float32) + bl1[None, :]
        h = jax.nn.relu(h)
        return jnp.dot(h, wl2) + bl2[None, :]

    return (head(p["wl1_clas"], p["bl1_clas"], p["wl2_clas"], p["bl2_clas"]),
            head(p["wl1_reg"], p["bl1_reg"], p["wl2_reg"], p["bl2_reg"]))


# ---------------------------------- main ------------------------------------ #

if __name__ == "__main__":
    batch = 2
    in_seq_dim = 16
    out_seq_dim = 1

    key = jax.random.PRNGKey(0)
    k_params, k_x = jax.random.split(key)
    params = init_params(k_params, in_seq_dim, out_seq_dim)
    kparams = prepare_kernel_params(params, in_seq_dim)   # one-time weight re-layout

    x = jax.random.normal(k_x, (batch, 1, in_seq_dim), jnp.float32)

    out_clas, out_reg = forward_pallas(x, kparams)
    out_clas = jax.block_until_ready(out_clas)
    out_reg = jax.block_until_ready(out_reg)

    ref_clas, ref_reg = forward_ref(x, params)
    ref_clas = jax.block_until_ready(ref_clas)
    ref_reg = jax.block_until_ready(ref_reg)

    np.testing.assert_allclose(np.asarray(out_clas), np.asarray(ref_clas), rtol=5e-3, atol=5e-3)
    np.testing.assert_allclose(np.asarray(out_reg), np.asarray(ref_reg), rtol=5e-3, atol=5e-3)
    assert out_clas.shape == (batch, out_seq_dim) and out_reg.shape == (batch, out_seq_dim)

    print("KERNEL_OK")
</pallas_src>

<mosaic_0001>
module attributes {stable_mosaic.version = 11 : i64} {
  func.func @kernel(%arg0: i32, %arg1: memref<36x1xf32, #tpu.memory_space<vmem>>, %arg2: memref<3x1x32xf32, #tpu.memory_space<vmem>>, %arg3: memref<1x32xf32, #tpu.memory_space<vmem>>, %arg4: memref<5x32x128xf32, #tpu.memory_space<vmem>>, %arg5: memref<1x128xf32, #tpu.memory_space<vmem>>, %arg6: memref<7x128x524xf32, #tpu.memory_space<vmem>>, %arg7: memref<1x524xf32, #tpu.memory_space<vmem>>, %arg8: memref<1x3x524x1024xbf16, #tpu.memory_space<vmem>>, %arg9: memref<1x1x1024xf32, #tpu.memory_space<vmem>>, %arg10: memref<1x1x1024xf32, #tpu.memory_space<vmem>>, %arg11: memref<1x1x1xf32, #tpu.memory_space<vmem>>, %arg12: memref<1x2x1xf32, #tpu.memory_space<vmem>>, %arg13: memref<40x32xf32, #tpu.memory_space<vmem>>, %arg14: memref<28x128xf32, #tpu.memory_space<vmem>>) attributes {dimension_semantics = [#tpu.dimension_semantics<parallel>], iteration_bounds = array<i64: 2>, scalar_prefetch = 0 : i64, scratch_operands = 2 : i64, tpu.core_type = #tpu.core_type<tc>, window_params = [{pipeline_mode = #tpu.pipeline_mode<synchronous>, transform_indices = @transform_0, window_bounds = array<i64: 36, 1>}, {pipeline_mode = #tpu.pipeline_mode<synchronous>, transform_indices = @transform_1, window_bounds = array<i64: 3, 1, 32>}, {pipeline_mode = #tpu.pipeline_mode<synchronous>, transform_indices = @transform_2, window_bounds = array<i64: 1, 32>}, {pipeline_mode = #tpu.pipeline_mode<synchronous>, transform_indices = @transform_3, window_bounds = array<i64: 5, 32, 128>}, {pipeline_mode = #tpu.pipeline_mode<synchronous>, transform_indices = @transform_4, window_bounds = array<i64: 1, 128>}, {pipeline_mode = #tpu.pipeline_mode<synchronous>, transform_indices = @transform_5, window_bounds = array<i64: 7, 128, 524>}, {pipeline_mode = #tpu.pipeline_mode<synchronous>, transform_indices = @transform_6, window_bounds = array<i64: 1, 524>}, {transform_indices = @transform_7, window_bounds = array<i64: 1, 3, 524, 1024>}, {transform_indices = @transform_8, window_bounds = array<i64: 1, 1, 1024>}, {transform_indices = @transform_9, window_bounds = array<i64: 1, 1, 1024>}, {transform_indices = @transform_10, window_bounds = array<i64: 1, 1, 1>}, {transform_indices = @transform_11, window_bounds = array<i64: 1, 2, 1>}]} {
    %c0 = arith.constant 0 : index
    %c0_0 = arith.constant 0 : index
    %0 = vector.load %arg1[%c0, %c0_0] : memref<36x1xf32, #tpu.memory_space<vmem>>, vector<16x1xf32>
    %c18 = arith.constant 18 : index
    %c0_1 = arith.constant 0 : index
    %1 = vector.load %arg1[%c18, %c0_1] : memref<36x1xf32, #tpu.memory_space<vmem>>, vector<16x1xf32>
    %2 = tpu.concatenate %0, %1 in 0 : vector<16x1xf32>, vector<16x1xf32> -> vector<32x1xf32>
    %c0_2 = arith.constant 0 : index
    %c0_3 = arith.constant 0 : index
    %c0_4 = arith.constant 0 : index
    %3 = vector.load %arg2[%c0_2, %c0_3, %c0_4] : memref<3x1x32xf32, #tpu.memory_space<vmem>>, vector<1x1x32xf32>
    %4 = vector.shape_cast %3 : vector<1x1x32xf32> to vector<1x32xf32>
    %5 = vector.broadcast %2 : vector<32x1xf32> to vector<32x32xf32>
    %6 = vector.broadcast %4 : vector<1x32xf32> to vector<32x32xf32>
    %7 = arith.mulf %5, %6 : vector<32x32xf32>
    %c1 = arith.constant 1 : index
    %c0_5 = arith.constant 0 : index
    %8 = vector.load %arg1[%c1, %c0_5] : memref<36x1xf32, #tpu.memory_space<vmem>>, vector<16x1xf32>
    %c19 = arith.constant 19 : index
    %c0_6 = arith.constant 0 : index
    %9 = vector.load %arg1[%c19, %c0_6] : memref<36x1xf32, #tpu.memory_space<vmem>>, vector<16x1xf32>
    %10 = tpu.concatenate %8, %9 in 0 : vector<16x1xf32>, vector<16x1xf32> -> vector<32x1xf32>
    %c1_7 = arith.constant 1 : index
    %c0_8 = arith.constant 0 : index
    %c0_9 = arith.constant 0 : index
    %11 = vector.load %arg2[%c1_7, %c0_8, %c0_9] : memref<3x1x32xf32, #tpu.memory_space<vmem>>, vector<1x1x32xf32>
    %12 = vector.shape_cast %11 : vector<1x1x32xf32> to vector<1x32xf32>
    %13 = vector.broadcast %10 : vector<32x1xf32> to vector<32x32xf32>
    %14 = vector.broadcast %12 : vector<1x32xf32> to vector<32x32xf32>
    %15 = arith.mulf %13, %14 : vector<32x32xf32>
    %16 = arith.addf %7, %15 : vector<32x32xf32>
    %c2 = arith.constant 2 : index
    %c0_10 = arith.constant 0 : index
    %17 = vector.load %arg1[%c2, %c0_10] : memref<36x1xf32, #tpu.memory_space<vmem>>, vector<16x1xf32>
    %c20 = arith.constant 20 : index
    %c0_11 = arith.constant 0 : index
    %18 = vector.load %arg1[%c20, %c0_11] : memref<36x1xf32, #tpu.memory_space<vmem>>, vector<16x1xf32>
    %19 = tpu.concatenate %17, %18 in 0 : vector<16x1xf32>, vector<16x1xf32> -> vector<32x1xf32>
    %c2_12 = arith.constant 2 : index
    %c0_13 = arith.constant 0 : index
    %c0_14 = arith.constant 0 : index
    %20 = vector.load %arg2[%c2_12, %c0_13, %c0_14] : memref<3x1x32xf32, #tpu.memory_space<vmem>>, vector<1x1x32xf32>
    %21 = vector.shape_cast %20 : vector<1x1x32xf32> to vector<1x32xf32>
    %22 = vector.broadcast %19 : vector<32x1xf32> to vector<32x32xf32>
    %23 = vector.broadcast %21 : vector<1x32xf32> to vector<32x32xf32>
    %24 = arith.mulf %22, %23 : vector<32x32xf32>
    %25 = arith.addf %16, %24 : vector<32x32xf32>
    %c0_15 = arith.constant 0 : index
    %c0_16 = arith.constant 0 : index
    %26 = vector.load %arg3[%c0_15, %c0_16] : memref<1x32xf32, #tpu.memory_space<vmem>>, vector<1x32xf32>
    %27 = vector.broadcast %26 : vector<1x32xf32> to vector<32x32xf32>
    %28 = arith.addf %25, %27 : vector<32x32xf32>
    %cst = arith.constant 0.000000e+00 : f32
    %29 = vector.broadcast %cst : f32 to vector<32x32xf32>
    %30 = arith.maximumf %28, %29 : vector<32x32xf32>
    %31 = vector.extract_strided_slice %30 {offsets = [0, 0], sizes = [16, 32], strides = [1, 1]} : vector<32x32xf32> to vector<16x32xf32>
    %c2_17 = arith.constant 2 : index
    %c0_18 = arith.constant 0 : index
    %32 = vector.load %arg13[%c2_17, %c0_18] : memref<40x32xf32, #tpu.memory_space<vmem>>, vector<16x32xf32>
    tpu.vector_store %arg13[%c2_17, %c0_18], %31 {strides = array<i32>} : memref<40x32xf32, #tpu.memory_space<vmem>>, vector<16x32xf32>,
    %33 = vector.extract_strided_slice %31 {offsets = [0, 0], sizes = [1, 32], strides = [1, 1]} : vector<16x32xf32> to vector<1x32xf32>
    %34 = vector.shape_cast %33 : vector<1x32xf32> to vector<1x32xf32>
    %35 = vector.broadcast %34 : vector<1x32xf32> to vector<2x32xf32>
    %c0_19 = arith.constant 0 : index
    %c0_20 = arith.constant 0 : index
    %36 = vector.load %arg13[%c0_19, %c0_20] : memref<40x32xf32, #tpu.memory_space<vmem>>, vector<2x32xf32>
    tpu.vector_store %arg13[%c0_19, %c0_20], %35 {strides = array<i32>} : memref<40x32xf32, #tpu.memory_space<vmem>>, vector<2x32xf32>,
    %37 = vector.extract_strided_slice %31 {offsets = [15, 0], sizes = [1, 32], strides = [1, 1]} : vector<16x32xf32> to vector<1x32xf32>
    %38 = vector.shape_cast %37 : vector<1x32xf32> to vector<1x32xf32>
    %39 = vector.broadcast %38 : vector<1x32xf32> to vector<2x32xf32>
    %c18_21 = arith.constant 18 : index
    %c0_22 = arith.constant 0 : index
    %40 = vector.load %arg13[%c18_21, %c0_22] : memref<40x32xf32, #tpu.memory_space<vmem>>, vector<2x32xf32>
    tpu.vector_store %arg13[%c18_21, %c0_22], %39 {strides = array<i32>} : memref<40x32xf32, #tpu.memory_space<vmem>>, vector<2x32xf32>,
    %41 = vector.extract_strided_slice %30 {offsets = [16, 0], sizes = [16, 32], strides = [1, 1]} : vector<32x32xf32> to vector<16x32xf32>
    %c22 = arith.constant 22 : index
    %c0_23 = arith.constant 0 : index
    %42 = vector.load %arg13[%c22, %c0_23] : memref<40x32xf32, #tpu.memory_space<vmem>>, vector<16x32xf32>
    tpu.vector_store %arg13[%c22, %c0_23], %41 {strides = array<i32>} : memref<40x32xf32, #tpu.memory_space<vmem>>, vector<16x32xf32>,
    %43 = vector.extract_strided_slice %41 {offsets = [0, 0], sizes = [1, 32], strides = [1, 1]} : vector<16x32xf32> to vector<1x32xf32>
    %44 = vector.shape_cast %43 : vector<1x32xf32> to vector<1x32xf32>
    %45 = vector.broadcast %44 : vector<1x32xf32> to vector<2x32xf32>
    %c20_24 = arith.constant 20 : index
    %c0_25 = arith.constant 0 : index
    %46 = vector.load %arg13[%c20_24, %c0_25] : memref<40x32xf32, #tpu.memory_space<vmem>>, vector<2x32xf32>
    tpu.vector_store %arg13[%c20_24, %c0_25], %45 {strides = array<i32>} : memref<40x32xf32, #tpu.memory_space<vmem>>, vector<2x32xf32>,
    %47 = vector.extract_strided_slice %41 {offsets = [15, 0], sizes = [1, 32], strides = [1, 1]} : vector<16x32xf32> to vector<1x32xf32>
    %48 = vector.shape_cast %47 : vector<1x32xf32> to vector<1x32xf32>
    %49 = vector.broadcast %48 : vector<1x32xf32> to vector<2x32xf32>
    %c38 = arith.constant 38 : index
    %c0_26 = arith.constant 0 : index
    %50 = vector.load %arg13[%c38, %c0_26] : memref<40x32xf32, #tpu.memory_space<vmem>>, vector<2x32xf32>
    tpu.vector_store %arg13[%c38, %c0_26], %49 {strides = array<i32>} : memref<40x32xf32, #tpu.memory_space<vmem>>, vector<2x32xf32>,
    %c0_27 = arith.constant 0 : index
    %c0_28 = arith.constant 0 : index
    %51 = tpu.strided_load %arg13[%c0_27, %c0_28] {strides = array<i32: 2, 1>} : memref<40x32xf32, #tpu.memory_space<vmem>>, vector<8x32xf32>
    %c20_29 = arith.constant 20 : index
    %c0_30 = arith.constant 0 : index
    %52 = tpu.strided_load %arg13[%c20_29, %c0_30] {strides = array<i32: 2, 1>} : memref<40x32xf32, #tpu.memory_space<vmem>>, vector<8x32xf32>
    %53 = tpu.concatenate %51, %52 in 0 : vector<8x32xf32>, vector<8x32xf32> -> vector<16x32xf32>
    %c0_31 = arith.constant 0 : index
    %c0_32 = arith.constant 0 : index
    %c0_33 = arith.constant 0 : index
    %54 = vector.load %arg4[%c0_31, %c0_32, %c0_33] : memref<5x32x128xf32, #tpu.memory_space<vmem>>, vector<1x32x128xf32>
    %55 = vector.shape_cast %54 : vector<1x32x128xf32> to vector<32x128xf32>
    %cst_34 = arith.constant dense<0.000000e+00> : vector<16x128xf32>
    %56 = tpu.matmul %53, %55, %cst_34 {dimension_numbers = #tpu.dot_dimension_numbers<[1], [0], [0], [1], [0, 0, 1, 1], [], []>} : vector<16x32xf32>, vector<32x128xf32>, vector<16x128xf32> -> vector<16x128xf32>
    %c1_35 = arith.constant 1 : index
    %c0_36 = arith.constant 0 : index
    %57 = tpu.strided_load %arg13[%c1_35, %c0_36] {strides = array<i32: 2, 1>} : memref<40x32xf32, #tpu.memory_space<vmem>>, vector<8x32xf32>
    %c21 = arith.constant 21 : index
    %c0_37 = arith.constant 0 : index
    %58 = tpu.strided_load %arg13[%c21, %c0_37] {strides = array<i32: 2, 1>} : memref<40x32xf32, #tpu.memory_space<vmem>>, vector<8x32xf32>
    %59 = tpu.concatenate %57, %58 in 0 : vector<8x32xf32>, vector<8x32xf32> -> vector<16x32xf32>
    %c1_38 = arith.constant 1 : index
    %c0_39 = arith.constant 0 : index
    %c0_40 = arith.constant 0 : index
    %60 = vector.load %arg4[%c1_38, %c0_39, %c0_40] : memref<5x32x128xf32, #tpu.memory_space<vmem>>, vector<1x32x128xf32>
    %61 = vector.shape_cast %60 : vector<1x32x128xf32> to vector<32x128xf32>
    %cst_41 = arith.constant dense<0.000000e+00> : vector<16x128xf32>
    %62 = tpu.matmul %59, %61, %cst_41 {dimension_numbers = #tpu.dot_dimension_numbers<[1], [0], [0], [1], [0, 0, 1, 1], [], []>} : vector<16x32xf32>, vector<32x128xf32>, vector<16x128xf32> -> vector<16x128xf32>
    %63 = arith.addf %56, %62 : vector<16x128xf32>
    %c2_42 = arith.constant 2 : index
    %c0_43 = arith.constant 0 : index
    %64 = tpu.strided_load %arg13[%c2_42, %c0_43] {strides = array<i32: 2, 1>} : memref<40x32xf32, #tpu.memory_space<vmem>>, vector<8x32xf32>
    %c22_44 = arith.constant 22 : index
    %c0_45 = arith.constant 0 : index
    %65 = tpu.strided_load %arg13[%c22_44, %c0_45] {strides = array<i32: 2, 1>} : memref<40x32xf32, #tpu.memory_space<vmem>>, vector<8x32xf32>
    %66 = tpu.concatenate %64, %65 in 0 : vector<8x32xf32>, vector<8x32xf32> -> vector<16x32xf32>
    %c2_46 = arith.constant 2 : index
    %c0_47 = arith.constant 0 : index
    %c0_48 = arith.constant 0 : index
    %67 = vector.load %arg4[%c2_46, %c0_47, %c0_48] : memref<5x32x128xf32, #tpu.memory_space<vmem>>, vector<1x32x128xf32>
    %68 = vector.shape_cast %67 : vector<1x32x128xf32> to vector<32x128xf32>
    %cst_49 = arith.constant dense<0.000000e+00> : vector<16x128xf32>
    %69 = tpu.matmul %66, %68, %cst_49 {dimension_numbers = #tpu.dot_dimension_numbers<[1], [0], [0], [1], [0, 0, 1, 1], [], []>} : vector<16x32xf32>, vector<32x128xf32>, vector<16x128xf32> -> vector<16x128xf32>
    %70 = arith.addf %63, %69 : vector<16x128xf32>
    %c3 = arith.constant 3 : index
    %c0_50 = arith.constant 0 : index
    %71 = tpu.strided_load %arg13[%c3, %c0_50] {strides = array<i32: 2, 1>} : memref<40x32xf32, #tpu.memory_space<vmem>>, vector<8x32xf32>
    %c23 = arith.constant 23 : index
    %c0_51 = arith.constant 0 : index
    %72 = tpu.strided_load %arg13[%c23, %c0_51] {strides = array<i32: 2, 1>} : memref<40x32xf32, #tpu.memory_space<vmem>>, vector<8x32xf32>
    %73 = tpu.concatenate %71, %72 in 0 : vector<8x32xf32>, vector<8x32xf32> -> vector<16x32xf32>
    %c3_52 = arith.constant 3 : index
    %c0_53 = arith.constant 0 : index
    %c0_54 = arith.constant 0 : index
    %74 = vector.load %arg4[%c3_52, %c0_53, %c0_54] : memref<5x32x128xf32, #tpu.memory_space<vmem>>, vector<1x32x128xf32>
    %75 = vector.shape_cast %74 : vector<1x32x128xf32> to vector<32x128xf32>
    %cst_55 = arith.constant dense<0.000000e+00> : vector<16x128xf32>
    %76 = tpu.matmul %73, %75, %cst_55 {dimension_numbers = #tpu.dot_dimension_numbers<[1], [0], [0], [1], [0, 0, 1, 1], [], []>} : vector<16x32xf32>, vector<32x128xf32>, vector<16x128xf32> -> vector<16x128xf32>
    %77 = arith.addf %70, %76 : vector<16x128xf32>
    %c4 = arith.constant 4 : index
    %c0_56 = arith.constant 0 : index
    %78 = tpu.strided_load %arg13[%c4, %c0_56] {strides = array<i32: 2, 1>} : memref<40x32xf32, #tpu.memory_space<vmem>>, vector<8x32xf32>
    %c24 = arith.constant 24 : index
    %c0_57 = arith.constant 0 : index
    %79 = tpu.strided_load %arg13[%c24, %c0_57] {strides = array<i32: 2, 1>} : memref<40x32xf32, #tpu.memory_space<vmem>>, vector<8x32xf32>
    %80 = tpu.concatenate %78, %79 in 0 : vector<8x32xf32>, vector<8x32xf32> -> vector<16x32xf32>
    %c4_58 = arith.constant 4 : index
    %c0_59 = arith.constant 0 : index
    %c0_60 = arith.constant 0 : index
    %81 = vector.load %arg4[%c4_58, %c0_59, %c0_60] : memref<5x32x128xf32, #tpu.memory_space<vmem>>, vector<1x32x128xf32>
    %82 = vector.shape_cast %81 : vector<1x32x128xf32> to vector<32x128xf32>
    %cst_61 = arith.constant dense<0.000000e+00> : vector<16x128xf32>
    %83 = tpu.matmul %80, %82, %cst_61 {dimension_numbers = #tpu.dot_dimension_numbers<[1], [0], [0], [1], [0, 0, 1, 1], [], []>} : vector<16x32xf32>, vector<32x128xf32>, vector<16x128xf32> -> vector<16x128xf32>
    %84 = arith.addf %77, %83 : vector<16x128xf32>
    %c0_62 = arith.constant 0 : index
    %c0_63 = arith.constant 0 : index
    %85 = vector.load %arg5[%c0_62, %c0_63] : memref<1x128xf32, #tpu.memory_space<vmem>>, vector<1x128xf32>
    %86 = vector.broadcast %85 : vector<1x128xf32> to vector<16x128xf32>
    %87 = arith.addf %84, %86 : vector<16x128xf32>
    %cst_64 = arith.constant 0.000000e+00 : f32
    %88 = vector.broadcast %cst_64 : f32 to vector<16x128xf32>
    %89 = arith.maximumf %87, %88 : vector<16x128xf32>
    %90 = vector.extract_strided_slice %89 {offsets = [0, 0], sizes = [8, 128], strides = [1, 1]} : vector<16x128xf32> to vector<8x128xf32>
    %c3_65 = arith.constant 3 : index
    %c0_66 = arith.constant 0 : index
    %91 = vector.load %arg14[%c3_65, %c0_66] : memref<28x128xf32, #tpu.memory_space<vmem>>, vector<8x128xf32>
    tpu.vector_store %arg14[%c3_65, %c0_66], %90 {strides = array<i32>} : memref<28x128xf32, #tpu.memory_space<vmem>>, vector<8x128xf32>,
    %92 = vector.extract_strided_slice %90 {offsets = [0, 0], sizes = [1, 128], strides = [1, 1]} : vector<8x128xf32> to vector<1x128xf32>
    %93 = vector.shape_cast %92 : vector<1x128xf32> to vector<1x128xf32>
    %94 = vector.broadcast %93 : vector<1x128xf32> to vector<3x128xf32>
    %c0_67 = arith.constant 0 : index
    %c0_68 = arith.constant 0 : index
    %95 = vector.load %arg14[%c0_67, %c0_68] : memref<28x128xf32, #tpu.memory_space<vmem>>, vector<3x128xf32>
    tpu.vector_store %arg14[%c0_67, %c0_68], %94 {strides = array<i32>} : memref<28x128xf32, #tpu.memory_space<vmem>>, vector<3x128xf32>,
    %96 = vector.extract_strided_slice %90 {offsets = [7, 0], sizes = [1, 128], strides = [1, 1]} : vector<8x128xf32> to vector<1x128xf32>
    %97 = vector.shape_cast %96 : vector<1x128xf32> to vector<1x128xf32>
    %98 = vector.broadcast %97 : vector<1x128xf32> to vector<3x128xf32>
    %c11 = arith.constant 11 : index
    %c0_69 = arith.constant 0 : index
    %99 = vector.load %arg14[%c11, %c0_69] : memref<28x128xf32, #tpu.memory_space<vmem>>, vector<3x128xf32>
    tpu.vector_store %arg14[%c11, %c0_69], %98 {strides = array<i32>} : memref<28x128xf32, #tpu.memory_space<vmem>>, vector<3x128xf32>,
    %100 = vector.extract_strided_slice %89 {offsets = [8, 0], sizes = [8, 128], strides = [1, 1]} : vector<16x128xf32> to vector<8x128xf32>
    %c17 = arith.constant 17 : index
    %c0_70 = arith.constant 0 : index
    %101 = vector.load %arg14[%c17, %c0_70] : memref<28x128xf32, #tpu.memory_space<vmem>>, vector<8x128xf32>
    tpu.vector_store %arg14[%c17, %c0_70], %100 {strides = array<i32>} : memref<28x128xf32, #tpu.memory_space<vmem>>, vector<8x128xf32>,
    %102 = vector.extract_strided_slice %100 {offsets = [0, 0], sizes = [1, 128], strides = [1, 1]} : vector<8x128xf32> to vector<1x128xf32>
    %103 = vector.shape_cast %102 : vector<1x128xf32> to vector<1x128xf32>
    %104 = vector.broadcast %103 : vector<1x128xf32> to vector<3x128xf32>
    %c14 = arith.constant 14 : index
    %c0_71 = arith.constant 0 : index
    %105 = vector.load %arg14[%c14, %c0_71] : memref<28x128xf32, #tpu.memory_space<vmem>>, vector<3x128xf32>
    tpu.vector_store %arg14[%c14, %c0_71], %104 {strides = array<i32>} : memref<28x128xf32, #tpu.memory_space<vmem>>, vector<3x128xf32>,
    %106 = vector.extract_strided_slice %100 {offsets = [7, 0], sizes = [1, 128], strides = [1, 1]} : vector<8x128xf32> to vector<1x128xf32>
    %107 = vector.shape_cast %106 : vector<1x128xf32> to vector<1x128xf32>
    %108 = vector.broadcast %107 : vector<1x128xf32> to vector<3x128xf32>
    %c25 = arith.constant 25 : index
    %c0_72 = arith.constant 0 : index
    %109 = vector.load %arg14[%c25, %c0_72] : memref<28x128xf32, #tpu.memory_space<vmem>>, vector<3x128xf32>
    tpu.vector_store %arg14[%c25, %c0_72], %108 {strides = array<i32>} : memref<28x128xf32, #tpu.memory_space<vmem>>, vector<3x128xf32>,
    %c0_73 = arith.constant 0 : index
    %c0_74 = arith.constant 0 : index
    %110 = tpu.strided_load %arg14[%c0_73, %c0_74] {strides = array<i32: 3, 1>} : memref<28x128xf32, #tpu.memory_space<vmem>>, vector<3x128xf32>
    %c14_75 = arith.constant 14 : index
    %c0_76 = arith.constant 0 : index
    %111 = tpu.strided_load %arg14[%c14_75, %c0_76] {strides = array<i32: 3, 1>} : memref<28x128xf32, #tpu.memory_space<vmem>>, vector<3x128xf32>
    %112 = tpu.concatenate %110, %111 in 0 : vector<3x128xf32>, vector<3x128xf32> -> vector<6x128xf32>
    %c0_77 = arith.constant 0 : index
    %c0_78 = arith.constant 0 : index
    %c0_79 = arith.constant 0 : index
    %113 = vector.load %arg6[%c0_77, %c0_78, %c0_79] : memref<7x128x524xf32, #tpu.memory_space<vmem>>, vector<1x128x524xf32>
    %114 = vector.shape_cast %113 : vector<1x128x524xf32> to vector<128x524xf32>
    %cst_80 = arith.constant dense<0.000000e+00> : vector<6x524xf32>
    %115 = tpu.matmul %112, %114, %cst_80 {dimension_numbers = #tpu.dot_dimension_numbers<[1], [0], [0], [1], [0, 0, 1, 1], [], []>} : vector<6x128xf32>, vector<128x524xf32>, vector<6x524xf32> -> vector<6x524xf32>
    %c1_81 = arith.constant 1 : index
    %c0_82 = arith.constant 0 : index
    %116 = tpu.strided_load %arg14[%c1_81, %c0_82] {strides = array<i32: 3, 1>} : memref<28x128xf32, #tpu.memory_space<vmem>>, vector<3x128xf32>
    %c15 = arith.constant 15 : index
    %c0_83 = arith.constant 0 : index
    %117 = tpu.strided_load %arg14[%c15, %c0_83] {strides = array<i32: 3, 1>} : memref<28x128xf32, #tpu.memory_space<vmem>>, vector<3x128xf32>
    %118 = tpu.concatenate %116, %117 in 0 : vector<3x128xf32>, vector<3x128xf32> -> vector<6x128xf32>
    %c1_84 = arith.constant 1 : index
    %c0_85 = arith.constant 0 : index
    %c0_86 = arith.constant 0 : index
    %119 = vector.load %arg6[%c1_84, %c0_85, %c0_86] : memref<7x128x524xf32, #tpu.memory_space<vmem>>, vector<1x128x524xf32>
    %120 = vector.shape_cast %119 : vector<1x128x524xf32> to vector<128x524xf32>
    %cst_87 = arith.constant dense<0.000000e+00> : vector<6x524xf32>
    %121 = tpu.matmul %118, %120, %cst_87 {dimension_numbers = #tpu.dot_dimension_numbers<[1], [0], [0], [1], [0, 0, 1, 1], [], []>} : vector<6x128xf32>, vector<128x524xf32>, vector<6x524xf32> -> vector<6x524xf32>
    %122 = arith.addf %115, %121 : vector<6x524xf32>
    %c2_88 = arith.constant 2 : index
    %c0_89 = arith.constant 0 : index
    %123 = tpu.strided_load %arg14[%c2_88, %c0_89] {strides = array<i32: 3, 1>} : memref<28x128xf32, #tpu.memory_space<vmem>>, vector<3x128xf32>
    %c16 = arith.constant 16 : index
    %c0_90 = arith.constant 0 : index
    %124 = tpu.strided_load %arg14[%c16, %c0_90] {strides = array<i32: 3, 1>} : memref<28x128xf32, #tpu.memory_space<vmem>>, vector<3x128xf32>
    %125 = tpu.concatenate %123, %124 in 0 : vector<3x128xf32>, vector<3x128xf32> -> vector<6x128xf32>
    %c2_91 = arith.constant 2 : index
    %c0_92 = arith.constant 0 : index
    %c0_93 = arith.constant 0 : index
    %126 = vector.load %arg6[%c2_91, %c0_92, %c0_93] : memref<7x128x524xf32, #tpu.memory_space<vmem>>, vector<1x128x524xf32>
    %127 = vector.shape_cast %126 : vector<1x128x524xf32> to vector<128x524xf32>
    %cst_94 = arith.constant dense<0.000000e+00> : vector<6x524xf32>
    %128 = tpu.matmul %125, %127, %cst_94 {dimension_numbers = #tpu.dot_dimension_numbers<[1], [0], [0], [1], [0, 0, 1, 1], [], []>} : vector<6x128xf32>, vector<128x524xf32>, vector<6x524xf32> -> vector<6x524xf32>
    %129 = arith.addf %122, %128 : vector<6x524xf32>
    %c3_95 = arith.constant 3 : index
    %c0_96 = arith.constant 0 : index
    %130 = tpu.strided_load %arg14[%c3_95, %c0_96] {strides = array<i32: 3, 1>} : memref<28x128xf32, #tpu.memory_space<vmem>>, vector<3x128xf32>
    %c17_97 = arith.constant 17 : index
    %c0_98 = arith.constant 0 : index
    %131 = tpu.strided_load %arg14[%c17_97, %c0_98] {strides = array<i32: 3, 1>} : memref<28x128xf32, #tpu.memory_space<vmem>>, vector<3x128xf32>
    %132 = tpu.concatenate %130, %131 in 0 : vector<3x128xf32>, vector<3x128xf32> -> vector<6x128xf32>
    %c3_99 = arith.constant 3 : index
    %c0_100 = arith.constant 0 : index
    %c0_101 = arith.constant 0 : index
    %133 = vector.load %arg6[%c3_99, %c0_100, %c0_101] : memref<7x128x524xf32, #tpu.memory_space<vmem>>, vector<1x128x524xf32>
    %134 = vector.shape_cast %133 : vector<1x128x524xf32> to vector<128x524xf32>
    %cst_102 = arith.constant dense<0.000000e+00> : vector<6x524xf32>
    %135 = tpu.matmul %132, %134, %cst_102 {dimension_numbers = #tpu.dot_dimension_numbers<[1], [0], [0], [1], [0, 0, 1, 1], [], []>} : vector<6x128xf32>, vector<128x524xf32>, vector<6x524xf32> -> vector<6x524xf32>
    %136 = arith.addf %129, %135 : vector<6x524xf32>
    %c4_103 = arith.constant 4 : index
    %c0_104 = arith.constant 0 : index
    %137 = tpu.strided_load %arg14[%c4_103, %c0_104] {strides = array<i32: 3, 1>} : memref<28x128xf32, #tpu.memory_space<vmem>>, vector<3x128xf32>
    %c18_105 = arith.constant 18 : index
    %c0_106 = arith.constant 0 : index
    %138 = tpu.strided_load %arg14[%c18_105, %c0_106] {strides = array<i32: 3, 1>} : memref<28x128xf32, #tpu.memory_space<vmem>>, vector<3x128xf32>
    %139 = tpu.concatenate %137, %138 in 0 : vector<3x128xf32>, vector<3x128xf32> -> vector<6x128xf32>
    %c4_107 = arith.constant 4 : index
    %c0_108 = arith.constant 0 : index
    %c0_109 = arith.constant 0 : index
    %140 = vector.load %arg6[%c4_107, %c0_108, %c0_109] : memref<7x128x524xf32, #tpu.memory_space<vmem>>, vector<1x128x524xf32>
    %141 = vector.shape_cast %140 : vector<1x128x524xf32> to vector<128x524xf32>
    %cst_110 = arith.constant dense<0.000000e+00> : vector<6x524xf32>
    %142 = tpu.matmul %139, %141, %cst_110 {dimension_numbers = #tpu.dot_dimension_numbers<[1], [0], [0], [1], [0, 0, 1, 1], [], []>} : vector<6x128xf32>, vector<128x524xf32>, vector<6x524xf32> -> vector<6x524xf32>
    %143 = arith.addf %136, %142 : vector<6x524xf32>
    %c5 = arith.constant 5 : index
    %c0_111 = arith.constant 0 : index
    %144 = tpu.strided_load %arg14[%c5, %c0_111] {strides = array<i32: 3, 1>} : memref<28x128xf32, #tpu.memory_space<vmem>>, vector<3x128xf32>
    %c19_112 = arith.constant 19 : index
    %c0_113 = arith.constant 0 : index
    %145 = tpu.strided_load %arg14[%c19_112, %c0_113] {strides = array<i32: 3, 1>} : memref<28x128xf32, #tpu.memory_space<vmem>>, vector<3x128xf32>
    %146 = tpu.concatenate %144, %145 in 0 : vector<3x128xf32>, vector<3x128xf32> -> vector<6x128xf32>
    %c5_114 = arith.constant 5 : index
    %c0_115 = arith.constant 0 : index
    %c0_116 = arith.constant 0 : index
    %147 = vector.load %arg6[%c5_114, %c0_115, %c0_116] : memref<7x128x524xf32, #tpu.memory_space<vmem>>, vector<1x128x524xf32>
    %148 = vector.shape_cast %147 : vector<1x128x524xf32> to vector<128x524xf32>
    %cst_117 = arith.constant dense<0.000000e+00> : vector<6x524xf32>
    %149 = tpu.matmul %146, %148, %cst_117 {dimension_numbers = #tpu.dot_dimension_numbers<[1], [0], [0], [1], [0, 0, 1, 1], [], []>} : vector<6x128xf32>, vector<128x524xf32>, vector<6x524xf32> -> vector<6x524xf32>
    %150 = arith.addf %143, %149 : vector<6x524xf32>
    %c6 = arith.constant 6 : index
    %c0_118 = arith.constant 0 : index
    %151 = tpu.strided_load %arg14[%c6, %c0_118] {strides = array<i32: 3, 1>} : memref<28x128xf32, #tpu.memory_space<vmem>>, vector<3x128xf32>
    %c20_119 = arith.constant 20 : index
    %c0_120 = arith.constant 0 : index
    %152 = tpu.strided_load %arg14[%c20_119, %c0_120] {strides = array<i32: 3, 1>} : memref<28x128xf32, #tpu.memory_space<vmem>>, vector<3x128xf32>
    %153 = tpu.concatenate %151, %152 in 0 : vector<3x128xf32>, vector<3x128xf32> -> vector<6x128xf32>
    %c6_121 = arith.constant 6 : index
    %c0_122 = arith.constant 0 : index
    %c0_123 = arith.constant 0 : index
    %154 = vector.load %arg6[%c6_121, %c0_122, %c0_123] : memref<7x128x524xf32, #tpu.memory_space<vmem>>, vector<1x128x524xf32>
    %155 = vector.shape_cast %154 : vector<1x128x524xf32> to vector<128x524xf32>
    %cst_124 = arith.constant dense<0.000000e+00> : vector<6x524xf32>
    %156 = tpu.matmul %153, %155, %cst_124 {dimension_numbers = #tpu.dot_dimension_numbers<[1], [0], [0], [1], [0, 0, 1, 1], [], []>} : vector<6x128xf32>, vector<128x524xf32>, vector<6x524xf32> -> vector<6x524xf32>
    %157 = arith.addf %150, %156 : vector<6x524xf32>
    %c0_125 = arith.constant 0 : index
    %c0_126 = arith.constant 0 : index
    %158 = vector.load %arg7[%c0_125, %c0_126] : memref<1x524xf32, #tpu.memory_space<vmem>>, vector<1x524xf32>
    %159 = vector.broadcast %158 : vector<1x524xf32> to vector<6x524xf32>
    %160 = arith.addf %157, %159 : vector<6x524xf32>
    %cst_127 = arith.constant 0.000000e+00 : f32
    %161 = vector.broadcast %cst_127 : f32 to vector<6x524xf32>
    %162 = arith.maximumf %160, %161 : vector<6x524xf32>
    %163 = vector.extract_strided_slice %162 {offsets = [0, 0], sizes = [1, 524], strides = [1, 1]} : vector<6x524xf32> to vector<1x524xf32>
    %164 = vector.extract_strided_slice %162 {offsets = [3, 0], sizes = [1, 524], strides = [1, 1]} : vector<6x524xf32> to vector<1x524xf32>
    %165 = tpu.concatenate %163, %164 in 0 : vector<1x524xf32>, vector<1x524xf32> -> vector<2x524xf32>
    %166 = arith.truncf %165 : vector<2x524xf32> to vector<2x524xbf16>
    %167 = vector.extract_strided_slice %162 {offsets = [1, 0], sizes = [1, 524], strides = [1, 1]} : vector<6x524xf32> to vector<1x524xf32>
    %168 = vector.extract_strided_slice %162 {offsets = [4, 0], sizes = [1, 524], strides = [1, 1]} : vector<6x524xf32> to vector<1x524xf32>
    %169 = tpu.concatenate %167, %168 in 0 : vector<1x524xf32>, vector<1x524xf32> -> vector<2x524xf32>
    %170 = arith.truncf %169 : vector<2x524xf32> to vector<2x524xbf16>
    %171 = vector.extract_strided_slice %162 {offsets = [2, 0], sizes = [1, 524], strides = [1, 1]} : vector<6x524xf32> to vector<1x524xf32>
    %172 = vector.extract_strided_slice %162 {offsets = [5, 0], sizes = [1, 524], strides = [1, 1]} : vector<6x524xf32> to vector<1x524xf32>
    %173 = tpu.concatenate %171, %172 in 0 : vector<1x524xf32>, vector<1x524xf32> -> vector<2x524xf32>
    %174 = arith.truncf %173 : vector<2x524xf32> to vector<2x524xbf16>
    %c0_128 = arith.constant 0 : index
    %c0_129 = arith.constant 0 : index
    %c0_130 = arith.constant 0 : index
    %c0_131 = arith.constant 0 : index
    %175 = vector.load %arg8[%c0_128, %c0_129, %c0_130, %c0_131] : memref<1x3x524x1024xbf16, #tpu.memory_space<vmem>>, vector<1x1x524x1024xbf16>
    %176 = vector.shape_cast %175 : vector<1x1x524x1024xbf16> to vector<524x1024xbf16>
    %cst_132 = arith.constant dense<0.000000e+00> : vector<2x1024xf32>
    %177 = tpu.matmul %166, %176, %cst_132 {dimension_numbers = #tpu.dot_dimension_numbers<[1], [0], [0], [1], [0, 0, 1, 1], [], []>} : vector<2x524xbf16>, vector<524x1024xbf16>, vector<2x1024xf32> -> vector<2x1024xf32>
    %c0_133 = arith.constant 0 : index
    %c1_134 = arith.constant 1 : index
    %c0_135 = arith.constant 0 : index
    %c0_136 = arith.constant 0 : index
    %178 = vector.load %arg8[%c0_133, %c1_134, %c0_135, %c0_136] : memref<1x3x524x1024xbf16, #tpu.memory_space<vmem>>, vector<1x1x524x1024xbf16>
    %179 = vector.shape_cast %178 : vector<1x1x524x1024xbf16> to vector<524x1024xbf16>
    %cst_137 = arith.constant dense<0.000000e+00> : vector<2x1024xf32>
    %180 = tpu.matmul %170, %179, %cst_137 {dimension_numbers = #tpu.dot_dimension_numbers<[1], [0], [0], [1], [0, 0, 1, 1], [], []>} : vector<2x524xbf16>, vector<524x1024xbf16>, vector<2x1024xf32> -> vector<2x1024xf32>
    %181 = arith.addf %177, %180 : vector<2x1024xf32>
    %c0_138 = arith.constant 0 : index
    %c2_139 = arith.constant 2 : index
    %c0_140 = arith.constant 0 : index
    %c0_141 = arith.constant 0 : index
    %182 = vector.load %arg8[%c0_138, %c2_139, %c0_140, %c0_141] : memref<1x3x524x1024xbf16, #tpu.memory_space<vmem>>, vector<1x1x524x1024xbf16>
    %183 = vector.shape_cast %182 : vector<1x1x524x1024xbf16> to vector<524x1024xbf16>
    %cst_142 = arith.constant dense<0.000000e+00> : vector<2x1024xf32>
    %184 = tpu.matmul %174, %183, %cst_142 {dimension_numbers = #tpu.dot_dimension_numbers<[1], [0], [0], [1], [0, 0, 1, 1], [], []>} : vector<2x524xbf16>, vector<524x1024xbf16>, vector<2x1024xf32> -> vector<2x1024xf32>
    %185 = arith.addf %181, %184 : vector<2x1024xf32>
    %c0_143 = arith.constant 0 : index
    %c0_144 = arith.constant 0 : index
    %c0_145 = arith.constant 0 : index
    %186 = vector.load %arg9[%c0_143, %c0_144, %c0_145] : memref<1x1x1024xf32, #tpu.memory_space<vmem>>, vector<1x1x1024xf32>
    %187 = vector.shape_cast %186 : vector<1x1x1024xf32> to vector<1x1024xf32>
    %188 = vector.broadcast %187 : vector<1x1024xf32> to vector<2x1024xf32>
    %189 = arith.addf %185, %188 : vector<2x1024xf32>
    %cst_146 = arith.constant 0.000000e+00 : f32
    %190 = vector.broadcast %cst_146 : f32 to vector<2x1024xf32>
    %191 = arith.maximumf %189, %190 : vector<2x1024xf32>
    %c0_147 = arith.constant 0 : index
    %c0_148 = arith.constant 0 : index
    %c0_149 = arith.constant 0 : index
    %192 = vector.load %arg10[%c0_147, %c0_148, %c0_149] : memref<1x1x1024xf32, #tpu.memory_space<vmem>>, vector<1x1x1024xf32>
    %193 = vector.shape_cast %192 : vector<1x1x1024xf32> to vector<1x1024xf32>
    %194 = vector.broadcast %193 : vector<1x1024xf32> to vector<2x1024xf32>
    %195 = arith.mulf %191, %194 : vector<2x1024xf32>
    %cst_150 = arith.constant dense<0.000000e+00> : vector<2xf32>
    %196 = vector.multi_reduction <add>, %195, %cst_150 [1] : vector<2x1024xf32> to vector<2xf32>
    %197 = vector.shape_cast %196 : vector<2xf32> to vector<2x1xf32>
    %c0_151 = arith.constant 0 : index
    %c0_152 = arith.constant 0 : index
    %c0_153 = arith.constant 0 : index
    %198 = vector.load %arg11[%c0_151, %c0_152, %c0_153] : memref<1x1x1xf32, #tpu.memory_space<vmem>>, vector<1x1x1xf32>
    %199 = vector.shape_cast %198 : vector<1x1x1xf32> to vector<1x1xf32>
    %200 = vector.broadcast %199 : vector<1x1xf32> to vector<2x1xf32>
    %201 = arith.addf %197, %200 : vector<2x1xf32>
    %c0_154 = arith.constant 0 : index
    %c0_155 = arith.constant 0 : index
    %c0_156 = arith.constant 0 : index
    %202 = vector.load %arg12[%c0_154, %c0_155, %c0_156] : memref<1x2x1xf32, #tpu.memory_space<vmem>>, vector<1x2x1xf32>
    %203 = vector.shape_cast %202 : vector<1x2x1xf32> to vector<2x1xf32>
    %204 = vector.shape_cast %201 : vector<2x1xf32> to vector<1x2x1xf32>
    tpu.vector_store %arg12[%c0_154, %c0_155, %c0_156], %204 {strides = array<i32>} : memref<1x2x1xf32, #tpu.memory_space<vmem>>, vector<1x2x1xf32>,
    return
  }
  func.func @transform_0(%arg0: i32) -> (i32, i32) {
    %c0_i32 = arith.constant 0 : i32
    %c0_i32_0 = arith.constant 0 : i32
    %c0_i32_1 = arith.constant 0 : i32
    return %c0_i32, %c0_i32_0 : i32, i32
  }
  func.func @transform_1(%arg0: i32) -> (i32, i32, i32) {
    %c0_i32 = arith.constant 0 : i32
    %c0_i32_0 = arith.constant 0 : i32
    %c0_i32_1 = arith.constant 0 : i32
    %c0_i32_2 = arith.constant 0 : i32
    return %c0_i32, %c0_i32_0, %c0_i32_1 : i32, i32, i32
  }
  func.func @transform_2(%arg0: i32) -> (i32, i32) {
    %c0_i32 = arith.constant 0 : i32
    %c0_i32_0 = arith.constant 0 : i32
    %c0_i32_1 = arith.constant 0 : i32
    return %c0_i32, %c0_i32_0 : i32, i32
  }
  func.func @transform_3(%arg0: i32) -> (i32, i32, i32) {
    %c0_i32 = arith.constant 0 : i32
    %c0_i32_0 = arith.constant 0 : i32
    %c0_i32_1 = arith.constant 0 : i32
    %c0_i32_2 = arith.constant 0 : i32
    return %c0_i32, %c0_i32_0, %c0_i32_1 : i32, i32, i32
  }
  func.func @transform_4(%arg0: i32) -> (i32, i32) {
    %c0_i32 = arith.constant 0 : i32
    %c0_i32_0 = arith.constant 0 : i32
    %c0_i32_1 = arith.constant 0 : i32
    return %c0_i32, %c0_i32_0 : i32, i32
  }
  func.func @transform_5(%arg0: i32) -> (i32, i32, i32) {
    %c0_i32 = arith.constant 0 : i32
    %c0_i32_0 = arith.constant 0 : i32
    %c0_i32_1 = arith.constant 0 : i32
    %c0_i32_2 = arith.constant 0 : i32
    return %c0_i32, %c0_i32_0, %c0_i32_1 : i32, i32, i32
  }
  func.func @transform_6(%arg0: i32) -> (i32, i32) {
    %c0_i32 = arith.constant 0 : i32
    %c0_i32_0 = arith.constant 0 : i32
    %c0_i32_1 = arith.constant 0 : i32
    return %c0_i32, %c0_i32_0 : i32, i32
  }
  func.func @transform_7(%arg0: i32) -> (i32, i32, i32, i32) {
    %c0_i32 = arith.constant 0 : i32
    %c0_i32_0 = arith.constant 0 : i32
    %c0_i32_1 = arith.constant 0 : i32
    %c0_i32_2 = arith.constant 0 : i32
    return %arg0, %c0_i32, %c0_i32_0, %c0_i32_1 : i32, i32, i32, i32
  }
  func.func @transform_8(%arg0: i32) -> (i32, i32, i32) {
    %c0_i32 = arith.constant 0 : i32
    %c0_i32_0 = arith.constant 0 : i32
    %c0_i32_1 = arith.constant 0 : i32
    return %arg0, %c0_i32, %c0_i32_0 : i32, i32, i32
  }
  func.func @transform_9(%arg0: i32) -> (i32, i32, i32) {
    %c0_i32 = arith.constant 0 : i32
    %c0_i32_0 = arith.constant 0 : i32
    %c0_i32_1 = arith.constant 0 : i32
    return %arg0, %c0_i32, %c0_i32_0 : i32, i32, i32
  }
  func.func @transform_10(%arg0: i32) -> (i32, i32, i32) {
    %c0_i32 = arith.constant 0 : i32
    %c0_i32_0 = arith.constant 0 : i32
    %c0_i32_1 = arith.constant 0 : i32
    return %arg0, %c0_i32, %c0_i32_0 : i32, i32, i32
  }
  func.func @transform_11(%arg0: i32) -> (i32, i32, i32) {
    %c0_i32 = arith.constant 0 : i32
    %c0_i32_0 = arith.constant 0 : i32
    %c0_i32_1 = arith.constant 0 : i32
    return %arg0, %c0_i32, %c0_i32_0 : i32, i32, i32
  }
}

</mosaic_0001>

<bundles_post_ra>
// kernel: tpu_custom_call.1
= control target key start
LH: loop header
LB: loop body
LE: loop exit
PB: predicated region body
PF: predicated region fallthrough
CT: control target
= control target key end

     0   :  { %s12933_s17 = smov 0   ;;  %s16189_s0 = inlined_call_operand.vmem [shape: f32[36,1], index: 0, kind: input, shape index: {}]   ;;  %s16190_s1 = inlined_call_operand.vmem [shape: f32[3,1,32], index: 1, kind: input, shape index: {}]   ;;  %s16191_s2 = inlined_call_operand.vmem [shape: f32[1,32], index: 2, kind: input, shape index: {}]   ;;  %s16192_s3 = inlined_call_operand.vmem [shape: f32[5,32,128], index: 3, kind: input, shape index: {}]   ;;  %s16193_s4 = inlined_call_operand.vmem [shape: f32[1,128], index: 4, kind: input, shape index: {}]   ;;  %s16194_s5 = inlined_call_operand.vmem [shape: f32[7,128,524], index: 5, kind: input, shape index: {}]   ;;  %s16195_s6 = inlined_call_operand.vmem [shape: f32[1,524], index: 6, kind: input, shape index: {}]   ;;  %s16196_s7 = inlined_call_operand.vmem [shape: bf16[2,3,524,1024], index: 7, kind: input, shape index: {}]   ;;  %s16197_s8 = inlined_call_operand.vmem [shape: f32[2,1,1024], index: 8, kind: input, shape index: {}]   ;;  %s16198_s9 = inlined_call_operand.vmem [shape: f32[2,1,1024], index: 9, kind: input, shape index: {}]   ;;  %s16199_s10 = inlined_call_operand.vmem [shape: f32[2,1,1], index: 10, kind: input, shape index: {}]   ;;  %s16200_s11 = inlined_call_operand.vmem [shape: f32[2,2,1], index: 11, kind: output, shape index: {}]  }
   0x1 LB: > { %s9840_s18 = sadd.s32 4294967295, %s12867_s17   ;;  %p9844_p0 = scmp.ge.s32.totalorder %s12867_s17, 1  ;;  %s12867_s17 = sphi %s12933_s17, %s21_s17  }
   0x2   : > { %p363_p1 = scmp.lt.s32.totalorder %s12867_s17, 3 }
   0x4   : > { %p364_p2 = pnand %p9844_p0, %p363_p1 }
   0x5   : > { %v436_v0 = vld [vmem:[%s16189_s0 + $0x12] sm:$0xff] (!%p364_p2)  ;;  %v434_v1 = vld [vmem:[%s16189_s0] sm:$0xff] (!%p364_p2)  ;;  %v12869_v2 = vmov (!%p364_p2), 0   ;;  %v470_v5 = vld [vmem:[%s16189_s0 + $0x9] sm:$0xff] (!%p364_p2)  ;;  %v567_v54 = vlaneseq (!%p364_p2)  ;;  %vm564_vm0 = vcmask (!%p364_p2), 261120   ;;  %vm571_vm1 = vcmask (!%p364_p2), 254976  }
   0x6   : > { %367 = sbr.rel (%p364_p2) target bundleno = 2252 (0x8cc), region = 64  ;;  %12860 = vset.pattern.permute.xlu1 (!%p364_p2), %v12869_v2  ;;  %12859 = vset.pattern.permute.xlu0 (!%p364_p2), %v12869_v2  ;;  %v471_v3 = vld [vmem:[%s16189_s0 + $0x13] sm:$0xff] (!%p364_p2)  ;;  %v469_v4 = vld [vmem:[%s16189_s0 + $0x1] sm:$0xff] (!%p364_p2)  ;;  %v510_v12 = vld [vmem:[%s16189_s0 + $0xa] sm:$0xff] (!%p364_p2)  ;;  %vm12872_vm2 = vmmov (!%p364_p2), 0   ;;  %vm1083_vm3 = vcmask (!%p364_p2), 1042432  }
   0x7   : > { %451 = vperm.xlu1 (!%p364_p2), %12860, %v436_v0   ;;  %441 = vperm.xlu0 (!%p364_p2), %12859, %v434_v1   ;;  %v435_v6 = vld [vmem:[%s16189_s0 + $0x8] sm:$0xff] (!%p364_p2)  ;;  %v437_v7 = vld [vmem:[%s16189_s0 + $0x1a] sm:$0xff] (!%p364_p2)  ;;  %v9857_v16 = vld [vmem:[%s16192_s3 + $0x30] sm:$0xff] (!%p364_p2)  ;;  %v13057_v59 = vshrl.u32 (!%p364_p2), %v567_v54, 7  ;;  %p413_p3 = scmp.lt.s32.totalorder (!%p364_p2), %s9840_s18, 1  ;;  %vm3260_vm4 = vcmask (!%p364_p2), 1040384  }
   0x8   : > { %v509_v8 = vld [vmem:[%s16189_s0 + $0x2] sm:$0xff] (!%p364_p2)  ;;  %v511_v9 = vld [vmem:[%s16189_s0 + $0x14] sm:$0xff] (!%p364_p2)  ;;  %v9851_v50 = vld [vmem:[%s16190_s1 + $0x1] ss:$0 sm:$0xff] (!%p364_p2)  ;;  %vm5166_vm5 = vcmask (!%p364_p2), 1045504   ;;  %vm5162_vm6 = vcmask (!%p364_p2), 97280  }
   0x9   : > { %v472_v10 = vld [vmem:[%s16189_s0 + $0x1b] sm:$0xff] (!%p364_p2)  ;;  %v9856_v14 = vld [vmem:[%s16192_s3 + $0x28] sm:$0xff] (!%p364_p2)  ;;  %v9888_v23 = vld [vmem:[%s16194_s5 + $0x2b0] sm:$0xff] (!%p364_p2)  ;;  %vm9726_vm7 = vcmask (!%p364_p2), 1041408   ;;  %vm9752_vm8 = vcmask (!%p364_p2), 1024  }
   0xa   : > { %v512_v11 = vld [vmem:[%s16189_s0 + $0x1c] sm:$0xff] (!%p364_p2)  ;;  %v594_v20 = vld [vmem:[%s16192_s3 + $0x8] sm:$0xff] (!%p364_p2)  ;;  %v9892_v30 = vld [vmem:[%s16194_s5 + $0x2d0] sm:$0xff] (!%p364_p2) }
   0xb   : > { %487 = vperm.xlu1 (!%p364_p2), %12860, %v471_v3   ;;  %477 = vperm.xlu0 (!%p364_p2), %12859, %v469_v4   ;;  %v9855_v13 = vld [vmem:[%s16192_s3 + $0x20] sm:$0xff] (!%p364_p2)  ;;  %v9858_v17 = vld [vmem:[%s16192_s3 + $0x38] sm:$0xff] (!%p364_p2)  ;;  %v9883_v22 = vld [vmem:[%s16194_s5 + $0x288] sm:$0xff] (!%p364_p2) }
   0xc   : > { %v12158_v15 = vpack.c.bf16 (!%p364_p2), %v9856_v14, %v9855_v13  ;;  %v12162_v18 = vpack.c.bf16 (!%p364_p2), %v9858_v17, %v9857_v16  ;;  %v593_v19 = vld [vmem:[%s16192_s3] sm:$0xff] (!%p364_p2)  ;;  %v12198_v25 = vpack.c.bf16 (!%p364_p2), %v9888_v23, %v9883_v22  ;;  %v9887_v26 = vld [vmem:[%s16194_s5 + $0x2a8] sm:$0xff] (!%p364_p2)  ;;  %v9893_v28 = vld [vmem:[%s16194_s5 + $0x2d8] sm:$0xff] (!%p364_p2) }
   0xd   : > { %v12997_v21 = vpack.c.bf16 %v594_v20, %v593_v19  ;;  %v9882_v24 = vld [vmem:[%s16194_s5 + $0x280] sm:$0xff]  ;;  %v9897_v32 = vld [vmem:[%s16194_s5 + $0x2f8] sm:$0xff]  ;;  %v9903_v34 = vld [vmem:[%s16194_s5 + $0x328] sm:$0xff]  ;;  %s16202_s18 = smov (!%p413_p3, %s9840_s18), 1 }
   0xe   : > { %12159 = vmatprep.subr.bf16.mxu0 %v12158_v15  ;;  %v12200_v27 = vpack.c.bf16 %v9887_v26, %v9882_v24  ;;  %v9898_v29 = vld [vmem:[%s16194_s5 + $0x300] sm:$0xff]  ;;  %12199 = vmatprep.subr.bf16.mxu1 %v12198_v25  ;;  %v12204_v33 = vpack.c.bf16 %v9897_v32, %v9892_v30  ;;  %v9908_v35 = vld [vmem:[%s16194_s5 + $0x350] sm:$0xff]  ;;  %v9907_v38 = vld [vmem:[%s16194_s5 + $0x348] sm:$0xff]  ;;  %s12846_s14 = smul.u32 6336, %s16202_s18  ;;  %s428_s15 = scalar_lea.vmem %s16199_s10, %s16202_s18 }
   0xf   : > { %482 = vperm.xlu1 %12860, %v470_v5   ;;  %446 = vperm.xlu0 %12859, %v435_v6   ;;  %v12202_v31 = vpack.c.bf16 %v9898_v29, %v9893_v28  ;;  %v12206_v36 = vpack.c.bf16 %v9908_v35, %v9903_v34  ;;  %v9902_v37 = vld [vmem:[%s16194_s5 + $0x320] sm:$0xff]  ;;  %v9913_v40 = vld [vmem:[%s16194_s5 + $0x378] sm:$0xff]  ;;  %v9912_v43 = vld [vmem:[%s16194_s5 + $0x370] sm:$0xff]  ;;  %v13063_v6 = vsub.s32 0, %v13057_v59  ;;  %v13071_v29 = vsub.s32 7, %v13057_v59  ;;  %s9848_s16 = sshll.u32 %s16202_s18, 1 }
  0x10   : > { %12161 = vmatpush3.bf16.msra.mxu0 %v12158_v15  ;;  %12201 = vmatpush1.bf16.msra.mxu1 %v12200_v27  ;;  %v12208_v39 = vpack.c.bf16 %v9907_v38, %v9902_v37  ;;  %v9918_v41 = vld [vmem:[%s16194_s5 + $0x3a0] sm:$0xff]  ;;  %v9917_v44 = vld [vmem:[%s16194_s5 + $0x398] sm:$0xff]  ;;  %s14573_s23 = scalar_lea.vmem %s16196_s7, %s12846_s14  ;;  %s432_s21 = scalar_lea.vmem %s16200_s11, %s9848_s16 }
  0x11   : > { %12163 = vmatprep.subr.bf16.mxu0 %v12162_v18  ;;  %12203 = vmatprep.subr.bf16.mxu1 %v12202_v31  ;;  %v12210_v42 = vpack.c.bf16 %v9918_v41, %v9913_v40  ;;  %v12212_v45 = vpack.c.bf16 %v9917_v44, %v9912_v43  ;;  %v9849_v51 = vld [vmem:[%s16190_s1] ss:$0 sm:$0xff]  ;;  %v9853_v56 = vld [vmem:[%s16190_s1 + $0x2] ss:$0 sm:$0xff]  ;;  %v596_v37 = vld [vmem:[%s16192_s3 + $0x18] sm:$0xff] }
  0x12   : > { %v9854_v0 = vld [vmem:[%s16191_s2] ss:$0 sm:$0xff] }
  0x13   : > { %456 = vperm.xlu1 %12860, %v437_v7   ;;  %517 = vperm.xlu0 %12859, %v509_v8   ;;  %v9863_v41 = vld [vmem:[%s16192_s3 + $0x40] sm:$0xff] }
  0x14   : > { %12165 = vmatpush3.bf16.msra.mxu0 %v12162_v18  ;;  %12205 = vmatpush1.bf16.msra.mxu1 %v12204_v33 }
  0x15   : > { %12167 = vmatprep.subr.bf16.mxu0 %v12997_v21  ;;  %12207 = vmatprep.subr.bf16.mxu1 %v12206_v36  ;;  %v595_v36 = vld [vmem:[%s16192_s3 + $0x10] sm:$0xff] }
  0x16   : > { %v12170_v40 = vpack.c.bf16 %v596_v37, %v595_v36  ;;  %v9941_v36 = vld [vmem:[%s16194_s5 + $0x458] sm:$0xff] }
  0x17   : > { %527 = vperm.xlu1 %12860, %v511_v9   ;;  %492 = vperm.xlu0 %12859, %v472_v10  }
  0x18   : > { %12209 = vmatpush1.bf16.msra.mxu1 %v12208_v39 }
  0x19   : > { %12211 = vmatprep.subr.bf16.mxu1 %v12210_v42  ;;  %v9864_v42 = vld [vmem:[%s16192_s3 + $0x48] sm:$0xff] }
  0x1a   : > { %v12174_v44 = vpack.c.bf16 %v9864_v42, %v9863_v41  ;;  %v9947_v42 = vld [vmem:[%s16194_s5 + $0x488] sm:$0xff] }
  0x1b   : > { %532 = vperm.xlu1 %12860, %v512_v11   ;;  %522 = vperm.xlu0 %12859, %v510_v12  }
  0x1c   : > { %12213 = vmatpush1.bf16.msra.mxu1 %v12212_v45  ;;  %v9865_v45 = vld [vmem:[%s16192_s3 + $0x50] sm:$0xff] }
  0x86   : > { %v452_v46 = vpop.permute.xlu1 %451  ;;  %v442_v47 = vpop.permute.xlu0 %441 }
  0x87   : > { %v465_v57 = vmul.f32 %v9849_v51, %v442_v47  ;;  %v467_v1 = vmul.f32 %v9849_v51, %v452_v46  ;;  %v9866_v46 = vld [vmem:[%s16192_s3 + $0x58] sm:$0xff] }
  0x88   : > { %v12178_v47 = vpack.c.bf16 %v9866_v46, %v9865_v45  ;;  %v12871_v45 = vmov 0.0  }
  0x89   : > { %1318 = vmatprep.mubr.f32.mxu1 %v12871_v45 }
  0x8a   : > { %v488_v48 = vpop.permute.xlu1 %487  ;;  %v478_v49 = vpop.permute.xlu0 %477 }
  0x8b   : > { %v501_v55 = vmul.f32 %v9851_v50, %v478_v49  ;;  %v503_v61 = vmul.f32 %v9851_v50, %v488_v48  ;;  %v9870_v49 = vld [vmem:[%s16192_s3 + $0x68] sm:$0xff] }
  0x8d   : > { %v505_v62 = vadd.f32 %v501_v55, %v465_v57  ;;  %v507_v9 = vadd.f32 %v503_v61, %v467_v1  ;;  %v9876_v57 = vld [vmem:[%s16192_s3 + $0x88] sm:$0xff]  ;;  %v9877_v61 = vld [vmem:[%s16192_s3 + $0x90] sm:$0xff] }
  0x8e   : > { %v483_v52 = vpop.permute.xlu1 %482  ;;  %v447_v53 = vpop.permute.xlu0 %446 }
  0x8f   : > { %v502_v4 = vmul.f32 %v9851_v50, %v483_v52  ;;  %v466_v5 = vmul.f32 %v9849_v51, %v447_v53  ;;  %v9871_v52 = vld [vmem:[%s16192_s3 + $0x70] sm:$0xff]  ;;  %v9872_v53 = vld [vmem:[%s16192_s3 + $0x78] sm:$0xff] }
  0x90   : > { %v12186_v54 = vpack.c.bf16 %v9872_v53, %v9871_v52  ;;  %v9956_v52 = vld [vmem:[%s16194_s5 + $0x4d0] sm:$0xff]  ;;  %v9961_v53 = vld [vmem:[%s16194_s5 + $0x4f8] sm:$0xff] }
  0x91   : > { %v506_v16 = vadd.f32 %v502_v4, %v466_v5  ;;  %v9891_v4 = vld [vmem:[%s16194_s5 + $0x2c8] sm:$0xff] }
  0x92   : > { %v457_v58 = vpop.permute.xlu1 %456  ;;  %v518_v60 = vpop.permute.xlu0 %517 }
  0x93   : > { %v541_v63 = vmul.f32 %v9853_v56, %v518_v60  ;;  %v468_v13 = vmul.f32 %v9849_v51, %v457_v58 }
  0x95   : > { %v545_v3 = vadd.f32 %v541_v63, %v505_v62  ;;  %v9878_v62 = vld [vmem:[%s16192_s3 + $0x98] sm:$0xff] }
  0x96   : > { %v528_v7 = vpop.permute.xlu1 %527  ;;  %v493_v8 = vpop.permute.xlu0 %492  ;;  %v12194_v63 = vpack.c.bf16 %v9878_v62, %v9877_v61 }
  0x97   : > { %v556_v10 = vadd.f32 %v9854_v0, %v545_v3  ;;  %v543_v11 = vmul.f32 %v9853_v56, %v528_v7  ;;  %v504_v12 = vmul.f32 %v9851_v50, %v493_v8  ;;  %v9886_v3 = vld [vmem:[%s16194_s5 + $0x2a0] sm:$0xff]  ;;  %v12870_v7 = vmov 0.0|0.0   ;;  %v9896_v8 = vld [vmem:[%s16194_s5 + $0x2f0] sm:$0xff] }
  0x98   : > { %v12263_v5 = vpack.c.bf16 %v9891_v4, %v9886_v3 }
  0x99   : > { %v560_v14 = vmax.f32 %v556_v10, 0.0  ;;  %v547_v15 = vadd.f32 %v543_v11, %v507_v9  ;;  %v508_v17 = vadd.f32 %v504_v12, %v468_v13  ;;  %v9901_v9 = vld [vmem:[%s16194_s5 + $0x318] sm:$0xff]  ;;  %v9906_v12 = vld [vmem:[%s16194_s5 + $0x340] sm:$0xff]  ;;  %v9911_v13 = vld [vmem:[%s16194_s5 + $0x368] sm:$0xff] }
  0x9a   : > { %v533_v18 = vpop.permute.xlu1 %532  ;;  %v523_v19 = vpop.permute.xlu0 %522  ;;  %v12266_v11 = vpack.c.bf16 %v9901_v9, %v9896_v8 }
  0x9b   : > { %565 = vst.msk [vmem:[#allocation2 + $0x2] sm:$0xff] %vm564_vm0, %v560_v14  ;;  %v570_v20 = vrot.slane %v560_v14, %v13063_v6  ;;  %v558_v22 = vadd.f32 %v9854_v0, %v547_v15  ;;  %v544_v23 = vmul.f32 %v9853_v56, %v533_v18  ;;  %v542_v24 = vmul.f32 %v9853_v56, %v523_v19  ;;  %v9875_v56 = vld [vmem:[%s16192_s3 + $0x80] sm:$0xff]  ;;  %v9916_v15 = vld [vmem:[%s16194_s5 + $0x390] sm:$0xff]  ;;  %v9923_v18 = vld [vmem:[%s16194_s5 + $0x3c8] sm:$0xff] }
  0x9c   : > { %v12190_v60 = vpack.c.bf16 %v9876_v57, %v9875_v56  ;;  %v12269_v14 = vpack.c.bf16 %v9911_v13, %v9906_v12  ;;  %v9928_v19 = vld [vmem:[%s16194_s5 + $0x3f0] sm:$0xff]  ;;  %v9890_v56 = vld [vmem:[%s16194_s5 + $0x2c0] sm:$0xff]  ;;  %v12284_v57 = vpack.c.bf16 %v9961_v53, %v9956_v52  ;;  %v1094_v13 = vld [vmem:[%s16194_s5 + $0x48] sm:$0xff] }
  0x9d   : > { %572 = vst.msk [vmem:[#allocation2] sm:$0x3] %vm571_vm1, %v570_v20  ;;  %v562_v25 = vmax.f32 %v558_v22, 0.0  ;;  %v548_v26 = vadd.f32 %v544_v23, %v508_v17  ;;  %v546_v27 = vadd.f32 %v542_v24, %v506_v16  ;;  %v9921_v16 = vld [vmem:[%s16194_s5 + $0x3b8] sm:$0xff]  ;;  %v12214_v20 = vpack.c.bf16 %v9928_v19, %v9923_v18  ;;  %v9922_v22 = vld [vmem:[%s16194_s5 + $0x3c0] sm:$0xff]  ;;  %v9927_v23 = vld [vmem:[%s16194_s5 + $0x3e8] sm:$0xff] }
  0x9e   : > { %v12272_v17 = vpack.c.bf16 %v9921_v16, %v9916_v15  ;;  %v9926_v24 = vld [vmem:[%s16194_s5 + $0x3e0] sm:$0xff]  ;;  %v9900_v15 = vld [vmem:[%s16194_s5 + $0x310] sm:$0xff]  ;;  %v9929_v53 = vld [vmem:[%s16194_s5 + $0x3f8] sm:$0xff] }
  0x9f   : > { %578 = vst.msk [vmem:[#allocation2 + $0x16] sm:$0xff] %vm564_vm0, %v562_v25  ;;  %v583_v28 = vrot.slane %v562_v25, %v13063_v6  ;;  %v559_v30 = vadd.f32 %v9854_v0, %v548_v26  ;;  %v557_v31 = vadd.f32 %v9854_v0, %v546_v27  ;;  %v12216_v25 = vpack.c.bf16 %v9927_v23, %v9922_v22  ;;  %v9931_v26 = vld [vmem:[%s16194_s5 + $0x408] sm:$0xff]  ;;  %v1089_v12 = vld [vmem:[%s16194_s5 + $0x20] sm:$0xff] }
  0xa0   : > { %12215 = vmatprep.subr.bf16.mxu1 %v12214_v20  ;;  %v12275_v27 = vpack.c.bf16 %v9931_v26, %v9926_v24  ;;  %v12351_v20 = vpack.c.bf16 %v1094_v13, %v1089_v12  ;;  %v9894_v22 = vld [vmem:[%s16194_s5 + $0x2e0] sm:$0xff]  ;;  %v9899_v24 = vld [vmem:[%s16194_s5 + $0x308] sm:$0xff]  ;;  %v1104_v26 = vld [vmem:[%s16194_s5 + $0x98] sm:$0xff] }
  0xa1   : > { %584 = vst.msk [vmem:[#allocation2 + $0x14] sm:$0x3] %vm571_vm1, %v583_v28  ;;  %v563_v32 = vmax.f32 %v559_v30, 0.0  ;;  %v561_v33 = vmax.f32 %v557_v31, 0.0  ;;  %12217 = vmatpush1.bf16.msra.mxu1 %v12216_v25  ;;  %v9933_v28 = vld [vmem:[%s16194_s5 + $0x418] sm:$0xff]  ;;  %v9938_v30 = vld [vmem:[%s16194_s5 + $0x440] sm:$0xff] }
  0xa2   : > { %v12218_v31 = vpack.c.bf16 %v9938_v30, %v9933_v28  ;;  %v1099_v25 = vld [vmem:[%s16194_s5 + $0x70] sm:$0xff]  ;;  %v9905_v28 = vld [vmem:[%s16194_s5 + $0x338] sm:$0xff]  ;;  %v9910_v30 = vld [vmem:[%s16194_s5 + $0x360] sm:$0xff] }
  0xa3   : > { %579 = vst.msk [vmem:[#allocation2 + $0x1e] sm:$0xff] %vm564_vm0, %v563_v32  ;;  %v588_v34 = vrot.slane %v563_v32, %v13071_v29  ;;  %566 = vst.msk [vmem:[#allocation2 + $0xa] sm:$0xff] %vm564_vm0, %v561_v33  ;;  %v576_v35 = vrot.slane %v561_v33, %v13071_v29  ;;  %v9932_v32 = vld [vmem:[%s16194_s5 + $0x410] sm:$0xff]  ;;  %v9937_v33 = vld [vmem:[%s16194_s5 + $0x438] sm:$0xff] }
  0xa4   : > { %12219 = vmatprep.subr.bf16.mxu1 %v12218_v31  ;;  %v12236_v31 = vpack.c.bf16 %v9899_v24, %v9894_v22  ;;  %v1149_v12 = vld [vmem:[%s16194_s5 + $0x200] sm:$0xff]  ;;  %v1154_v13 = vld [vmem:[%s16194_s5 + $0x228] sm:$0xff]  ;;  %v1159_v22 = vld [vmem:[%s16194_s5 + $0x250] sm:$0xff] }
  0xa5   : > { %589 = vst.msk [vmem:[#allocation2 + $0x26] sm:$0x3] %vm571_vm1, %v588_v34  ;;  %577 = vst.msk [vmem:[#allocation2 + $0x12] sm:$0x3] %vm571_vm1, %v576_v35  ;;  %v9936_v34 = vld [vmem:[%s16194_s5 + $0x430] sm:$0xff]  ;;  %v12220_v35 = vpack.c.bf16 %v9937_v33, %v9932_v32  ;;  %v12354_v32 = vpack.c.bf16 %v1104_v26, %v1099_v25  ;;  %v1086_v24 = vld [vmem:[%s16194_s5 + $0x8] sm:$0xff] }
  0xa6   : > { %v12278_v37 = vpack.c.bf16 %v9941_v36, %v9936_v34  ;;  %v9904_v33 = vld [vmem:[%s16194_s5 + $0x330] sm:$0xff]  ;;  %v12238_v34 = vpack.c.bf16 %v9910_v30, %v9905_v28  ;;  %v1109_v36 = vld [vmem:[%s16194_s5 + $0xc0] sm:$0xff] }
  0xa7   : > { %12221 = vmatpush1.bf16.msra.mxu1 %v12220_v35  ;;  %v9909_v35 = vld [vmem:[%s16194_s5 + $0x358] sm:$0xff]  ;;  %v1091_v25 = vld [vmem:[%s16194_s5 + $0x30] sm:$0xff] }
  0xaa   : > { %v598_v38 = vld [vmem:[#allocation2 + $0x1] ss:$2 sm:$0xff]  ;;  %v590_v43 = vld [vmem:[#allocation2] ss:$2 sm:$0xff] }
  0xab   : > { %v600_v39 = vld [vmem:[#allocation2 + $0x15] ss:$2 sm:$0xff]  ;;  %11866 = vmatprep.mubr.msk.f32.mxu0 %vm564_vm0, %v598_v38  ;;  %v592_v48 = vld [vmem:[#allocation2 + $0x14] ss:$2 sm:$0xff]  ;;  %v9943_v38 = vld [vmem:[%s16194_s5 + $0x468] sm:$0xff] }
  0xac   : > { %11867 = vmatmul.mubr.msk.f32.vlgmr.msra.gmra.mrb[0].mxu0 %vm564_vm0, %v600_v39  ;;  %v769_v50 = vld [vmem:[#allocation2 + $0x2] ss:$2 sm:$0xff]  ;;  %v861_v58 = vld [vmem:[#allocation2 + $0x3] ss:$2 sm:$0xff] }
  0xad   : > { %12169 = vmatpush3.bf16.msra.mxu0 %v12997_v21  ;;  %11877 = vmatprep.mubr.msk.f32.mxu0 %vm564_vm0, %v590_v43  ;;  %v9869_v21 = vld [vmem:[%s16192_s3 + $0x60] sm:$0xff]  ;;  %v9948_v39 = vld [vmem:[%s16194_s5 + $0x490] sm:$0xff] }
  0xae   : > { %12171 = vmatprep.subr.bf16.mxu0 %v12170_v40  ;;  %v12182_v51 = vpack.c.bf16 %v9870_v49, %v9869_v21  ;;  %v771_v55 = vld [vmem:[#allocation2 + $0x16] ss:$2 sm:$0xff]  ;;  %v863_v0 = vld [vmem:[#allocation2 + $0x17] ss:$2 sm:$0xff]  ;;  %v12222_v41 = vpack.c.bf16 %v9948_v39, %v9943_v38  ;;  %v9915_v38 = vld [vmem:[%s16194_s5 + $0x388] sm:$0xff] }
  0xaf   : > { %v953_v1 = vld [vmem:[#allocation2 + $0x4] ss:$2 sm:$0xff] }
  0xb0   : > { %v955_v10 = vld [vmem:[#allocation2 + $0x18] ss:$2 sm:$0xff]  ;;  %v9952_v49 = vld [vmem:[%s16194_s5 + $0x4b0] sm:$0xff]  ;;  %12223 = vmatprep.subr.bf16.mxu1 %v12222_v41 }
  0xb1   : > { %12173 = vmatpush3.bf16.msra.mxu0 %v12170_v40  ;;  %v9942_v40 = vld [vmem:[%s16194_s5 + $0x460] sm:$0xff]  ;;  %v9920_v39 = vld [vmem:[%s16194_s5 + $0x3b0] sm:$0xff] }
  0xb2   : > { %12175 = vmatprep.subr.bf16.mxu0 %v12174_v44  ;;  %v9946_v43 = vld [vmem:[%s16194_s5 + $0x480] sm:$0xff]  ;;  %v12224_v46 = vpack.c.bf16 %v9947_v42, %v9942_v40  ;;  %v12240_v40 = vpack.c.bf16 %v9909_v35, %v9904_v33  ;;  %v1090_v33 = vld [vmem:[%s16194_s5 + $0x28] sm:$0xff] }
  0xb3   : > { %v9958_v21 = vld [vmem:[%s16194_s5 + $0x4e0] sm:$0xff]  ;;  %v9971_v35 = vld [vmem:[%s16194_s5 + $0x548] sm:$0xff] }
  0xb4   : > { %11878 = vmatmul.mubr.msk.f32.vlgmr.msra.gmra.mrb[0].mxu0 %vm564_vm0, %v592_v48  ;;  %v9953_v48 = vld [vmem:[%s16194_s5 + $0x4b8] sm:$0xff]  ;;  %12225 = vmatpush1.bf16.msra.mxu1 %v12224_v46  ;;  %v9914_v42 = vld [vmem:[%s16194_s5 + $0x380] sm:$0xff]  ;;  %v1119_v46 = vld [vmem:[%s16194_s5 + $0x110] sm:$0xff] }
  0xb5   : > { %12177 = vmatpush3.bf16.msra.mxu0 %v12174_v44  ;;  %11888 = vmatprep.mubr.msk.f32.mxu0 %vm564_vm0, %v769_v50  ;;  %v9951_v44 = vld [vmem:[%s16194_s5 + $0x4a8] sm:$0xff]  ;;  %v12226_v50 = vpack.c.bf16 %v9958_v21, %v9953_v48  ;;  %v9925_v48 = vld [vmem:[%s16194_s5 + $0x3d8] sm:$0xff]  ;;  %v9930_v21 = vld [vmem:[%s16194_s5 + $0x400] sm:$0xff] }
  0xb6   : > { %12179 = vmatprep.subr.bf16.mxu0 %v12178_v47  ;;  %v12246_v52 = vpack.c.bf16 %v9930_v21, %v9925_v48  ;;  %v1106_v21 = vld [vmem:[%s16194_s5 + $0xa8] sm:$0xff] }
  0xb7   : > { %12227 = vmatprep.subr.bf16.mxu1 %v12226_v50 }
  0xb9   : > { %12181 = vmatpush3.bf16.msra.mxu0 %v12178_v47  ;;  %v12281_v47 = vpack.c.bf16 %v9951_v44, %v9946_v43  ;;  %v12242_v43 = vpack.c.bf16 %v9920_v39, %v9915_v38  ;;  %v9919_v44 = vld [vmem:[%s16194_s5 + $0x3a8] sm:$0xff]  ;;  %v1101_v38 = vld [vmem:[%s16194_s5 + $0x80] sm:$0xff] }
  0xba   : > { %12183 = vmatprep.subr.bf16.mxu0 %v12182_v51 }
  0xbc   : > { %11889 = vmatmul.mubr.msk.f32.vlgmr.msra.gmra.mrb[0].mxu0 %vm564_vm0, %v771_v55  ;;  %v9885_v55 = vld [vmem:[%s16194_s5 + $0x298] sm:$0xff] }
  0xbd   : > { %12185 = vmatpush3.bf16.msra.mxu0 %v12182_v51  ;;  %11899 = vmatprep.mubr.msk.f32.mxu0 %vm564_vm0, %v861_v58  ;;  %v9957_v51 = vld [vmem:[%s16194_s5 + $0x4d8] sm:$0xff]  ;;  %v12230_v58 = vpack.c.bf16 %v9890_v56, %v9885_v55  ;;  %v1134_v55 = vld [vmem:[%s16194_s5 + $0x188] sm:$0xff] }
  0xbe   : > { %12187 = vmatprep.subr.bf16.mxu0 %v12186_v54  ;;  %v9935_v56 = vld [vmem:[%s16194_s5 + $0x428] sm:$0xff] }
  0xc1   : > { %12189 = vmatpush3.bf16.msra.mxu0 %v12186_v54  ;;  %v12228_v54 = vpack.c.bf16 %v9957_v51, %v9952_v49  ;;  %v12244_v49 = vpack.c.bf16 %v9919_v44, %v9914_v42  ;;  %v9924_v51 = vld [vmem:[%s16194_s5 + $0x3d0] sm:$0xff]  ;;  %v1100_v44 = vld [vmem:[%s16194_s5 + $0x78] sm:$0xff] }
  0xc2   : > { %12191 = vmatprep.subr.bf16.mxu0 %v12190_v60  ;;  %v1095_v42 = vld [vmem:[%s16194_s5 + $0x50] sm:$0xff] }
  0xc3   : > { %12229 = vmatpush1.bf16.msra.mxu1 %v12228_v54  ;;  %v1129_v54 = vld [vmem:[%s16194_s5 + $0x160] sm:$0xff] }
  0xc4   : > { %11900 = vmatmul.mubr.msk.f32.vlgmr.msra.gmra.mrb[0].mxu0 %vm564_vm0, %v863_v0  ;;  %12231 = vmatprep.subr.bf16.mxu1 %v12230_v58  ;;  %v12248_v58 = vpack.c.bf16 %v9929_v53, %v9924_v51 }
  0xc5   : > { %12193 = vmatpush3.bf16.msra.mxu0 %v12190_v60  ;;  %11910 = vmatprep.mubr.msk.f32.mxu0 %vm564_vm0, %v953_v1  ;;  %v9881_v60 = vld [vmem:[%s16193_s4] ss:$0 sm:$0xff] }
  0xc6   : > { %12195 = vmatprep.subr.bf16.mxu0 %v12194_v63 }
  0xc9   : > { %12197 = vmatpush3.bf16.msra.mxu0 %v12194_v63 }
  0xca   : > { %12262 = vmatprep.subr.bf16.mxu0 %v12870_v7 }
  0xcc   : > { %11911 = vmatmul.mubr.msk.f32.vlgmr.msra.gmra.mrb[0].mxu0 %vm564_vm0, %v955_v10  ;;  %v9884_v10 = vld [vmem:[%s16194_s5 + $0x290] sm:$0xff] }
  0xcd   : > { %12264 = vmatpush3.bf16.msra.mxu0 %v12263_v5  ;;  %11945 = vmatprep.mubr.msk.f32.mxu0 %vm12872_vm2, %v12871_v45 }
  0xce   : > { %12265 = vmatprep.subr.bf16.mxu0 %v12870_v7 }
  0xd1   : > { %12267 = vmatpush3.bf16.msra.mxu0 %v12266_v11  ;;  %v9889_v11 = vld [vmem:[%s16194_s5 + $0x2b8] sm:$0xff] }
  0xd2   : > { %12268 = vmatprep.subr.bf16.mxu0 %v12870_v7  ;;  %v12232_v19 = vpack.c.bf16 %v9889_v11, %v9884_v10  ;;  %v9949_v11 = vld [vmem:[%s16194_s5 + $0x498] sm:$0xff] }
  0xd5   : > { %12270 = vmatpush3.bf16.msra.mxu0 %v12269_v14  ;;  %v9895_v14 = vld [vmem:[%s16194_s5 + $0x2e8] sm:$0xff] }
  0xd6   : > { %12271 = vmatprep.subr.bf16.mxu0 %v12870_v7  ;;  %v12234_v23 = vpack.c.bf16 %v9900_v15, %v9895_v14  ;;  %v9955_v14 = vld [vmem:[%s16194_s5 + $0x4c8] sm:$0xff]  ;;  %v9960_v15 = vld [vmem:[%s16194_s5 + $0x4f0] sm:$0xff] }
  0xd9   : > { %12273 = vmatpush3.bf16.msra.mxu0 %v12272_v17 }
  0xda   : > { %12274 = vmatprep.subr.bf16.mxu0 %v12870_v7 }
  0xdd   : > { %12276 = vmatpush3.bf16.msra.mxu0 %v12275_v27 }
  0xde   : > { %12277 = vmatprep.subr.bf16.mxu0 %v12870_v7 }
  0xe1   : > { %12279 = vmatpush3.bf16.msra.mxu0 %v12278_v37  ;;  %v1114_v37 = vld [vmem:[%s16194_s5 + $0xe8] sm:$0xff] }
  0xe2   : > { %12280 = vmatprep.subr.bf16.mxu0 %v12870_v7  ;;  %v12357_v41 = vpack.c.bf16 %v1114_v37, %v1109_v36  ;;  %v1096_v37 = vld [vmem:[%s16194_s5 + $0x58] sm:$0xff] }
  0xe5   : > { %12282 = vmatpush3.bf16.msra.mxu0 %v12281_v47  ;;  %v1124_v47 = vld [vmem:[%s16194_s5 + $0x138] sm:$0xff] }
  0xe6   : > { %12283 = vmatprep.subr.bf16.mxu0 %v12870_v7  ;;  %v12360_v50 = vpack.c.bf16 %v1124_v47, %v1119_v46  ;;  %v9976_v46 = vld [vmem:[%s16194_s5 + $0x570] sm:$0xff]  ;;  %v9981_v47 = vld [vmem:[%s16194_s5 + $0x598] sm:$0xff] }
  0xe7   : > { %v12442_v51 = vpack.c.bf16 %v9981_v47, %v9976_v46  ;;  %v1093_v46 = vld [vmem:[%s16194_s5 + $0x40] sm:$0xff] }
  0xe9   : > { %12285 = vmatpush3.bf16.msra.mxu0 %v12284_v57  ;;  %v9940_v57 = vld [vmem:[%s16194_s5 + $0x450] sm:$0xff] }
  0xea   : > { %12350 = vmatprep.subr.bf16.mxu0 %v12870_v7 }
 0x19f   : > { %v11912_v61 = vpop.f32.mrb[0].mxu0 }
 0x1a0   : > { %v1052_v62 = vadd.f32 %v11912_v61, %v9881_v60  ;;  %v1033_v63 = vpop.f32.mrb[1].mxu0  ;;  %v9934_v61 = vld [vmem:[%s16194_s5 + $0x420] sm:$0xff] }
 0x1a1   : > { %v1051_v0 = vadd.f32 %v9881_v60, %v1033_v63  ;;  %v12363_v60 = vpack.c.bf16 %v1134_v55, %v1129_v54  ;;  %v9939_v63 = vld [vmem:[%s16194_s5 + $0x448] sm:$0xff] }
 0x1a2   : > { %v1054_v1 = vmax.f32 %v1052_v62, 0.0  ;;  %v12250_v62 = vpack.c.bf16 %v9940_v57, %v9935_v56  ;;  %v1110_v54 = vld [vmem:[%s16194_s5 + $0xc8] sm:$0xff]  ;;  %v1116_v56 = vld [vmem:[%s16194_s5 + $0xf8] sm:$0xff]  ;;  %v1121_v57 = vld [vmem:[%s16194_s5 + $0x120] sm:$0xff] }
 0x1a3   : > { %v1053_v3 = vmax.f32 %v1051_v0, 0.0  ;;  %v1139_v0 = vld [vmem:[%s16194_s5 + $0x1b0] sm:$0xff]  ;;  %v9991_v55 = vld [vmem:[%s16194_s5 + $0x5e8] sm:$0xff] }
 0x1a4   : > { %1066 = vst [vmem:[#allocation3 + $0x11] sm:$0xff] %v1054_v1  ;;  %v1070_v4 = vrot.slane %v1054_v1, %v13063_v6  ;;  %v1075_v5 = vrot.slane %v1054_v1, %v13071_v29  ;;  %v1144_v1 = vld [vmem:[%s16194_s5 + $0x1d8] sm:$0xff] }
 0x1a5   : > { %1055 = vst [vmem:[#allocation3 + $0x3] sm:$0xff] %v1053_v3  ;;  %v1059_v8 = vrot.slane %v1053_v3, %v13063_v6  ;;  %v1064_v9 = vrot.slane %v1053_v3, %v13071_v29  ;;  %v9945_v3 = vld [vmem:[%s16194_s5 + $0x478] sm:$0xff] }
 0x1a6   : > { %1071 = vst [vmem:[#allocation3 + $0xe] sm:$0x7] %v1070_v4  ;;  %1076 = vst [vmem:[#allocation3 + $0x19] sm:$0x7] %v1075_v5  ;;  %v9950_v4 = vld [vmem:[%s16194_s5 + $0x4a0] sm:$0xff]  ;;  %v12252_v5 = vpack.c.bf16 %v9939_v63, %v9934_v61  ;;  %v1115_v61 = vld [vmem:[%s16194_s5 + $0xf0] sm:$0xff] }
 0x1a7   : > { %1060 = vst [vmem:[#allocation3] sm:$0x7] %v1059_v8  ;;  %1065 = vst [vmem:[#allocation3 + $0xb] sm:$0x7] %v1064_v9  ;;  %v12366_v8 = vpack.c.bf16 %v1144_v1, %v1139_v0  ;;  %v9944_v9 = vld [vmem:[%s16194_s5 + $0x470] sm:$0xff]  ;;  %v12254_v10 = vpack.c.bf16 %v9950_v4, %v9945_v3  ;;  %v1120_v63 = vld [vmem:[%s16194_s5 + $0x118] sm:$0xff] }
 0x1a8   : > { %v9996_v0 = vld [vmem:[%s16194_s5 + $0x610] sm:$0xff]  ;;  %v10001_v1 = vld [vmem:[%s16194_s5 + $0x638] sm:$0xff]  ;;  %v1126_v3 = vld [vmem:[%s16194_s5 + $0x148] sm:$0xff] }
 0x1a9   : > { %v1131_v4 = vld [vmem:[%s16194_s5 + $0x170] sm:$0xff] }
 0x1ad   : > { %v1168_v16 = vld [vmem:[#allocation3 + $0xf] ss:$3 sm:$0x7]  ;;  %v1079_v26 = vld [vmem:[#allocation3 + $0xe] ss:$3 sm:$0x7] }
 0x1ae   : > { %v1166_v17 = vld [vmem:[#allocation3 + $0x1] ss:$3 sm:$0x7]  ;;  %v1170_v18 = vrot.slane %v1168_v16, 5  ;;  %v12256_v16 = vpack.c.bf16 %v9949_v11, %v9944_v9  ;;  %v1081_v36 = vrot.slane %v1079_v26, 5  ;;  %v1125_v9 = vld [vmem:[%s16194_s5 + $0x140] sm:$0xff] }
 0x1af   : > { %v1077_v39 = vld [vmem:[#allocation3] ss:$3 sm:$0x7]  ;;  %v1681_v47 = vld [vmem:[#allocation3 + $0x10] ss:$3 sm:$0x7] }
 0x1b0   : > { %v13285_v27 = vsel %vm1083_vm3, %v1166_v17, %v1170_v18  ;;  %v12369_v17 = vpack.c.bf16 %v1154_v13, %v1149_v12  ;;  %v9954_v18 = vld [vmem:[%s16194_s5 + $0x4c0] sm:$0xff]  ;;  %v13445_v48 = vsel %vm1083_vm3, %v1077_v39, %v1081_v36  ;;  %v1130_v11 = vld [vmem:[%s16194_s5 + $0x168] sm:$0xff]  ;;  %v1155_v39 = vld [vmem:[%s16194_s5 + $0x230] sm:$0xff] }
 0x1b1   : > { %1319 = vmatmul.mubr.f32.vlgmr.msra.gmra.mrb[0].mxu1 %v13285_v27  ;;  %11946 = vmatmul.mubr.f32.vlgmr.msra.gmra.mrb[2].mxu0 %v13285_v27  ;;  %v10006_v12 = vld [vmem:[%s16194_s5 + $0x660] sm:$0xff]  ;;  %v10011_v13 = vld [vmem:[%s16194_s5 + $0x688] sm:$0xff] }
 0x1b2   : > { %12233 = vmatpush1.bf16.msra.mxu1 %v12232_v19  ;;  %12352 = vmatpush3.bf16.msra.mxu0 %v12351_v20  ;;  %v12258_v19 = vpack.c.bf16 %v9960_v15, %v9955_v14  ;;  %v9959_v20 = vld [vmem:[%s16194_s5 + $0x4e8] sm:$0xff]  ;;  %v1136_v14 = vld [vmem:[%s16194_s5 + $0x198] sm:$0xff]  ;;  %v1141_v15 = vld [vmem:[%s16194_s5 + $0x1c0] sm:$0xff] }
 0x1b3   : > { %12235 = vmatprep.subr.bf16.mxu1 %v12234_v23  ;;  %12353 = vmatprep.subr.bf16.mxu0 %v12870_v7  ;;  %v1164_v23 = vld [vmem:[%s16194_s5 + $0x278] sm:$0xff]  ;;  %v12260_v28 = vpack.c.bf16 %v9959_v20, %v9954_v18  ;;  %v1135_v18 = vld [vmem:[%s16194_s5 + $0x190] sm:$0xff]  ;;  %v1161_v36 = vld [vmem:[%s16194_s5 + $0x260] sm:$0xff] }
 0x1b4   : > { %1389 = vmatprep.mubr.f32.mxu1 %v12871_v45  ;;  %11980 = vmatprep.mubr.msk.f32.mxu0 %vm12872_vm2, %v12871_v45  ;;  %v12372_v30 = vpack.c.bf16 %v1164_v23, %v1159_v22  ;;  %v1140_v20 = vld [vmem:[%s16194_s5 + $0x1b8] sm:$0xff]  ;;  %v10016_v22 = vld [vmem:[%s16194_s5 + $0x6b0] sm:$0xff] }
 0x1b5   : > { %v10021_v23 = vld [vmem:[%s16194_s5 + $0x6d8] sm:$0xff]  ;;  %v12308_v26 = vpack.c.bf16 %v1140_v20, %v1135_v18 }
 0x1b6   : > { %12237 = vmatpush1.bf16.msra.mxu1 %v12236_v31  ;;  %12355 = vmatpush3.bf16.msra.mxu0 %v12354_v32  ;;  %v1085_v31 = vld [vmem:[%s16194_s5] sm:$0xff]  ;;  %v12286_v32 = vpack.c.bf16 %v1091_v25, %v1086_v24  ;;  %v1146_v24 = vld [vmem:[%s16194_s5 + $0x1e8] sm:$0xff]  ;;  %v1151_v25 = vld [vmem:[%s16194_s5 + $0x210] sm:$0xff] }
 0x1b7   : > { %12239 = vmatprep.subr.bf16.mxu1 %v12238_v34  ;;  %12356 = vmatprep.subr.bf16.mxu0 %v12870_v7  ;;  %v9966_v34 = vld [vmem:[%s16194_s5 + $0x520] sm:$0xff] }
 0x1ba   : > { %12241 = vmatpush1.bf16.msra.mxu1 %v12240_v40  ;;  %12358 = vmatpush3.bf16.msra.mxu0 %v12357_v41  ;;  %v12288_v40 = vpack.c.bf16 %v1090_v33, %v1085_v31  ;;  %v12439_v41 = vpack.c.bf16 %v9971_v35, %v9966_v34  ;;  %v12310_v31 = vpack.c.bf16 %v1151_v25, %v1146_v24  ;;  %v10026_v33 = vld [vmem:[%s16194_s5 + $0x700] sm:$0xff]  ;;  %v10031_v34 = vld [vmem:[%s16194_s5 + $0x728] sm:$0xff]  ;;  %v1156_v35 = vld [vmem:[%s16194_s5 + $0x238] sm:$0xff] }
 0x1bb   : > { %12243 = vmatprep.subr.bf16.mxu1 %v12242_v43  ;;  %12359 = vmatprep.subr.bf16.mxu0 %v12870_v7  ;;  %v12290_v43 = vpack.c.bf16 %v1101_v38, %v1096_v37  ;;  %v12457_v38 = vpack.c.bf16 %v10031_v34, %v10026_v33  ;;  %v10081_v24 = vld [vmem:[%s16194_s5 + $0x8b8] sm:$0xff]  ;;  %v10086_v34 = vld [vmem:[%s16194_s5 + $0x8e0] sm:$0xff] }
 0x1bc   : > { %v1128_v25 = vld [vmem:[%s16194_s5 + $0x158] sm:$0xff] }
 0x1bd   : > { %v1132_v33 = vld [vmem:[%s16194_s5 + $0x178] sm:$0xff] }
 0x1be   : > { %12245 = vmatpush1.bf16.msra.mxu1 %v12244_v49  ;;  %12361 = vmatpush3.bf16.msra.mxu0 %v12360_v50  ;;  %v1111_v49 = vld [vmem:[%s16194_s5 + $0xd0] sm:$0xff]  ;;  %v12292_v50 = vpack.c.bf16 %v1100_v44, %v1095_v42  ;;  %v1088_v44 = vld [vmem:[%s16194_s5 + $0x18] sm:$0xff] }
 0x1bf   : > { %12247 = vmatprep.subr.bf16.mxu1 %v12246_v52  ;;  %12362 = vmatprep.subr.bf16.mxu0 %v12870_v7  ;;  %v1105_v52 = vld [vmem:[%s16194_s5 + $0xa0] sm:$0xff]  ;;  %v12294_v53 = vpack.c.bf16 %v1111_v49, %v1106_v21  ;;  %v10036_v42 = vld [vmem:[%s16194_s5 + $0x750] sm:$0xff] }
 0x1c2   : > { %12249 = vmatpush1.bf16.msra.mxu1 %v12248_v58  ;;  %12364 = vmatpush3.bf16.msra.mxu0 %v12363_v60  ;;  %v12296_v58 = vpack.c.bf16 %v1110_v54, %v1105_v52  ;;  %v1092_v52 = vld [vmem:[%s16194_s5 + $0x38] sm:$0xff]  ;;  %v10051_v54 = vld [vmem:[%s16194_s5 + $0x7c8] sm:$0xff] }
 0x1c3   : > { %12251 = vmatprep.subr.bf16.mxu1 %v12250_v62  ;;  %12365 = vmatprep.subr.bf16.mxu0 %v12870_v7  ;;  %v12298_v62 = vpack.c.bf16 %v1121_v57, %v1116_v56  ;;  %v1103_v56 = vld [vmem:[%s16194_s5 + $0x90] sm:$0xff] }
 0x1c4   : > { %v1679_v57 = vld [vmem:[#allocation3 + $0x2] ss:$3 sm:$0x7] }
 0x1c6   : > { %12253 = vmatpush1.bf16.msra.mxu1 %v12252_v5  ;;  %12367 = vmatpush3.bf16.msra.mxu0 %v12366_v8  ;;  %v12300_v5 = vpack.c.bf16 %v1120_v63, %v1115_v61  ;;  %v12448_v8 = vpack.c.bf16 %v10001_v1, %v9996_v0  ;;  %v1097_v61 = vld [vmem:[%s16194_s5 + $0x60] sm:$0xff]  ;;  %v1102_v63 = vld [vmem:[%s16194_s5 + $0x88] sm:$0xff]  ;;  %v10056_v0 = vld [vmem:[%s16194_s5 + $0x7f0] sm:$0xff] }
 0x1c7   : > { %12255 = vmatprep.subr.bf16.mxu1 %v12254_v10  ;;  %12368 = vmatprep.subr.bf16.mxu0 %v12870_v7  ;;  %v12302_v10 = vpack.c.bf16 %v1131_v4, %v1126_v3  ;;  %v10061_v1 = vld [vmem:[%s16194_s5 + $0x818] sm:$0xff] }
 0x1c8   : > { %v1108_v4 = vld [vmem:[%s16194_s5 + $0xb8] sm:$0xff] }
 0x1ca   : > { %12257 = vmatpush1.bf16.msra.mxu1 %v12256_v16  ;;  %12370 = vmatpush3.bf16.msra.mxu0 %v12369_v17  ;;  %v12304_v16 = vpack.c.bf16 %v1130_v11, %v1125_v9  ;;  %v12451_v17 = vpack.c.bf16 %v10011_v13, %v10006_v12  ;;  %v12530_v9 = vpack.c.bf16 %v10061_v1, %v10056_v0  ;;  %v1112_v12 = vld [vmem:[%s16194_s5 + $0xd8] sm:$0xff]  ;;  %v10066_v13 = vld [vmem:[%s16194_s5 + $0x840] sm:$0xff]  ;;  %v9963_v0 = vld [vmem:[%s16194_s5 + $0x508] sm:$0xff] }
 0x1cb   : > { %12259 = vmatprep.subr.bf16.mxu1 %v12258_v19  ;;  %12371 = vmatprep.subr.bf16.mxu0 %v12870_v7  ;;  %v12306_v19 = vpack.c.bf16 %v1141_v15, %v1136_v14  ;;  %v10071_v14 = vld [vmem:[%s16194_s5 + $0x868] sm:$0xff]  ;;  %v9968_v1 = vld [vmem:[%s16194_s5 + $0x530] sm:$0xff] }
 0x1cc   : > { %v1118_v15 = vld [vmem:[%s16194_s5 + $0x108] sm:$0xff]  ;;  %v12533_v18 = vpack.c.bf16 %v10071_v14, %v10066_v13 }
 0x1cd   : > { %v10131_v13 = vld [vmem:[%s16194_s5 + $0xa48] sm:$0xff] }
 0x1ce   : > { %12261 = vmatpush1.bf16.msra.mxu1 %v12260_v28  ;;  %12373 = vmatpush3.bf16.msra.mxu0 %v12372_v30  ;;  %v12454_v28 = vpack.c.bf16 %v10021_v23, %v10016_v22  ;;  %v1145_v30 = vld [vmem:[%s16194_s5 + $0x1e0] sm:$0xff]  ;;  %v1122_v22 = vld [vmem:[%s16194_s5 + $0x128] sm:$0xff]  ;;  %v10076_v23 = vld [vmem:[%s16194_s5 + $0x890] sm:$0xff] }
 0x1cf   : > { %12287 = vmatprep.subr.bf16.mxu1 %v12286_v32  ;;  %12438 = vmatprep.subr.bf16.mxu0 %v12870_v7  ;;  %v1150_v32 = vld [vmem:[%s16194_s5 + $0x208] sm:$0xff] }
 0x1d0   : > { %v12312_v37 = vpack.c.bf16 %v1150_v32, %v1145_v30  ;;  %v12536_v30 = vpack.c.bf16 %v10081_v24, %v10076_v23  ;;  %v9977_v23 = vld [vmem:[%s16194_s5 + $0x578] sm:$0xff]  ;;  %v10136_v24 = vld [vmem:[%s16194_s5 + $0xa70] sm:$0xff] }
 0x1d1   : > { %1390 = vmatmul.mubr.f32.vlgmr.msra.gmra.mrb[2].mxu1 %v13285_v27  ;;  %11981 = vmatmul.mubr.f32.vlgmr.msra.gmra.mrb[4].mxu0 %v13445_v48  ;;  %v9986_v27 = vld [vmem:[%s16194_s5 + $0x5c0] sm:$0xff] }
 0x1d2   : > { %12289 = vmatpush1.bf16.msra.mxu1 %v12288_v40  ;;  %12440 = vmatpush3.bf16.msra.mxu0 %v12439_v41  ;;  %v12445_v60 = vpack.c.bf16 %v9991_v55, %v9986_v27  ;;  %v12314_v40 = vpack.c.bf16 %v1161_v36, %v1156_v35  ;;  %v1160_v41 = vld [vmem:[%s16194_s5 + $0x258] sm:$0xff]  ;;  %v1683_v27 = vrot.slane %v1681_v47, 5  ;;  %v1098_v55 = vld [vmem:[%s16194_s5 + $0x68] sm:$0xff]  ;;  %v1153_v47 = vld [vmem:[%s16194_s5 + $0x220] sm:$0xff] }
 0x1d3   : > { %12291 = vmatprep.subr.bf16.mxu1 %v12290_v43  ;;  %12441 = vmatprep.subr.bf16.mxu0 %v12870_v7  ;;  %v10041_v43 = vld [vmem:[%s16194_s5 + $0x778] sm:$0xff]  ;;  %v12316_v21 = vpack.c.bf16 %v1160_v41, %v1155_v39  ;;  %v10091_v35 = vld [vmem:[%s16194_s5 + $0x908] sm:$0xff] }
 0x1d4   : > { %1530 = vmatprep.mubr.f32.mxu1 %v12871_v45  ;;  %12015 = vmatprep.mubr.msk.f32.mxu0 %vm12872_vm2, %v12871_v45  ;;  %v12460_v49 = vpack.c.bf16 %v10041_v43, %v10036_v42  ;;  %v13605_v3 = vsel %vm1083_vm3, %v1679_v57, %v1683_v27  ;;  %v1138_v36 = vld [vmem:[%s16194_s5 + $0x1a8] sm:$0xff]  ;;  %v12539_v39 = vpack.c.bf16 %v10091_v35, %v10086_v34  ;;  %v10096_v43 = vld [vmem:[%s16194_s5 + $0x930] sm:$0xff] }
 0x1d5   : > { %v1142_v42 = vld [vmem:[%s16194_s5 + $0x1c8] sm:$0xff] }
 0x1d6   : > { %12293 = vmatpush1.bf16.msra.mxu1 %v12292_v50  ;;  %12443 = vmatpush3.bf16.msra.mxu0 %v12442_v51  ;;  %v1087_v50 = vld [vmem:[%s16194_s5 + $0x10] sm:$0xff]  ;;  %v12318_v51 = vpack.c.bf16 %v1093_v46, %v1088_v44  ;;  %v10101_v44 = vld [vmem:[%s16194_s5 + $0x958] sm:$0xff]  ;;  %v1158_v27 = vld [vmem:[%s16194_s5 + $0x248] sm:$0xff] }
 0x1d7   : > { %12295 = vmatprep.subr.bf16.mxu1 %v12294_v53  ;;  %12444 = vmatprep.subr.bf16.mxu0 %v12870_v7  ;;  %v10046_v53 = vld [vmem:[%s16194_s5 + $0x7a0] sm:$0xff]  ;;  %v1148_v46 = vld [vmem:[%s16194_s5 + $0x1f8] sm:$0xff]  ;;  %v9987_v35 = vld [vmem:[%s16194_s5 + $0x5c8] sm:$0xff] }
 0x1da   : > { %12297 = vmatpush1.bf16.msra.mxu1 %v12296_v58  ;;  %12446 = vmatpush3.bf16.msra.mxu0 %v12445_v60  ;;  %v12320_v58 = vpack.c.bf16 %v1092_v52, %v1087_v50  ;;  %v12527_v60 = vpack.c.bf16 %v10051_v54, %v10046_v53  ;;  %v1147_v50 = vld [vmem:[%s16194_s5 + $0x1f0] sm:$0xff]  ;;  %v1152_v52 = vld [vmem:[%s16194_s5 + $0x218] sm:$0xff]  ;;  %v10106_v53 = vld [vmem:[%s16194_s5 + $0x980] sm:$0xff] }
 0x1db   : > { %12299 = vmatprep.subr.bf16.mxu1 %v12298_v62  ;;  %12447 = vmatprep.subr.bf16.mxu0 %v12870_v7  ;;  %v12322_v62 = vpack.c.bf16 %v1103_v56, %v1098_v55  ;;  %v10111_v54 = vld [vmem:[%s16194_s5 + $0x9a8] sm:$0xff]  ;;  %v1163_v55 = vld [vmem:[%s16194_s5 + $0x270] sm:$0xff]  ;;  %v12344_v56 = vpack.c.bf16 %v1152_v52, %v1147_v50 }
 0x1dc   : > { %v12545_v57 = vpack.c.bf16 %v10111_v54, %v10106_v53  ;;  %v10007_v53 = vld [vmem:[%s16194_s5 + $0x668] sm:$0xff]  ;;  %v10166_v54 = vld [vmem:[%s16194_s5 + $0xb60] sm:$0xff] }
 0x1de   : > { %12301 = vmatpush1.bf16.msra.mxu1 %v12300_v5  ;;  %12449 = vmatpush3.bf16.msra.mxu0 %v12448_v8  ;;  %v1113_v5 = vld [vmem:[%s16194_s5 + $0xe0] sm:$0xff]  ;;  %v12324_v8 = vpack.c.bf16 %v1102_v63, %v1097_v61  ;;  %v1162_v61 = vld [vmem:[%s16194_s5 + $0x268] sm:$0xff]  ;;  %v10121_v63 = vld [vmem:[%s16194_s5 + $0x9f8] sm:$0xff] }
 0x1df   : > { %12303 = vmatprep.subr.bf16.mxu1 %v12302_v10  ;;  %12450 = vmatprep.subr.bf16.mxu0 %v12870_v7  ;;  %v1107_v10 = vld [vmem:[%s16194_s5 + $0xb0] sm:$0xff]  ;;  %v12326_v11 = vpack.c.bf16 %v1113_v5, %v1108_v4  ;;  %v1987_v4 = vld [vmem:[#allocation3 + $0x11] ss:$3 sm:$0x7] }
 0x1e0   : > { %v1989_v14 = vrot.slane %v1987_v4, 5  ;;  %v10028_v4 = vld [vmem:[%s16194_s5 + $0x710] sm:$0xff] }
 0x1e2   : > { %12305 = vmatpush1.bf16.msra.mxu1 %v12304_v16  ;;  %12452 = vmatpush3.bf16.msra.mxu0 %v12451_v17  ;;  %v1123_v16 = vld [vmem:[%s16194_s5 + $0x130] sm:$0xff]  ;;  %v12328_v17 = vpack.c.bf16 %v1112_v12, %v1107_v10  ;;  %v12374_v10 = vpack.c.bf16 %v9968_v1, %v9963_v0  ;;  %v10126_v12 = vld [vmem:[%s16194_s5 + $0xa20] sm:$0xff]  ;;  %v10181_v0 = vld [vmem:[%s16194_s5 + $0xbd8] sm:$0xff] }
 0x1e3   : > { %12307 = vmatprep.subr.bf16.mxu1 %v12306_v19  ;;  %12453 = vmatprep.subr.bf16.mxu0 %v12870_v7  ;;  %v1117_v19 = vld [vmem:[%s16194_s5 + $0x100] sm:$0xff]  ;;  %v12330_v20 = vpack.c.bf16 %v1123_v16, %v1118_v15  ;;  %v9973_v15 = vld [vmem:[%s16194_s5 + $0x558] sm:$0xff]  ;;  %v10023_v1 = vld [vmem:[%s16194_s5 + $0x6e8] sm:$0xff] }
 0x1e4   : > { %v9978_v16 = vld [vmem:[%s16194_s5 + $0x580] sm:$0xff] }
 0x1e6   : > { %12309 = vmatpush1.bf16.msra.mxu1 %v12308_v26  ;;  %12455 = vmatpush3.bf16.msra.mxu0 %v12454_v28  ;;  %v1133_v26 = vld [vmem:[%s16194_s5 + $0x180] sm:$0xff]  ;;  %v12332_v28 = vpack.c.bf16 %v1122_v22, %v1117_v19  ;;  %v12615_v19 = vpack.c.bf16 %v10131_v13, %v10126_v12  ;;  %v12378_v22 = vpack.c.bf16 %v9978_v16, %v9973_v15  ;;  %v10191_v13 = vld [vmem:[%s16194_s5 + $0xc28] sm:$0xff] }
 0x1e7   : > { %12311 = vmatprep.subr.bf16.mxu1 %v12310_v31  ;;  %12456 = vmatprep.subr.bf16.mxu0 %v12870_v7  ;;  %v1127_v31 = vld [vmem:[%s16194_s5 + $0x150] sm:$0xff]  ;;  %v12334_v32 = vpack.c.bf16 %v1133_v26, %v1128_v25  ;;  %v10141_v25 = vld [vmem:[%s16194_s5 + $0xa98] sm:$0xff]  ;;  %v10186_v12 = vld [vmem:[%s16194_s5 + $0xc00] sm:$0xff] }
 0x1e8   : > { %v10038_v15 = vld [vmem:[%s16194_s5 + $0x760] sm:$0xff] }
 0x1ea   : > { %12313 = vmatpush1.bf16.msra.mxu1 %v12312_v37  ;;  %12458 = vmatpush3.bf16.msra.mxu0 %v12457_v38  ;;  %v1143_v37 = vld [vmem:[%s16194_s5 + $0x1d0] sm:$0xff]  ;;  %v12336_v38 = vpack.c.bf16 %v1132_v33, %v1127_v31  ;;  %v9982_v33 = vld [vmem:[%s16194_s5 + $0x5a0] sm:$0xff] }
 0x1eb   : > { %12315 = vmatprep.subr.bf16.mxu1 %v12314_v40  ;;  %12459 = vmatprep.subr.bf16.mxu0 %v12870_v7  ;;  %v1137_v40 = vld [vmem:[%s16194_s5 + $0x1a0] sm:$0xff]  ;;  %v12338_v41 = vpack.c.bf16 %v1143_v37, %v1138_v36  ;;  %v10151_v36 = vld [vmem:[%s16194_s5 + $0xae8] sm:$0xff]  ;;  %v9993_v37 = vld [vmem:[%s16194_s5 + $0x5f8] sm:$0xff] }
 0x1ee   : > { %12317 = vmatpush1.bf16.msra.mxu1 %v12316_v21  ;;  %12461 = vmatpush3.bf16.msra.mxu0 %v12460_v49  ;;  %v12340_v21 = vpack.c.bf16 %v1142_v42, %v1137_v40  ;;  %v12542_v49 = vpack.c.bf16 %v10101_v44, %v10096_v43  ;;  %v9997_v43 = vld [vmem:[%s16194_s5 + $0x618] sm:$0xff]  ;;  %v10156_v44 = vld [vmem:[%s16194_s5 + $0xb10] sm:$0xff] }
 0x1ef   : > { %12319 = vmatprep.subr.bf16.mxu1 %v12318_v51  ;;  %12526 = vmatprep.subr.bf16.mxu0 %v12870_v7  ;;  %v12342_v51 = vpack.c.bf16 %v1153_v47, %v1148_v46  ;;  %v10161_v46 = vld [vmem:[%s16194_s5 + $0xb38] sm:$0xff]  ;;  %v10003_v47 = vld [vmem:[%s16194_s5 + $0x648] sm:$0xff] }
 0x1f0   : > { %v12624_v50 = vpack.c.bf16 %v10161_v46, %v10156_v44  ;;  %v9979_v44 = vld [vmem:[%s16194_s5 + $0x588] sm:$0xff]  ;;  %v10216_v46 = vld [vmem:[%s16194_s5 + $0xcf0] sm:$0xff] }
 0x1f1   : > { %1531 = vmatmul.mubr.f32.vlgmr.msra.gmra.mrb[0].mxu1 %v13445_v48  ;;  %12016 = vmatmul.mubr.f32.vlgmr.msra.gmra.mrb[6].mxu0 %v13605_v3 }
 0x1f2   : > { %12321 = vmatpush1.bf16.msra.mxu1 %v12320_v58  ;;  %12528 = vmatpush3.bf16.msra.mxu0 %v12527_v60  ;;  %v1157_v58 = vld [vmem:[%s16194_s5 + $0x240] sm:$0xff]  ;;  %v12346_v60 = vpack.c.bf16 %v1163_v55, %v1158_v27  ;;  %v10171_v27 = vld [vmem:[%s16194_s5 + $0xb88] sm:$0xff]  ;;  %v10013_v55 = vld [vmem:[%s16194_s5 + $0x698] sm:$0xff] }
 0x1f3   : > { %12323 = vmatprep.subr.bf16.mxu1 %v12322_v62  ;;  %12529 = vmatprep.subr.bf16.mxu0 %v12870_v7  ;;  %v10116_v62 = vld [vmem:[%s16194_s5 + $0x9d0] sm:$0xff]  ;;  %v12348_v5 = vpack.c.bf16 %v1162_v61, %v1157_v58  ;;  %v12627_v58 = vpack.c.bf16 %v10171_v27, %v10166_v54  ;;  %v9989_v27 = vld [vmem:[%s16194_s5 + $0x5d8] sm:$0xff] }
 0x1f4   : > { %1601 = vmatprep.mubr.f32.mxu1 %v12871_v45  ;;  %12050 = vmatprep.mubr.msk.f32.mxu0 %vm12872_vm2, %v12871_v45 }
 0x1f6   : > { %12325 = vmatpush1.bf16.msra.mxu1 %v12324_v8  ;;  %12531 = vmatpush3.bf16.msra.mxu0 %v12530_v9  ;;  %v12548_v8 = vpack.c.bf16 %v10121_v63, %v10116_v62  ;;  %v9962_v9 = vld [vmem:[%s16194_s5 + $0x500] sm:$0xff]  ;;  %v10017_v62 = vld [vmem:[%s16194_s5 + $0x6b8] sm:$0xff]  ;;  %v10176_v63 = vld [vmem:[%s16194_s5 + $0xbb0] sm:$0xff] }
 0x1f7   : > { %12327 = vmatprep.subr.bf16.mxu1 %v12326_v11  ;;  %12532 = vmatprep.subr.bf16.mxu0 %v12870_v7  ;;  %v9967_v11 = vld [vmem:[%s16194_s5 + $0x528] sm:$0xff] }
 0x1fa   : > { %12329 = vmatpush1.bf16.msra.mxu1 %v12328_v17  ;;  %12534 = vmatpush3.bf16.msra.mxu0 %v12533_v18  ;;  %v1985_v17 = vld [vmem:[#allocation3 + $0x3] ss:$3 sm:$0x7]  ;;  %v12376_v18 = vpack.c.bf16 %v9967_v11, %v9962_v9  ;;  %v10022_v9 = vld [vmem:[%s16194_s5 + $0x6e0] sm:$0xff] }
 0x1fb   : > { %12331 = vmatprep.subr.bf16.mxu1 %v12330_v20  ;;  %12535 = vmatprep.subr.bf16.mxu0 %v12870_v7  ;;  %v9972_v20 = vld [vmem:[%s16194_s5 + $0x550] sm:$0xff]  ;;  %v13765_v26 = vsel %vm1083_vm3, %v1985_v17, %v1989_v14  ;;  %v10027_v11 = vld [vmem:[%s16194_s5 + $0x708] sm:$0xff]  ;;  %v10033_v14 = vld [vmem:[%s16194_s5 + $0x738] sm:$0xff]  ;;  %v12633_v17 = vpack.c.bf16 %v10191_v13, %v10186_v12 }
 0x1fc   : > { %v12380_v31 = vpack.c.bf16 %v9977_v23, %v9972_v20  ;;  %v12400_v16 = vpack.c.bf16 %v10027_v11, %v10022_v9  ;;  %v10037_v20 = vld [vmem:[%s16194_s5 + $0x758] sm:$0xff]  ;;  %v10004_v11 = vld [vmem:[%s16194_s5 + $0x650] sm:$0xff] }
 0x1fd   : > { %v10201_v23 = vld [vmem:[%s16194_s5 + $0xc78] sm:$0xff] }
 0x1fe   : > { %12333 = vmatpush1.bf16.msra.mxu1 %v12332_v28  ;;  %12537 = vmatpush3.bf16.msra.mxu0 %v12536_v30  ;;  %v9983_v28 = vld [vmem:[%s16194_s5 + $0x5a8] sm:$0xff]  ;;  %v9988_v30 = vld [vmem:[%s16194_s5 + $0x5d0] sm:$0xff]  ;;  %v10009_v13 = vld [vmem:[%s16194_s5 + $0x678] sm:$0xff] }
 0x1ff   : > { %12335 = vmatprep.subr.bf16.mxu1 %v12334_v32  ;;  %12538 = vmatprep.subr.bf16.mxu0 %v12870_v7  ;;  %v12618_v32 = vpack.c.bf16 %v10141_v25, %v10136_v24  ;;  %v12382_v34 = vpack.c.bf16 %v9988_v30, %v9983_v28  ;;  %v9965_v24 = vld [vmem:[%s16194_s5 + $0x518] sm:$0xff]  ;;  %v9970_v25 = vld [vmem:[%s16194_s5 + $0x540] sm:$0xff] }
 0x200   : > { %v2293_v28 = vld [vmem:[#allocation3 + $0x12] ss:$3 sm:$0x7] }
 0x202   : > { %12337 = vmatpush1.bf16.msra.mxu1 %v12336_v38  ;;  %12540 = vmatpush3.bf16.msra.mxu0 %v12539_v39  ;;  %v9998_v38 = vld [vmem:[%s16194_s5 + $0x620] sm:$0xff]  ;;  %v12384_v39 = vpack.c.bf16 %v9987_v35, %v9982_v33  ;;  %v12406_v33 = vpack.c.bf16 %v9970_v25, %v9965_v24  ;;  %v10256_v24 = vld [vmem:[%s16194_s5 + $0xe30] sm:$0xff]  ;;  %v10261_v25 = vld [vmem:[%s16194_s5 + $0xe58] sm:$0xff] }
 0x203   : > { %12339 = vmatprep.subr.bf16.mxu1 %v12338_v41  ;;  %12541 = vmatprep.subr.bf16.mxu0 %v12870_v7  ;;  %v9992_v41 = vld [vmem:[%s16194_s5 + $0x5f0] sm:$0xff]  ;;  %v12386_v42 = vpack.c.bf16 %v9998_v38, %v9993_v37  ;;  %v10206_v35 = vld [vmem:[%s16194_s5 + $0xca0] sm:$0xff]  ;;  %v9975_v37 = vld [vmem:[%s16194_s5 + $0x568] sm:$0xff] }
 0x204   : > { %v9980_v38 = vld [vmem:[%s16194_s5 + $0x590] sm:$0xff] }
 0x206   : > { %12341 = vmatpush1.bf16.msra.mxu1 %v12340_v21  ;;  %12543 = vmatpush3.bf16.msra.mxu0 %v12542_v49  ;;  %v10008_v21 = vld [vmem:[%s16194_s5 + $0x670] sm:$0xff]  ;;  %v12388_v49 = vpack.c.bf16 %v9997_v43, %v9992_v41  ;;  %v12410_v43 = vpack.c.bf16 %v9980_v38, %v9975_v37  ;;  %v10035_v37 = vld [vmem:[%s16194_s5 + $0x748] sm:$0xff] }
 0x207   : > { %12343 = vmatprep.subr.bf16.mxu1 %v12342_v51  ;;  %12544 = vmatprep.subr.bf16.mxu0 %v12870_v7  ;;  %v10002_v51 = vld [vmem:[%s16194_s5 + $0x640] sm:$0xff]  ;;  %v12390_v52 = vpack.c.bf16 %v10008_v21, %v10003_v47  ;;  %v10221_v47 = vld [vmem:[%s16194_s5 + $0xd18] sm:$0xff]  ;;  %v10040_v38 = vld [vmem:[%s16194_s5 + $0x770] sm:$0xff] }
 0x20a   : > { %12345 = vmatpush1.bf16.msra.mxu1 %v12344_v56  ;;  %12546 = vmatpush3.bf16.msra.mxu0 %v12545_v57  ;;  %v10018_v56 = vld [vmem:[%s16194_s5 + $0x6c0] sm:$0xff]  ;;  %v12392_v57 = vpack.c.bf16 %v10007_v53, %v10002_v51  ;;  %v9984_v53 = vld [vmem:[%s16194_s5 + $0x5b0] sm:$0xff] }
 0x20b   : > { %12347 = vmatprep.subr.bf16.mxu1 %v12346_v60  ;;  %12547 = vmatprep.subr.bf16.mxu0 %v12870_v7  ;;  %v10012_v60 = vld [vmem:[%s16194_s5 + $0x690] sm:$0xff]  ;;  %v12394_v61 = vpack.c.bf16 %v10018_v56, %v10013_v55  ;;  %v10226_v55 = vld [vmem:[%s16194_s5 + $0xd40] sm:$0xff]  ;;  %v10231_v56 = vld [vmem:[%s16194_s5 + $0xd68] sm:$0xff] }
 0x20e   : > { %12349 = vmatpush1.bf16.msra.mxu1 %v12348_v5  ;;  %12549 = vmatpush3.bf16.msra.mxu0 %v12548_v8  ;;  %v12396_v5 = vpack.c.bf16 %v10017_v62, %v10012_v60  ;;  %v12630_v8 = vpack.c.bf16 %v10181_v0, %v10176_v63  ;;  %v12416_v60 = vpack.c.bf16 %v9989_v27, %v9984_v53  ;;  %v9994_v62 = vld [vmem:[%s16194_s5 + $0x600] sm:$0xff]  ;;  %v9999_v0 = vld [vmem:[%s16194_s5 + $0x628] sm:$0xff] }
 0x20f   : > { %12375 = vmatprep.subr.bf16.mxu1 %v12374_v10  ;;  %12614 = vmatprep.subr.bf16.mxu0 %v12870_v7  ;;  %v12398_v10 = vpack.c.bf16 %v10028_v4, %v10023_v1  ;;  %v10236_v1 = vld [vmem:[%s16194_s5 + $0xd90] sm:$0xff]  ;;  %v10241_v4 = vld [vmem:[%s16194_s5 + $0xdb8] sm:$0xff]  ;;  %v12420_v9 = vpack.c.bf16 %v9999_v0, %v9994_v62  ;;  %v10042_v53 = vld [vmem:[%s16194_s5 + $0x780] sm:$0xff] }
 0x210   : > { %v10047_v27 = vld [vmem:[%s16194_s5 + $0x7a8] sm:$0xff]  ;;  %v10052_v0 = vld [vmem:[%s16194_s5 + $0x7d0] sm:$0xff] }
 0x211   : > { %1602 = vmatmul.mubr.f32.vlgmr.msra.gmra.mrb[2].mxu1 %v13445_v48  ;;  %12051 = vmatmul.mubr.f32.vlgmr.msra.gmra.mrb[8].mxu0 %v13765_v26  ;;  %v10146_v48 = vld [vmem:[%s16194_s5 + $0xac0] sm:$0xff]  ;;  %v12464_v62 = vpack.c.bf16 %v10047_v27, %v10042_v53 }
 0x212   : > { %12377 = vmatpush1.bf16.msra.mxu1 %v12376_v18  ;;  %12616 = vmatpush3.bf16.msra.mxu0 %v12615_v19  ;;  %v12621_v40 = vpack.c.bf16 %v10151_v36, %v10146_v48  ;;  %v10032_v18 = vld [vmem:[%s16194_s5 + $0x730] sm:$0xff]  ;;  %v12402_v19 = vpack.c.bf16 %v10038_v15, %v10033_v14  ;;  %v10211_v48 = vld [vmem:[%s16194_s5 + $0xcc8] sm:$0xff]  ;;  %v2295_v36 = vrot.slane %v2293_v28, 5  ;;  %v10246_v14 = vld [vmem:[%s16194_s5 + $0xde0] sm:$0xff] }
 0x213   : > { %12379 = vmatprep.subr.bf16.mxu1 %v12378_v22  ;;  %12617 = vmatprep.subr.bf16.mxu0 %v12870_v7  ;;  %v10196_v22 = vld [vmem:[%s16194_s5 + $0xc50] sm:$0xff]  ;;  %v12404_v30 = vpack.c.bf16 %v10037_v20, %v10032_v18  ;;  %v12703_v41 = vpack.c.bf16 %v10211_v48, %v10206_v35  ;;  %v10251_v15 = vld [vmem:[%s16194_s5 + $0xe08] sm:$0xff]  ;;  %v12424_v18 = vpack.c.bf16 %v10009_v13, %v10004_v11  ;;  %v10014_v20 = vld [vmem:[%s16194_s5 + $0x6a0] sm:$0xff] }
 0x214   : > { %1831 = vmatprep.mubr.f32.mxu1 %v12871_v45  ;;  %12085 = vmatprep.mubr.msk.f32.mxu0 %vm12872_vm2, %v12871_v45  ;;  %v10025_v28 = vld [vmem:[%s16194_s5 + $0x6f8] sm:$0xff]  ;;  %v10266_v48 = vld [vmem:[%s16194_s5 + $0xe80] sm:$0xff]  ;;  %v10068_v11 = vld [vmem:[%s16194_s5 + $0x850] sm:$0xff] }
 0x215   : > { %v10029_v35 = vld [vmem:[%s16194_s5 + $0x718] sm:$0xff] }
 0x216   : > { %12381 = vmatpush1.bf16.msra.mxu1 %v12380_v31  ;;  %12619 = vmatpush3.bf16.msra.mxu0 %v12618_v32  ;;  %v12636_v31 = vpack.c.bf16 %v10201_v23, %v10196_v22  ;;  %v9964_v32 = vld [vmem:[%s16194_s5 + $0x510] sm:$0xff]  ;;  %v10019_v23 = vld [vmem:[%s16194_s5 + $0x6c8] sm:$0xff] }
 0x217   : > { %12383 = vmatprep.subr.bf16.mxu1 %v12382_v34  ;;  %12620 = vmatprep.subr.bf16.mxu0 %v12870_v7  ;;  %v9969_v34 = vld [vmem:[%s16194_s5 + $0x538] sm:$0xff] }
 0x21a   : > { %12385 = vmatpush1.bf16.msra.mxu1 %v12384_v39  ;;  %12622 = vmatpush3.bf16.msra.mxu0 %v12621_v40  ;;  %v2291_v39 = vld [vmem:[#allocation3 + $0x4] ss:$3 sm:$0x7]  ;;  %v12408_v40 = vpack.c.bf16 %v9969_v34, %v9964_v32  ;;  %v12718_v32 = vpack.c.bf16 %v10261_v25, %v10256_v24  ;;  %v10077_v25 = vld [vmem:[%s16194_s5 + $0x898] sm:$0xff] }
 0x21b   : > { %12387 = vmatprep.subr.bf16.mxu1 %v12386_v42  ;;  %12623 = vmatprep.subr.bf16.mxu0 %v12870_v7  ;;  %v9974_v42 = vld [vmem:[%s16194_s5 + $0x560] sm:$0xff]  ;;  %v13925_v21 = vsel %vm1083_vm3, %v2291_v39, %v2295_v36  ;;  %v10271_v36 = vld [vmem:[%s16194_s5 + $0xea8] sm:$0xff] }
 0x21c   : > { %v12412_v51 = vpack.c.bf16 %v9979_v44, %v9974_v42  ;;  %v12434_v42 = vpack.c.bf16 %v10040_v38, %v10035_v37  ;;  %v10276_v44 = vld [vmem:[%s16194_s5 + $0xed0] sm:$0xff]  ;;  %v10326_v37 = vld [vmem:[%s16194_s5 + $0x1060] sm:$0xff]  ;;  %v10331_v38 = vld [vmem:[%s16194_s5 + $0x1088] sm:$0xff] }
 0x21e   : > { %12389 = vmatpush1.bf16.msra.mxu1 %v12388_v49  ;;  %12625 = vmatpush3.bf16.msra.mxu0 %v12624_v50  ;;  %v9985_v49 = vld [vmem:[%s16194_s5 + $0x5b8] sm:$0xff]  ;;  %v9990_v50 = vld [vmem:[%s16194_s5 + $0x5e0] sm:$0xff] }
 0x21f   : > { %12391 = vmatprep.subr.bf16.mxu1 %v12390_v52  ;;  %12626 = vmatprep.subr.bf16.mxu0 %v12870_v7  ;;  %v12706_v52 = vpack.c.bf16 %v10221_v47, %v10216_v46  ;;  %v12414_v54 = vpack.c.bf16 %v9990_v50, %v9985_v49  ;;  %v10281_v46 = vld [vmem:[%s16194_s5 + $0xef8] sm:$0xff]  ;;  %v10043_v47 = vld [vmem:[%s16194_s5 + $0x788] sm:$0xff]  ;;  %v10048_v49 = vld [vmem:[%s16194_s5 + $0x7b0] sm:$0xff] }
 0x220   : > { %v2599_v50 = vld [vmem:[#allocation3 + $0x13] ss:$3 sm:$0x7] }
 0x222   : > { %12393 = vmatpush1.bf16.msra.mxu1 %v12392_v57  ;;  %12628 = vmatpush3.bf16.msra.mxu0 %v12627_v58  ;;  %v9995_v57 = vld [vmem:[%s16194_s5 + $0x608] sm:$0xff]  ;;  %v10000_v58 = vld [vmem:[%s16194_s5 + $0x630] sm:$0xff] }
 0x223   : > { %12395 = vmatprep.subr.bf16.mxu1 %v12394_v61  ;;  %12629 = vmatprep.subr.bf16.mxu0 %v12870_v7  ;;  %v12709_v61 = vpack.c.bf16 %v10231_v56, %v10226_v55  ;;  %v12418_v63 = vpack.c.bf16 %v10000_v58, %v9995_v57  ;;  %v10286_v55 = vld [vmem:[%s16194_s5 + $0xf20] sm:$0xff]  ;;  %v10291_v56 = vld [vmem:[%s16194_s5 + $0xf48] sm:$0xff]  ;;  %v2601_v57 = vrot.slane %v2599_v50, 5  ;;  %v10053_v58 = vld [vmem:[%s16194_s5 + $0x7d8] sm:$0xff] }
 0x224   : > { %v10103_v50 = vld [vmem:[%s16194_s5 + $0x968] sm:$0xff] }
 0x226   : > { %12397 = vmatpush1.bf16.msra.mxu1 %v12396_v5  ;;  %12631 = vmatpush3.bf16.msra.mxu0 %v12630_v8  ;;  %v10005_v5 = vld [vmem:[%s16194_s5 + $0x658] sm:$0xff]  ;;  %v10010_v8 = vld [vmem:[%s16194_s5 + $0x680] sm:$0xff] }
 0x227   : > { %12399 = vmatprep.subr.bf16.mxu1 %v12398_v10  ;;  %12632 = vmatprep.subr.bf16.mxu0 %v12870_v7  ;;  %v12712_v10 = vpack.c.bf16 %v10241_v4, %v10236_v1  ;;  %v12422_v12 = vpack.c.bf16 %v10010_v8, %v10005_v5  ;;  %v10057_v4 = vld [vmem:[%s16194_s5 + $0x7f8] sm:$0xff]  ;;  %v10296_v5 = vld [vmem:[%s16194_s5 + $0xf70] sm:$0xff] }
 0x228   : > { %v10301_v8 = vld [vmem:[%s16194_s5 + $0xf98] sm:$0xff] }
 0x229   : > { %v12794_v13 = vpack.c.bf16 %v10301_v8, %v10296_v5  ;;  %v10361_v5 = vld [vmem:[%s16194_s5 + $0x1178] sm:$0xff] }
 0x22a   : > { %12401 = vmatpush1.bf16.msra.mxu1 %v12400_v16  ;;  %12634 = vmatpush3.bf16.msra.mxu0 %v12633_v17  ;;  %v10015_v16 = vld [vmem:[%s16194_s5 + $0x6a8] sm:$0xff]  ;;  %v10020_v17 = vld [vmem:[%s16194_s5 + $0x6d0] sm:$0xff]  ;;  %v10045_v8 = vld [vmem:[%s16194_s5 + $0x798] sm:$0xff] }
 0x22b   : > { %12403 = vmatprep.subr.bf16.mxu1 %v12402_v19  ;;  %12635 = vmatprep.subr.bf16.mxu0 %v12870_v7  ;;  %v12715_v19 = vpack.c.bf16 %v10251_v15, %v10246_v14  ;;  %v12426_v22 = vpack.c.bf16 %v10020_v17, %v10015_v16  ;;  %v10062_v14 = vld [vmem:[%s16194_s5 + $0x820] sm:$0xff]  ;;  %v10067_v16 = vld [vmem:[%s16194_s5 + $0x848] sm:$0xff] }
 0x22c   : > { %v10311_v17 = vld [vmem:[%s16194_s5 + $0xfe8] sm:$0xff] }
 0x22e   : > { %12405 = vmatpush1.bf16.msra.mxu1 %v12404_v30  ;;  %12637 = vmatpush3.bf16.msra.mxu0 %v12636_v31  ;;  %v10030_v30 = vld [vmem:[%s16194_s5 + $0x720] sm:$0xff]  ;;  %v12428_v31 = vpack.c.bf16 %v10019_v23, %v10014_v20  ;;  %v12472_v20 = vpack.c.bf16 %v10067_v16, %v10062_v14  ;;  %v10072_v23 = vld [vmem:[%s16194_s5 + $0x870] sm:$0xff]  ;;  %v10049_v16 = vld [vmem:[%s16194_s5 + $0x7b8] sm:$0xff] }
 0x22f   : > { %12407 = vmatprep.subr.bf16.mxu1 %v12406_v33  ;;  %12702 = vmatprep.subr.bf16.mxu0 %v12870_v7  ;;  %v10024_v33 = vld [vmem:[%s16194_s5 + $0x6f0] sm:$0xff]  ;;  %v12430_v34 = vpack.c.bf16 %v10030_v30, %v10025_v28  ;;  %v10321_v30 = vld [vmem:[%s16194_s5 + $0x1038] sm:$0xff] }
 0x230   : > { %v12432_v39 = vpack.c.bf16 %v10029_v35, %v10024_v33  ;;  %v10316_v28 = vld [vmem:[%s16194_s5 + $0x1010] sm:$0xff]  ;;  %v12476_v33 = vpack.c.bf16 %v10077_v25, %v10072_v23  ;;  %v10082_v35 = vld [vmem:[%s16194_s5 + $0x8c0] sm:$0xff]  ;;  %v10059_v23 = vld [vmem:[%s16194_s5 + $0x808] sm:$0xff] }
 0x231   : > { %1832 = vmatmul.mubr.f32.vlgmr.msra.gmra.mrb[0].mxu1 %v13605_v3  ;;  %12086 = vmatmul.mubr.f32.vlgmr.msra.gmra.mrb[10].mxu0 %v13925_v21  ;;  %v10065_v25 = vld [vmem:[%s16194_s5 + $0x838] sm:$0xff] }
 0x232   : > { %12409 = vmatpush1.bf16.msra.mxu1 %v12408_v40  ;;  %12704 = vmatpush3.bf16.msra.mxu0 %v12703_v41  ;;  %v12721_v40 = vpack.c.bf16 %v10271_v36, %v10266_v48  ;;  %v10034_v41 = vld [vmem:[%s16194_s5 + $0x740] sm:$0xff]  ;;  %v10087_v36 = vld [vmem:[%s16194_s5 + $0x8e8] sm:$0xff] }
 0x233   : > { %12411 = vmatprep.subr.bf16.mxu1 %v12410_v43  ;;  %12705 = vmatprep.subr.bf16.mxu0 %v12870_v7  ;;  %v10039_v43 = vld [vmem:[%s16194_s5 + $0x768] sm:$0xff] }
 0x234   : > { %1902 = vmatprep.mubr.f32.mxu1 %v12871_v45  ;;  %12120 = vmatprep.mubr.msk.f32.mxu0 %vm12872_vm2, %v12871_v45 }
 0x236   : > { %12413 = vmatpush1.bf16.msra.mxu1 %v12412_v51  ;;  %12707 = vmatpush3.bf16.msra.mxu0 %v12706_v52  ;;  %v12436_v51 = vpack.c.bf16 %v10039_v43, %v10034_v41  ;;  %v12724_v52 = vpack.c.bf16 %v10281_v46, %v10276_v44  ;;  %v12480_v41 = vpack.c.bf16 %v10087_v36, %v10082_v35  ;;  %v10092_v43 = vld [vmem:[%s16194_s5 + $0x910] sm:$0xff]  ;;  %v10097_v46 = vld [vmem:[%s16194_s5 + $0x938] sm:$0xff] }
 0x237   : > { %12415 = vmatprep.subr.bf16.mxu1 %v12414_v54  ;;  %12708 = vmatprep.subr.bf16.mxu0 %v12870_v7  ;;  %v12462_v54 = vpack.c.bf16 %v10048_v49, %v10043_v47  ;;  %v10336_v47 = vld [vmem:[%s16194_s5 + $0x10b0] sm:$0xff]  ;;  %v10341_v49 = vld [vmem:[%s16194_s5 + $0x10d8] sm:$0xff] }
 0x238   : > { %v12806_v53 = vpack.c.bf16 %v10341_v49, %v10336_v47  ;;  %v10080_v35 = vld [vmem:[%s16194_s5 + $0x8b0] sm:$0xff] }
 0x239   : > { %v10100_v47 = vld [vmem:[%s16194_s5 + $0x950] sm:$0xff] }
 0x23a   : > { %12417 = vmatpush1.bf16.msra.mxu1 %v12416_v60  ;;  %12710 = vmatpush3.bf16.msra.mxu0 %v12709_v61  ;;  %v10058_v60 = vld [vmem:[%s16194_s5 + $0x800] sm:$0xff]  ;;  %v2597_v61 = vld [vmem:[#allocation3 + $0x5] ss:$3 sm:$0x7] }
 0x23b   : > { %12419 = vmatprep.subr.bf16.mxu1 %v12418_v63  ;;  %12711 = vmatprep.subr.bf16.mxu0 %v12870_v7  ;;  %v12791_v63 = vpack.c.bf16 %v10291_v56, %v10286_v55  ;;  %v12466_v1 = vpack.c.bf16 %v10058_v60, %v10053_v58  ;;  %v10107_v55 = vld [vmem:[%s16194_s5 + $0x988] sm:$0xff]  ;;  %v10346_v56 = vld [vmem:[%s16194_s5 + $0x1100] sm:$0xff]  ;;  %v10113_v58 = vld [vmem:[%s16194_s5 + $0x9b8] sm:$0xff] }
 0x23c   : > { %v10118_v60 = vld [vmem:[%s16194_s5 + $0x9e0] sm:$0xff] }
 0x23e   : > { %12421 = vmatpush1.bf16.msra.mxu1 %v12420_v9  ;;  %12713 = vmatpush3.bf16.msra.mxu0 %v12712_v10  ;;  %v14085_v9 = vsel %vm1083_vm3, %v2597_v61, %v2601_v57  ;;  %v10063_v10 = vld [vmem:[%s16194_s5 + $0x828] sm:$0xff] }
 0x23f   : > { %12423 = vmatprep.subr.bf16.mxu1 %v12422_v12  ;;  %12714 = vmatprep.subr.bf16.mxu0 %v12870_v7  ;;  %v12468_v12 = vpack.c.bf16 %v10057_v4, %v10052_v0  ;;  %v12470_v15 = vpack.c.bf16 %v10068_v11, %v10063_v10  ;;  %v10351_v57 = vld [vmem:[%s16194_s5 + $0x1128] sm:$0xff]  ;;  %v12490_v0 = vpack.c.bf16 %v10118_v60, %v10113_v58  ;;  %v10356_v4 = vld [vmem:[%s16194_s5 + $0x1150] sm:$0xff]  ;;  %v10050_v10 = vld [vmem:[%s16194_s5 + $0x7c0] sm:$0xff] }
 0x240   : > { %v2905_v11 = vld [vmem:[#allocation3 + $0x14] ss:$3 sm:$0x7]  ;;  %v12494_v14 = vpack.c.bf16 %v10050_v10, %v10045_v8  ;;  %v10115_v60 = vld [vmem:[%s16194_s5 + $0x9c8] sm:$0xff]  ;;  %v10128_v8 = vld [vmem:[%s16194_s5 + $0xa30] sm:$0xff] }
 0x242   : > { %12425 = vmatpush1.bf16.msra.mxu1 %v12424_v18  ;;  %12716 = vmatpush3.bf16.msra.mxu0 %v12715_v19  ;;  %v10073_v18 = vld [vmem:[%s16194_s5 + $0x878] sm:$0xff]  ;;  %v10078_v19 = vld [vmem:[%s16194_s5 + $0x8a0] sm:$0xff] }
 0x243   : > { %12427 = vmatprep.subr.bf16.mxu1 %v12426_v22  ;;  %12717 = vmatprep.subr.bf16.mxu0 %v12870_v7  ;;  %v12474_v24 = vpack.c.bf16 %v10078_v19, %v10073_v18  ;;  %v10060_v18 = vld [vmem:[%s16194_s5 + $0x810] sm:$0xff] }
 0x244   : > { %v2903_v19 = vld [vmem:[#allocation3 + $0x6] ss:$3 sm:$0x7] }
 0x246   : > { %12429 = vmatpush1.bf16.msra.mxu1 %v12428_v31  ;;  %12719 = vmatpush3.bf16.msra.mxu0 %v12718_v32  ;;  %v10083_v31 = vld [vmem:[%s16194_s5 + $0x8c8] sm:$0xff]  ;;  %v10088_v32 = vld [vmem:[%s16194_s5 + $0x8f0] sm:$0xff] }
 0x247   : > { %12431 = vmatprep.subr.bf16.mxu1 %v12430_v34  ;;  %12720 = vmatprep.subr.bf16.mxu0 %v12870_v7  ;;  %v12800_v34 = vpack.c.bf16 %v10321_v30, %v10316_v28  ;;  %v12478_v48 = vpack.c.bf16 %v10088_v32, %v10083_v31  ;;  %v10070_v28 = vld [vmem:[%s16194_s5 + $0x860] sm:$0xff]  ;;  %v10064_v32 = vld [vmem:[%s16194_s5 + $0x830] sm:$0xff] }
 0x248   : > { %v12502_v31 = vpack.c.bf16 %v10070_v28, %v10065_v25  ;;  %v10147_v25 = vld [vmem:[%s16194_s5 + $0xac8] sm:$0xff]  ;;  %v10153_v28 = vld [vmem:[%s16194_s5 + $0xaf8] sm:$0xff] }
 0x24a   : > { %12433 = vmatpush1.bf16.msra.mxu1 %v12432_v39  ;;  %12722 = vmatpush3.bf16.msra.mxu0 %v12721_v40  ;;  %v10093_v39 = vld [vmem:[%s16194_s5 + $0x918] sm:$0xff]  ;;  %v10098_v40 = vld [vmem:[%s16194_s5 + $0x940] sm:$0xff] }
 0x24b   : > { %12435 = vmatprep.subr.bf16.mxu1 %v12434_v42  ;;  %12723 = vmatprep.subr.bf16.mxu0 %v12870_v7  ;;  %v12803_v42 = vpack.c.bf16 %v10331_v38, %v10326_v37  ;;  %v12482_v44 = vpack.c.bf16 %v10098_v40, %v10093_v39  ;;  %v10074_v37 = vld [vmem:[%s16194_s5 + $0x880] sm:$0xff]  ;;  %v10079_v38 = vld [vmem:[%s16194_s5 + $0x8a8] sm:$0xff]  ;;  %v10085_v39 = vld [vmem:[%s16194_s5 + $0x8d8] sm:$0xff] }
 0x24c   : > { %v10090_v40 = vld [vmem:[%s16194_s5 + $0x900] sm:$0xff] }
 0x24e   : > { %12437 = vmatpush1.bf16.msra.mxu1 %v12436_v51  ;;  %12725 = vmatpush3.bf16.msra.mxu0 %v12724_v52  ;;  %v10108_v51 = vld [vmem:[%s16194_s5 + $0x990] sm:$0xff]  ;;  %v12484_v52 = vpack.c.bf16 %v10097_v46, %v10092_v43  ;;  %v10095_v46 = vld [vmem:[%s16194_s5 + $0x928] sm:$0xff] }
 0x24f   : > { %12463 = vmatprep.subr.bf16.mxu1 %v12462_v54  ;;  %12790 = vmatprep.subr.bf16.mxu0 %v12870_v7  ;;  %v10102_v54 = vld [vmem:[%s16194_s5 + $0x960] sm:$0xff]  ;;  %v12486_v27 = vpack.c.bf16 %v10108_v51, %v10103_v50  ;;  %v10084_v43 = vld [vmem:[%s16194_s5 + $0x8d0] sm:$0xff]  ;;  %v12514_v50 = vpack.c.bf16 %v10100_v47, %v10095_v46  ;;  %v10183_v46 = vld [vmem:[%s16194_s5 + $0xbe8] sm:$0xff] }
 0x250   : > { %v12488_v61 = vpack.c.bf16 %v10107_v55, %v10102_v54  ;;  %v10094_v51 = vld [vmem:[%s16194_s5 + $0x920] sm:$0xff]  ;;  %v10188_v47 = vld [vmem:[%s16194_s5 + $0xc10] sm:$0xff] }
 0x251   : > { %1903 = vmatmul.mubr.f32.vlgmr.msra.gmra.mrb[2].mxu1 %v13605_v3  ;;  %12121 = vmatmul.mubr.f32.vlgmr.msra.gmra.mrb[12].mxu0 %v14085_v9  ;;  %v10306_v3 = vld [vmem:[%s16194_s5 + $0xfc0] sm:$0xff] }
 0x252   : > { %12465 = vmatpush1.bf16.msra.mxu1 %v12464_v62  ;;  %12792 = vmatpush3.bf16.msra.mxu0 %v12791_v63  ;;  %v12797_v22 = vpack.c.bf16 %v10311_v17, %v10306_v3  ;;  %v12809_v62 = vpack.c.bf16 %v10351_v57, %v10346_v56  ;;  %v10112_v63 = vld [vmem:[%s16194_s5 + $0x9b0] sm:$0xff]  ;;  %v2907_v3 = vrot.slane %v2905_v11, 5  ;;  %v10055_v17 = vld [vmem:[%s16194_s5 + $0x7e8] sm:$0xff]  ;;  %v10110_v54 = vld [vmem:[%s16194_s5 + $0x9a0] sm:$0xff] }
 0x253   : > { %12467 = vmatprep.subr.bf16.mxu1 %v12466_v1  ;;  %12793 = vmatprep.subr.bf16.mxu0 %v12870_v7  ;;  %v10117_v1 = vld [vmem:[%s16194_s5 + $0x9d8] sm:$0xff]  ;;  %v10104_v56 = vld [vmem:[%s16194_s5 + $0x970] sm:$0xff] }
 0x254   : > { %2137 = vmatprep.mubr.f32.mxu1 %v12871_v45  ;;  %12155 = vmatprep.mubr.msk.f32.mxu0 %vm12872_vm2, %v12871_v45  ;;  %v10109_v57 = vld [vmem:[%s16194_s5 + $0x998] sm:$0xff] }
 0x256   : > { %12469 = vmatpush1.bf16.msra.mxu1 %v12468_v12  ;;  %12795 = vmatpush3.bf16.msra.mxu0 %v12794_v13  ;;  %v12492_v12 = vpack.c.bf16 %v10117_v1, %v10112_v63  ;;  %v12812_v13 = vpack.c.bf16 %v10361_v5, %v10356_v4  ;;  %v12520_v63 = vpack.c.bf16 %v10109_v57, %v10104_v56  ;;  %v10114_v1 = vld [vmem:[%s16194_s5 + $0x9c0] sm:$0xff]  ;;  %v10119_v4 = vld [vmem:[%s16194_s5 + $0x9e8] sm:$0xff] }
 0x257   : > { %12471 = vmatprep.subr.bf16.mxu1 %v12470_v15  ;;  %12796 = vmatprep.subr.bf16.mxu0 %v12870_v7  ;;  %v10044_v15 = vld [vmem:[%s16194_s5 + $0x790] sm:$0xff]  ;;  %v10123_v5 = vld [vmem:[%s16194_s5 + $0xa08] sm:$0xff]  ;;  %v12524_v10 = vpack.c.bf16 %v10119_v4, %v10114_v1 }
 0x258   : > { %v12550_v11 = vpack.c.bf16 %v10128_v8, %v10123_v5  ;;  %v10124_v4 = vld [vmem:[%s16194_s5 + $0xa10] sm:$0xff]  ;;  %v10129_v5 = vld [vmem:[%s16194_s5 + $0xa38] sm:$0xff]  ;;  %v10135_v8 = vld [vmem:[%s16194_s5 + $0xa68] sm:$0xff] }
 0x25a   : > { %12473 = vmatpush1.bf16.msra.mxu1 %v12472_v20  ;;  %12798 = vmatpush3.bf16.msra.mxu0 %v12797_v22  ;;  %v12498_v20 = vpack.c.bf16 %v10060_v18, %v10055_v17  ;;  %v10054_v22 = vld [vmem:[%s16194_s5 + $0x7e0] sm:$0xff]  ;;  %v10132_v17 = vld [vmem:[%s16194_s5 + $0xa50] sm:$0xff]  ;;  %v10137_v18 = vld [vmem:[%s16194_s5 + $0xa78] sm:$0xff] }
 0x25b   : > { %12475 = vmatprep.subr.bf16.mxu1 %v12474_v24  ;;  %12799 = vmatprep.subr.bf16.mxu0 %v12870_v7  ;;  %v14232_v24 = vsel %vm1083_vm3, %v2903_v19, %v2907_v3  ;;  %v12500_v30 = vpack.c.bf16 %v10059_v23, %v10054_v22  ;;  %v10143_v19 = vld [vmem:[%s16194_s5 + $0xaa8] sm:$0xff]  ;;  %v10142_v23 = vld [vmem:[%s16194_s5 + $0xaa0] sm:$0xff] }
 0x25e   : > { %12477 = vmatpush1.bf16.msra.mxu1 %v12476_v33  ;;  %12801 = vmatpush3.bf16.msra.mxu0 %v12800_v34  ;;  %v10069_v33 = vld [vmem:[%s16194_s5 + $0x858] sm:$0xff]  ;;  %v10075_v34 = vld [vmem:[%s16194_s5 + $0x888] sm:$0xff] }
 0x25f   : > { %12479 = vmatprep.subr.bf16.mxu1 %v12478_v48  ;;  %12802 = vmatprep.subr.bf16.mxu0 %v12870_v7  ;;  %v12504_v48 = vpack.c.bf16 %v10069_v33, %v10064_v32  ;;  %v12506_v36 = vpack.c.bf16 %v10080_v35, %v10075_v34  ;;  %v10152_v32 = vld [vmem:[%s16194_s5 + $0xaf0] sm:$0xff]  ;;  %v10157_v33 = vld [vmem:[%s16194_s5 + $0xb18] sm:$0xff]  ;;  %v10163_v34 = vld [vmem:[%s16194_s5 + $0xb48] sm:$0xff] }
 0x260   : > { %v10168_v35 = vld [vmem:[%s16194_s5 + $0xb70] sm:$0xff] }
 0x262   : > { %12481 = vmatpush1.bf16.msra.mxu1 %v12480_v41  ;;  %12804 = vmatpush3.bf16.msra.mxu0 %v12803_v42  ;;  %v12508_v41 = vpack.c.bf16 %v10079_v38, %v10074_v37  ;;  %v12510_v42 = vpack.c.bf16 %v10090_v40, %v10085_v39  ;;  %v10162_v37 = vld [vmem:[%s16194_s5 + $0xb40] sm:$0xff]  ;;  %v10167_v38 = vld [vmem:[%s16194_s5 + $0xb68] sm:$0xff]  ;;  %v10173_v39 = vld [vmem:[%s16194_s5 + $0xb98] sm:$0xff] }
 0x263   : > { %12483 = vmatprep.subr.bf16.mxu1 %v12482_v44  ;;  %12805 = vmatprep.subr.bf16.mxu0 %v12870_v7  ;;  %v10089_v44 = vld [vmem:[%s16194_s5 + $0x8f8] sm:$0xff]  ;;  %v10178_v40 = vld [vmem:[%s16194_s5 + $0xbc0] sm:$0xff] }
 0x264   : > { %v12512_v49 = vpack.c.bf16 %v10089_v44, %v10084_v43  ;;  %v10172_v43 = vld [vmem:[%s16194_s5 + $0xb90] sm:$0xff]  ;;  %v10177_v44 = vld [vmem:[%s16194_s5 + $0xbb8] sm:$0xff] }
 0x266   : > { %12485 = vmatpush1.bf16.msra.mxu1 %v12484_v52  ;;  %12807 = vmatpush3.bf16.msra.mxu0 %v12806_v53  ;;  %v10099_v52 = vld [vmem:[%s16194_s5 + $0x948] sm:$0xff]  ;;  %v10105_v53 = vld [vmem:[%s16194_s5 + $0x978] sm:$0xff] }
 0x267   : > { %12487 = vmatprep.subr.bf16.mxu1 %v12486_v27  ;;  %12808 = vmatprep.subr.bf16.mxu0 %v12870_v7  ;;  %v12516_v27 = vpack.c.bf16 %v10099_v52, %v10094_v51  ;;  %v12518_v55 = vpack.c.bf16 %v10110_v54, %v10105_v53  ;;  %v10182_v51 = vld [vmem:[%s16194_s5 + $0xbe0] sm:$0xff]  ;;  %v10187_v52 = vld [vmem:[%s16194_s5 + $0xc08] sm:$0xff]  ;;  %v10193_v54 = vld [vmem:[%s16194_s5 + $0xc38] sm:$0xff] }
 0x268   : > { %v12576_v57 = vpack.c.bf16 %v10187_v52, %v10182_v51 }
 0x26a   : > { %12489 = vmatpush1.bf16.msra.mxu1 %v12488_v61  ;;  %12810 = vmatpush3.bf16.msra.mxu0 %v12809_v62  ;;  %v10120_v61 = vld [vmem:[%s16194_s5 + $0x9f0] sm:$0xff] }
 0x26b   : > { %12491 = vmatprep.subr.bf16.mxu1 %v12490_v0  ;;  %12811 = vmatprep.subr.bf16.mxu0 %v12870_v7  ;;  %v12496_v7 = vpack.c.bf16 %v10049_v16, %v10044_v15  ;;  %v12522_v0 = vpack.c.bf16 %v10120_v61, %v10115_v60  ;;  %v10138_v15 = vld [vmem:[%s16194_s5 + $0xa80] sm:$0xff]  ;;  %v10192_v61 = vld [vmem:[%s16194_s5 + $0xc30] sm:$0xff] }
 0x26e   : > { %12493 = vmatpush1.bf16.msra.mxu1 %v12492_v12  ;;  %12813 = vmatpush3.bf16.msra.mxu0 %v12812_v13  ;;  %v10122_v12 = vld [vmem:[%s16194_s5 + $0xa00] sm:$0xff]  ;;  %v10127_v13 = vld [vmem:[%s16194_s5 + $0xa28] sm:$0xff] }
 0x26f   : > { %12495 = vmatprep.subr.bf16.mxu1 %v12494_v14  ;;  %v10133_v14 = vld [vmem:[%s16194_s5 + $0xa58] sm:$0xff]  ;;  %v12552_v16 = vpack.c.bf16 %v10127_v13, %v10122_v12  ;;  %v10134_v13 = vld [vmem:[%s16194_s5 + $0xa60] sm:$0xff] }
 0x270   : > { %v12554_v3 = vpack.c.bf16 %v10138_v15, %v10133_v14  ;;  %v10139_v14 = vld [vmem:[%s16194_s5 + $0xa88] sm:$0xff]  ;;  %v10145_v15 = vld [vmem:[%s16194_s5 + $0xab8] sm:$0xff] }
 0x271   : > { %2138 = vmatmul.mubr.f32.vlgmr.msra.gmra.mrb[0].mxu1 %v13765_v26  ;;  %12156 = vmatmul.mubr.f32.vlgmr.msra.gmra.mrb[14].mxu0 %v14232_v24 }
 0x272   : > { %12497 = vmatpush1.bf16.msra.mxu1 %v12496_v7  ;;  %2208 = vmatprep.mubr.f32.mxu1 %v12871_v45  ;;  %v10148_v7 = vld [vmem:[%s16194_s5 + $0xad0] sm:$0xff] }
 0x273   : > { %12499 = vmatprep.subr.bf16.mxu1 %v12498_v20  ;;  %v12556_v20 = vpack.c.bf16 %v10137_v18, %v10132_v17  ;;  %v12558_v22 = vpack.c.bf16 %v10148_v7, %v10143_v19  ;;  %v10144_v18 = vld [vmem:[%s16194_s5 + $0xab0] sm:$0xff]  ;;  %v10149_v19 = vld [vmem:[%s16194_s5 + $0xad8] sm:$0xff]  ;;  %v10155_v7 = vld [vmem:[%s16194_s5 + $0xb08] sm:$0xff] }
 0x276   : > { %12501 = vmatpush1.bf16.msra.mxu1 %v12500_v30  ;;  %v12560_v30 = vpack.c.bf16 %v10147_v25, %v10142_v23  ;;  %v10154_v25 = vld [vmem:[%s16194_s5 + $0xb00] sm:$0xff] }
 0x277   : > { %12503 = vmatprep.subr.bf16.mxu1 %v12502_v31 }
 0x27a   : > { %12505 = vmatpush1.bf16.msra.mxu1 %v12504_v48  ;;  %v12564_v48 = vpack.c.bf16 %v10157_v33, %v10152_v32  ;;  %v10164_v33 = vld [vmem:[%s16194_s5 + $0xb50] sm:$0xff] }
 0x27b   : > { %12507 = vmatprep.subr.bf16.mxu1 %v12506_v36  ;;  %v12566_v36 = vpack.c.bf16 %v10168_v35, %v10163_v34  ;;  %v10169_v34 = vld [vmem:[%s16194_s5 + $0xb78] sm:$0xff]  ;;  %v10175_v35 = vld [vmem:[%s16194_s5 + $0xba8] sm:$0xff] }
 0x27e   : > { %12509 = vmatpush1.bf16.msra.mxu1 %v12508_v41  ;;  %v12568_v41 = vpack.c.bf16 %v10167_v38, %v10162_v37  ;;  %v10174_v38 = vld [vmem:[%s16194_s5 + $0xba0] sm:$0xff] }
 0x27f   : > { %12511 = vmatprep.subr.bf16.mxu1 %v12510_v42  ;;  %v12570_v42 = vpack.c.bf16 %v10178_v40, %v10173_v39  ;;  %v10179_v39 = vld [vmem:[%s16194_s5 + $0xbc8] sm:$0xff]  ;;  %v10185_v40 = vld [vmem:[%s16194_s5 + $0xbf8] sm:$0xff] }
 0x282   : > { %12513 = vmatpush1.bf16.msra.mxu1 %v12512_v49  ;;  %v12572_v49 = vpack.c.bf16 %v10177_v44, %v10172_v43  ;;  %v10184_v44 = vld [vmem:[%s16194_s5 + $0xbf0] sm:$0xff] }
 0x283   : > { %12515 = vmatprep.subr.bf16.mxu1 %v12514_v50  ;;  %v12574_v50 = vpack.c.bf16 %v10188_v47, %v10183_v46  ;;  %v10189_v46 = vld [vmem:[%s16194_s5 + $0xc18] sm:$0xff] }
 0x284   : > { %v14297_v58 = vpop.f32.mrb[2].mxu0 }
 0x285   : > { %v11947_v62 = vpop.f32.mrb[3].mxu0 }
 0x286   : > { %12517 = vmatpush1.bf16.msra.mxu1 %v12516_v27  ;;  %v10198_v27 = vld [vmem:[%s16194_s5 + $0xc60] sm:$0xff]  ;;  %v10197_v62 = vld [vmem:[%s16194_s5 + $0xc58] sm:$0xff] }
 0x287   : > { %12519 = vmatprep.subr.bf16.mxu1 %v12518_v55  ;;  %v12578_v60 = vpack.c.bf16 %v10198_v27, %v10193_v54  ;;  %v10194_v27 = vld [vmem:[%s16194_s5 + $0xc40] sm:$0xff] }
 0x28a   : > { %12521 = vmatpush1.bf16.msra.mxu1 %v12520_v63  ;;  %v10125_v63 = vld [vmem:[%s16194_s5 + $0xa18] sm:$0xff] }
 0x28b   : > { %12523 = vmatprep.subr.bf16.mxu1 %v12522_v0  ;;  %v12580_v0 = vpack.c.bf16 %v10197_v62, %v10192_v61  ;;  %v10202_v62 = vld [vmem:[%s16194_s5 + $0xc80] sm:$0xff] }
 0x28e   : > { %12525 = vmatpush1.bf16.msra.mxu1 %v12524_v10  ;;  %v10140_v10 = vld [vmem:[%s16194_s5 + $0xa90] sm:$0xff] }
 0x28f   : > { %12551 = vmatprep.subr.bf16.mxu1 %v12550_v11  ;;  %v12584_v11 = vpack.c.bf16 %v10129_v5, %v10124_v4  ;;  %v12586_v12 = vpack.c.bf16 %v10140_v10, %v10135_v8  ;;  %v10212_v5 = vld [vmem:[%s16194_s5 + $0xcd0] sm:$0xff]  ;;  %v10217_v8 = vld [vmem:[%s16194_s5 + $0xcf8] sm:$0xff]  ;;  %v10223_v10 = vld [vmem:[%s16194_s5 + $0xd28] sm:$0xff] }
 0x291   : > { %2209 = vmatmul.mubr.f32.vlgmr.msra.gmra.mrb[2].mxu1 %v13765_v26  ;;  %v10158_v26 = vld [vmem:[%s16194_s5 + $0xb20] sm:$0xff] }
 0x292   : > { %12553 = vmatpush1.bf16.msra.mxu1 %v12552_v16  ;;  %2443 = vmatprep.mubr.f32.mxu1 %v12871_v45  ;;  %v12562_v31 = vpack.c.bf16 %v10158_v26, %v10153_v28  ;;  %v10150_v16 = vld [vmem:[%s16194_s5 + $0xae0] sm:$0xff]  ;;  %v10159_v28 = vld [vmem:[%s16194_s5 + $0xb28] sm:$0xff]  ;;  %v10165_v26 = vld [vmem:[%s16194_s5 + $0xb58] sm:$0xff] }
 0x293   : > { %12555 = vmatprep.subr.bf16.mxu1 %v12554_v3  ;;  %v12588_v3 = vpack.c.bf16 %v10139_v14, %v10134_v13  ;;  %v12590_v17 = vpack.c.bf16 %v10150_v16, %v10145_v15  ;;  %v10222_v14 = vld [vmem:[%s16194_s5 + $0xd20] sm:$0xff]  ;;  %v10227_v15 = vld [vmem:[%s16194_s5 + $0xd48] sm:$0xff] }
 0x294   : > { %v10238_v16 = vld [vmem:[%s16194_s5 + $0xda0] sm:$0xff] }
 0x296   : > { %12557 = vmatpush1.bf16.msra.mxu1 %v12556_v20  ;;  %v10160_v20 = vld [vmem:[%s16194_s5 + $0xb30] sm:$0xff] }
 0x297   : > { %12559 = vmatprep.subr.bf16.mxu1 %v12558_v22  ;;  %v12592_v22 = vpack.c.bf16 %v10149_v19, %v10144_v18  ;;  %v12594_v23 = vpack.c.bf16 %v10160_v20, %v10155_v7  ;;  %v10232_v18 = vld [vmem:[%s16194_s5 + $0xd70] sm:$0xff]  ;;  %v10237_v19 = vld [vmem:[%s16194_s5 + $0xd98] sm:$0xff]  ;;  %v10243_v7 = vld [vmem:[%s16194_s5 + $0xdc8] sm:$0xff] }
 0x298   : > { %v10248_v20 = vld [vmem:[%s16194_s5 + $0xdf0] sm:$0xff] }
 0x29a   : > { %12561 = vmatpush1.bf16.msra.mxu1 %v12560_v30  ;;  %v10170_v30 = vld [vmem:[%s16194_s5 + $0xb80] sm:$0xff] }
 0x29b   : > { %12563 = vmatprep.subr.bf16.mxu1 %v12562_v31  ;;  %v12596_v31 = vpack.c.bf16 %v10159_v28, %v10154_v25  ;;  %v12598_v32 = vpack.c.bf16 %v10170_v30, %v10165_v26  ;;  %v10370_v25 = vld [vmem:[%s14573_s23 + $0x880] sm:$0xff]  ;;  %v12652_v26 = vpack.c.bf16 %v10237_v19, %v10232_v18  ;;  %v10209_v18 = vld [vmem:[%s16194_s5 + $0xcb8] sm:$0xff]  ;;  %v10215_v19 = vld [vmem:[%s16194_s5 + $0xce8] sm:$0xff] }
 0x29c   : > { %v10374_v28 = vld [vmem:[%s14573_s23 + $0x8a0] sm:$0xff] }
 0x29d   : > { %v10242_v30 = vld [vmem:[%s16194_s5 + $0xdc0] sm:$0xff] }
 0x29e   : > { %12565 = vmatpush1.bf16.msra.mxu1 %v12564_v48  ;;  %v10180_v48 = vld [vmem:[%s16194_s5 + $0xbd0] sm:$0xff] }
 0x29f   : > { %12567 = vmatprep.subr.bf16.mxu1 %v12566_v36  ;;  %v12600_v36 = vpack.c.bf16 %v10169_v34, %v10164_v33  ;;  %v12602_v37 = vpack.c.bf16 %v10180_v48, %v10175_v35  ;;  %v10635_v33 = vcombine.high %v10370_v25, %v10374_v28  ;;  %v12654_v34 = vpack.c.bf16 %v10248_v20, %v10243_v7  ;;  %v10247_v35 = vld [vmem:[%s16194_s5 + $0xde8] sm:$0xff]  ;;  %v10378_v48 = vld [vmem:[%s14573_s23 + $0x8c0] sm:$0xff]  ;;  %v10220_v7 = vld [vmem:[%s16194_s5 + $0xd10] sm:$0xff] }
 0x2a0   : > { %v10410_v20 = vld [vmem:[%s14573_s23 + $0x9c0] sm:$0xff] }
 0x2a2   : > { %12569 = vmatpush1.bf16.msra.mxu1 %v12568_v41  ;;  %v10190_v41 = vld [vmem:[%s16194_s5 + $0xc20] sm:$0xff] }
 0x2a3   : > { %12571 = vmatprep.subr.bf16.mxu1 %v12570_v42  ;;  %v12604_v42 = vpack.c.bf16 %v10179_v39, %v10174_v38  ;;  %v12606_v43 = vpack.c.bf16 %v10190_v41, %v10185_v40  ;;  %v10258_v38 = vld [vmem:[%s16194_s5 + $0xe40] sm:$0xff]  ;;  %v10634_v39 = vcombine.low %v10370_v25, %v10374_v28  ;;  %v12656_v40 = vpack.c.bf16 %v10247_v35, %v10242_v30  ;;  %v10252_v41 = vld [vmem:[%s16194_s5 + $0xe10] sm:$0xff]  ;;  %v10219_v30 = vld [vmem:[%s16194_s5 + $0xd08] sm:$0xff] }
 0x2a4   : > { %v1674_v53 = vpop.f32.mrb[4].mxu0  ;;  %v10214_v28 = vld [vmem:[%s16194_s5 + $0xce0] sm:$0xff] }
 0x2a5   : > { %v14404_v55 = vadd.f32 %v1674_v53, %v14297_v58  ;;  %v11982_v56 = vpop.f32.mrb[5].mxu0  ;;  %v10130_v58 = vld [vmem:[%s16194_s5 + $0xa40] sm:$0xff]  ;;  %v12608_v53 = vpack.c.bf16 %v10189_v46, %v10184_v44  ;;  %v10257_v44 = vld [vmem:[%s16194_s5 + $0xe38] sm:$0xff] }
 0x2a6   : > { %12573 = vmatpush1.bf16.msra.mxu1 %v12572_v49  ;;  %v12582_v1 = vpack.c.bf16 %v10130_v58, %v10125_v63  ;;  %v10195_v49 = vld [vmem:[%s16194_s5 + $0xc48] sm:$0xff]  ;;  %v10213_v58 = vld [vmem:[%s16194_s5 + $0xcd8] sm:$0xff]  ;;  %v10386_v46 = vld [vmem:[%s14573_s23 + $0x900] sm:$0xff] }
 0x2a7   : > { %12575 = vmatprep.subr.bf16.mxu1 %v12574_v50  ;;  %v10200_v50 = vld [vmem:[%s16194_s5 + $0xc70] sm:$0xff]  ;;  %v10199_v56 = vld [vmem:[%s16194_s5 + $0xc68] sm:$0xff]  ;;  %v10230_v35 = vld [vmem:[%s16194_s5 + $0xd60] sm:$0xff] }
 0x2a8   : > { %v12610_v54 = vpack.c.bf16 %v10200_v50, %v10195_v49  ;;  %v10207_v63 = vld [vmem:[%s16194_s5 + $0xca8] sm:$0xff]  ;;  %v10268_v50 = vld [vmem:[%s16194_s5 + $0xe90] sm:$0xff] }
 0x2a9   : > { %v10263_v49 = vld [vmem:[%s16194_s5 + $0xe68] sm:$0xff] }
 0x2aa   : > { %12577 = vmatpush1.bf16.msra.mxu1 %v12576_v57  ;;  %v10203_v57 = vld [vmem:[%s16194_s5 + $0xc88] sm:$0xff] }
 0x2ab   : > { %12579 = vmatprep.subr.bf16.mxu1 %v12578_v60  ;;  %v12612_v60 = vpack.c.bf16 %v10199_v56, %v10194_v27  ;;  %v12662_v56 = vpack.c.bf16 %v10268_v50, %v10263_v49  ;;  %v10234_v49 = vld [vmem:[%s16194_s5 + $0xd80] sm:$0xff] }
 0x2ae   : > { %12581 = vmatpush1.bf16.msra.mxu1 %v12580_v0  ;;  %v10218_v0 = vld [vmem:[%s16194_s5 + $0xd00] sm:$0xff] }
 0x2af   : > { %12583 = vmatprep.subr.bf16.mxu1 %v12582_v1  ;;  %v12640_v1 = vpack.c.bf16 %v10207_v63, %v10202_v62  ;;  %v12642_v4 = vpack.c.bf16 %v10218_v0, %v10213_v58  ;;  %v10273_v62 = vld [vmem:[%s16194_s5 + $0xeb8] sm:$0xff]  ;;  %v10278_v63 = vld [vmem:[%s16194_s5 + $0xee0] sm:$0xff] }
 0x2b1   : > { %2444 = vmatmul.mubr.f32.vlgmr.msra.gmra.mrb[0].mxu1 %v13925_v21 }
 0x2b2   : > { %12585 = vmatpush1.bf16.msra.mxu1 %v12584_v11  ;;  %2514 = vmatprep.mubr.f32.mxu1 %v12871_v45  ;;  %v10228_v11 = vld [vmem:[%s16194_s5 + $0xd50] sm:$0xff] }
 0x2b3   : > { %12587 = vmatprep.subr.bf16.mxu1 %v12586_v12  ;;  %v12644_v12 = vpack.c.bf16 %v10217_v8, %v10212_v5  ;;  %v12646_v13 = vpack.c.bf16 %v10228_v11, %v10223_v10  ;;  %v10272_v5 = vld [vmem:[%s16194_s5 + $0xeb0] sm:$0xff]  ;;  %v12666_v10 = vpack.c.bf16 %v10278_v63, %v10273_v62  ;;  %v10277_v11 = vld [vmem:[%s16194_s5 + $0xed8] sm:$0xff] }
 0x2b6   : > { %12589 = vmatpush1.bf16.msra.mxu1 %v12588_v3  ;;  %v12648_v3 = vpack.c.bf16 %v10227_v15, %v10222_v14  ;;  %v10210_v14 = vld [vmem:[%s16194_s5 + $0xcc0] sm:$0xff] }
 0x2b7   : > { %12591 = vmatprep.subr.bf16.mxu1 %v12590_v17 }
 0x2ba   : > { %12593 = vmatpush1.bf16.msra.mxu1 %v12592_v22  ;;  %v10362_v22 = vld [vmem:[%s14573_s23 + $0x840] sm:$0xff] }
 0x2bb   : > { %12595 = vmatprep.subr.bf16.mxu1 %v12594_v23  ;;  %v10366_v23 = vld [vmem:[%s14573_s23 + $0x860] sm:$0xff] }
 0x2be   : > { %12597 = vmatpush1.bf16.msra.mxu1 %v12596_v31  ;;  %v10626_v31 = vcombine.low %v10362_v22, %v10366_v23 }
 0x2bf   : > { %12599 = vmatprep.subr.bf16.mxu1 %v12598_v32  ;;  %v10627_v32 = vcombine.high %v10362_v22, %v10366_v23  ;;  %v10414_v22 = vld [vmem:[%s14573_s23 + $0x9e0] sm:$0xff] }
 0x2c1   : > { %5191 = vmatprep.subr.bf16.mxu0 %v10627_v32  ;;  %v10418_v32 = vld [vmem:[%s14573_s23 + $0xa00] sm:$0xff] }
 0x2c2   : > { %12601 = vmatpush1.bf16.msra.mxu1 %v12600_v36  ;;  %v10382_v36 = vld [vmem:[%s14573_s23 + $0x8e0] sm:$0xff]  ;;  %5192 = vmatpush1.bf16.msra.mxu0 %v10626_v31  ;;  %v10675_v31 = vcombine.high %v10410_v20, %v10414_v22 }
 0x2c3   : > { %12603 = vmatprep.subr.bf16.mxu1 %v12602_v37  ;;  %v10253_v37 = vld [vmem:[%s16194_s5 + $0xe18] sm:$0xff]  ;;  %5193 = vmatprep.subr.bf16.mxu0 %v10635_v33  ;;  %v10422_v33 = vld [vmem:[%s14573_s23 + $0xa20] sm:$0xff] }
 0x2c4   : > { %v1975_v47 = vpop.f32.mrb[6].mxu0 }
 0x2c5   : > { %v14505_v51 = vadd.f32 %v1975_v47, %v14404_v55  ;;  %v12017_v52 = vpop.f32.mrb[7].mxu0  ;;  %v10208_v55 = vld [vmem:[%s16194_s5 + $0xcb0] sm:$0xff]  ;;  %v10390_v47 = vld [vmem:[%s14573_s23 + $0x920] sm:$0xff] }
 0x2c6   : > { %12605 = vmatpush1.bf16.msra.mxu1 %v12604_v42  ;;  %v12638_v61 = vpack.c.bf16 %v10208_v55, %v10203_v57  ;;  %v10643_v42 = vcombine.high %v10378_v48, %v10382_v36  ;;  %5194 = vmatpush1.bf16.msra.mxu0 %v10634_v39  ;;  %v10642_v52 = vcombine.low %v10378_v48, %v10382_v36  ;;  %v10267_v57 = vld [vmem:[%s16194_s5 + $0xe88] sm:$0xff]  ;;  %v10394_v55 = vld [vmem:[%s14573_s23 + $0x940] sm:$0xff] }
 0x2c7   : > { %12607 = vmatprep.subr.bf16.mxu1 %v12606_v43  ;;  %v12658_v43 = vpack.c.bf16 %v10258_v38, %v10253_v37  ;;  %v10651_v27 = vcombine.high %v10386_v46, %v10390_v47  ;;  %v10674_v48 = vcombine.low %v10410_v20, %v10414_v22  ;;  %v12676_v36 = vpack.c.bf16 %v10219_v30, %v10214_v28  ;;  %v10224_v37 = vld [vmem:[%s16194_s5 + $0xd30] sm:$0xff]  ;;  %v10269_v22 = vld [vmem:[%s16194_s5 + $0xe98] sm:$0xff] }
 0x2c8   : > { %5195 = vmatprep.subr.bf16.mxu0 %v10643_v42  ;;  %v10683_v38 = vcombine.high %v10418_v32, %v10422_v33  ;;  %v10430_v42 = vld [vmem:[%s14573_s23 + $0xa60] sm:$0xff]  ;;  %v10280_v30 = vld [vmem:[%s16194_s5 + $0xef0] sm:$0xff] }
 0x2ca   : > { %12609 = vmatpush1.bf16.msra.mxu1 %v12608_v53  ;;  %v12660_v53 = vpack.c.bf16 %v10257_v44, %v10252_v41  ;;  %5196 = vmatpush1.bf16.msra.mxu0 %v10642_v52  ;;  %v10426_v41 = vld [vmem:[%s14573_s23 + $0xa40] sm:$0xff]  ;;  %v10240_v44 = vld [vmem:[%s16194_s5 + $0xdb0] sm:$0xff] }
 0x2cb   : > { %12611 = vmatprep.subr.bf16.mxu1 %v12610_v54  ;;  %v10262_v54 = vld [vmem:[%s16194_s5 + $0xe60] sm:$0xff]  ;;  %5197 = vmatprep.subr.bf16.mxu0 %v10651_v27  ;;  %v10691_v50 = vcombine.high %v10426_v41, %v10430_v42 }
 0x2cc   : > { %v10438_v27 = vld [vmem:[%s14573_s23 + $0xaa0] sm:$0xff] }
 0x2ce   : > { %12613 = vmatpush1.bf16.msra.mxu1 %v12612_v60  ;;  %v10398_v60 = vld [vmem:[%s14573_s23 + $0x960] sm:$0xff] }
 0x2cf   : > { %12639 = vmatprep.subr.bf16.mxu1 %v12638_v61  ;;  %v10659_v8 = vcombine.high %v10394_v55, %v10398_v60  ;;  %v10658_v15 = vcombine.low %v10394_v55, %v10398_v60  ;;  %v10690_v55 = vcombine.low %v10426_v41, %v10430_v42 }
 0x2d1   : > { %2515 = vmatmul.mubr.f32.vlgmr.msra.gmra.mrb[2].mxu1 %v13925_v21  ;;  %v10233_v21 = vld [vmem:[%s16194_s5 + $0xd78] sm:$0xff] }
 0x2d2   : > { %12641 = vmatpush1.bf16.msra.mxu1 %v12640_v1  ;;  %2749 = vmatprep.mubr.f32.mxu1 %v12871_v45  ;;  %v12650_v17 = vpack.c.bf16 %v10238_v16, %v10233_v21  ;;  %v10650_v1 = vcombine.low %v10386_v46, %v10390_v47  ;;  %v12668_v21 = vpack.c.bf16 %v10277_v11, %v10272_v5  ;;  %v10255_v5 = vld [vmem:[%s16194_s5 + $0xe28] sm:$0xff] }
 0x2d3   : > { %12643 = vmatprep.subr.bf16.mxu1 %v12642_v4  ;;  %v12664_v4 = vpack.c.bf16 %v10267_v57, %v10262_v54  ;;  %v10682_v46 = vcombine.low %v10418_v32, %v10422_v33  ;;  %v10434_v54 = vld [vmem:[%s14573_s23 + $0xa80] sm:$0xff] }
 0x2d4   : > { %5198 = vmatpush1.bf16.msra.mxu0 %v10650_v1  ;;  %v10250_v57 = vld [vmem:[%s16194_s5 + $0xe00] sm:$0xff]  ;;  %v10699_v62 = vcombine.high %v10434_v54, %v10438_v27 }
 0x2d5   : > { %5199 = vmatprep.subr.bf16.mxu0 %v10659_v8  ;;  %v10442_v1 = vld [vmem:[%s14573_s23 + $0xac0] sm:$0xff]  ;;  %v10260_v8 = vld [vmem:[%s16194_s5 + $0xe50] sm:$0xff] }
 0x2d6   : > { %12645 = vmatpush1.bf16.msra.mxu1 %v12644_v12  ;;  %v10402_v12 = vld [vmem:[%s14573_s23 + $0x980] sm:$0xff] }
 0x2d7   : > { %12647 = vmatprep.subr.bf16.mxu1 %v12646_v13  ;;  %v10205_v13 = vld [vmem:[%s16194_s5 + $0xc98] sm:$0xff] }
 0x2d8   : > { %5200 = vmatpush1.bf16.msra.mxu0 %v10658_v15  ;;  %v10450_v15 = vld [vmem:[%s14573_s23 + $0xb00] sm:$0xff] }
 0x2da   : > { %12649 = vmatpush1.bf16.msra.mxu1 %v12648_v3  ;;  %v12670_v3 = vpack.c.bf16 %v10210_v14, %v10205_v13  ;;  %v12690_v13 = vpack.c.bf16 %v10260_v8, %v10255_v5  ;;  %v10259_v14 = vld [vmem:[%s16194_s5 + $0xe48] sm:$0xff]  ;;  %v10312_v5 = vld [vmem:[%s16194_s5 + $0xff0] sm:$0xff]  ;;  %v10317_v8 = vld [vmem:[%s16194_s5 + $0x1018] sm:$0xff] }
 0x2db   : > { %12651 = vmatprep.subr.bf16.mxu1 %v12650_v17  ;;  %v10204_v17 = vld [vmem:[%s16194_s5 + $0xc90] sm:$0xff] }
 0x2dc   : > { %v12672_v25 = vpack.c.bf16 %v10209_v18, %v10204_v17 }
 0x2de   : > { %12653 = vmatpush1.bf16.msra.mxu1 %v12652_v26  ;;  %v12674_v26 = vpack.c.bf16 %v10220_v7, %v10215_v19  ;;  %v10264_v19 = vld [vmem:[%s16194_s5 + $0xe70] sm:$0xff] }
 0x2df   : > { %12655 = vmatprep.subr.bf16.mxu1 %v12654_v34  ;;  %v10225_v34 = vld [vmem:[%s16194_s5 + $0xd38] sm:$0xff] }
 0x2e0   : > { %v12678_v39 = vpack.c.bf16 %v10230_v35, %v10225_v34  ;;  %v12696_v34 = vpack.c.bf16 %v10269_v22, %v10264_v19  ;;  %v10274_v35 = vld [vmem:[%s16194_s5 + $0xec0] sm:$0xff]  ;;  %v10343_v19 = vld [vmem:[%s16194_s5 + $0x10e8] sm:$0xff] }
 0x2e2   : > { %12657 = vmatpush1.bf16.msra.mxu1 %v12656_v40  ;;  %v10229_v40 = vld [vmem:[%s16194_s5 + $0xd58] sm:$0xff] }
 0x2e3   : > { %12659 = vmatprep.subr.bf16.mxu1 %v12658_v43  ;;  %v10235_v43 = vld [vmem:[%s16194_s5 + $0xd88] sm:$0xff]  ;;  %v12680_v47 = vpack.c.bf16 %v10229_v40, %v10224_v37  ;;  %v10288_v40 = vld [vmem:[%s16194_s5 + $0xf30] sm:$0xff] }
 0x2e4   : > { %v2281_v61 = vpop.f32.mrb[8].mxu0  ;;  %v12682_v52 = vpack.c.bf16 %v10240_v44, %v10235_v43  ;;  %v10279_v37 = vld [vmem:[%s16194_s5 + $0xee8] sm:$0xff] }
 0x2e5   : > { %v14628_v58 = vadd.f32 %v2281_v61, %v14505_v51  ;;  %v12052_v0 = vpop.f32.mrb[9].mxu0  ;;  %v10406_v51 = vld [vmem:[%s14573_s23 + $0x9a0] sm:$0xff]  ;;  %v10244_v61 = vld [vmem:[%s16194_s5 + $0xdd0] sm:$0xff]  ;;  %v12700_v42 = vpack.c.bf16 %v10279_v37, %v10274_v35  ;;  %v10285_v37 = vld [vmem:[%s16194_s5 + $0xf18] sm:$0xff] }
 0x2e6   : > { %12661 = vmatpush1.bf16.msra.mxu1 %v12660_v53  ;;  %v10667_v16 = vcombine.high %v10402_v12, %v10406_v51  ;;  %v10666_v23 = vcombine.low %v10402_v12, %v10406_v51  ;;  %v10239_v53 = vld [vmem:[%s16194_s5 + $0xda8] sm:$0xff]  ;;  %v10249_v0 = vld [vmem:[%s16194_s5 + $0xdf8] sm:$0xff]  ;;  %v10254_v12 = vld [vmem:[%s16194_s5 + $0xe20] sm:$0xff] }
 0x2e7   : > { %12663 = vmatprep.subr.bf16.mxu1 %v12662_v56  ;;  %v10245_v56 = vld [vmem:[%s16194_s5 + $0xdd8] sm:$0xff]  ;;  %v12684_v60 = vpack.c.bf16 %v10239_v53, %v10234_v49  ;;  %v12688_v11 = vpack.c.bf16 %v10249_v0, %v10244_v61  ;;  %v12692_v18 = vpack.c.bf16 %v10259_v14, %v10254_v12  ;;  %v12740_v12 = vpack.c.bf16 %v10317_v8, %v10312_v5  ;;  %v10327_v14 = vld [vmem:[%s16194_s5 + $0x1068] sm:$0xff]  ;;  %v10340_v8 = vld [vmem:[%s16194_s5 + $0x10d0] sm:$0xff] }
 0x2e8   : > { %5201 = vmatprep.subr.bf16.mxu0 %v10667_v16  ;;  %v12686_v63 = vpack.c.bf16 %v10250_v57, %v10245_v56  ;;  %v10265_v16 = vld [vmem:[%s16194_s5 + $0xe78] sm:$0xff]  ;;  %v10303_v57 = vld [vmem:[%s16194_s5 + $0xfa8] sm:$0xff] }
 0x2e9   : > { %5202 = vmatpush1.bf16.msra.mxu0 %v10666_v23  ;;  %v10458_v23 = vld [vmem:[%s14573_s23 + $0xb40] sm:$0xff]  ;;  %v10293_v49 = vld [vmem:[%s16194_s5 + $0xf58] sm:$0xff]  ;;  %v10335_v5 = vld [vmem:[%s16194_s5 + $0x10a8] sm:$0xff] }
 0x2ea   : > { %12665 = vmatpush1.bf16.msra.mxu1 %v12664_v4  ;;  %5203 = vmatprep.subr.bf16.mxu0 %v10675_v31  ;;  %v10446_v4 = vld [vmem:[%s14573_s23 + $0xae0] sm:$0xff]  ;;  %v10297_v56 = vld [vmem:[%s16194_s5 + $0xf78] sm:$0xff] }
 0x2eb   : > { %12667 = vmatprep.subr.bf16.mxu1 %v12666_v10  ;;  %v10698_v10 = vcombine.low %v10434_v54, %v10438_v27  ;;  %v10707_v51 = vcombine.high %v10442_v1, %v10446_v4  ;;  %v10706_v17 = vcombine.low %v10442_v1, %v10446_v4  ;;  %v10292_v27 = vld [vmem:[%s16194_s5 + $0xf50] sm:$0xff]  ;;  %v10313_v0 = vld [vmem:[%s16194_s5 + $0xff8] sm:$0xff] }
 0x2ed   : > { %5204 = vmatpush1.bf16.msra.mxu0 %v10674_v48 }
 0x2ee   : > { %12669 = vmatpush1.bf16.msra.mxu1 %v12668_v21  ;;  %5205 = vmatprep.subr.bf16.mxu0 %v10683_v38  ;;  %v10454_v21 = vld [vmem:[%s14573_s23 + $0xb20] sm:$0xff] }
 0x2ef   : > { %12671 = vmatprep.subr.bf16.mxu1 %v12670_v3  ;;  %v10270_v3 = vld [vmem:[%s16194_s5 + $0xea0] sm:$0xff]  ;;  %v10715_v7 = vcombine.high %v10450_v15, %v10454_v21  ;;  %v10714_v33 = vcombine.low %v10450_v15, %v10454_v21  ;;  %v10333_v15 = vld [vmem:[%s16194_s5 + $0x1098] sm:$0xff] }
 0x2f0   : > { %v12694_v20 = vpack.c.bf16 %v10270_v3, %v10265_v16  ;;  %v10466_v38 = vld [vmem:[%s14573_s23 + $0xb80] sm:$0xff] }
 0x2f1   : > { %2750 = vmatmul.mubr.f32.vlgmr.msra.gmra.mrb[0].mxu1 %v14085_v9  ;;  %5206 = vmatpush1.bf16.msra.mxu0 %v10682_v46  ;;  %v10282_v46 = vld [vmem:[%s16194_s5 + $0xf00] sm:$0xff] }
 0x2f2   : > { %12673 = vmatpush1.bf16.msra.mxu1 %v12672_v25  ;;  %2820 = vmatprep.mubr.f32.mxu1 %v12871_v45  ;;  %v10462_v25 = vld [vmem:[%s14573_s23 + $0xb60] sm:$0xff] }
 0x2f3   : > { %12675 = vmatprep.subr.bf16.mxu1 %v12674_v26  ;;  %5207 = vmatprep.subr.bf16.mxu0 %v10691_v50  ;;  %v10275_v26 = vld [vmem:[%s16194_s5 + $0xec8] sm:$0xff]  ;;  %v10723_v48 = vcombine.high %v10458_v23, %v10462_v25  ;;  %v10722_v41 = vcombine.low %v10458_v23, %v10462_v25  ;;  %v10298_v50 = vld [vmem:[%s16194_s5 + $0xf80] sm:$0xff] }
 0x2f4   : > { %v12730_v54 = vpack.c.bf16 %v10298_v50, %v10293_v49  ;;  %v10338_v21 = vld [vmem:[%s16194_s5 + $0x10c0] sm:$0xff]  ;;  %v10347_v25 = vld [vmem:[%s16194_s5 + $0x1108] sm:$0xff]  ;;  %v10305_v49 = vld [vmem:[%s16194_s5 + $0xfb8] sm:$0xff] }
 0x2f5   : > { %5208 = vmatpush1.bf16.msra.mxu0 %v10690_v55  ;;  %v10308_v55 = vld [vmem:[%s16194_s5 + $0xfd0] sm:$0xff]  ;;  %v12746_v3 = vpack.c.bf16 %v10338_v21, %v10333_v15  ;;  %v10342_v23 = vld [vmem:[%s16194_s5 + $0x10e0] sm:$0xff]  ;;  %v10345_v15 = vld [vmem:[%s16194_s5 + $0x10f8] sm:$0xff] }
 0x2f6   : > { %12677 = vmatpush1.bf16.msra.mxu1 %v12676_v36  ;;  %5209 = vmatprep.subr.bf16.mxu0 %v10699_v62  ;;  %v12698_v36 = vpack.c.bf16 %v10280_v30, %v10275_v26  ;;  %v12734_v61 = vpack.c.bf16 %v10308_v55, %v10303_v57  ;;  %v10302_v62 = vld [vmem:[%s16194_s5 + $0xfa0] sm:$0xff]  ;;  %v10353_v26 = vld [vmem:[%s16194_s5 + $0x1138] sm:$0xff]  ;;  %v10320_v57 = vld [vmem:[%s16194_s5 + $0x1030] sm:$0xff] }
 0x2f7   : > { %12679 = vmatprep.subr.bf16.mxu1 %v12678_v39  ;;  %v10283_v39 = vld [vmem:[%s16194_s5 + $0xf08] sm:$0xff]  ;;  %v10358_v30 = vld [vmem:[%s16194_s5 + $0x1160] sm:$0xff] }
 0x2f8   : > { %v12726_v44 = vpack.c.bf16 %v10288_v40, %v10283_v39  ;;  %v12754_v35 = vpack.c.bf16 %v10358_v30, %v10353_v26  ;;  %v10284_v39 = vld [vmem:[%s16194_s5 + $0xf10] sm:$0xff]  ;;  %v10289_v40 = vld [vmem:[%s16194_s5 + $0xf38] sm:$0xff]  ;;  %v10310_v50 = vld [vmem:[%s16194_s5 + $0xfe0] sm:$0xff] }
 0x2f9   : > { %5210 = vmatpush1.bf16.msra.mxu0 %v10698_v10  ;;  %v10323_v10 = vld [vmem:[%s16194_s5 + $0x1048] sm:$0xff]  ;;  %v10350_v21 = vld [vmem:[%s16194_s5 + $0x1120] sm:$0xff] }
 0x2fa   : > { %12681 = vmatpush1.bf16.msra.mxu1 %v12680_v47  ;;  %5211 = vmatprep.subr.bf16.mxu0 %v10707_v51  ;;  %v10287_v47 = vld [vmem:[%s16194_s5 + $0xf28] sm:$0xff] }
 0x2fb   : > { %12683 = vmatprep.subr.bf16.mxu1 %v12682_v52  ;;  %v12728_v53 = vpack.c.bf16 %v10287_v47, %v10282_v46  ;;  %v10294_v46 = vld [vmem:[%s16194_s5 + $0xf60] sm:$0xff]  ;;  %v10299_v47 = vld [vmem:[%s16194_s5 + $0xf88] sm:$0xff] }
 0x2fd   : > { %5212 = vmatpush1.bf16.msra.mxu0 %v10706_v17  ;;  %v10332_v17 = vld [vmem:[%s16194_s5 + $0x1090] sm:$0xff] }
 0x2fe   : > { %12685 = vmatpush1.bf16.msra.mxu1 %v12684_v60  ;;  %5213 = vmatprep.subr.bf16.mxu0 %v10715_v7  ;;  %v12732_v60 = vpack.c.bf16 %v10297_v56, %v10292_v27  ;;  %v10348_v7 = vld [vmem:[%s16194_s5 + $0x1110] sm:$0xff]  ;;  %v10309_v27 = vld [vmem:[%s16194_s5 + $0xfd8] sm:$0xff]  ;;  %v10315_v56 = vld [vmem:[%s16194_s5 + $0x1008] sm:$0xff] }
 0x2ff   : > { %12687 = vmatprep.subr.bf16.mxu1 %v12686_v63  ;;  %v10307_v63 = vld [vmem:[%s16194_s5 + $0xfc8] sm:$0xff]  ;;  %v12750_v22 = vpack.c.bf16 %v10348_v7, %v10343_v19  ;;  %v12770_v55 = vpack.c.bf16 %v10320_v57, %v10315_v56  ;;  %v10349_v19 = vld [vmem:[%s16194_s5 + $0x1118] sm:$0xff] }
 0x300   : > { %v12736_v1 = vpack.c.bf16 %v10307_v63, %v10302_v62  ;;  %v10325_v62 = vld [vmem:[%s16194_s5 + $0x1058] sm:$0xff]  ;;  %v10330_v63 = vld [vmem:[%s16194_s5 + $0x1080] sm:$0xff]  ;;  %v10511_v56 = vld [vmem:[%s14573_s23 + $0xce8] sm:$0xff] }
 0x301   : > { %5214 = vmatpush1.bf16.msra.mxu0 %v10714_v33 }
 0x302   : > { %12689 = vmatpush1.bf16.msra.mxu1 %v12688_v11  ;;  %5215 = vmatprep.subr.bf16.mxu0 %v10723_v48  ;;  %v10328_v11 = vld [vmem:[%s16194_s5 + $0x1070] sm:$0xff] }
 0x303   : > { %12691 = vmatprep.subr.bf16.mxu1 %v12690_v13  ;;  %v12742_v51 = vpack.c.bf16 %v10328_v11, %v10323_v10  ;;  %v10322_v13 = vld [vmem:[%s16194_s5 + $0x1040] sm:$0xff]  ;;  %v10352_v48 = vld [vmem:[%s16194_s5 + $0x1130] sm:$0xff]  ;;  %v14925_v11 = vsub.s32 4, %v13057_v59 }
 0x304   : > { %v2587_v28 = vpop.f32.mrb[10].mxu0  ;;  %v12744_v16 = vpack.c.bf16 %v10327_v14, %v10322_v13  ;;  %v10339_v13 = vld [vmem:[%s16194_s5 + $0x10c8] sm:$0xff]  ;;  %v14936_v14 = vld [vmem:[%s16195_s6] sm:$0x1f] }
 0x305   : > { %v14745_v31 = vadd.f32 %v2587_v28, %v14628_v58  ;;  %v12087_v32 = vpop.f32.mrb[11].mxu0  ;;  %v10470_v58 = vld [vmem:[%s14573_s23 + $0xba0] sm:$0xff]  ;;  %5216 = vmatpush1.bf16.msra.mxu0 %v10722_v41  ;;  %v10295_v41 = vld [vmem:[%s16194_s5 + $0xf68] sm:$0xff] }
 0x306   : > { %12693 = vmatpush1.bf16.msra.mxu1 %v12692_v18  ;;  %v10731_v43 = vcombine.high %v10466_v38, %v10470_v58  ;;  %v10730_v52 = vcombine.low %v10466_v38, %v10470_v58  ;;  %v10337_v18 = vld [vmem:[%s16194_s5 + $0x10b8] sm:$0xff] }
 0x307   : > { %12695 = vmatprep.subr.bf16.mxu1 %v12694_v20  ;;  %v12748_v20 = vpack.c.bf16 %v10337_v18, %v10332_v17  ;;  %v12782_v17 = vpack.c.bf16 %v10350_v21, %v10345_v15  ;;  %v10344_v18 = vld [vmem:[%s16194_s5 + $0x10f0] sm:$0xff] }
 0x308   : > { %5217 = vmatprep.subr.bf16.mxu0 %v10731_v43  ;;  %v12760_v43 = vpack.c.bf16 %v10289_v40, %v10284_v39 }
 0x309   : > { %5218 = vmatpush1.bf16.msra.mxu0 %v10730_v52  ;;  %v12764_v52 = vpack.c.bf16 %v10299_v47, %v10294_v46 }
 0x30a   : > { %12697 = vmatpush1.bf16.msra.mxu1 %v12696_v34  ;;  %v12752_v34 = vpack.c.bf16 %v10347_v25, %v10342_v23 }
 0x30b   : > { %12699 = vmatprep.subr.bf16.mxu1 %v12698_v36  ;;  %v10357_v36 = vld [vmem:[%s16194_s5 + $0x1158] sm:$0xff] }
 0x30c   : > { %v12756_v38 = vpack.c.bf16 %v10357_v36, %v10352_v48  ;;  %v10622_v48 = vld [vmem:[%s14573_s23 + $0x1060] sm:$0x33] }
 0x30e   : > { %12701 = vmatpush1.bf16.msra.mxu1 %v12700_v42  ;;  %v10300_v42 = vld [vmem:[%s16194_s5 + $0xf90] sm:$0xff] }
 0x30f   : > { %12727 = vmatprep.subr.bf16.mxu1 %v12726_v44  ;;  %v12762_v44 = vpack.c.bf16 %v10300_v42, %v10295_v41  ;;  %v10491_v41 = vld [vmem:[%s14573_s23 + $0xc48] sm:$0xff] }
 0x310   : > { %v10495_v42 = vld [vmem:[%s14573_s23 + $0xc68] sm:$0xff] }
 0x311   : > { %2821 = vmatmul.mubr.f32.vlgmr.msra.gmra.mrb[2].mxu1 %v14085_v9  ;;  %v10318_v9 = vld [vmem:[%s16194_s5 + $0x1020] sm:$0xff]  ;;  %v10757_v46 = vcombine.high %v10491_v41, %v10495_v42 }
 0x312   : > { %12729 = vmatpush1.bf16.msra.mxu1 %v12728_v53  ;;  %3055 = vmatprep.mubr.f32.mxu1 %v12871_v45  ;;  %v12738_v4 = vpack.c.bf16 %v10318_v9, %v10313_v0  ;;  %v12766_v53 = vpack.c.bf16 %v10310_v50, %v10305_v49  ;;  %v12774_v9 = vpack.c.bf16 %v10330_v63, %v10325_v62  ;;  %v10499_v49 = vld [vmem:[%s14573_s23 + $0xc88] sm:$0xff] }
 0x313   : > { %12731 = vmatprep.subr.bf16.mxu1 %v12730_v54  ;;  %v10304_v54 = vld [vmem:[%s16194_s5 + $0xfb0] sm:$0xff]  ;;  %v10503_v50 = vld [vmem:[%s14573_s23 + $0xca8] sm:$0xff] }
 0x314   : > { %v10523_v62 = vld [vmem:[%s14573_s23 + $0xd48] sm:$0xff] }
 0x315   : > { %v10527_v63 = vld [vmem:[%s14573_s23 + $0xd68] sm:$0xff] }
 0x316   : > { %12733 = vmatpush1.bf16.msra.mxu1 %v12732_v60  ;;  %v10314_v60 = vld [vmem:[%s16194_s5 + $0x1000] sm:$0xff] }
 0x317   : > { %12735 = vmatprep.subr.bf16.mxu1 %v12734_v61  ;;  %v10319_v61 = vld [vmem:[%s16194_s5 + $0x1028] sm:$0xff] }
 0x318   : > { %v12772_v0 = vpack.c.bf16 %v10319_v61, %v10314_v60 }
 0x31a   : > { %12737 = vmatpush1.bf16.msra.mxu1 %v12736_v1  ;;  %v10324_v1 = vld [vmem:[%s16194_s5 + $0x1050] sm:$0xff] }
 0x31b   : > { %12739 = vmatprep.subr.bf16.mxu1 %v12738_v4  ;;  %v10329_v4 = vld [vmem:[%s16194_s5 + $0x1078] sm:$0xff] }
 0x31c   : > { %v12776_v10 = vpack.c.bf16 %v10329_v4, %v10324_v1  ;;  %v10531_v1 = vld [vmem:[%s14573_s23 + $0xd88] sm:$0xff] }
 0x31d   : > { %v10535_v4 = vld [vmem:[%s14573_s23 + $0xda8] sm:$0xff] }
 0x31e   : > { %12741 = vmatpush1.bf16.msra.mxu1 %v12740_v12  ;;  %v12778_v12 = vpack.c.bf16 %v10340_v8, %v10335_v5  ;;  %v10788_v5 = vcombine.low %v10523_v62, %v10527_v63  ;;  %v10797_v8 = vcombine.high %v10531_v1, %v10535_v4 }
 0x31f   : > { %12743 = vmatprep.subr.bf16.mxu1 %v12742_v51  ;;  %v10334_v51 = vld [vmem:[%s16194_s5 + $0x10a0] sm:$0xff] }
 0x322   : > { %12745 = vmatpush1.bf16.msra.mxu1 %v12744_v16  ;;  %v12780_v16 = vpack.c.bf16 %v10339_v13, %v10334_v51  ;;  %v10478_v51 = vld [vmem:[%s14573_s23 + $0xbe0] sm:$0xff]  ;;  %v10539_v13 = vld [vmem:[%s14573_s23 + $0xdc8] sm:$0xff] }
 0x323   : > { %12747 = vmatprep.subr.bf16.mxu1 %v12746_v3  ;;  %v3229_v3 = vrot.slane %v14936_v14, %v14925_v11 }
 0x324   : > { %v2893_v28 = vpop.f32.mrb[12].mxu0 }
 0x325   : > { %v14848_v32 = vadd.f32 %v2893_v28, %v14745_v31  ;;  %v12122_v33 = vpop.f32.mrb[13].mxu0  ;;  %v10290_v31 = vld [vmem:[%s16194_s5 + $0xf40] sm:$0xff]  ;;  %v12784_v28 = vpack.c.bf16 %v10349_v19, %v10344_v18 }
 0x326   : > { %12749 = vmatpush1.bf16.msra.mxu1 %v12748_v20  ;;  %v12758_v58 = vpack.c.bf16 %v10290_v31, %v10285_v37  ;;  %v10355_v20 = vld [vmem:[%s16194_s5 + $0x1148] sm:$0xff]  ;;  %v10354_v33 = vld [vmem:[%s16194_s5 + $0x1140] sm:$0xff] }
 0x327   : > { %12751 = vmatprep.subr.bf16.mxu1 %v12750_v22  ;;  %v10360_v22 = vld [vmem:[%s16194_s5 + $0x1170] sm:$0xff] }
 0x328   : > { %v12786_v30 = vpack.c.bf16 %v10360_v22, %v10355_v20  ;;  %v10547_v20 = vld [vmem:[%s14573_s23 + $0xe08] sm:$0xff] }
 0x329   : > { %v10551_v22 = vld [vmem:[%s14573_s23 + $0xe28] sm:$0xff] }
 0x32a   : > { %12753 = vmatpush1.bf16.msra.mxu1 %v12752_v34  ;;  %v10359_v34 = vld [vmem:[%s16194_s5 + $0x1168] sm:$0xff] }
 0x32b   : > { %12755 = vmatprep.subr.bf16.mxu1 %v12754_v35  ;;  %v10618_v35 = vld [vmem:[%s14573_s23 + $0x1040] sm:$0xff] }
 0x32e   : > { %12757 = vmatpush1.bf16.msra.mxu1 %v12756_v38  ;;  %v10883_v38 = vcombine.high %v10618_v35, %v10622_v48 }
 0x32f   : > { %12759 = vmatprep.subr.bf16.mxu1 %v12758_v58  ;;  %v10882_v58 = vcombine.low %v10618_v35, %v10622_v48  ;;  %v10559_v48 = vld [vmem:[%s14573_s23 + $0xe68] sm:$0xff] }
 0x331   : > { %3056 = vmatmul.mubr.f32.vlgmr.msra.gmra.mrb[0].mxu1 %v14232_v24 }
 0x332   : > { %12761 = vmatpush1.bf16.msra.mxu1 %v12760_v43  ;;  %3126 = vmatprep.mubr.f32.mxu1 %v12871_v45  ;;  %v12768_v45 = vpack.c.bf16 %v10309_v27, %v10304_v54  ;;  %v10765_v54 = vcombine.high %v10499_v49, %v10503_v50  ;;  %v10507_v27 = vld [vmem:[%s14573_s23 + $0xcc8] sm:$0xff] }
 0x333   : > { %12763 = vmatprep.subr.bf16.mxu1 %v12762_v44  ;;  %v5168_v44 = vsel %vm5166_vm5, %v10882_v58, 0  ;;  %v10773_v57 = vcombine.high %v10507_v27, %v10511_v56  ;;  %v10772_v60 = vcombine.low %v10507_v27, %v10511_v56  ;;  %v10567_v58 = vld [vmem:[%s14573_s23 + $0xea8] sm:$0xff] }
 0x334   : > { %v10591_v27 = vld [vmem:[%s14573_s23 + $0xf68] sm:$0xff] }
 0x336   : > { %12765 = vmatpush1.bf16.msra.mxu1 %v12764_v52  ;;  %v10756_v52 = vcombine.low %v10491_v41, %v10495_v42  ;;  %v10571_v41 = vld [vmem:[%s14573_s23 + $0xec8] sm:$0xff] }
 0x337   : > { %12767 = vmatprep.subr.bf16.mxu1 %v12766_v53  ;;  %v10575_v42 = vld [vmem:[%s14573_s23 + $0xee8] sm:$0xff] }
 0x33a   : > { %12769 = vmatpush1.bf16.msra.mxu1 %v12768_v45  ;;  %v10515_v45 = vld [vmem:[%s14573_s23 + $0xd08] sm:$0xff] }
 0x33b   : > { %12771 = vmatprep.subr.bf16.mxu1 %v12770_v55  ;;  %v10519_v55 = vld [vmem:[%s14573_s23 + $0xd28] sm:$0xff] }
 0x33c   : > { %v10781_v61 = vcombine.high %v10515_v45, %v10519_v55 }
 0x33e   : > { %12773 = vmatpush1.bf16.msra.mxu1 %v12772_v0  ;;  %v10780_v0 = vcombine.low %v10515_v45, %v10519_v55  ;;  %v10599_v45 = vld [vmem:[%s14573_s23 + $0xfa8] sm:$0xff] }
 0x33f   : > { %12775 = vmatprep.subr.bf16.mxu1 %v12774_v9  ;;  %v10789_v9 = vcombine.high %v10523_v62, %v10527_v63  ;;  %v10607_v62 = vld [vmem:[%s14573_s23 + $0xfe8] sm:$0xff] }
 0x342   : > { %12777 = vmatpush1.bf16.msra.mxu1 %v12776_v10  ;;  %v10796_v10 = vcombine.low %v10531_v1, %v10535_v4  ;;  %v10615_v1 = vld [vmem:[%s14573_s23 + $0x1028] sm:$0xff] }
 0x343   : > { %12779 = vmatprep.subr.bf16.mxu1 %v12778_v12  ;;  %v10474_v12 = vld [vmem:[%s14573_s23 + $0xbc0] sm:$0xff] }
 0x344   : > { %v3199_v7 = vpop.f32.mrb[14].mxu0  ;;  %v10738_v15 = vcombine.low %v10474_v12, %v10478_v51  ;;  %v10739_v21 = vcombine.high %v10474_v12, %v10478_v51 }
 0x345   : > { %v3207_v23 = vadd.f32 %v3199_v7, %v14848_v32  ;;  %v12157_v25 = vpop.f32.mrb[15].mxu0  ;;  %v12788_v32 = vpack.c.bf16 %v10359_v34, %v10354_v33  ;;  %v10555_v33 = vld [vmem:[%s14573_s23 + $0xe48] sm:$0xff] }
 0x346   : > { %12781 = vmatpush1.bf16.msra.mxu1 %v12780_v16  ;;  %v10543_v16 = vld [vmem:[%s14573_s23 + $0xde8] sm:$0xff]  ;;  %5219 = vmatprep.subr.bf16.mxu0 %v10739_v21 }
 0x347   : > { %v3239_v26 = vadd.f32 %v3229_v3, %v3207_v23  ;;  %12783 = vmatprep.subr.bf16.mxu1 %v12782_v17  ;;  %v10482_v3 = vld [vmem:[%s14573_s23 + $0xc00] sm:$0xff]  ;;  %v10804_v18 = vcombine.low %v10539_v13, %v10543_v16  ;;  %v10805_v19 = vcombine.high %v10539_v13, %v10543_v16  ;;  %v10813_v23 = vcombine.high %v10547_v20, %v10551_v22 }
 0x348   : > { %v10486_v17 = vld [vmem:[%s14573_s23 + $0xc20] sm:$0xff]  ;;  %5220 = vmatpush1.bf16.msra.mxu0 %v10738_v15  ;;  %v15044_v13 = vsub.s32 1, %v13057_v59  ;;  %v3213_v15 = vrot.slane %v14936_v14, %v13063_v6 }
 0x349   : > { %v14967_v36 = vmax.f32 %v3239_v26, 0.0  ;;  %v10747_v7 = vcombine.high %v10482_v3, %v10486_v17  ;;  %v10746_v25 = vcombine.low %v10482_v3, %v10486_v17  ;;  %v15008_v26 = vld [vmem:[%s14573_s23 + $0xc40] sm:$0xff] }
 0x34a   : > { %12785 = vmatpush1.bf16.msra.mxu1 %v12784_v28  ;;  %v10812_v28 = vcombine.low %v10547_v20, %v10551_v22  ;;  %v3217_v21 = vrot.slane %v14936_v14, %v15044_v13 }
 0x34b   : > { %v3254_v37 = vrot.slane %v14967_v36, 2  ;;  %v3305_v31 = vrot.slane %v14967_v36, 4  ;;  %12787 = vmatprep.subr.bf16.mxu1 %v12786_v30  ;;  %v3275_v39 = vrot.slane %v14967_v36, 1  ;;  %v3285_v40 = vrot.slane %v14967_v36, 3  ;;  %5221 = vmatprep.subr.bf16.mxu0 %v10747_v7  ;;  %v15011_v30 = vld [vmem:[%s14573_s23 + $0xc60] sm:$0xff] }
 0x34c   : > { %5222 = vmatpush1.bf16.msra.mxu0 %v10746_v25  ;;  %v10754_v34 = vcombine.low %v15008_v26, %v15011_v30  ;;  %v10755_v35 = vcombine.high %v15008_v26, %v15011_v30  ;;  %v10530_v30 = vld [vmem:[%s14573_s23 + $0xd80] sm:$0xff] }
 0x34d   : > { %v14978_v43 = vsel %vm3260_vm4, %v3254_v37, %v3305_v31  ;;  %v3295_v47 = vsel %vm3260_vm4, %v3275_v39, %v3285_v40  ;;  %v10821_v31 = vcombine.high %v10555_v33, %v10559_v48 }
 0x34e   : > { %12789 = vmatpush1.bf16.msra.mxu1 %v12788_v32  ;;  %v14987_v53 = vpack.c.bf16 %v3295_v47, %v3295_v47  ;;  %v10820_v32 = vcombine.low %v10555_v33, %v10559_v48  ;;  %5232 = vmatprep.subr.bf16.mxu0 %v10755_v35  ;;  %v10579_v47 = vld [vmem:[%s14573_s23 + $0xf08] sm:$0xff]  ;;  %v10498_v48 = vld [vmem:[%s14573_s23 + $0xc80] sm:$0xff] }
 0x34f   : > { %10890 = vmatprep.subr.msk.bf16.mxu1 %vm5166_vm5, %v10883_v38  ;;  %v10563_v38 = vld [vmem:[%s14573_s23 + $0xe88] sm:$0xff] }
 0x350   : > { %v10829_v39 = vcombine.high %v10563_v38, %v10567_v58  ;;  %v10828_v40 = vcombine.low %v10563_v38, %v10567_v58 }
 0x351   : > { %3127 = vmatmul.mubr.f32.vlgmr.msra.gmra.mrb[2].mxu1 %v14232_v24  ;;  %v10764_v24 = vcombine.low %v10499_v49, %v10503_v50  ;;  %v10583_v49 = vld [vmem:[%s14573_s23 + $0xf28] sm:$0xff] }
 0x352   : > { %5274 = vmatpush1.bf16.msra.mxu1 %v5168_v44  ;;  %5305 = vmatprep.mubr.bf16.mxu1 %v12869_v2  ;;  %v10837_v44 = vcombine.high %v10571_v41, %v10575_v42  ;;  %v10845_v50 = vcombine.high %v10579_v47, %v10583_v49 }
 0x353   : > { %5355 = vmatprep.subr.bf16.mxu1 %v10757_v46  ;;  %v10836_v46 = vcombine.low %v10571_v41, %v10575_v42 }
 0x355   : > { %10891 = vmatmul.mubr.msk.bf16.vlgmr.msra.gmra.mrb[4].mxu1 %vm5162_vm6, %v14987_v53 }
 0x356   : > { %5356 = vmatpush1.bf16.msra.mxu1 %v10756_v52  ;;  %v10844_v52 = vcombine.low %v10579_v47, %v10583_v49 }
 0x357   : > { %5357 = vmatprep.subr.bf16.mxu1 %v10765_v54  ;;  %v10587_v54 = vld [vmem:[%s14573_s23 + $0xf48] sm:$0xff] }
 0x358   : > { %v10853_v56 = vcombine.high %v10587_v54, %v10591_v27 }
 0x35a   : > { %5358 = vmatpush1.bf16.msra.mxu1 %v10764_v24  ;;  %v10852_v24 = vcombine.low %v10587_v54, %v10591_v27  ;;  %v10518_v54 = vld [vmem:[%s14573_s23 + $0xd20] sm:$0xff] }
 0x35b   : > { %5359 = vmatprep.subr.bf16.mxu1 %v10773_v57  ;;  %v10595_v57 = vld [vmem:[%s14573_s23 + $0xf88] sm:$0xff] }
 0x35c   : > { %v10861_v55 = vcombine.high %v10595_v57, %v10599_v45 }
 0x35e   : > { %5360 = vmatpush1.bf16.msra.mxu1 %v10772_v60  ;;  %v10860_v60 = vcombine.low %v10595_v57, %v10599_v45  ;;  %v10526_v57 = vld [vmem:[%s14573_s23 + $0xd60] sm:$0xff] }
 0x35f   : > { %5361 = vmatprep.subr.bf16.mxu1 %v10781_v61  ;;  %v10603_v61 = vld [vmem:[%s14573_s23 + $0xfc8] sm:$0xff] }
 0x360   : > { %v10868_v63 = vcombine.low %v10603_v61, %v10607_v62 }
 0x362   : > { %5362 = vmatpush1.bf16.msra.mxu1 %v10780_v0  ;;  %v10869_v0 = vcombine.high %v10603_v61, %v10607_v62  ;;  %v15097_v62 = vsub.s32 3, %v13057_v59 }
 0x363   : > { %5363 = vmatprep.subr.bf16.mxu1 %v10789_v9  ;;  %v10611_v9 = vld [vmem:[%s14573_s23 + $0x1008] sm:$0xff] }
 0x364   : > { %v10877_v4 = vcombine.high %v10611_v9, %v10615_v1 }
 0x366   : > { %5364 = vmatpush1.bf16.msra.mxu1 %v10788_v5  ;;  %v10876_v5 = vcombine.low %v10611_v9, %v10615_v1 }
 0x367   : > { %5365 = vmatprep.subr.bf16.mxu1 %v10797_v8  ;;  %v15034_v8 = vld [vmem:[%s14573_s23 + $0xc50] sm:$0xff] }
 0x36a   : > { %5366 = vmatpush1.bf16.msra.mxu1 %v10796_v10  ;;  %v15037_v10 = vld [vmem:[%s14573_s23 + $0xc70] sm:$0xff] }
 0x36b   : > { %5367 = vmatprep.subr.bf16.mxu1 %v10805_v19  ;;  %v10758_v12 = vcombine.low %v15034_v8, %v15037_v10  ;;  %v10759_v51 = vcombine.high %v15034_v8, %v15037_v10 }
 0x36e   : > { %5368 = vmatpush1.bf16.msra.mxu1 %v10804_v18 }
 0x36f   : > { %5369 = vmatprep.subr.bf16.mxu1 %v10813_v23 }
 0x372   : > { %5370 = vmatpush1.bf16.msra.mxu1 %v10812_v28 }
 0x373   : > { %5371 = vmatprep.subr.bf16.mxu1 %v10821_v31 }
 0x376   : > { %5372 = vmatpush1.bf16.msra.mxu1 %v10820_v32  ;;  %v10502_v32 = vld [vmem:[%s14573_s23 + $0xca0] sm:$0xff] }
 0x377   : > { %5373 = vmatprep.subr.bf16.mxu1 %v10829_v39  ;;  %v10763_v41 = vcombine.high %v10498_v48, %v10502_v32  ;;  %v10762_v49 = vcombine.low %v10498_v48, %v10502_v32 }
 0x37a   : > { %5374 = vmatpush1.bf16.msra.mxu1 %v10828_v40 }
 0x37b   : > { %5375 = vmatprep.subr.bf16.mxu1 %v10837_v44  ;;  %v10506_v44 = vld [vmem:[%s14573_s23 + $0xcc0] sm:$0xff] }
 0x37e   : > { %5376 = vmatpush1.bf16.msra.mxu1 %v10836_v46  ;;  %v10510_v46 = vld [vmem:[%s14573_s23 + $0xce0] sm:$0xff] }
 0x37f   : > { %5377 = vmatprep.subr.bf16.mxu1 %v10845_v50  ;;  %v10771_v50 = vcombine.high %v10506_v44, %v10510_v46  ;;  %v10770_v27 = vcombine.low %v10506_v44, %v10510_v46 }
 0x382   : > { %5378 = vmatpush1.bf16.msra.mxu1 %v10844_v52  ;;  %v10514_v52 = vld [vmem:[%s14573_s23 + $0xd00] sm:$0xff] }
 0x383   : > { %5379 = vmatprep.subr.bf16.mxu1 %v10853_v56  ;;  %v10779_v56 = vcombine.high %v10514_v52, %v10518_v54  ;;  %v10778_v45 = vcombine.low %v10514_v52, %v10518_v54  ;;  %v10562_v52 = vld [vmem:[%s14573_s23 + $0xe80] sm:$0xff] }
 0x384   : > { %v10566_v54 = vld [vmem:[%s14573_s23 + $0xea0] sm:$0xff] }
 0x386   : > { %5380 = vmatpush1.bf16.msra.mxu1 %v10852_v24  ;;  %v10522_v24 = vld [vmem:[%s14573_s23 + $0xd40] sm:$0xff] }
 0x387   : > { %5381 = vmatprep.subr.bf16.mxu1 %v10861_v55  ;;  %v10787_v26 = vcombine.high %v10522_v24, %v10526_v57  ;;  %v10786_v55 = vcombine.low %v10522_v24, %v10526_v57  ;;  %v10500_v24 = vld [vmem:[%s14573_s23 + $0xc90] sm:$0xff] }
 0x388   : > { %v10504_v57 = vld [vmem:[%s14573_s23 + $0xcb0] sm:$0xff] }
 0x38a   : > { %5382 = vmatpush1.bf16.msra.mxu1 %v10860_v60  ;;  %v15094_v60 = vsub.s32 2, %v13057_v59 }
 0x38b   : > { %5383 = vmatprep.subr.bf16.mxu1 %v10869_v0  ;;  %v10542_v0 = vld [vmem:[%s14573_s23 + $0xde0] sm:$0xff] }
 0x38c   : > { %v3221_v1 = vrot.slane %v14936_v14, %v15094_v60 }
 0x38e   : > { %5384 = vmatpush1.bf16.msra.mxu1 %v10868_v63  ;;  %v10538_v63 = vld [vmem:[%s14573_s23 + $0xdc0] sm:$0xff] }
 0x38f   : > { %5385 = vmatprep.subr.bf16.mxu1 %v10877_v4  ;;  %v3225_v4 = vrot.slane %v14936_v14, %v15097_v62 }
 0x392   : > { %5386 = vmatpush1.bf16.msra.mxu1 %v10876_v5  ;;  %v10803_v5 = vcombine.high %v10538_v63, %v10542_v0 }
 0x393   : > { %5478 = vmatprep.subr.bf16.mxu1 %v10759_v51  ;;  %v10546_v51 = vld [vmem:[%s14573_s23 + $0xe00] sm:$0xff] }
 0x404   : > { %v3057_v16 = vpop.f32.mrb[0].mxu1 }
 0x405   : > { %v3235_v3 = vadd.f32 %v3213_v15, %v3057_v16  ;;  %v3059_v17 = vpop.f32.mrb[1].mxu1  ;;  %v10550_v15 = vld [vmem:[%s14573_s23 + $0xe20] sm:$0xff] }
 0x406   : > { %v3236_v18 = vadd.f32 %v3217_v21, %v3059_v17  ;;  %v10802_v17 = vcombine.low %v10538_v63, %v10542_v0  ;;  %v10810_v48 = vcombine.low %v10546_v51, %v10550_v15  ;;  %v10827_v63 = vcombine.high %v10562_v52, %v10566_v54  ;;  %v10570_v0 = vld [vmem:[%s14573_s23 + $0xec0] sm:$0xff] }
 0x407   : > { %v15050_v19 = vmax.f32 %v3235_v3, 0.0 }
 0x408   : > { %v15052_v7 = vmax.f32 %v3236_v18, 0.0 }
 0x409   : > { %v3271_v20 = vrot.slane %v15050_v19, 1  ;;  %v3281_v22 = vrot.slane %v15050_v19, 3  ;;  %v3250_v28 = vrot.slane %v15050_v19, 2  ;;  %v3301_v33 = vrot.slane %v15050_v19, 4 }
 0x40a   : > { %v3272_v23 = vrot.slane %v15052_v7, 1  ;;  %v3282_v25 = vrot.slane %v15052_v7, 3  ;;  %v3251_v31 = vrot.slane %v15052_v7, 2  ;;  %v3302_v39 = vrot.slane %v15052_v7, 4 }
 0x40b   : > { %v3291_v35 = vsel %vm3260_vm4, %v3271_v20, %v3281_v22  ;;  %v15073_v42 = vsel %vm3260_vm4, %v3250_v28, %v3301_v33  ;;  %v10811_v20 = vcombine.high %v10546_v51, %v10550_v15  ;;  %v10512_v51 = vld [vmem:[%s14573_s23 + $0xcf0] sm:$0xff] }
 0x40c   : > { %v3292_v38 = vsel %vm3260_vm4, %v3272_v23, %v3282_v25  ;;  %v15068_v40 = vpack.c.bf16 %v3291_v35, %v3291_v35  ;;  %v15081_v47 = vsel %vm3260_vm4, %v3251_v31, %v3302_v39  ;;  %v10554_v23 = vld [vmem:[%s14573_s23 + $0xe40] sm:$0xff] }
 0x40d   : > { %v15065_v58 = vpack.c.bf16 %v3292_v38, %v3292_v38  ;;  %v10558_v25 = vld [vmem:[%s14573_s23 + $0xe60] sm:$0xff] }
 0x40f   : > { %5223 = vmatprep.mubr.bf16.mxu0 %v15065_v58 }
 0x410   : > { %5224 = vmatmul.mubr.bf16.vlgmr.msra.gmra.mrb[16].mxu0 %v15068_v40 }
 0x411   : > { %5233 = vmatpush1.bf16.msra.mxu0 %v10754_v34  ;;  %v10534_v34 = vld [vmem:[%s14573_s23 + $0xda0] sm:$0xff] }
 0x412   : > { %5234 = vmatprep.subr.bf16.mxu0 %v10763_v41  ;;  %v10795_v61 = vcombine.high %v10530_v30, %v10534_v34  ;;  %v10794_v9 = vcombine.low %v10530_v30, %v10534_v34  ;;  %v10819_v41 = vcombine.high %v10554_v23, %v10558_v25  ;;  %v10818_v30 = vcombine.low %v10554_v23, %v10558_v25  ;;  %v10516_v23 = vld [vmem:[%s14573_s23 + $0xd10] sm:$0xff] }
 0x413   : > { %v10520_v25 = vld [vmem:[%s14573_s23 + $0xd30] sm:$0xff] }
 0x415   : > { %5235 = vmatpush1.bf16.msra.mxu0 %v10762_v49 }
 0x416   : > { %5236 = vmatprep.subr.bf16.mxu0 %v10771_v50 }
 0x419   : > { %5237 = vmatpush1.bf16.msra.mxu0 %v10770_v27 }
 0x41a   : > { %5238 = vmatprep.subr.bf16.mxu0 %v10779_v56 }
 0x41d   : > { %5239 = vmatpush1.bf16.msra.mxu0 %v10778_v45 }
 0x41e   : > { %5240 = vmatprep.subr.bf16.mxu0 %v10787_v26 }
 0x421   : > { %5241 = vmatpush1.bf16.msra.mxu0 %v10786_v55 }
 0x422   : > { %5242 = vmatprep.subr.bf16.mxu0 %v10795_v61 }
 0x424   : > { %v3128_v21 = vpop.f32.mrb[2].mxu1 }
 0x425   : > { %v3237_v16 = vadd.f32 %v3221_v1, %v3128_v21  ;;  %5243 = vmatpush1.bf16.msra.mxu0 %v10794_v9  ;;  %v3130_v3 = vpop.f32.mrb[3].mxu1  ;;  %v10767_v1 = vcombine.high %v10500_v24, %v10504_v57  ;;  %v10826_v21 = vcombine.low %v10562_v52, %v10566_v54  ;;  %v10594_v52 = vld [vmem:[%s14573_s23 + $0xf80] sm:$0xff] }
 0x426   : > { %v3238_v18 = vadd.f32 %v3225_v4, %v3130_v3  ;;  %5244 = vmatprep.subr.bf16.mxu0 %v10803_v5  ;;  %v10574_v4 = vld [vmem:[%s14573_s23 + $0xee0] sm:$0xff]  ;;  %v10508_v5 = vld [vmem:[%s14573_s23 + $0xcd0] sm:$0xff] }
 0x427   : > { %v15107_v22 = vmax.f32 %v3237_v16, 0.0  ;;  %v10766_v16 = vcombine.low %v10500_v24, %v10504_v57  ;;  %v10835_v3 = vcombine.high %v10570_v0, %v10574_v4  ;;  %v10834_v8 = vcombine.low %v10570_v0, %v10574_v4  ;;  %v10598_v54 = vld [vmem:[%s14573_s23 + $0xfa0] sm:$0xff]  ;;  %v10536_v24 = vld [vmem:[%s14573_s23 + $0xdb0] sm:$0xff] }
 0x428   : > { %v15111_v33 = vmax.f32 %v3238_v18, 0.0  ;;  %v15113_v14 = vpop.f32.mrb[4].mxu1  ;;  %v10578_v18 = vld [vmem:[%s14573_s23 + $0xf00] sm:$0xff]  ;;  %v10774_v10 = vcombine.low %v10508_v5, %v10512_v51  ;;  %v10544_v4 = vld [vmem:[%s14573_s23 + $0xdf0] sm:$0xff] }
 0x429   : > { %5245 = vmatpush1.bf16.msra.mxu0 %v10802_v17  ;;  %v15115_v35 = vpop.f32.mrb[5].mxu1  ;;  %v3273_v32 = vrot.slane %v15107_v22, 1  ;;  %v3283_v38 = vrot.slane %v15107_v22, 3  ;;  %v3252_v45 = vrot.slane %v15107_v22, 2  ;;  %v3303_v55 = vrot.slane %v15107_v22, 4  ;;  %v10606_v0 = vld [vmem:[%s14573_s23 + $0xfe0] sm:$0xff] }
 0x42a   : > { %v5311_v39 = vpop.f32.mrb[6].mxu1  ;;  %5246 = vmatprep.subr.bf16.mxu0 %v10811_v20  ;;  %v3274_v44 = vrot.slane %v15111_v33, 1  ;;  %v3284_v46 = vrot.slane %v15111_v33, 3  ;;  %v3253_v27 = vrot.slane %v15111_v33, 2  ;;  %v3304_v26 = vrot.slane %v15111_v33, 4  ;;  %v10582_v20 = vld [vmem:[%s14573_s23 + $0xf20] sm:$0xff] }
 0x42b   : > { %v5312_v49 = vpop.f32.mrb[7].mxu1  ;;  %v3293_v50 = vsel %vm3260_vm4, %v3273_v32, %v3283_v38  ;;  %v15150_v15 = vsel %vm3260_vm4, %v3252_v45, %v3303_v55  ;;  %v10775_v17 = vcombine.high %v10508_v5, %v10512_v51  ;;  %v10586_v32 = vld [vmem:[%s14573_s23 + $0xf40] sm:$0xff]  ;;  %v10524_v39 = vld [vmem:[%s14573_s23 + $0xd50] sm:$0xff]  ;;  %v10858_v5 = vcombine.low %v10594_v52, %v10598_v54 }
 0x42c   : > { %v3294_v56 = vsel %vm3260_vm4, %v3274_v44, %v3284_v46  ;;  %v15133_v61 = vpack.c.bf16 %v3293_v50, %v3293_v50  ;;  %v15139_v9 = vsel %vm3260_vm4, %v3253_v27, %v3304_v26  ;;  %v10590_v38 = vld [vmem:[%s14573_s23 + $0xf60] sm:$0xff]  ;;  %v10842_v44 = vcombine.low %v10578_v18, %v10582_v20 }
 0x42d   : > { %5247 = vmatpush1.bf16.msra.mxu0 %v10810_v48  ;;  %v15130_v34 = vpack.c.bf16 %v3294_v56, %v3294_v56  ;;  %v10783_v48 = vcombine.high %v10516_v23, %v10520_v25  ;;  %v10782_v46 = vcombine.low %v10516_v23, %v10520_v25  ;;  %v10851_v49 = vcombine.high %v10586_v32, %v10590_v38  ;;  %v10532_v56 = vld [vmem:[%s14573_s23 + $0xd90] sm:$0xff] }
 0x42e   : > { %5248 = vmatprep.subr.bf16.mxu0 %v10819_v41  ;;  %v10528_v41 = vld [vmem:[%s14573_s23 + $0xd70] sm:$0xff]  ;;  %v10850_v57 = vcombine.low %v10586_v32, %v10590_v38  ;;  %v10799_v55 = vcombine.high %v10532_v56, %v10536_v24  ;;  %v10798_v51 = vcombine.low %v10532_v56, %v10536_v24 }
 0x42f   : > { %5264 = vmatprep.mubr.bf16.mxu0 %v15130_v34  ;;  %5387 = vmatprep.mubr.bf16.mxu1 %v15130_v34  ;;  %v10791_v50 = vcombine.high %v10524_v39, %v10528_v41  ;;  %v10790_v26 = vcombine.low %v10524_v39, %v10528_v41  ;;  %v10556_v32 = vld [vmem:[%s14573_s23 + $0xe50] sm:$0xff] }
 0x430   : > { %5388 = vmatmul.mubr.bf16.vlgmr.msra.gmra.mrb[8].mxu1 %v15133_v61  ;;  %v10560_v38 = vld [vmem:[%s14573_s23 + $0xe70] sm:$0xff] }
 0x431   : > { %5249 = vmatpush1.bf16.msra.mxu0 %v10818_v30  ;;  %5479 = vmatpush1.bf16.msra.mxu1 %v10758_v12  ;;  %v10843_v12 = vcombine.high %v10578_v18, %v10582_v20  ;;  %v10859_v30 = vcombine.high %v10594_v52, %v10598_v54  ;;  %v10548_v18 = vld [vmem:[%s14573_s23 + $0xe10] sm:$0xff]  ;;  %v10822_v24 = vcombine.low %v10556_v32, %v10560_v38 }
 0x432   : > { %5510 = vmatprep.mubr.bf16.mxu1 %v15130_v34  ;;  %5250 = vmatprep.subr.bf16.mxu0 %v10827_v63  ;;  %v10602_v63 = vld [vmem:[%s14573_s23 + $0xfc0] sm:$0xff]  ;;  %v10552_v20 = vld [vmem:[%s14573_s23 + $0xe30] sm:$0xff] }
 0x433   : > { %5480 = vmatprep.subr.bf16.mxu1 %v10767_v1  ;;  %v10540_v1 = vld [vmem:[%s14573_s23 + $0xdd0] sm:$0xff]  ;;  %v10866_v23 = vcombine.low %v10602_v63, %v10606_v0  ;;  %v10814_v41 = vcombine.low %v10548_v18, %v10552_v20 }
 0x434   : > { %v10806_v25 = vcombine.low %v10540_v1, %v10544_v4  ;;  %v10564_v52 = vld [vmem:[%s14573_s23 + $0xe90] sm:$0xff] }
 0x435   : > { %5251 = vmatpush1.bf16.msra.mxu0 %v10826_v21  ;;  %5481 = vmatpush1.bf16.msra.mxu1 %v10766_v16  ;;  %v10867_v21 = vcombine.high %v10602_v63, %v10606_v0  ;;  %v10807_v16 = vcombine.high %v10540_v1, %v10544_v4  ;;  %v10568_v54 = vld [vmem:[%s14573_s23 + $0xeb0] sm:$0xff] }
 0x436   : > { %5252 = vmatprep.subr.bf16.mxu0 %v10835_v3  ;;  %5482 = vmatprep.subr.bf16.mxu1 %v10775_v17  ;;  %v10610_v3 = vld [vmem:[%s14573_s23 + $0x1000] sm:$0xff]  ;;  %v10572_v63 = vld [vmem:[%s14573_s23 + $0xed0] sm:$0xff]  ;;  %v10830_v4 = vcombine.low %v10564_v52, %v10568_v54 }
 0x437   : > { %v10614_v17 = vld [vmem:[%s14573_s23 + $0x1020] sm:$0xff]  ;;  %v10576_v0 = vld [vmem:[%s14573_s23 + $0xef0] sm:$0xff] }
 0x438   : > { %v10874_v39 = vcombine.low %v10610_v3, %v10614_v17 }
 0x439   : > { %5253 = vmatpush1.bf16.msra.mxu0 %v10834_v8  ;;  %5483 = vmatpush1.bf16.msra.mxu1 %v10774_v10  ;;  %v10875_v8 = vcombine.high %v10610_v3, %v10614_v17  ;;  %v10815_v10 = vcombine.high %v10548_v18, %v10552_v20  ;;  %v10580_v3 = vld [vmem:[%s14573_s23 + $0xf10] sm:$0xff]  ;;  %v10838_v20 = vcombine.low %v10572_v63, %v10576_v0 }
 0x43a   : > { %5254 = vmatprep.subr.bf16.mxu0 %v10843_v12  ;;  %5484 = vmatprep.subr.bf16.mxu1 %v10783_v48  ;;  %v10363_v12 = vld [vmem:[%s14573_s23 + $0x848] sm:$0xff]  ;;  %v10584_v17 = vld [vmem:[%s14573_s23 + $0xf30] sm:$0xff] }
 0x43b   : > { %v10367_v48 = vld [vmem:[%s14573_s23 + $0x868] sm:$0xff] }
 0x43c   : > { %v10628_v56 = vcombine.low %v10363_v12, %v10367_v48 }
 0x43d   : > { %5255 = vmatpush1.bf16.msra.mxu0 %v10842_v44  ;;  %5485 = vmatpush1.bf16.msra.mxu1 %v10782_v46  ;;  %v10629_v44 = vcombine.high %v10363_v12, %v10367_v48  ;;  %v10823_v46 = vcombine.high %v10556_v32, %v10560_v38  ;;  %v10588_v12 = vld [vmem:[%s14573_s23 + $0xf50] sm:$0xff]  ;;  %v10846_v38 = vcombine.low %v10580_v3, %v10584_v17 }
 0x43e   : > { %5256 = vmatprep.subr.bf16.mxu0 %v10851_v49  ;;  %5486 = vmatprep.subr.bf16.mxu1 %v10791_v50  ;;  %v10371_v49 = vld [vmem:[%s14573_s23 + $0x888] sm:$0xff]  ;;  %v10592_v48 = vld [vmem:[%s14573_s23 + $0xf70] sm:$0xff] }
 0x43f   : > { %v10375_v50 = vld [vmem:[%s14573_s23 + $0x8a8] sm:$0xff] }
 0x440   : > { %v10636_v1 = vcombine.low %v10371_v49, %v10375_v50 }
 0x441   : > { %5257 = vmatpush1.bf16.msra.mxu0 %v10850_v57  ;;  %5487 = vmatpush1.bf16.msra.mxu1 %v10790_v26  ;;  %v10637_v57 = vcombine.high %v10371_v49, %v10375_v50  ;;  %v10831_v26 = vcombine.high %v10564_v52, %v10568_v54  ;;  %v10596_v49 = vld [vmem:[%s14573_s23 + $0xf90] sm:$0xff]  ;;  %v10854_v54 = vcombine.low %v10588_v12, %v10592_v48 }
 0x442   : > { %5258 = vmatprep.subr.bf16.mxu0 %v10859_v30  ;;  %5488 = vmatprep.subr.bf16.mxu1 %v10799_v55  ;;  %v10379_v30 = vld [vmem:[%s14573_s23 + $0x8c8] sm:$0xff]  ;;  %v10600_v50 = vld [vmem:[%s14573_s23 + $0xfb0] sm:$0xff] }
 0x443   : > { %v10383_v55 = vld [vmem:[%s14573_s23 + $0x8e8] sm:$0xff] }
 0x444   : > { %v10644_v18 = vcombine.low %v10379_v30, %v10383_v55 }
 0x445   : > { %5259 = vmatpush1.bf16.msra.mxu0 %v10858_v5  ;;  %5489 = vmatpush1.bf16.msra.mxu1 %v10798_v51  ;;  %v10645_v5 = vcombine.high %v10379_v30, %v10383_v55  ;;  %v10839_v51 = vcombine.high %v10572_v63, %v10576_v0  ;;  %v10604_v30 = vld [vmem:[%s14573_s23 + $0xfd0] sm:$0xff]  ;;  %v10862_v0 = vcombine.low %v10596_v49, %v10600_v50 }
 0x446   : > { %5260 = vmatprep.subr.bf16.mxu0 %v10867_v21  ;;  %5490 = vmatprep.subr.bf16.mxu1 %v10807_v16  ;;  %v10387_v21 = vld [vmem:[%s14573_s23 + $0x908] sm:$0xff]  ;;  %v10608_v55 = vld [vmem:[%s14573_s23 + $0xff0] sm:$0xff] }
 0x447   : > { %v10391_v16 = vld [vmem:[%s14573_s23 + $0x928] sm:$0xff] }
 0x448   : > { %v10652_v32 = vcombine.low %v10387_v21, %v10391_v16 }
 0x449   : > { %5261 = vmatpush1.bf16.msra.mxu0 %v10866_v23  ;;  %5491 = vmatpush1.bf16.msra.mxu1 %v10806_v25  ;;  %v10653_v23 = vcombine.high %v10387_v21, %v10391_v16  ;;  %v10847_v25 = vcombine.high %v10580_v3, %v10584_v17  ;;  %v10612_v21 = vld [vmem:[%s14573_s23 + $0x1010] sm:$0xff]  ;;  %v10870_v17 = vcombine.low %v10604_v30, %v10608_v55 }
 0x44a   : > { %5262 = vmatprep.subr.bf16.mxu0 %v10875_v8  ;;  %5492 = vmatprep.subr.bf16.mxu1 %v10815_v10  ;;  %v10395_v8 = vld [vmem:[%s14573_s23 + $0x948] sm:$0xff]  ;;  %v10616_v16 = vld [vmem:[%s14573_s23 + $0x1030] sm:$0xff] }
 0x44b   : > { %v10399_v10 = vld [vmem:[%s14573_s23 + $0x968] sm:$0xff] }
 0x44c   : > { %v10660_v52 = vcombine.low %v10395_v8, %v10399_v10 }
 0x44d   : > { %5263 = vmatpush1.bf16.msra.mxu0 %v10874_v39  ;;  %5493 = vmatpush1.bf16.msra.mxu1 %v10814_v41  ;;  %v10661_v39 = vcombine.high %v10395_v8, %v10399_v10  ;;  %v10855_v41 = vcombine.high %v10588_v12, %v10592_v48  ;;  %v10493_v8 = vld [vmem:[%s14573_s23 + $0xc58] sm:$0xff]  ;;  %v10878_v48 = vcombine.low %v10612_v21, %v10616_v16 }
 0x44e   : > { %5314 = vmatprep.subr.bf16.mxu0 %v10629_v44  ;;  %5494 = vmatprep.subr.bf16.mxu1 %v10823_v46  ;;  %v10403_v44 = vld [vmem:[%s14573_s23 + $0x988] sm:$0xff]  ;;  %v10497_v10 = vld [vmem:[%s14573_s23 + $0xc78] sm:$0xff] }
 0x44f   : > { %v10407_v46 = vld [vmem:[%s14573_s23 + $0x9a8] sm:$0xff] }
 0x450   : > { %5265 = vmatmul.mubr.bf16.vlgmr.msra.gmra.mrb[20].mxu0 %v15133_v61  ;;  %v10668_v63 = vcombine.low %v10403_v44, %v10407_v46 }
 0x451   : > { %5315 = vmatpush1.bf16.msra.mxu0 %v10628_v56  ;;  %5346 = vmatprep.mubr.bf16.mxu0 %v15065_v58  ;;  %v10669_v56 = vcombine.high %v10403_v44, %v10407_v46  ;;  %v10501_v44 = vld [vmem:[%s14573_s23 + $0xc98] sm:$0xff] }
 0x452   : > { %5495 = vmatpush1.bf16.msra.mxu1 %v10822_v24  ;;  %5316 = vmatprep.subr.bf16.mxu0 %v10637_v57  ;;  %v10863_v24 = vcombine.high %v10596_v49, %v10600_v50  ;;  %v10411_v57 = vld [vmem:[%s14573_s23 + $0x9c8] sm:$0xff]  ;;  %v10505_v46 = vld [vmem:[%s14573_s23 + $0xcb8] sm:$0xff]  ;;  %v10760_v50 = vcombine.low %v10493_v8, %v10497_v10 }
 0x453   : > { %5496 = vmatprep.subr.bf16.mxu1 %v10831_v26  ;;  %v10415_v26 = vld [vmem:[%s14573_s23 + $0x9e8] sm:$0xff] }
 0x454   : > { %v10676_v3 = vcombine.low %v10411_v57, %v10415_v26 }
 0x455   : > { %5317 = vmatpush1.bf16.msra.mxu0 %v10636_v1  ;;  %v10677_v1 = vcombine.high %v10411_v57, %v10415_v26  ;;  %v10509_v57 = vld [vmem:[%s14573_s23 + $0xcd8] sm:$0xff] }
 0x456   : > { %5497 = vmatpush1.bf16.msra.mxu1 %v10830_v4  ;;  %5318 = vmatprep.subr.bf16.mxu0 %v10645_v5  ;;  %v10871_v4 = vcombine.high %v10604_v30, %v10608_v55  ;;  %v10419_v5 = vld [vmem:[%s14573_s23 + $0xa08] sm:$0xff]  ;;  %v10513_v26 = vld [vmem:[%s14573_s23 + $0xcf8] sm:$0xff]  ;;  %v10768_v55 = vcombine.low %v10501_v44, %v10505_v46 }
 0x457   : > { %5498 = vmatprep.subr.bf16.mxu1 %v10839_v51  ;;  %v10423_v51 = vld [vmem:[%s14573_s23 + $0xa28] sm:$0xff] }
 0x458   : > { %v10684_v12 = vcombine.low %v10419_v5, %v10423_v51 }
 0x459   : > { %5319 = vmatpush1.bf16.msra.mxu0 %v10644_v18  ;;  %v10685_v18 = vcombine.high %v10419_v5, %v10423_v51  ;;  %v10517_v5 = vld [vmem:[%s14573_s23 + $0xd18] sm:$0xff] }
 0x45a   : > { %5499 = vmatpush1.bf16.msra.mxu1 %v10838_v20  ;;  %5320 = vmatprep.subr.bf16.mxu0 %v10653_v23  ;;  %v10879_v20 = vcombine.high %v10612_v21, %v10616_v16  ;;  %v10427_v23 = vld [vmem:[%s14573_s23 + $0xa48] sm:$0xff]  ;;  %v10521_v51 = vld [vmem:[%s14573_s23 + $0xd38] sm:$0xff]  ;;  %v10776_v16 = vcombine.low %v10509_v57, %v10513_v26 }
 0x45b   : > { %5500 = vmatprep.subr.bf16.mxu1 %v10847_v25  ;;  %v10431_v25 = vld [vmem:[%s14573_s23 + $0xa68] sm:$0xff] }
 0x45c   : > { %v10692_v49 = vcombine.low %v10427_v23, %v10431_v25 }
 0x45d   : > { %5321 = vmatpush1.bf16.msra.mxu0 %v10652_v32  ;;  %v10693_v32 = vcombine.high %v10427_v23, %v10431_v25  ;;  %v10529_v23 = vld [vmem:[%s14573_s23 + $0xd78] sm:$0xff] }
 0x45e   : > { %5501 = vmatpush1.bf16.msra.mxu1 %v10846_v38  ;;  %5322 = vmatprep.subr.bf16.mxu0 %v10661_v39  ;;  %v10761_v38 = vcombine.high %v10493_v8, %v10497_v10  ;;  %v10435_v39 = vld [vmem:[%s14573_s23 + $0xa88] sm:$0xff]  ;;  %v10784_v8 = vcombine.low %v10517_v5, %v10521_v51 }
 0x45f   : > { %5502 = vmatprep.subr.bf16.mxu1 %v10855_v41  ;;  %v10439_v41 = vld [vmem:[%s14573_s23 + $0xaa8] sm:$0xff] }
 0x460   : > { %v10700_v30 = vcombine.low %v10435_v39, %v10439_v41 }
 0x461   : > { %5323 = vmatpush1.bf16.msra.mxu0 %v10660_v52  ;;  %v10701_v52 = vcombine.high %v10435_v39, %v10439_v41  ;;  %v10537_v39 = vld [vmem:[%s14573_s23 + $0xdb8] sm:$0xff] }
 0x462   : > { %5503 = vmatpush1.bf16.msra.mxu1 %v10854_v54  ;;  %5324 = vmatprep.subr.bf16.mxu0 %v10669_v56  ;;  %v10769_v54 = vcombine.high %v10501_v44, %v10505_v46  ;;  %v10443_v56 = vld [vmem:[%s14573_s23 + $0xac8] sm:$0xff] }
 0x463   : > { %5504 = vmatprep.subr.bf16.mxu1 %v10863_v24  ;;  %v10447_v24 = vld [vmem:[%s14573_s23 + $0xae8] sm:$0xff] }
 0x464   : > { %v10708_v21 = vcombine.low %v10443_v56, %v10447_v24 }
 0x465   : > { %5325 = vmatpush1.bf16.msra.mxu0 %v10668_v63  ;;  %v10709_v63 = vcombine.high %v10443_v56, %v10447_v24  ;;  %v10545_v56 = vld [vmem:[%s14573_s23 + $0xdf8] sm:$0xff] }
 0x466   : > { %5505 = vmatpush1.bf16.msra.mxu1 %v10862_v0  ;;  %5326 = vmatprep.subr.bf16.mxu0 %v10677_v1  ;;  %v10777_v0 = vcombine.high %v10509_v57, %v10513_v26  ;;  %v10451_v1 = vld [vmem:[%s14573_s23 + $0xb08] sm:$0xff] }
 0x467   : > { %5506 = vmatprep.subr.bf16.mxu1 %v10871_v4  ;;  %v10455_v4 = vld [vmem:[%s14573_s23 + $0xb28] sm:$0xff] }
 0x468   : > { %v10716_v25 = vcombine.low %v10451_v1, %v10455_v4 }
 0x469   : > { %5327 = vmatpush1.bf16.msra.mxu0 %v10676_v3  ;;  %v10785_v3 = vcombine.high %v10517_v5, %v10521_v51 }
 0x46a   : > { %5507 = vmatpush1.bf16.msra.mxu1 %v10870_v17  ;;  %5328 = vmatprep.subr.bf16.mxu0 %v10685_v18  ;;  %v10459_v17 = vld [vmem:[%s14573_s23 + $0xb48] sm:$0xff] }
 0x46b   : > { %5508 = vmatprep.subr.bf16.mxu1 %v10879_v20  ;;  %v10463_v18 = vld [vmem:[%s14573_s23 + $0xb68] sm:$0xff]  ;;  %v10525_v20 = vld [vmem:[%s14573_s23 + $0xd58] sm:$0xff] }
 0x46c   : > { %v10725_v10 = vcombine.high %v10459_v17, %v10463_v18  ;;  %v10724_v41 = vcombine.low %v10459_v17, %v10463_v18  ;;  %v10792_v44 = vcombine.low %v10525_v20, %v10529_v23  ;;  %v10561_v17 = vld [vmem:[%s14573_s23 + $0xe78] sm:$0xff] }
 0x46d   : > { %5329 = vmatpush1.bf16.msra.mxu0 %v10684_v12  ;;  %v10793_v12 = vcombine.high %v10525_v20, %v10529_v23 }
 0x46e   : > { %5509 = vmatpush1.bf16.msra.mxu1 %v10878_v48  ;;  %5330 = vmatprep.subr.bf16.mxu0 %v10693_v32  ;;  %v10467_v48 = vld [vmem:[%s14573_s23 + $0xb88] sm:$0xff] }
 0x46f   : > { %5601 = vmatprep.subr.bf16.mxu1 %v10761_v38  ;;  %v10471_v32 = vld [vmem:[%s14573_s23 + $0xba8] sm:$0xff]  ;;  %v10533_v38 = vld [vmem:[%s14573_s23 + $0xd98] sm:$0xff] }
 0x470   : > { %v10733_v46 = vcombine.high %v10467_v48, %v10471_v32  ;;  %v10732_v24 = vcombine.low %v10467_v48, %v10471_v32  ;;  %v10800_v57 = vcombine.low %v10533_v38, %v10537_v39  ;;  %v10565_v48 = vld [vmem:[%s14573_s23 + $0xe98] sm:$0xff] }
 0x471   : > { %5511 = vmatmul.mubr.bf16.vlgmr.msra.gmra.mrb[12].mxu1 %v15133_v61  ;;  %5331 = vmatpush1.bf16.msra.mxu0 %v10692_v49  ;;  %v10801_v49 = vcombine.high %v10533_v38, %v10537_v39  ;;  %v10569_v32 = vld [vmem:[%s14573_s23 + $0xeb8] sm:$0xff] }
 0x472   : > { %5602 = vmatpush1.bf16.msra.mxu1 %v10760_v50  ;;  %5633 = vmatprep.mubr.bf16.mxu1 %v15130_v34  ;;  %v10717_v34 = vcombine.high %v10451_v1, %v10455_v4  ;;  %v10475_v50 = vld [vmem:[%s14573_s23 + $0xbc8] sm:$0xff]  ;;  %v10553_v1 = vld [vmem:[%s14573_s23 + $0xe38] sm:$0xff] }
 0x473   : > { %5332 = vmatprep.subr.bf16.mxu0 %v10701_v52  ;;  %5603 = vmatprep.subr.bf16.mxu1 %v10769_v54  ;;  %v10479_v52 = vld [vmem:[%s14573_s23 + $0xbe8] sm:$0xff]  ;;  %v10541_v54 = vld [vmem:[%s14573_s23 + $0xdd8] sm:$0xff] }
 0x474   : > { %v10741_v26 = vcombine.high %v10475_v50, %v10479_v52  ;;  %v10740_v4 = vcombine.low %v10475_v50, %v10479_v52  ;;  %v10808_v5 = vcombine.low %v10541_v54, %v10545_v56  ;;  %v10832_v50 = vcombine.low %v10565_v48, %v10569_v32 }
 0x475   : > { %5333 = vmatpush1.bf16.msra.mxu0 %v10700_v30  ;;  %v10809_v30 = vcombine.high %v10541_v54, %v10545_v56  ;;  %v10372_v54 = vld [vmem:[%s14573_s23 + $0x890] sm:$0xff] }
 0x476   : > { %5604 = vmatpush1.bf16.msra.mxu1 %v10768_v55  ;;  %5334 = vmatprep.subr.bf16.mxu0 %v10709_v63  ;;  %v10483_v55 = vld [vmem:[%s14573_s23 + $0xc08] sm:$0xff]  ;;  %v10376_v56 = vld [vmem:[%s14573_s23 + $0x8b0] sm:$0xff] }
 0x477   : > { %5605 = vmatprep.subr.bf16.mxu1 %v10777_v0  ;;  %v10487_v63 = vld [vmem:[%s14573_s23 + $0xc28] sm:$0xff]  ;;  %v10549_v0 = vld [vmem:[%s14573_s23 + $0xe18] sm:$0xff] }
 0x478   : > { %v10749_v51 = vcombine.high %v10483_v55, %v10487_v63  ;;  %v10748_v18 = vcombine.low %v10483_v55, %v10487_v63  ;;  %v10816_v20 = vcombine.low %v10549_v0, %v10553_v1  ;;  %v10639_v55 = vcombine.high %v10372_v54, %v10376_v56 }
 0x479   : > { %5335 = vmatpush1.bf16.msra.mxu0 %v10708_v21  ;;  %v10817_v21 = vcombine.high %v10549_v0, %v10553_v1  ;;  %v10380_v0 = vld [vmem:[%s14573_s23 + $0x8d0] sm:$0xff] }
 0x47a   : > { %5606 = vmatpush1.bf16.msra.mxu1 %v10776_v16  ;;  %5336 = vmatprep.subr.bf16.mxu0 %v10717_v34  ;;  %v10619_v16 = vld [vmem:[%s14573_s23 + $0x1048] sm:$0xff]  ;;  %v10384_v1 = vld [vmem:[%s14573_s23 + $0x8f0] sm:$0xff] }
 0x47b   : > { %5607 = vmatprep.subr.bf16.mxu1 %v10785_v3  ;;  %v10623_v34 = vld [vmem:[%s14573_s23 + $0x1068] sm:$0x33]  ;;  %v10557_v3 = vld [vmem:[%s14573_s23 + $0xe58] sm:$0xff] }
 0x47c   : > { %v10885_v23 = vcombine.high %v10619_v16, %v10623_v34  ;;  %v10824_v38 = vcombine.low %v10557_v3, %v10561_v17 }
 0x47d   : > { %5337 = vmatpush1.bf16.msra.mxu0 %v10716_v25  ;;  %v10884_v25 = vcombine.low %v10619_v16, %v10623_v34  ;;  %v10647_v16 = vcombine.high %v10380_v0, %v10384_v1 }
 0x47e   : > { %5608 = vmatpush1.bf16.msra.mxu1 %v10784_v8  ;;  %5338 = vmatprep.subr.bf16.mxu0 %v10725_v10  ;;  %v10825_v8 = vcombine.high %v10557_v3, %v10561_v17  ;;  %v10364_v10 = vld [vmem:[%s14573_s23 + $0x850] sm:$0xff] }
 0x47f   : > { %5609 = vmatprep.subr.bf16.mxu1 %v10793_v12  ;;  %v10368_v12 = vld [vmem:[%s14573_s23 + $0x870] sm:$0xff]  ;;  %v5174_v39 = vsel %vm5166_vm5, %v10884_v25, 0 }
 0x480   : > { %v10388_v3 = vld [vmem:[%s14573_s23 + $0x910] sm:$0xff] }
 0x481   : > { %5339 = vmatpush1.bf16.msra.mxu0 %v10724_v41  ;;  %v10631_v41 = vcombine.high %v10364_v10, %v10368_v12  ;;  %v10392_v17 = vld [vmem:[%s14573_s23 + $0x930] sm:$0xff] }
 0x482   : > { %5610 = vmatpush1.bf16.msra.mxu1 %v10792_v44  ;;  %5340 = vmatprep.subr.bf16.mxu0 %v10733_v46  ;;  %v10833_v44 = vcombine.high %v10565_v48, %v10569_v32  ;;  %v10573_v46 = vld [vmem:[%s14573_s23 + $0xed8] sm:$0xff]  ;;  %v10400_v48 = vld [vmem:[%s14573_s23 + $0x970] sm:$0xff] }
 0x483   : > { %5611 = vmatprep.subr.bf16.mxu1 %v10801_v49  ;;  %v10577_v49 = vld [vmem:[%s14573_s23 + $0xef8] sm:$0xff] }
 0x484   : > { %v10841_v52 = vcombine.high %v10573_v46, %v10577_v49  ;;  %v10605_v32 = vld [vmem:[%s14573_s23 + $0xfd8] sm:$0xff] }
 0x485   : > { %5341 = vmatpush1.bf16.msra.mxu0 %v10732_v24  ;;  %v10581_v24 = vld [vmem:[%s14573_s23 + $0xf18] sm:$0xff] }
 0x486   : > { %5612 = vmatpush1.bf16.msra.mxu1 %v10800_v57  ;;  %5342 = vmatprep.subr.bf16.mxu0 %v10741_v26  ;;  %v10585_v57 = vld [vmem:[%s14573_s23 + $0xf38] sm:$0xff]  ;;  %v10630_v26 = vcombine.low %v10364_v10, %v10368_v12  ;;  %v10396_v12 = vld [vmem:[%s14573_s23 + $0x950] sm:$0xff] }
 0x487   : > { %5613 = vmatprep.subr.bf16.mxu1 %v10809_v30  ;;  %v10840_v30 = vcombine.low %v10573_v46, %v10577_v49  ;;  %v10849_v63 = vcombine.high %v10581_v24, %v10585_v57  ;;  %v10404_v49 = vld [vmem:[%s14573_s23 + $0x990] sm:$0xff] }
 0x489   : > { %5343 = vmatpush1.bf16.msra.mxu0 %v10740_v4  ;;  %v10589_v4 = vld [vmem:[%s14573_s23 + $0xf58] sm:$0xff] }
 0x48a   : > { %5614 = vmatpush1.bf16.msra.mxu1 %v10808_v5  ;;  %5344 = vmatprep.subr.bf16.mxu0 %v10749_v51  ;;  %v10593_v5 = vld [vmem:[%s14573_s23 + $0xf78] sm:$0xff]  ;;  %v10638_v51 = vcombine.low %v10372_v54, %v10376_v56  ;;  %v10662_v56 = vcombine.low %v10396_v12, %v10400_v48 }
 0x48b   : > { %5615 = vmatprep.subr.bf16.mxu1 %v10817_v21  ;;  %v10848_v21 = vcombine.low %v10581_v24, %v10585_v57  ;;  %v10857_v34 = vcombine.high %v10589_v4, %v10593_v5  ;;  %v10856_v25 = vcombine.low %v10589_v4, %v10593_v5  ;;  %v10617_v54 = vld [vmem:[%s14573_s23 + $0x1038] sm:$0xff] }
 0x48d   : > { %5345 = vmatpush1.bf16.msra.mxu0 %v10748_v18  ;;  %v10597_v18 = vld [vmem:[%s14573_s23 + $0xf98] sm:$0xff] }
 0x48e   : > { %5616 = vmatpush1.bf16.msra.mxu1 %v10816_v20  ;;  %10892 = vmatprep.subr.msk.bf16.mxu0 %vm5166_vm5, %v10885_v23  ;;  %v10601_v20 = vld [vmem:[%s14573_s23 + $0xfb8] sm:$0xff]  ;;  %v10646_v23 = vcombine.low %v10380_v0, %v10384_v1  ;;  %v3453_v0 = vld [vmem:[%s14573_s23 + $0x420] sm:$0xff] }
 0x48f   : > { %5617 = vmatprep.subr.bf16.mxu1 %v10825_v8  ;;  %v10655_v8 = vcombine.high %v10388_v3, %v10392_v17  ;;  %v10865_v10 = vcombine.high %v10597_v18, %v10601_v20 }
 0x490   : > { %5347 = vmatmul.mubr.bf16.vlgmr.msra.gmra.mrb[24].mxu0 %v15068_v40 }
 0x491   : > { %5397 = vmatpush1.bf16.msra.mxu0 %v5174_v39  ;;  %5428 = vmatprep.mubr.bf16.mxu0 %v12869_v2  ;;  %v10654_v39 = vcombine.low %v10388_v3, %v10392_v17  ;;  %v3461_v3 = vld [vmem:[%s14573_s23 + $0x460] sm:$0xff] }
 0x492   : > { %5618 = vmatpush1.bf16.msra.mxu1 %v10824_v38  ;;  %5437 = vmatprep.subr.bf16.mxu0 %v10631_v41  ;;  %v10609_v38 = vld [vmem:[%s14573_s23 + $0xff8] sm:$0xff]  ;;  %v10864_v41 = vcombine.low %v10597_v18, %v10601_v20  ;;  %v3264_v18 = vsel %vm3260_vm4, %v15111_v33, %v3253_v27 }
 0x493   : > { %5619 = vmatprep.subr.bf16.mxu1 %v10833_v44  ;;  %v10663_v44 = vcombine.high %v10396_v12, %v10400_v48  ;;  %v10873_v46 = vcombine.high %v10605_v32, %v10609_v38  ;;  %v10872_v24 = vcombine.low %v10605_v32, %v10609_v38  ;;  %v15295_v12 = vpack.c.bf16 %v3264_v18, %v3264_v18  ;;  %v3465_v48 = vld [vmem:[%s14573_s23 + $0x480] sm:$0xff]  ;;  %v10464_v18 = vld [vmem:[%s14573_s23 + $0xb70] sm:$0xff] }
 0x494   : > { %v3469_v32 = vld [vmem:[%s14573_s23 + $0x4a0] sm:$0xff] }
 0x496   : > { %5620 = vmatpush1.bf16.msra.mxu1 %v10832_v50  ;;  %v10408_v50 = vld [vmem:[%s14573_s23 + $0x9b0] sm:$0xff] }
 0x497   : > { %5621 = vmatprep.subr.bf16.mxu1 %v10841_v52  ;;  %v10613_v52 = vld [vmem:[%s14573_s23 + $0x1018] sm:$0xff]  ;;  %v10671_v57 = vcombine.high %v10404_v49, %v10408_v50  ;;  %v10670_v1 = vcombine.low %v10404_v49, %v10408_v50  ;;  %v3477_v49 = vld [vmem:[%s14573_s23 + $0x4e0] sm:$0xff] }
 0x498   : > { %10893 = vmatmul.mubr.msk.bf16.vlgmr.msra.gmra.mrb[28].mxu0 %vm5162_vm6, %v14987_v53  ;;  %v10880_v4 = vcombine.low %v10613_v52, %v10617_v54 }
 0x499   : > { %5438 = vmatpush1.bf16.msra.mxu0 %v10630_v26  ;;  %5469 = vmatprep.mubr.bf16.mxu0 %v15065_v58  ;;  %v10881_v26 = vcombine.high %v10613_v52, %v10617_v54 }
 0x49a   : > { %5622 = vmatpush1.bf16.msra.mxu1 %v10840_v30  ;;  %5439 = vmatprep.subr.bf16.mxu0 %v10639_v55  ;;  %v10412_v30 = vld [vmem:[%s14573_s23 + $0x9d0] sm:$0xff] }
 0x49b   : > { %5623 = vmatprep.subr.bf16.mxu1 %v10849_v63  ;;  %v10416_v55 = vld [vmem:[%s14573_s23 + $0x9f0] sm:$0xff]  ;;  %v3449_v63 = vld [vmem:[%s14573_s23 + $0x400] sm:$0xff] }
 0x49c   : > { %v10679_v5 = vcombine.high %v10412_v30, %v10416_v55  ;;  %v10678_v17 = vcombine.low %v10412_v30, %v10416_v55  ;;  %v11026_v20 = vcombine.low %v3449_v63, %v3453_v0 }
 0x49d   : > { %5440 = vmatpush1.bf16.msra.mxu0 %v10638_v51  ;;  %v11027_v51 = vcombine.high %v3449_v63, %v3453_v0 }
 0x49e   : > { %5624 = vmatpush1.bf16.msra.mxu1 %v10848_v21  ;;  %5441 = vmatprep.subr.bf16.mxu0 %v10647_v16  ;;  %v10420_v21 = vld [vmem:[%s14573_s23 + $0xa10] sm:$0xff] }
 0x49f   : > { %5625 = vmatprep.subr.bf16.mxu1 %v10857_v34  ;;  %v10424_v16 = vld [vmem:[%s14573_s23 + $0xa30] sm:$0xff]  ;;  %v3457_v34 = vld [vmem:[%s14573_s23 + $0x440] sm:$0xff] }
 0x4a0   : > { %v10686_v33 = vcombine.low %v10420_v21, %v10424_v16  ;;  %v11034_v27 = vcombine.low %v3457_v34, %v3461_v3 }
 0x4a1   : > { %5442 = vmatpush1.bf16.msra.mxu0 %v10646_v23  ;;  %v10687_v23 = vcombine.high %v10420_v21, %v10424_v16 }
 0x4a2   : > { %5626 = vmatpush1.bf16.msra.mxu1 %v10856_v25  ;;  %5443 = vmatprep.subr.bf16.mxu0 %v10655_v8  ;;  %v11035_v25 = vcombine.high %v3457_v34, %v3461_v3  ;;  %v10428_v8 = vld [vmem:[%s14573_s23 + $0xa50] sm:$0xff] }
 0x4a3   : > { %5627 = vmatprep.subr.bf16.mxu1 %v10865_v10  ;;  %v10432_v10 = vld [vmem:[%s14573_s23 + $0xa70] sm:$0xff] }
 0x4a4   : > { %v10695_v38 = vcombine.high %v10428_v8, %v10432_v10  ;;  %v10694_v50 = vcombine.low %v10428_v8, %v10432_v10 }
 0x4a5   : > { %5444 = vmatpush1.bf16.msra.mxu0 %v10654_v39  ;;  %v11043_v39 = vcombine.high %v3465_v48, %v3469_v32 }
 0x4a6   : > { %5628 = vmatpush1.bf16.msra.mxu1 %v10864_v41  ;;  %5445 = vmatprep.subr.bf16.mxu0 %v10663_v44  ;;  %v10436_v41 = vld [vmem:[%s14573_s23 + $0xa90] sm:$0xff] }
 0x4a7   : > { %5629 = vmatprep.subr.bf16.mxu1 %v10873_v46  ;;  %v10440_v44 = vld [vmem:[%s14573_s23 + $0xab0] sm:$0xff]  ;;  %v3473_v46 = vld [vmem:[%s14573_s23 + $0x4c0] sm:$0xff] }
 0x4a8   : > { %v10703_v52 = vcombine.high %v10436_v41, %v10440_v44  ;;  %v11051_v54 = vcombine.high %v3473_v46, %v3477_v49  ;;  %v10702_v30 = vcombine.low %v10436_v41, %v10440_v44  ;;  %v11050_v55 = vcombine.low %v3473_v46, %v3477_v49  ;;  %v10476_v49 = vld [vmem:[%s14573_s23 + $0xbd0] sm:$0xff] }
 0x4a9   : > { %5446 = vmatpush1.bf16.msra.mxu0 %v10662_v56  ;;  %v10444_v56 = vld [vmem:[%s14573_s23 + $0xad0] sm:$0xff] }
 0x4aa   : > { %5630 = vmatpush1.bf16.msra.mxu1 %v10872_v24  ;;  %5447 = vmatprep.subr.bf16.mxu0 %v10671_v57  ;;  %v10448_v24 = vld [vmem:[%s14573_s23 + $0xaf0] sm:$0xff]  ;;  %v3481_v57 = vld [vmem:[%s14573_s23 + $0x500] sm:$0xff] }
 0x4ab   : > { %5631 = vmatprep.subr.bf16.mxu1 %v10881_v26  ;;  %v3485_v26 = vld [vmem:[%s14573_s23 + $0x520] sm:$0xff]  ;;  %v10711_v63 = vcombine.high %v10444_v56, %v10448_v24  ;;  %v10710_v21 = vcombine.low %v10444_v56, %v10448_v24 }
 0x4ac   : > { %v11059_v0 = vcombine.high %v3481_v57, %v3485_v26  ;;  %v11058_v16 = vcombine.low %v3481_v57, %v3485_v26  ;;  %v10484_v26 = vld [vmem:[%s14573_s23 + $0xc10] sm:$0xff] }
 0x4ad   : > { %5448 = vmatpush1.bf16.msra.mxu0 %v10670_v1  ;;  %v10452_v1 = vld [vmem:[%s14573_s23 + $0xb10] sm:$0xff] }
 0x4ae   : > { %5632 = vmatpush1.bf16.msra.mxu1 %v10880_v4  ;;  %5449 = vmatprep.subr.bf16.mxu0 %v10679_v5  ;;  %v10456_v4 = vld [vmem:[%s14573_s23 + $0xb30] sm:$0xff]  ;;  %v3489_v5 = vld [vmem:[%s14573_s23 + $0x540] sm:$0xff] }
 0x4af   : > { %7063 = vmatprep.subr.bf16.mxu1 %v11027_v51  ;;  %v3493_v51 = vld [vmem:[%s14573_s23 + $0x560] sm:$0xff]  ;;  %v10719_v34 = vcombine.high %v10452_v1, %v10456_v4 }
 0x4b0   : > { %v11067_v3 = vcombine.high %v3489_v5, %v3493_v51  ;;  %v11066_v8 = vcombine.low %v3489_v5, %v3493_v51  ;;  %v10620_v51 = vld [vmem:[%s14573_s23 + $0x1050] sm:$0xff] }
 0x4b1   : > { %5450 = vmatpush1.bf16.msra.mxu0 %v10678_v17  ;;  %5634 = vmatmul.mubr.bf16.vlgmr.msra.gmra.mrb[16].mxu1 %v15133_v61  ;;  %v11042_v61 = vcombine.low %v3465_v48, %v3469_v32  ;;  %v10460_v17 = vld [vmem:[%s14573_s23 + $0xb50] sm:$0xff] }
 0x4b2   : > { %7064 = vmatpush1.bf16.msra.mxu1 %v11026_v20  ;;  %7095 = vmatprep.mubr.bf16.mxu1 %v15295_v12  ;;  %v3497_v20 = vld [vmem:[%s14573_s23 + $0x580] sm:$0xff]  ;;  %v10727_v10 = vcombine.high %v10460_v17, %v10464_v18  ;;  %v10468_v32 = vld [vmem:[%s14573_s23 + $0xb90] sm:$0xff] }
 0x4b3   : > { %5451 = vmatprep.subr.bf16.mxu0 %v10687_v23  ;;  %7065 = vmatprep.subr.bf16.mxu1 %v11035_v25  ;;  %v3501_v23 = vld [vmem:[%s14573_s23 + $0x5a0] sm:$0xff]  ;;  %v10718_v25 = vcombine.low %v10452_v1, %v10456_v4 }
 0x4b4   : > { %v11075_v48 = vcombine.high %v3497_v20, %v3501_v23  ;;  %v11074_v41 = vcombine.low %v3497_v20, %v3501_v23 }
 0x4b5   : > { %5452 = vmatpush1.bf16.msra.mxu0 %v10686_v33  ;;  %v10472_v33 = vld [vmem:[%s14573_s23 + $0xbb0] sm:$0xff] }
 0x4b6   : > { %7066 = vmatpush1.bf16.msra.mxu1 %v11034_v27  ;;  %5453 = vmatprep.subr.bf16.mxu0 %v10695_v38  ;;  %v3505_v27 = vld [vmem:[%s14573_s23 + $0x5c0] sm:$0xff]  ;;  %v10735_v44 = vcombine.high %v10468_v32, %v10472_v33 }
 0x4b7   : > { %7067 = vmatprep.subr.bf16.mxu1 %v11043_v39  ;;  %v3509_v38 = vld [vmem:[%s14573_s23 + $0x5e0] sm:$0xff]  ;;  %v10726_v39 = vcombine.low %v10460_v17, %v10464_v18 }
 0x4b8   : > { %v11083_v46 = vcombine.high %v3505_v27, %v3509_v38  ;;  %v11082_v56 = vcombine.low %v3505_v27, %v3509_v38 }
 0x4b9   : > { %5454 = vmatpush1.bf16.msra.mxu0 %v10694_v50  ;;  %v10480_v50 = vld [vmem:[%s14573_s23 + $0xbf0] sm:$0xff] }
 0x4ba   : > { %7068 = vmatpush1.bf16.msra.mxu1 %v11042_v61  ;;  %5455 = vmatprep.subr.bf16.mxu0 %v10703_v52  ;;  %v3513_v61 = vld [vmem:[%s14573_s23 + $0x600] sm:$0xff]  ;;  %v10743_v24 = vcombine.high %v10476_v49, %v10480_v50 }
 0x4bb   : > { %7069 = vmatprep.subr.bf16.mxu1 %v11051_v54  ;;  %v3517_v52 = vld [vmem:[%s14573_s23 + $0x620] sm:$0xff]  ;;  %v10734_v54 = vcombine.low %v10468_v32, %v10472_v33 }
 0x4bc   : > { %v11091_v57 = vcombine.high %v3513_v61, %v3517_v52  ;;  %v11090_v1 = vcombine.low %v3513_v61, %v3517_v52  ;;  %v3553_v61 = vld [vmem:[%s14573_s23 + $0x740] sm:$0xff] }
 0x4bd   : > { %5456 = vmatpush1.bf16.msra.mxu0 %v10702_v30  ;;  %v10488_v30 = vld [vmem:[%s14573_s23 + $0xc30] sm:$0xff]  ;;  %v3557_v52 = vld [vmem:[%s14573_s23 + $0x760] sm:$0xff] }
 0x4be   : > { %7070 = vmatpush1.bf16.msra.mxu1 %v11050_v55  ;;  %5457 = vmatprep.subr.bf16.mxu0 %v10711_v63  ;;  %v3521_v55 = vld [vmem:[%s14573_s23 + $0x640] sm:$0xff]  ;;  %v10751_v4 = vcombine.high %v10484_v26, %v10488_v30 }
 0x4bf   : > { %7071 = vmatprep.subr.bf16.mxu1 %v11059_v0  ;;  %v3525_v63 = vld [vmem:[%s14573_s23 + $0x660] sm:$0xff]  ;;  %v10742_v0 = vcombine.low %v10476_v49, %v10480_v50  ;;  %v10373_v49 = vld [vmem:[%s14573_s23 + $0x898] sm:$0xff] }
 0x4c0   : > { %v11099_v5 = vcombine.high %v3521_v55, %v3525_v63  ;;  %v11098_v17 = vcombine.low %v3521_v55, %v3525_v63  ;;  %v10377_v50 = vld [vmem:[%s14573_s23 + $0x8b8] sm:$0xff]  ;;  %v3561_v55 = vld [vmem:[%s14573_s23 + $0x780] sm:$0xff] }
 0x4c1   : > { %5458 = vmatpush1.bf16.msra.mxu0 %v10710_v21  ;;  %v10624_v21 = vld [vmem:[%s14573_s23 + $0x1070] sm:$0x33]  ;;  %v3565_v63 = vld [vmem:[%s14573_s23 + $0x7a0] sm:$0xff] }
 0x4c2   : > { %7072 = vmatpush1.bf16.msra.mxu1 %v11058_v16  ;;  %5459 = vmatprep.subr.bf16.mxu0 %v10719_v34  ;;  %v3529_v16 = vld [vmem:[%s14573_s23 + $0x680] sm:$0xff]  ;;  %v10887_v18 = vcombine.high %v10620_v51, %v10624_v21  ;;  %v10886_v20 = vcombine.low %v10620_v51, %v10624_v21  ;;  %v11139_v51 = vcombine.high %v3561_v55, %v3565_v63  ;;  %v10389_v21 = vld [vmem:[%s14573_s23 + $0x918] sm:$0xff] }
 0x4c3   : > { %7073 = vmatprep.subr.bf16.mxu1 %v11067_v3  ;;  %v3533_v34 = vld [vmem:[%s14573_s23 + $0x6a0] sm:$0xff]  ;;  %v10750_v3 = vcombine.low %v10484_v26, %v10488_v30  ;;  %v10381_v26 = vld [vmem:[%s14573_s23 + $0x8d8] sm:$0xff] }
 0x4c4   : > { %v11107_v23 = vcombine.high %v3529_v16, %v3533_v34  ;;  %v5180_v32 = vsel %vm5166_vm5, %v10886_v20, 0  ;;  %v11106_v33 = vcombine.low %v3529_v16, %v3533_v34  ;;  %v10385_v30 = vld [vmem:[%s14573_s23 + $0x8f8] sm:$0xff] }
 0x4c5   : > { %5460 = vmatpush1.bf16.msra.mxu0 %v10718_v25  ;;  %v10365_v25 = vld [vmem:[%s14573_s23 + $0x858] sm:$0xff] }
 0x4c6   : > { %7074 = vmatpush1.bf16.msra.mxu1 %v11066_v8  ;;  %5461 = vmatprep.subr.bf16.mxu0 %v10727_v10  ;;  %v10369_v8 = vld [vmem:[%s14573_s23 + $0x878] sm:$0xff]  ;;  %v3537_v10 = vld [vmem:[%s14573_s23 + $0x6c0] sm:$0xff] }
 0x4c7   : > { %7075 = vmatprep.subr.bf16.mxu1 %v11075_v48  ;;  %v3541_v48 = vld [vmem:[%s14573_s23 + $0x6e0] sm:$0xff]  ;;  %v10633_v27 = vcombine.high %v10365_v25, %v10369_v8  ;;  %v10393_v16 = vld [vmem:[%s14573_s23 + $0x938] sm:$0xff] }
 0x4c8   : > { %v11115_v38 = vcombine.high %v3537_v10, %v3541_v48 }
 0x4c9   : > { %5462 = vmatpush1.bf16.msra.mxu0 %v10726_v39  ;;  %v3545_v39 = vld [vmem:[%s14573_s23 + $0x700] sm:$0xff] }
 0x4ca   : > { %7076 = vmatpush1.bf16.msra.mxu1 %v11074_v41  ;;  %5463 = vmatprep.subr.bf16.mxu0 %v10735_v44  ;;  %v3549_v41 = vld [vmem:[%s14573_s23 + $0x720] sm:$0xff]  ;;  %v11114_v44 = vcombine.low %v3537_v10, %v3541_v48  ;;  %v10397_v10 = vld [vmem:[%s14573_s23 + $0x958] sm:$0xff] }
 0x4cb   : > { %7077 = vmatprep.subr.bf16.mxu1 %v11083_v46  ;;  %v11123_v46 = vcombine.high %v3545_v39, %v3549_v41  ;;  %v10401_v48 = vld [vmem:[%s14573_s23 + $0x978] sm:$0xff] }
 0x4cd   : > { %5464 = vmatpush1.bf16.msra.mxu0 %v10734_v54  ;;  %v10632_v54 = vcombine.low %v10365_v25, %v10369_v8  ;;  %v10657_v25 = vcombine.high %v10389_v21, %v10393_v16 }
 0x4ce   : > { %7078 = vmatpush1.bf16.msra.mxu1 %v11082_v56  ;;  %5465 = vmatprep.subr.bf16.mxu0 %v10743_v24  ;;  %v11122_v56 = vcombine.low %v3545_v39, %v3549_v41  ;;  %v10641_v24 = vcombine.high %v10373_v49, %v10377_v50  ;;  %v10665_v39 = vcombine.high %v10397_v10, %v10401_v48 }
 0x4cf   : > { %7079 = vmatprep.subr.bf16.mxu1 %v11091_v57  ;;  %v11131_v57 = vcombine.high %v3553_v61, %v3557_v52 }
 0x4d1   : > { %5466 = vmatpush1.bf16.msra.mxu0 %v10742_v0  ;;  %v10640_v0 = vcombine.low %v10373_v49, %v10377_v50  ;;  %v10409_v49 = vld [vmem:[%s14573_s23 + $0x9b8] sm:$0xff]  ;;  %v3458_v50 = vld [vmem:[%s14573_s23 + $0x448] sm:$0xff] }
 0x4d2   : > { %7080 = vmatpush1.bf16.msra.mxu1 %v11090_v1  ;;  %5467 = vmatprep.subr.bf16.mxu0 %v10751_v4  ;;  %v11130_v1 = vcombine.low %v3553_v61, %v3557_v52  ;;  %v10649_v4 = vcombine.high %v10381_v26, %v10385_v30  ;;  %v3462_v61 = vld [vmem:[%s14573_s23 + $0x468] sm:$0xff]  ;;  %v10664_v52 = vcombine.low %v10397_v10, %v10401_v48 }
 0x4d3   : > { %7081 = vmatprep.subr.bf16.mxu1 %v11099_v5 }
 0x4d5   : > { %5468 = vmatpush1.bf16.msra.mxu0 %v10750_v3  ;;  %v3569_v3 = vld [vmem:[%s14573_s23 + $0x7c0] sm:$0xff] }
 0x4d6   : > { %7082 = vmatpush1.bf16.msra.mxu1 %v11098_v17  ;;  %10894 = vmatprep.subr.msk.bf16.mxu0 %vm5166_vm5, %v10887_v18  ;;  %v3573_v17 = vld [vmem:[%s14573_s23 + $0x7e0] sm:$0xff]  ;;  %v10648_v18 = vcombine.low %v10381_v26, %v10385_v30  ;;  %v10413_v26 = vld [vmem:[%s14573_s23 + $0x9d8] sm:$0xff] }
 0x4d7   : > { %7083 = vmatprep.subr.bf16.mxu1 %v11107_v23  ;;  %v11138_v23 = vcombine.low %v3561_v55, %v3565_v63  ;;  %v11147_v8 = vcombine.high %v3569_v3, %v3573_v17  ;;  %v10417_v30 = vld [vmem:[%s14573_s23 + $0x9f8] sm:$0xff]  ;;  %v11036_v63 = vcombine.low %v3458_v50, %v3462_v61 }
 0x4d8   : > { %5470 = vmatmul.mubr.bf16.vlgmr.msra.gmra.mrb[32].mxu0 %v15068_v40 }
 0x4d9   : > { %5520 = vmatpush1.bf16.msra.mxu0 %v5180_v32  ;;  %5551 = vmatprep.mubr.bf16.mxu0 %v12869_v2  ;;  %v3450_v32 = vld [vmem:[%s14573_s23 + $0x408] sm:$0xff] }
 0x4da   : > { %7084 = vmatpush1.bf16.msra.mxu1 %v11106_v33  ;;  %5560 = vmatprep.subr.bf16.mxu0 %v10633_v27  ;;  %v3454_v33 = vld [vmem:[%s14573_s23 + $0x428] sm:$0xff]  ;;  %v10656_v27 = vcombine.low %v10389_v21, %v10393_v16 }
 0x4db   : > { %7085 = vmatprep.subr.bf16.mxu1 %v11115_v38  ;;  %v11146_v38 = vcombine.low %v3569_v3, %v3573_v17  ;;  %v11029_v41 = vcombine.high %v3450_v32, %v3454_v33  ;;  %v3474_v21 = vld [vmem:[%s14573_s23 + $0x4c8] sm:$0xff]  ;;  %v10680_v3 = vcombine.low %v10413_v26, %v10417_v30 }
 0x4dc   : > { %v3478_v16 = vld [vmem:[%s14573_s23 + $0x4e8] sm:$0xff] }
 0x4dd   : > { %v11052_v48 = vcombine.low %v3474_v21, %v3478_v16 }
 0x4de   : > { %7086 = vmatpush1.bf16.msra.mxu1 %v11114_v44  ;;  %v10405_v44 = vld [vmem:[%s14573_s23 + $0x998] sm:$0xff] }
 0x4df   : > { %7087 = vmatprep.subr.bf16.mxu1 %v11123_v46  ;;  %v3263_v46 = vsel %vm3260_vm4, %v15107_v22, %v3252_v45  ;;  %v3466_v22 = vld [vmem:[%s14573_s23 + $0x488] sm:$0xff]  ;;  %v10672_v55 = vcombine.low %v10405_v44, %v10409_v49 }
 0x4e0   : > { %10895 = vmatmul.mubr.msk.bf16.vlgmr.msra.gmra.mrb[36].mxu0 %vm5162_vm6, %v14987_v53  ;;  %v3470_v45 = vld [vmem:[%s14573_s23 + $0x4a8] sm:$0xff] }
 0x4e1   : > { %5561 = vmatpush1.bf16.msra.mxu0 %v10632_v54  ;;  %5592 = vmatprep.mubr.bf16.mxu0 %v15065_v58  ;;  %v11028_v54 = vcombine.low %v3450_v32, %v3454_v33  ;;  %v11044_v17 = vcombine.low %v3466_v22, %v3470_v45 }
 0x4e2   : > { %7088 = vmatpush1.bf16.msra.mxu1 %v11122_v56  ;;  %5562 = vmatprep.subr.bf16.mxu0 %v10641_v24  ;;  %v15374_v56 = vpack.c.bf16 %v3263_v46, %v3263_v46  ;;  %v10673_v24 = vcombine.high %v10405_v44, %v10409_v49 }
 0x4e3   : > { %v15354_v5 = vpop.f32.mrb[16].mxu0  ;;  %7089 = vmatprep.subr.bf16.mxu1 %v11131_v57  ;;  %v11037_v57 = vcombine.high %v3458_v50, %v3462_v61  ;;  %v10445_v61 = vld [vmem:[%s14573_s23 + $0xad8] sm:$0xff] }
 0x4e4   : > { %v15358_v34 = vpop.f32.mrb[17].mxu0 }
 0x4e5   : > { %5563 = vmatpush1.bf16.msra.mxu0 %v10640_v0  ;;  %v5229_v58 = vpop.f32.mrb[18].mxu0  ;;  %v10681_v0 = vcombine.high %v10413_v26, %v10417_v30 }
 0x4e6   : > { %7090 = vmatpush1.bf16.msra.mxu1 %v11130_v1  ;;  %5564 = vmatprep.subr.bf16.mxu0 %v10649_v4  ;;  %v5230_v20 = vpop.f32.mrb[19].mxu0  ;;  %v11045_v1 = vcombine.high %v3466_v22, %v3470_v45  ;;  %v10421_v4 = vld [vmem:[%s14573_s23 + $0xa18] sm:$0xff] }
 0x4e7   : > { %7091 = vmatprep.subr.bf16.mxu1 %v11139_v51  ;;  %v10425_v51 = vld [vmem:[%s14573_s23 + $0xa38] sm:$0xff] }
 0x4e8   : > { %v10689_v58 = vcombine.high %v10421_v4, %v10425_v51  ;;  %v10429_v20 = vld [vmem:[%s14573_s23 + $0xa58] sm:$0xff]  ;;  %v10688_v10 = vcombine.low %v10421_v4, %v10425_v51  ;;  %v3510_v4 = vld [vmem:[%s14573_s23 + $0x5e8] sm:$0xff] }
 0x4e9   : > { %5565 = vmatpush1.bf16.msra.mxu0 %v10648_v18  ;;  %v11053_v18 = vcombine.high %v3474_v21, %v3478_v16 }
 0x4ea   : > { %7092 = vmatpush1.bf16.msra.mxu1 %v11138_v23  ;;  %5566 = vmatprep.subr.bf16.mxu0 %v10657_v25  ;;  %v10433_v23 = vld [vmem:[%s14573_s23 + $0xa78] sm:$0xff]  ;;  %v3482_v25 = vld [vmem:[%s14573_s23 + $0x508] sm:$0xff] }
 0x4eb   : > { %7093 = vmatprep.subr.bf16.mxu1 %v11147_v8  ;;  %v3486_v8 = vld [vmem:[%s14573_s23 + $0x528] sm:$0xff]  ;;  %v10697_v32 = vcombine.high %v10429_v20, %v10433_v23  ;;  %v10696_v44 = vcombine.low %v10429_v20, %v10433_v23  ;;  %v10465_v20 = vld [vmem:[%s14573_s23 + $0xb78] sm:$0xff] }
 0x4ec   : > { %v11061_v33 = vcombine.high %v3482_v25, %v3486_v8  ;;  %v11060_v46 = vcombine.low %v3482_v25, %v3486_v8  ;;  %v3514_v23 = vld [vmem:[%s14573_s23 + $0x608] sm:$0xff] }
 0x4ed   : > { %5567 = vmatpush1.bf16.msra.mxu0 %v10656_v27  ;;  %v10437_v27 = vld [vmem:[%s14573_s23 + $0xa98] sm:$0xff]  ;;  %v3518_v25 = vld [vmem:[%s14573_s23 + $0x628] sm:$0xff] }
 0x4ee   : > { %7094 = vmatpush1.bf16.msra.mxu1 %v11146_v38  ;;  %5568 = vmatprep.subr.bf16.mxu0 %v10665_v39  ;;  %v10441_v38 = vld [vmem:[%s14573_s23 + $0xab8] sm:$0xff]  ;;  %v3490_v39 = vld [vmem:[%s14573_s23 + $0x548] sm:$0xff] }
 0x4ef   : > { %7186 = vmatprep.subr.bf16.mxu1 %v11029_v41  ;;  %v3494_v41 = vld [vmem:[%s14573_s23 + $0x568] sm:$0xff]  ;;  %v10705_v49 = vcombine.high %v10437_v27, %v10441_v38 }
 0x4f0   : > { %v11069_v50 = vcombine.high %v3490_v39, %v3494_v41  ;;  %v11068_v26 = vcombine.low %v3490_v39, %v3494_v41  ;;  %v3526_v39 = vld [vmem:[%s14573_s23 + $0x668] sm:$0xff] }
 0x4f1   : > { %5569 = vmatpush1.bf16.msra.mxu0 %v10664_v52  ;;  %7096 = vmatmul.mubr.bf16.vlgmr.msra.gmra.mrb[20].mxu1 %v15374_v56  ;;  %v10449_v52 = vld [vmem:[%s14573_s23 + $0xaf8] sm:$0xff] }
 0x4f2   : > { %7187 = vmatpush1.bf16.msra.mxu1 %v11028_v54  ;;  %7218 = vmatprep.mubr.bf16.mxu1 %v15295_v12  ;;  %v3498_v54 = vld [vmem:[%s14573_s23 + $0x588] sm:$0xff]  ;;  %v10713_v30 = vcombine.high %v10445_v61, %v10449_v52  ;;  %v10712_v21 = vcombine.low %v10445_v61, %v10449_v52  ;;  %v10481_v61 = vld [vmem:[%s14573_s23 + $0xbf8] sm:$0xff] }
 0x4f3   : > { %5570 = vmatprep.subr.bf16.mxu0 %v10673_v24  ;;  %7188 = vmatprep.subr.bf16.mxu1 %v11037_v57  ;;  %v3502_v24 = vld [vmem:[%s14573_s23 + $0x5a8] sm:$0xff]  ;;  %v10704_v57 = vcombine.low %v10437_v27, %v10441_v38  ;;  %v10473_v27 = vld [vmem:[%s14573_s23 + $0xbb8] sm:$0xff] }
 0x4f4   : > { %v11077_v45 = vcombine.high %v3498_v54, %v3502_v24  ;;  %v3522_v38 = vld [vmem:[%s14573_s23 + $0x648] sm:$0xff] }
 0x4f5   : > { %5571 = vmatpush1.bf16.msra.mxu0 %v10672_v55  ;;  %v10453_v55 = vld [vmem:[%s14573_s23 + $0xb18] sm:$0xff]  ;;  %v3530_v52 = vld [vmem:[%s14573_s23 + $0x688] sm:$0xff] }
 0x4f6   : > { %7189 = vmatpush1.bf16.msra.mxu1 %v11036_v63  ;;  %5572 = vmatprep.subr.bf16.mxu0 %v10681_v0  ;;  %v10457_v63 = vld [vmem:[%s14573_s23 + $0xb38] sm:$0xff] }
 0x4f7   : > { %7190 = vmatprep.subr.bf16.mxu1 %v11045_v1  ;;  %v3506_v1 = vld [vmem:[%s14573_s23 + $0x5c8] sm:$0xff]  ;;  %v10720_v8 = vcombine.low %v10453_v55, %v10457_v63 }
 0x4f9   : > { %5573 = vmatpush1.bf16.msra.mxu0 %v10680_v3  ;;  %v11076_v3 = vcombine.low %v3498_v54, %v3502_v24  ;;  %v3534_v54 = vld [vmem:[%s14573_s23 + $0x6a8] sm:$0xff] }
 0x4fa   : > { %7191 = vmatpush1.bf16.msra.mxu1 %v11044_v17  ;;  %5574 = vmatprep.subr.bf16.mxu0 %v10689_v58  ;;  %v10721_v17 = vcombine.high %v10453_v55, %v10457_v63  ;;  %v11085_v58 = vcombine.high %v3506_v1, %v3510_v4  ;;  %v10489_v55 = vld [vmem:[%s14573_s23 + $0xc38] sm:$0xff]  ;;  %v3538_v63 = vld [vmem:[%s14573_s23 + $0x6c8] sm:$0xff] }
 0x4fb   : > { %7192 = vmatprep.subr.bf16.mxu1 %v11053_v18  ;;  %v10461_v18 = vld [vmem:[%s14573_s23 + $0xb58] sm:$0xff] }
 0x4fc   : > { %v10728_v41 = vcombine.low %v10461_v18, %v10465_v20 }
 0x4fd   : > { %5575 = vmatpush1.bf16.msra.mxu0 %v10688_v10  ;;  %v11084_v10 = vcombine.low %v3506_v1, %v3510_v4  ;;  %v3542_v1 = vld [vmem:[%s14573_s23 + $0x6e8] sm:$0xff] }
 0x4fe   : > { %7193 = vmatpush1.bf16.msra.mxu1 %v11052_v48  ;;  %5576 = vmatprep.subr.bf16.mxu0 %v10697_v32  ;;  %v10729_v48 = vcombine.high %v10461_v18, %v10465_v20  ;;  %v11093_v32 = vcombine.high %v3514_v23, %v3518_v25  ;;  %v3550_v18 = vld [vmem:[%s14573_s23 + $0x728] sm:$0xff] }
 0x4ff   : > { %7194 = vmatprep.subr.bf16.mxu1 %v11061_v33  ;;  %v10469_v33 = vld [vmem:[%s14573_s23 + $0xb98] sm:$0xff] }
 0x500   : > { %v10736_v24 = vcombine.low %v10469_v33, %v10473_v27 }
 0x501   : > { %5577 = vmatpush1.bf16.msra.mxu0 %v10696_v44  ;;  %v11092_v44 = vcombine.low %v3514_v23, %v3518_v25  ;;  %v11116_v23 = vcombine.low %v3538_v63, %v3542_v1 }
 0x502   : > { %7195 = vmatpush1.bf16.msra.mxu1 %v11060_v46  ;;  %5578 = vmatprep.subr.bf16.mxu0 %v10705_v49  ;;  %v10737_v46 = vcombine.high %v10469_v33, %v10473_v27  ;;  %v11101_v49 = vcombine.high %v3522_v38, %v3526_v39  ;;  %v3554_v33 = vld [vmem:[%s14573_s23 + $0x748] sm:$0xff] }
 0x503   : > { %v15398_v22 = vpop.f32.mrb[8].mxu1  ;;  %7196 = vmatprep.subr.bf16.mxu1 %v11069_v50  ;;  %v10477_v50 = vld [vmem:[%s14573_s23 + $0xbd8] sm:$0xff]  ;;  %v3558_v27 = vld [vmem:[%s14573_s23 + $0x768] sm:$0xff] }
 0x504   : > { %v15402_v0 = vpop.f32.mrb[9].mxu1  ;;  %v10744_v4 = vcombine.low %v10477_v50, %v10481_v61 }
 0x505   : > { %5579 = vmatpush1.bf16.msra.mxu0 %v10704_v57  ;;  %v5393_v51 = vpop.f32.mrb[10].mxu1  ;;  %v11100_v57 = vcombine.low %v3522_v38, %v3526_v39 }
 0x506   : > { %7197 = vmatpush1.bf16.msra.mxu1 %v11068_v26  ;;  %5580 = vmatprep.subr.bf16.mxu0 %v10713_v30  ;;  %v5394_v16 = vpop.f32.mrb[11].mxu1  ;;  %v10745_v26 = vcombine.high %v10477_v50, %v10481_v61  ;;  %v11109_v30 = vcombine.high %v3530_v52, %v3534_v54  ;;  %v11108_v51 = vcombine.low %v3530_v52, %v3534_v54  ;;  %v3329_v54 = vld [vmem:[%s14573_s23 + $0x40] sm:$0xff] }
 0x507   : > { %7198 = vmatprep.subr.bf16.mxu1 %v11077_v45  ;;  %v10485_v45 = vld [vmem:[%s14573_s23 + $0xc18] sm:$0xff]  ;;  %v11117_v16 = vcombine.high %v3538_v63, %v3542_v1  ;;  %v11132_v50 = vcombine.low %v3554_v33, %v3558_v27 }
 0x508   : > { %v10752_v20 = vcombine.low %v10485_v45, %v10489_v55 }
 0x509   : > { %5581 = vmatpush1.bf16.msra.mxu0 %v10712_v21  ;;  %v10753_v21 = vcombine.high %v10485_v45, %v10489_v55  ;;  %v3574_v45 = vld [vmem:[%s14573_s23 + $0x7e8] sm:$0xff] }
 0x50a   : > { %7199 = vmatpush1.bf16.msra.mxu1 %v11076_v3  ;;  %5582 = vmatprep.subr.bf16.mxu0 %v10721_v17  ;;  %v10621_v3 = vld [vmem:[%s14573_s23 + $0x1058] sm:$0xff] }
 0x50b   : > { %7200 = vmatprep.subr.bf16.mxu1 %v11085_v58  ;;  %v10625_v17 = vld [vmem:[%s14573_s23 + $0x1078] sm:$0x33]  ;;  %v3546_v58 = vld [vmem:[%s14573_s23 + $0x708] sm:$0xff] }
 0x50c   : > { %v10889_v25 = vcombine.high %v10621_v3, %v10625_v17  ;;  %v11124_v39 = vcombine.low %v3546_v58, %v3550_v18 }
 0x50d   : > { %5583 = vmatpush1.bf16.msra.mxu0 %v10720_v8  ;;  %v10888_v8 = vcombine.low %v10621_v3, %v10625_v17  ;;  %v3451_v17 = vld [vmem:[%s14573_s23 + $0x410] sm:$0xff] }
 0x50e   : > { %7201 = vmatpush1.bf16.msra.mxu1 %v11084_v10  ;;  %5584 = vmatprep.subr.bf16.mxu0 %v10729_v48  ;;  %v11125_v10 = vcombine.high %v3546_v58, %v3550_v18  ;;  %v3321_v48 = vld [vmem:[%s14573_s23] sm:$0xff]  ;;  %v3455_v58 = vld [vmem:[%s14573_s23 + $0x430] sm:$0xff] }
 0x50f   : > { %7202 = vmatprep.subr.bf16.mxu1 %v11093_v32  ;;  %v3325_v32 = vld [vmem:[%s14573_s23 + $0x20] sm:$0xff]  ;;  %v5186_v38 = vsel %vm5166_vm5, %v10888_v8, 0  ;;  %v3459_v8 = vld [vmem:[%s14573_s23 + $0x450] sm:$0xff] }
 0x510   : > { %v10898_v1 = vcombine.low %v3321_v48, %v3325_v32 }
 0x511   : > { %5585 = vmatpush1.bf16.msra.mxu0 %v10728_v41  ;;  %v10899_v41 = vcombine.high %v3321_v48, %v3325_v32  ;;  %v11030_v48 = vcombine.low %v3451_v17, %v3455_v58 }
 0x512   : > { %7203 = vmatpush1.bf16.msra.mxu1 %v11092_v44  ;;  %5586 = vmatprep.subr.bf16.mxu0 %v10737_v46  ;;  %v11133_v44 = vcombine.high %v3554_v33, %v3558_v27  ;;  %v3562_v46 = vld [vmem:[%s14573_s23 + $0x788] sm:$0xff]  ;;  %v3353_v27 = vld [vmem:[%s14573_s23 + $0x100] sm:$0xff] }
 0x513   : > { %7204 = vmatprep.subr.bf16.mxu1 %v11101_v49  ;;  %v3566_v49 = vld [vmem:[%s14573_s23 + $0x7a8] sm:$0xff] }
 0x514   : > { %v11141_v52 = vcombine.high %v3562_v46, %v3566_v49 }
 0x515   : > { %5587 = vmatpush1.bf16.msra.mxu0 %v10736_v24  ;;  %v3333_v24 = vld [vmem:[%s14573_s23 + $0x60] sm:$0xff] }
 0x516   : > { %7205 = vmatpush1.bf16.msra.mxu1 %v11100_v57  ;;  %5588 = vmatprep.subr.bf16.mxu0 %v10745_v26 }
 0x517   : > { %7206 = vmatprep.subr.bf16.mxu1 %v11109_v30  ;;  %v3570_v30 = vld [vmem:[%s14573_s23 + $0x7c8] sm:$0xff] }
 0x518   : > { %v11149_v3 = vcombine.high %v3570_v30, %v3574_v45  ;;  %v11148_v18 = vcombine.low %v3570_v30, %v3574_v45  ;;  %v3369_v45 = vld [vmem:[%s14573_s23 + $0x180] sm:$0xff] }
 0x519   : > { %5589 = vmatpush1.bf16.msra.mxu0 %v10744_v4 }
 0x51a   : > { %7207 = vmatpush1.bf16.msra.mxu1 %v11108_v51  ;;  %5590 = vmatprep.subr.bf16.mxu0 %v10753_v21  ;;  %v11140_v51 = vcombine.low %v3562_v46, %v3566_v49 }
 0x51b   : > { %7208 = vmatprep.subr.bf16.mxu1 %v11117_v16 }
 0x51d   : > { %5591 = vmatpush1.bf16.msra.mxu0 %v10752_v20 }
 0x51e   : > { %7209 = vmatpush1.bf16.msra.mxu1 %v11116_v23  ;;  %10896 = vmatprep.subr.msk.bf16.mxu0 %vm5166_vm5, %v10889_v25  ;;  %v3345_v23 = vld [vmem:[%s14573_s23 + $0xc0] sm:$0xff] }
 0x51f   : > { %7210 = vmatprep.subr.bf16.mxu1 %v11125_v10  ;;  %v3349_v25 = vld [vmem:[%s14573_s23 + $0xe0] sm:$0xff] }
 0x520   : > { %5593 = vmatmul.mubr.bf16.vlgmr.msra.gmra.mrb[40].mxu0 %v15068_v40  ;;  %v3262_v40 = vsel %vm3260_vm4, %v15052_v7, %v3251_v31  ;;  %v3337_v7 = vld [vmem:[%s14573_s23 + $0x80] sm:$0xff]  ;;  %v10923_v32 = vcombine.high %v3345_v23, %v3349_v25 }
 0x521   : > { %5643 = vmatpush1.bf16.msra.mxu0 %v5186_v38  ;;  %5674 = vmatprep.mubr.bf16.mxu0 %v12869_v2  ;;  %v15449_v16 = vpack.c.bf16 %v3262_v40, %v3262_v40  ;;  %v3341_v31 = vld [vmem:[%s14573_s23 + $0xa0] sm:$0xff] }
 0x522   : > { %7211 = vmatpush1.bf16.msra.mxu1 %v11124_v39  ;;  %7022 = vmatprep.subr.bf16.mxu0 %v10899_v41  ;;  %v10915_v20 = vcombine.high %v3337_v7, %v3341_v31  ;;  %v10914_v10 = vcombine.low %v3337_v7, %v3341_v31  ;;  %v3357_v38 = vld [vmem:[%s14573_s23 + $0x120] sm:$0xff]  ;;  %v3467_v39 = vld [vmem:[%s14573_s23 + $0x490] sm:$0xff] }
 0x523   : > { %v5266_v61 = vpop.f32.mrb[20].mxu0  ;;  %7212 = vmatprep.subr.bf16.mxu1 %v11133_v44  ;;  %v3471_v41 = vld [vmem:[%s14573_s23 + $0x4b0] sm:$0xff]  ;;  %v10922_v44 = vcombine.low %v3345_v23, %v3349_v25  ;;  %v10931_v49 = vcombine.high %v3353_v27, %v3357_v38  ;;  %v3377_v7 = vld [vmem:[%s14573_s23 + $0x1c0] sm:$0xff] }
 0x524   : > { %v5267_v57 = vadd.f32 %v5266_v61, %v15354_v5  ;;  %v5268_v26 = vpop.f32.mrb[21].mxu0  ;;  %v10907_v5 = vcombine.high %v3329_v54, %v3333_v24  ;;  %v3361_v61 = vld [vmem:[%s14573_s23 + $0x140] sm:$0xff] }
 0x525   : > { %v5269_v55 = vadd.f32 %v5268_v26, %v15358_v34  ;;  %v5270_v63 = vpop.f32.mrb[22].mxu0  ;;  %v11046_v26 = vcombine.low %v3467_v39, %v3471_v41  ;;  %v3381_v31 = vld [vmem:[%s14573_s23 + $0x1e0] sm:$0xff] }
 0x526   : > { %7213 = vmatpush1.bf16.msra.mxu1 %v11132_v50  ;;  %v5271_v4 = vpop.f32.mrb[23].mxu0  ;;  %v15447_v21 = vadd.f32 %v15113_v14, %v5267_v57  ;;  %v10906_v14 = vcombine.low %v3329_v54, %v3333_v24  ;;  %v11047_v50 = vcombine.high %v3467_v39, %v3471_v41  ;;  %v3475_v54 = vld [vmem:[%s14573_s23 + $0x4d0] sm:$0xff]  ;;  %v10930_v57 = vcombine.low %v3353_v27, %v3357_v38  ;;  %v3385_v23 = vld [vmem:[%s14573_s23 + $0x200] sm:$0xff] }
 0x527   : > { %7214 = vmatprep.subr.bf16.mxu1 %v11141_v52  ;;  %v15454_v34 = vadd.f32 %v15115_v35, %v5269_v55  ;;  %v11031_v35 = vcombine.high %v3451_v17, %v3455_v58  ;;  %v3365_v52 = vld [vmem:[%s14573_s23 + $0x160] sm:$0xff]  ;;  %v3479_v24 = vld [vmem:[%s14573_s23 + $0x4f0] sm:$0xff] }
 0x528   : > { %10897 = vmatmul.mubr.msk.bf16.vlgmr.msra.gmra.mrb[44].mxu0 %vm5162_vm6, %v14987_v53  ;;  %v3463_v53 = vld [vmem:[%s14573_s23 + $0x470] sm:$0xff]  ;;  %v10939_v40 = vcombine.high %v3361_v61, %v3365_v52  ;;  %v11055_v30 = vcombine.high %v3475_v54, %v3479_v24  ;;  %v3373_v55 = vld [vmem:[%s14573_s23 + $0x1a0] sm:$0xff]  ;;  %v10938_v4 = vcombine.low %v3361_v61, %v3365_v52 }
 0x529   : > { %7023 = vmatpush1.bf16.msra.mxu0 %v10898_v1  ;;  %7054 = vmatprep.mubr.bf16.mxu0 %v15449_v16  ;;  %v11039_v33 = vcombine.high %v3459_v8, %v3463_v53  ;;  %v11038_v46 = vcombine.low %v3459_v8, %v3463_v53  ;;  %v3483_v63 = vld [vmem:[%s14573_s23 + $0x510] sm:$0xff]  ;;  %v3389_v25 = vld [vmem:[%s14573_s23 + $0x220] sm:$0xff] }
 0x52a   : > { %7024 = vmatprep.subr.bf16.mxu0 %v10907_v5  ;;  %7215 = vmatpush1.bf16.msra.mxu1 %v11140_v51  ;;  %v3487_v1 = vld [vmem:[%s14573_s23 + $0x530] sm:$0xff]  ;;  %v11054_v51 = vcombine.low %v3475_v54, %v3479_v24  ;;  %v10947_v5 = vcombine.high %v3369_v45, %v3373_v55  ;;  %v3393_v27 = vld [vmem:[%s14573_s23 + $0x240] sm:$0xff] }
 0x52b   : > { %7216 = vmatprep.subr.bf16.mxu1 %v11149_v3  ;;  %v11063_v3 = vcombine.high %v3483_v63, %v3487_v1  ;;  %v3491_v17 = vld [vmem:[%s14573_s23 + $0x550] sm:$0xff]  ;;  %v3397_v38 = vld [vmem:[%s14573_s23 + $0x260] sm:$0xff] }
 0x52c   : > { %v3495_v58 = vld [vmem:[%s14573_s23 + $0x570] sm:$0xff]  ;;  %v10971_v52 = vcombine.high %v3393_v27, %v3397_v38 }
 0x52d   : > { %7025 = vmatpush1.bf16.msra.mxu0 %v10906_v14  ;;  %v10946_v14 = vcombine.low %v3369_v45, %v3373_v55  ;;  %v3499_v8 = vld [vmem:[%s14573_s23 + $0x590] sm:$0xff]  ;;  %v10970_v45 = vcombine.low %v3393_v27, %v3397_v38 }
 0x52e   : > { %7026 = vmatprep.subr.bf16.mxu0 %v10915_v20  ;;  %7217 = vmatpush1.bf16.msra.mxu1 %v11148_v18  ;;  %v11062_v18 = vcombine.low %v3483_v63, %v3487_v1  ;;  %v10955_v20 = vcombine.high %v3377_v7, %v3381_v31  ;;  %v3503_v53 = vld [vmem:[%s14573_s23 + $0x5b0] sm:$0xff] }
 0x52f   : > { %7309 = vmatprep.subr.bf16.mxu1 %v11031_v35  ;;  %v11071_v35 = vcombine.high %v3491_v17, %v3495_v58  ;;  %v3507_v41 = vld [vmem:[%s14573_s23 + $0x5d0] sm:$0xff]  ;;  %v11078_v61 = vcombine.low %v3499_v8, %v3503_v53 }
 0x531   : > { %7027 = vmatpush1.bf16.msra.mxu0 %v10914_v10  ;;  %7219 = vmatmul.mubr.bf16.vlgmr.msra.gmra.mrb[24].mxu1 %v15374_v56  ;;  %v10954_v10 = vcombine.low %v3377_v7, %v3381_v31 }
 0x532   : > { %7028 = vmatprep.subr.bf16.mxu0 %v10923_v32  ;;  %7310 = vmatpush1.bf16.msra.mxu1 %v11030_v48  ;;  %v11070_v48 = vcombine.low %v3491_v17, %v3495_v58  ;;  %v10963_v32 = vcombine.high %v3385_v23, %v3389_v25 }
 0x533   : > { %7341 = vmatprep.mubr.bf16.mxu1 %v15295_v12  ;;  %7311 = vmatprep.subr.bf16.mxu1 %v11039_v33  ;;  %v11079_v33 = vcombine.high %v3499_v8, %v3503_v53 }
 0x535   : > { %7029 = vmatpush1.bf16.msra.mxu0 %v10922_v44  ;;  %v3511_v44 = vld [vmem:[%s14573_s23 + $0x5f0] sm:$0xff] }
 0x536   : > { %7030 = vmatprep.subr.bf16.mxu0 %v10931_v49  ;;  %7312 = vmatpush1.bf16.msra.mxu1 %v11038_v46  ;;  %v10962_v49 = vcombine.low %v3385_v23, %v3389_v25  ;;  %v11087_v24 = vcombine.high %v3507_v41, %v3511_v44  ;;  %v11086_v55 = vcombine.low %v3507_v41, %v3511_v44 }
 0x537   : > { %7313 = vmatprep.subr.bf16.mxu1 %v11047_v50 }
 0x539   : > { %7031 = vmatpush1.bf16.msra.mxu0 %v10930_v57  ;;  %v3401_v57 = vld [vmem:[%s14573_s23 + $0x280] sm:$0xff] }
 0x53a   : > { %7032 = vmatprep.subr.bf16.mxu0 %v10939_v40  ;;  %7314 = vmatpush1.bf16.msra.mxu1 %v11046_v26  ;;  %v3405_v26 = vld [vmem:[%s14573_s23 + $0x2a0] sm:$0xff]  ;;  %v3515_v40 = vld [vmem:[%s14573_s23 + $0x610] sm:$0xff] }
 0x53b   : > { %7315 = vmatprep.subr.bf16.mxu1 %v11055_v30  ;;  %v3519_v30 = vld [vmem:[%s14573_s23 + $0x630] sm:$0xff]  ;;  %v10979_v63 = vcombine.high %v3401_v57, %v3405_v26  ;;  %v10978_v7 = vcombine.low %v3401_v57, %v3405_v26 }
 0x53c   : > { %v11095_v1 = vcombine.high %v3515_v40, %v3519_v30  ;;  %v11094_v31 = vcombine.low %v3515_v40, %v3519_v30  ;;  %v3441_v40 = vld [vmem:[%s14573_s23 + $0x3c0] sm:$0xff] }
 0x53d   : > { %7033 = vmatpush1.bf16.msra.mxu0 %v10938_v4  ;;  %v3409_v4 = vld [vmem:[%s14573_s23 + $0x2c0] sm:$0xff] }
 0x53e   : > { %7034 = vmatprep.subr.bf16.mxu0 %v10947_v5  ;;  %7316 = vmatpush1.bf16.msra.mxu1 %v11054_v51  ;;  %v3413_v51 = vld [vmem:[%s14573_s23 + $0x2e0] sm:$0xff]  ;;  %v3523_v5 = vld [vmem:[%s14573_s23 + $0x650] sm:$0xff] }
 0x53f   : > { %7317 = vmatprep.subr.bf16.mxu1 %v11063_v3  ;;  %v3527_v3 = vld [vmem:[%s14573_s23 + $0x670] sm:$0xff]  ;;  %v10987_v17 = vcombine.high %v3409_v4, %v3413_v51  ;;  %v10986_v23 = vcombine.low %v3409_v4, %v3413_v51  ;;  %v3445_v30 = vld [vmem:[%s14573_s23 + $0x3e0] sm:$0xff] }
 0x540   : > { %v11103_v58 = vcombine.high %v3523_v5, %v3527_v3  ;;  %v11102_v25 = vcombine.low %v3523_v5, %v3527_v3  ;;  %v11019_v4 = vcombine.high %v3441_v40, %v3445_v30  ;;  %v3577_v5 = vld [vmem:[%s14573_s23 + $0x800] sm:$0xff] }
 0x541   : > { %7035 = vmatpush1.bf16.msra.mxu0 %v10946_v14  ;;  %v3417_v14 = vld [vmem:[%s14573_s23 + $0x300] sm:$0xff] }
 0x542   : > { %7036 = vmatprep.subr.bf16.mxu0 %v10955_v20  ;;  %7318 = vmatpush1.bf16.msra.mxu1 %v11062_v18  ;;  %v3421_v18 = vld [vmem:[%s14573_s23 + $0x320] sm:$0xff]  ;;  %v3531_v20 = vld [vmem:[%s14573_s23 + $0x690] sm:$0xff] }
 0x543   : > { %7319 = vmatprep.subr.bf16.mxu1 %v11071_v35  ;;  %v3535_v35 = vld [vmem:[%s14573_s23 + $0x6b0] sm:$0xff]  ;;  %v10995_v8 = vcombine.high %v3417_v14, %v3421_v18  ;;  %v10994_v27 = vcombine.low %v3417_v14, %v3421_v18  ;;  %v3581_v3 = vld [vmem:[%s14573_s23 + $0x820] sm:$0x33] }
 0x544   : > { %v15489_v39 = vpop.f32.mrb[12].mxu1  ;;  %v11111_v53 = vcombine.high %v3531_v20, %v3535_v35  ;;  %v11110_v38 = vcombine.low %v3531_v20, %v3535_v35  ;;  %v11155_v14 = vcombine.high %v3577_v5, %v3581_v3  ;;  %v11154_v18 = vcombine.low %v3577_v5, %v3581_v3  ;;  %v3338_v5 = vld [vmem:[%s14573_s23 + $0x88] sm:$0xff] }
 0x545   : > { %7037 = vmatpush1.bf16.msra.mxu0 %v10954_v10  ;;  %v15493_v46 = vpop.f32.mrb[13].mxu1  ;;  %v3425_v10 = vld [vmem:[%s14573_s23 + $0x340] sm:$0xff]  ;;  %v3261_v35 = vsel %vm3260_vm4, %v15050_v19, %v3250_v28  ;;  %v3342_v3 = vld [vmem:[%s14573_s23 + $0xa8] sm:$0xff] }
 0x546   : > { %v5516_v50 = vpop.f32.mrb[14].mxu1  ;;  %7038 = vmatprep.subr.bf16.mxu0 %v10963_v32  ;;  %7320 = vmatpush1.bf16.msra.mxu1 %v11070_v48  ;;  %v3429_v48 = vld [vmem:[%s14573_s23 + $0x360] sm:$0xff]  ;;  %v3539_v32 = vld [vmem:[%s14573_s23 + $0x6d0] sm:$0xff]  ;;  %v6999_v28 = vsel %vm5166_vm5, %v11154_v18, 0 }
 0x547   : > { %v5517_v54 = vpop.f32.mrb[15].mxu1  ;;  %7321 = vmatprep.subr.bf16.mxu1 %v11079_v33  ;;  %v3543_v33 = vld [vmem:[%s14573_s23 + $0x6f0] sm:$0xff]  ;;  %v11003_v41 = vcombine.high %v3425_v10, %v3429_v48  ;;  %v3437_v50 = vld [vmem:[%s14573_s23 + $0x3a0] sm:$0xff] }
 0x548   : > { %v11119_v44 = vcombine.high %v3539_v32, %v3543_v33  ;;  %v11002_v54 = vcombine.low %v3425_v10, %v3429_v48  ;;  %v3571_v48 = vld [vmem:[%s14573_s23 + $0x7d0] sm:$0xff] }
 0x549   : > { %7039 = vmatpush1.bf16.msra.mxu0 %v10962_v49  ;;  %v3433_v49 = vld [vmem:[%s14573_s23 + $0x380] sm:$0xff] }
 0x54a   : > { %7040 = vmatprep.subr.bf16.mxu0 %v10971_v52  ;;  %7322 = vmatpush1.bf16.msra.mxu1 %v11078_v61  ;;  %v3547_v61 = vld [vmem:[%s14573_s23 + $0x710] sm:$0xff]  ;;  %v11011_v57 = vcombine.high %v3433_v49, %v3437_v50 }
 0x54b   : > { %7323 = vmatprep.subr.bf16.mxu1 %v11087_v24  ;;  %v3551_v52 = vld [vmem:[%s14573_s23 + $0x730] sm:$0xff]  ;;  %v11118_v24 = vcombine.low %v3539_v32, %v3543_v33 }
 0x54c   : > { %v11127_v26 = vcombine.high %v3547_v61, %v3551_v52  ;;  %v3575_v32 = vld [vmem:[%s14573_s23 + $0x7f0] sm:$0xff] }
 0x54d   : > { %7041 = vmatpush1.bf16.msra.mxu0 %v10970_v45  ;;  %v3555_v45 = vld [vmem:[%s14573_s23 + $0x750] sm:$0xff] }
 0x54e   : > { %7042 = vmatprep.subr.bf16.mxu0 %v10979_v63  ;;  %7324 = vmatpush1.bf16.msra.mxu1 %v11086_v55  ;;  %v3559_v55 = vld [vmem:[%s14573_s23 + $0x770] sm:$0xff]  ;;  %v11010_v63 = vcombine.low %v3433_v49, %v3437_v50  ;;  %v3452_v49 = vld [vmem:[%s14573_s23 + $0x418] sm:$0xff] }
 0x54f   : > { %7325 = vmatprep.subr.bf16.mxu1 %v11095_v1  ;;  %v11126_v1 = vcombine.low %v3547_v61, %v3551_v52  ;;  %v11135_v51 = vcombine.high %v3555_v45, %v3559_v55  ;;  %v3456_v50 = vld [vmem:[%s14573_s23 + $0x438] sm:$0xff]  ;;  %v3265_v52 = vsel %vm3260_vm4, %v14967_v36, %v3254_v37 }
 0x551   : > { %7043 = vmatpush1.bf16.msra.mxu0 %v10978_v7  ;;  %v3563_v7 = vld [vmem:[%s14573_s23 + $0x790] sm:$0xff] }
 0x552   : > { %7044 = vmatprep.subr.bf16.mxu0 %v10987_v17  ;;  %7326 = vmatpush1.bf16.msra.mxu1 %v11094_v31  ;;  %v3567_v31 = vld [vmem:[%s14573_s23 + $0x7b0] sm:$0xff]  ;;  %v11018_v17 = vcombine.low %v3441_v40, %v3445_v30 }
 0x553   : > { %7327 = vmatprep.subr.bf16.mxu1 %v11103_v58  ;;  %v11134_v58 = vcombine.low %v3555_v45, %v3559_v55 }
 0x555   : > { %7045 = vmatpush1.bf16.msra.mxu0 %v10986_v23  ;;  %v11143_v23 = vcombine.high %v3563_v7, %v3567_v31 }
 0x556   : > { %7046 = vmatprep.subr.bf16.mxu0 %v10995_v8  ;;  %7328 = vmatpush1.bf16.msra.mxu1 %v11102_v25  ;;  %v3322_v25 = vld [vmem:[%s14573_s23 + $0x8] sm:$0xff] }
 0x557   : > { %7329 = vmatprep.subr.bf16.mxu1 %v11111_v53  ;;  %v3326_v8 = vld [vmem:[%s14573_s23 + $0x28] sm:$0xff] }
 0x558   : > { %v10900_v45 = vcombine.low %v3322_v25, %v3326_v8 }
 0x559   : > { %7047 = vmatpush1.bf16.msra.mxu0 %v10994_v27 }
 0x55a   : > { %7048 = vmatprep.subr.bf16.mxu0 %v11003_v41  ;;  %7330 = vmatpush1.bf16.msra.mxu1 %v11110_v38  ;;  %v15533_v38 = vpack.c.bf16 %v3261_v35, %v3261_v35  ;;  %v11142_v41 = vcombine.low %v3563_v7, %v3567_v31  ;;  %v3350_v35 = vld [vmem:[%s14573_s23 + $0xe8] sm:$0xff] }
 0x55b   : > { %7331 = vmatprep.subr.bf16.mxu1 %v11119_v44  ;;  %v11151_v44 = vcombine.high %v3571_v48, %v3575_v32 }
 0x55d   : > { %7049 = vmatpush1.bf16.msra.mxu0 %v11002_v54  ;;  %v3330_v54 = vld [vmem:[%s14573_s23 + $0x48] sm:$0xff] }
 0x55e   : > { %7050 = vmatprep.subr.bf16.mxu0 %v11011_v57  ;;  %7332 = vmatpush1.bf16.msra.mxu1 %v11118_v24  ;;  %v3334_v24 = vld [vmem:[%s14573_s23 + $0x68] sm:$0xff]  ;;  %v11033_v57 = vcombine.high %v3452_v49, %v3456_v50 }
 0x55f   : > { %7333 = vmatprep.subr.bf16.mxu1 %v11127_v26  ;;  %v10909_v37 = vcombine.high %v3330_v54, %v3334_v24  ;;  %v10908_v31 = vcombine.low %v3330_v54, %v3334_v24 }
 0x561   : > { %7051 = vmatpush1.bf16.msra.mxu0 %v11010_v63  ;;  %v3460_v63 = vld [vmem:[%s14573_s23 + $0x458] sm:$0xff] }
 0x562   : > { %7052 = vmatprep.subr.bf16.mxu0 %v11019_v4  ;;  %7334 = vmatpush1.bf16.msra.mxu1 %v11126_v1  ;;  %v3464_v1 = vld [vmem:[%s14573_s23 + $0x478] sm:$0xff]  ;;  %v15553_v4 = vpack.c.bf16 %v3265_v52, %v3265_v52 }
 0x563   : > { %v5348_v20 = vpop.f32.mrb[24].mxu0  ;;  %7335 = vmatprep.subr.bf16.mxu1 %v11135_v51  ;;  %v11032_v51 = vcombine.low %v3452_v49, %v3456_v50  ;;  %v11041_v7 = vcombine.high %v3460_v63, %v3464_v1  ;;  %v11040_v18 = vcombine.low %v3460_v63, %v3464_v1  ;;  %v3366_v49 = vld [vmem:[%s14573_s23 + $0x168] sm:$0xff]  ;;  %v3496_v52 = vld [vmem:[%s14573_s23 + $0x578] sm:$0xff] }
 0x564   : > { %v5390_v53 = vadd.f32 %v15398_v22, %v5348_v20  ;;  %v5350_v10 = vpop.f32.mrb[25].mxu0  ;;  %v10901_v22 = vcombine.high %v3322_v25, %v3326_v8  ;;  %v3346_v20 = vld [vmem:[%s14573_s23 + $0xc8] sm:$0xff]  ;;  %v10916_v25 = vcombine.low %v3338_v5, %v3342_v3  ;;  %v3476_v8 = vld [vmem:[%s14573_s23 + $0x4d8] sm:$0xff] }
 0x565   : > { %7053 = vmatpush1.bf16.msra.mxu0 %v11018_v17  ;;  %v5392_v33 = vadd.f32 %v15402_v0, %v5350_v10  ;;  %v5352_v27 = vpop.f32.mrb[26].mxu0  ;;  %v11150_v0 = vcombine.low %v3571_v48, %v3575_v32  ;;  %v3468_v17 = vld [vmem:[%s14573_s23 + $0x498] sm:$0xff]  ;;  %v10925_v10 = vcombine.high %v3346_v20, %v3350_v35  ;;  %v3354_v32 = vld [vmem:[%s14573_s23 + $0x108] sm:$0xff] }
 0x566   : > { %11162 = vmatprep.subr.msk.bf16.mxu0 %vm5166_vm5, %v11155_v14  ;;  %7336 = vmatpush1.bf16.msra.mxu1 %v11134_v58  ;;  %v5353_v19 = vpop.f32.mrb[27].mxu0  ;;  %v3472_v58 = vld [vmem:[%s14573_s23 + $0x4b8] sm:$0xff]  ;;  %v10917_v14 = vcombine.high %v3338_v5, %v3342_v3  ;;  %v10924_v27 = vcombine.low %v3346_v20, %v3350_v35  ;;  %v3382_v5 = vld [vmem:[%s14573_s23 + $0x1e8] sm:$0xff] }
 0x567   : > { %7337 = vmatprep.subr.bf16.mxu1 %v11143_v23  ;;  %v11049_v23 = vcombine.high %v3468_v17, %v3472_v58  ;;  %v11048_v48 = vcombine.low %v3468_v17, %v3472_v58  ;;  %v3484_v19 = vld [vmem:[%s14573_s23 + $0x518] sm:$0xff] }
 0x568   : > { %7055 = vmatmul.mubr.bf16.vlgmr.msra.gmra.mrb[48].mxu0 %v15533_v38  ;;  %v3500_v63 = vld [vmem:[%s14573_s23 + $0x598] sm:$0xff] }
 0x569   : > { %7105 = vmatpush1.bf16.msra.mxu0 %v6999_v28  ;;  %7136 = vmatprep.mubr.bf16.mxu0 %v12869_v2  ;;  %v3488_v28 = vld [vmem:[%s14573_s23 + $0x538] sm:$0xff] }
 0x56a   : > { %7338 = vmatpush1.bf16.msra.mxu1 %v11142_v41  ;;  %7145 = vmatprep.subr.bf16.mxu0 %v10901_v22  ;;  %v11065_v50 = vcombine.high %v3484_v19, %v3488_v28  ;;  %v11064_v24 = vcombine.low %v3484_v19, %v3488_v28  ;;  %v3504_v1 = vld [vmem:[%s14573_s23 + $0x5b8] sm:$0xff]  ;;  %v3398_v19 = vld [vmem:[%s14573_s23 + $0x268] sm:$0xff] }
 0x56b   : > { %v5430_v61 = vpop.f32.mrb[28].mxu0  ;;  %7339 = vmatprep.subr.bf16.mxu1 %v11151_v44  ;;  %v3362_v44 = vld [vmem:[%s14573_s23 + $0x148] sm:$0xff]  ;;  %v3508_v58 = vld [vmem:[%s14573_s23 + $0x5d8] sm:$0xff] }
 0x56c   : > { %v15547_v26 = vadd.f32 %v5430_v61, %v5390_v53  ;;  %v5432_v40 = vpop.f32.mrb[29].mxu0  ;;  %v3480_v53 = vld [vmem:[%s14573_s23 + $0x4f8] sm:$0xff]  ;;  %v10941_v54 = vcombine.high %v3362_v44, %v3366_v49 }
 0x56d   : > { %v15549_v30 = vadd.f32 %v5432_v40, %v5392_v33  ;;  %v5434_v55 = vpop.f32.mrb[30].mxu0  ;;  %v3358_v33 = vld [vmem:[%s14573_s23 + $0x128] sm:$0xff]  ;;  %v11056_v22 = vcombine.low %v3476_v8, %v3480_v53  ;;  %v3492_v61 = vld [vmem:[%s14573_s23 + $0x558] sm:$0xff] }
 0x56e   : > { %7340 = vmatpush1.bf16.msra.mxu1 %v11150_v0  ;;  %v5435_v36 = vpop.f32.mrb[31].mxu0  ;;  %v10933_v41 = vcombine.high %v3354_v32, %v3358_v33  ;;  %v10932_v0 = vcombine.low %v3354_v32, %v3358_v33  ;;  %v3374_v40 = vld [vmem:[%s14573_s23 + $0x1a8] sm:$0xff]  ;;  %v10940_v55 = vcombine.low %v3362_v44, %v3366_v49  ;;  %v3520_v32 = vld [vmem:[%s14573_s23 + $0x638] sm:$0xff] }
 0x56f   : > { %7432 = vmatprep.subr.bf16.mxu1 %v11033_v57  ;;  %v3370_v57 = vld [vmem:[%s14573_s23 + $0x188] sm:$0xff]  ;;  %v3528_v44 = vld [vmem:[%s14573_s23 + $0x678] sm:$0xff] }
 0x570   : > { %11163 = vmatmul.mubr.msk.bf16.vlgmr.msra.gmra.mrb[52].mxu0 %vm5162_vm6, %v15553_v4  ;;  %v10949_v36 = vcombine.high %v3370_v57, %v3374_v40  ;;  %v10948_v17 = vcombine.low %v3370_v57, %v3374_v40  ;;  %v3536_v57 = vld [vmem:[%s14573_s23 + $0x6b8] sm:$0xff] }
 0x571   : > { %7146 = vmatpush1.bf16.msra.mxu0 %v10900_v45  ;;  %7177 = vmatprep.mubr.bf16.mxu0 %v15449_v16  ;;  %v11073_v45 = vcombine.high %v3492_v61, %v3496_v52 }
 0x572   : > { %7147 = vmatprep.subr.bf16.mxu0 %v10909_v37  ;;  %7342 = vmatmul.mubr.bf16.vlgmr.msra.gmra.mrb[28].mxu1 %v15374_v56  ;;  %v11072_v37 = vcombine.low %v3492_v61, %v3496_v52  ;;  %v3406_v61 = vld [vmem:[%s14573_s23 + $0x2a8] sm:$0xff] }
 0x573   : > { %7433 = vmatpush1.bf16.msra.mxu1 %v11032_v51  ;;  %7464 = vmatprep.mubr.bf16.mxu1 %v15295_v12  ;;  %v11057_v12 = vcombine.high %v3476_v8, %v3480_v53  ;;  %v3378_v51 = vld [vmem:[%s14573_s23 + $0x1c8] sm:$0xff] }
 0x574   : > { %7434 = vmatprep.subr.bf16.mxu1 %v11041_v7  ;;  %v11081_v7 = vcombine.high %v3500_v63, %v3504_v1  ;;  %v10957_v20 = vcombine.high %v3378_v51, %v3382_v5  ;;  %v3390_v8 = vld [vmem:[%s14573_s23 + $0x228] sm:$0xff] }
 0x575   : > { %7148 = vmatpush1.bf16.msra.mxu0 %v10908_v31 }
 0x576   : > { %7149 = vmatprep.subr.bf16.mxu0 %v10917_v14  ;;  %v3512_v14 = vld [vmem:[%s14573_s23 + $0x5f8] sm:$0xff] }
 0x577   : > { %7435 = vmatpush1.bf16.msra.mxu1 %v11040_v18  ;;  %v11089_v53 = vcombine.high %v3508_v58, %v3512_v14 }
 0x578   : > { %7436 = vmatprep.subr.bf16.mxu1 %v11049_v23  ;;  %v11080_v23 = vcombine.low %v3500_v63, %v3504_v1  ;;  %v3414_v63 = vld [vmem:[%s14573_s23 + $0x2e8] sm:$0xff] }
 0x579   : > { %7150 = vmatpush1.bf16.msra.mxu0 %v10916_v25  ;;  %v3386_v25 = vld [vmem:[%s14573_s23 + $0x208] sm:$0xff] }
 0x57a   : > { %7151 = vmatprep.subr.bf16.mxu0 %v10925_v10  ;;  %v10956_v10 = vcombine.low %v3378_v51, %v3382_v5  ;;  %v10965_v33 = vcombine.high %v3386_v25, %v3390_v8  ;;  %v3544_v51 = vld [vmem:[%s14573_s23 + $0x6f8] sm:$0xff] }
 0x57b   : > { %7437 = vmatpush1.bf16.msra.mxu1 %v11048_v48  ;;  %v3516_v48 = vld [vmem:[%s14573_s23 + $0x618] sm:$0xff] }
 0x57c   : > { %7438 = vmatprep.subr.bf16.mxu1 %v11057_v12  ;;  %v11088_v12 = vcombine.low %v3508_v58, %v3512_v14  ;;  %v11097_v28 = vcombine.high %v3516_v48, %v3520_v32  ;;  %v3422_v58 = vld [vmem:[%s14573_s23 + $0x328] sm:$0xff] }
 0x57d   : > { %7152 = vmatpush1.bf16.msra.mxu0 %v10924_v27  ;;  %v3394_v27 = vld [vmem:[%s14573_s23 + $0x248] sm:$0xff] }
 0x57e   : > { %7153 = vmatprep.subr.bf16.mxu0 %v10933_v41  ;;  %v10964_v41 = vcombine.low %v3386_v25, %v3390_v8  ;;  %v10973_v49 = vcombine.high %v3394_v27, %v3398_v19  ;;  %v3426_v8 = vld [vmem:[%s14573_s23 + $0x348] sm:$0xff] }
 0x57f   : > { %7439 = vmatpush1.bf16.msra.mxu1 %v11056_v22  ;;  %v3524_v22 = vld [vmem:[%s14573_s23 + $0x658] sm:$0xff] }
 0x580   : > { %7440 = vmatprep.subr.bf16.mxu1 %v11065_v50  ;;  %v11096_v50 = vcombine.low %v3516_v48, %v3520_v32  ;;  %v11105_v52 = vcombine.high %v3524_v22, %v3528_v44  ;;  %v3556_v32 = vld [vmem:[%s14573_s23 + $0x758] sm:$0xff] }
 0x581   : > { %7154 = vmatpush1.bf16.msra.mxu0 %v10932_v0  ;;  %v3402_v0 = vld [vmem:[%s14573_s23 + $0x288] sm:$0xff] }
 0x582   : > { %7155 = vmatprep.subr.bf16.mxu0 %v10941_v54  ;;  %v10972_v54 = vcombine.low %v3394_v27, %v3398_v19  ;;  %v10981_v40 = vcombine.high %v3402_v0, %v3406_v61  ;;  %v3434_v19 = vld [vmem:[%s14573_s23 + $0x388] sm:$0xff] }
 0x583   : > { %7441 = vmatpush1.bf16.msra.mxu1 %v11064_v24  ;;  %v3532_v24 = vld [vmem:[%s14573_s23 + $0x698] sm:$0xff] }
 0x584   : > { %v15582_v3 = vpop.f32.mrb[16].mxu1  ;;  %7442 = vmatprep.subr.bf16.mxu1 %v11073_v45  ;;  %v11104_v45 = vcombine.low %v3524_v22, %v3528_v44  ;;  %v11113_v1 = vcombine.high %v3532_v24, %v3536_v57  ;;  %v3564_v44 = vld [vmem:[%s14573_s23 + $0x798] sm:$0xff] }
 0x585   : > { %7156 = vmatpush1.bf16.msra.mxu0 %v10940_v55  ;;  %v15584_v31 = vpop.f32.mrb[17].mxu1  ;;  %v3410_v55 = vld [vmem:[%s14573_s23 + $0x2c8] sm:$0xff] }
 0x586   : > { %7157 = vmatprep.subr.bf16.mxu0 %v10949_v36  ;;  %v5639_v18 = vpop.f32.mrb[18].mxu1  ;;  %v10980_v36 = vcombine.low %v3402_v0, %v3406_v61  ;;  %v10989_v5 = vcombine.high %v3410_v55, %v3414_v63  ;;  %v3442_v61 = vld [vmem:[%s14573_s23 + $0x3c8] sm:$0xff] }
 0x587   : > { %7443 = vmatpush1.bf16.msra.mxu1 %v11072_v37  ;;  %v5640_v35 = vpop.f32.mrb[19].mxu1  ;;  %v3540_v37 = vld [vmem:[%s14573_s23 + $0x6d8] sm:$0xff]  ;;  %v10988_v18 = vcombine.low %v3410_v55, %v3414_v63  ;;  %v3578_v63 = vld [vmem:[%s14573_s23 + $0x808] sm:$0xff] }
 0x588   : > { %7444 = vmatprep.subr.bf16.mxu1 %v11081_v7  ;;  %v11112_v7 = vcombine.low %v3532_v24, %v3536_v57  ;;  %v11121_v14 = vcombine.high %v3540_v37, %v3544_v51  ;;  %v3552_v35 = vld [vmem:[%s14573_s23 + $0x738] sm:$0xff]  ;;  %v11120_v25 = vcombine.low %v3540_v37, %v3544_v51  ;;  %v11170_v51 = vld [vmem:[%s14573_s23 + $0x1080] sm:$0xff] }
 0x589   : > { %7158 = vmatpush1.bf16.msra.mxu0 %v10948_v17  ;;  %v3418_v17 = vld [vmem:[%s14573_s23 + $0x308] sm:$0xff]  ;;  %v3572_v57 = vld [vmem:[%s14573_s23 + $0x7d8] sm:$0xff] }
 0x58a   : > { %7159 = vmatprep.subr.bf16.mxu0 %v10957_v20  ;;  %v3548_v20 = vld [vmem:[%s14573_s23 + $0x718] sm:$0xff]  ;;  %v10996_v48 = vcombine.low %v3418_v17, %v3422_v58 }
 0x58b   : > { %7445 = vmatpush1.bf16.msra.mxu1 %v11080_v23  ;;  %v10997_v23 = vcombine.high %v3418_v17, %v3422_v58  ;;  %v11128_v27 = vcombine.low %v3548_v20, %v3552_v35 }
 0x58c   : > { %7446 = vmatprep.subr.bf16.mxu1 %v11089_v53  ;;  %v3430_v53 = vld [vmem:[%s14573_s23 + $0x368] sm:$0xff] }
 0x58d   : > { %7160 = vmatpush1.bf16.msra.mxu0 %v10956_v10  ;;  %v11129_v10 = vcombine.high %v3548_v20, %v3552_v35  ;;  %v11004_v22 = vcombine.low %v3426_v8, %v3430_v53  ;;  %v3327_v20 = vld [vmem:[%s14573_s23 + $0x30] sm:$0xff] }
 0x58e   : > { %7161 = vmatprep.subr.bf16.mxu0 %v10965_v33  ;;  %v3560_v33 = vld [vmem:[%s14573_s23 + $0x778] sm:$0xff] }
 0x58f   : > { %7447 = vmatpush1.bf16.msra.mxu1 %v11088_v12  ;;  %v11005_v12 = vcombine.high %v3426_v8, %v3430_v53  ;;  %v11136_v0 = vcombine.low %v3556_v32, %v3560_v33 }
 0x590   : > { %7448 = vmatprep.subr.bf16.mxu1 %v11097_v28  ;;  %v3438_v28 = vld [vmem:[%s14573_s23 + $0x3a8] sm:$0xff] }
 0x591   : > { %7162 = vmatpush1.bf16.msra.mxu0 %v10964_v41  ;;  %v11137_v41 = vcombine.high %v3556_v32, %v3560_v33  ;;  %v11012_v24 = vcombine.low %v3434_v19, %v3438_v28 }
 0x592   : > { %7163 = vmatprep.subr.bf16.mxu0 %v10973_v49  ;;  %v3568_v49 = vld [vmem:[%s14573_s23 + $0x7b8] sm:$0xff] }
 0x593   : > { %7449 = vmatpush1.bf16.msra.mxu1 %v11096_v50  ;;  %v11013_v50 = vcombine.high %v3434_v19, %v3438_v28  ;;  %v11144_v55 = vcombine.low %v3564_v44, %v3568_v49  ;;  %v11186_v19 = vld [vmem:[%s14573_s23 + $0x1100] sm:$0xff] }
 0x594   : > { %7450 = vmatprep.subr.bf16.mxu1 %v11105_v52  ;;  %v3446_v52 = vld [vmem:[%s14573_s23 + $0x3e8] sm:$0xff]  ;;  %v11190_v28 = vld [vmem:[%s14573_s23 + $0x1120] sm:$0xff] }
 0x595   : > { %7164 = vmatpush1.bf16.msra.mxu0 %v10972_v54  ;;  %v11145_v54 = vcombine.high %v3564_v44, %v3568_v49  ;;  %v11020_v37 = vcombine.low %v3442_v61, %v3446_v52  ;;  %v3331_v44 = vld [vmem:[%s14573_s23 + $0x50] sm:$0xff] }
 0x596   : > { %7165 = vmatprep.subr.bf16.mxu0 %v10981_v40  ;;  %v3576_v40 = vld [vmem:[%s14573_s23 + $0x7f8] sm:$0xff]  ;;  %v3335_v49 = vld [vmem:[%s14573_s23 + $0x70] sm:$0xff] }
 0x597   : > { %7451 = vmatpush1.bf16.msra.mxu1 %v11104_v45  ;;  %v11021_v45 = vcombine.high %v3442_v61, %v3446_v52 }
 0x598   : > { %7452 = vmatprep.subr.bf16.mxu1 %v11113_v1  ;;  %v3582_v1 = vld [vmem:[%s14573_s23 + $0x828] sm:$0x33] }
 0x599   : > { %7166 = vmatpush1.bf16.msra.mxu0 %v10980_v36  ;;  %v11153_v36 = vcombine.high %v3572_v57, %v3576_v40  ;;  %v11156_v17 = vcombine.low %v3578_v63, %v3582_v1 }
 0x59a   : > { %7167 = vmatprep.subr.bf16.mxu0 %v10989_v5  ;;  %v11174_v5 = vld [vmem:[%s14573_s23 + $0x10a0] sm:$0xff] }
 0x59b   : > { %7453 = vmatpush1.bf16.msra.mxu1 %v11112_v7  ;;  %v11157_v7 = vcombine.high %v3578_v63, %v3582_v1  ;;  %v7005_v33 = vsel %vm5166_vm5, %v11156_v17, 0  ;;  %v3343_v63 = vld [vmem:[%s14573_s23 + $0xb0] sm:$0xff] }
 0x59c   : > { %7454 = vmatprep.subr.bf16.mxu1 %v11121_v14  ;;  %v11152_v14 = vcombine.low %v3572_v57, %v3576_v40  ;;  %v10911_v40 = vcombine.high %v3331_v44, %v3335_v49  ;;  %v3347_v17 = vld [vmem:[%s14573_s23 + $0xd0] sm:$0xff] }
 0x59d   : > { %7168 = vmatpush1.bf16.msra.mxu0 %v10988_v18  ;;  %v3323_v18 = vld [vmem:[%s14573_s23 + $0x10] sm:$0xff] }
 0x59e   : > { %7169 = vmatprep.subr.bf16.mxu0 %v10997_v23  ;;  %v10902_v52 = vcombine.low %v3323_v18, %v3327_v20 }
 0x59f   : > { %7455 = vmatpush1.bf16.msra.mxu1 %v11120_v25  ;;  %v11435_v25 = vcombine.high %v11170_v51, %v11174_v5 }
 0x5a0   : > { %7456 = vmatprep.subr.bf16.mxu1 %v11129_v10  ;;  %v11178_v10 = vld [vmem:[%s14573_s23 + $0x10c0] sm:$0xff] }
 0x5a1   : > { %7170 = vmatpush1.bf16.msra.mxu0 %v10996_v48  ;;  %v11182_v48 = vld [vmem:[%s14573_s23 + $0x10e0] sm:$0xff] }
 0x5a2   : > { %7171 = vmatprep.subr.bf16.mxu0 %v11005_v12  ;;  %v10903_v12 = vcombine.high %v3323_v18, %v3327_v20  ;;  %v11210_v20 = vld [vmem:[%s14573_s23 + $0x11c0] sm:$0xff] }
 0x5a3   : > { %7457 = vmatpush1.bf16.msra.mxu1 %v11128_v27  ;;  %v11443_v27 = vcombine.high %v11178_v10, %v11182_v48 }
 0x5a4   : > { %7458 = vmatprep.subr.bf16.mxu1 %v11137_v41 }
 0x5a5   : > { %7172 = vmatpush1.bf16.msra.mxu0 %v11004_v22  ;;  %v11442_v22 = vcombine.low %v11178_v10, %v11182_v48 }
 0x5a6   : > { %7173 = vmatprep.subr.bf16.mxu0 %v11013_v50 }
 0x5a7   : > { %7459 = vmatpush1.bf16.msra.mxu1 %v11136_v0  ;;  %v11451_v0 = vcombine.high %v11186_v19, %v11190_v28 }
 0x5a8   : > { %7460 = vmatprep.subr.bf16.mxu1 %v11145_v54  ;;  %v11194_v54 = vld [vmem:[%s14573_s23 + $0x1140] sm:$0xff] }
 0x5a9   : > { %7174 = vmatpush1.bf16.msra.mxu0 %v11012_v24  ;;  %v11198_v24 = vld [vmem:[%s14573_s23 + $0x1160] sm:$0xff] }
 0x5aa   : > { %7175 = vmatprep.subr.bf16.mxu0 %v11021_v45  ;;  %v11450_v45 = vcombine.low %v11186_v19, %v11190_v28  ;;  %v11459_v1 = vcombine.high %v11194_v54, %v11198_v24  ;;  %v3367_v19 = vld [vmem:[%s14573_s23 + $0x170] sm:$0xff] }
 0x5ab   : > { %7461 = vmatpush1.bf16.msra.mxu1 %v11144_v55  ;;  %v5471_v58 = vpop.f32.mrb[32].mxu0  ;;  %v3339_v55 = vld [vmem:[%s14573_s23 + $0x90] sm:$0xff] }
 0x5ac   : > { %v5513_v35 = vadd.f32 %v15489_v39, %v5471_v58  ;;  %v5473_v23 = vpop.f32.mrb[33].mxu0  ;;  %7462 = vmatprep.subr.bf16.mxu1 %v11153_v36  ;;  %v11434_v39 = vcombine.low %v11170_v51, %v11174_v5  ;;  %v10910_v36 = vcombine.low %v3331_v44, %v3335_v49  ;;  %v11206_v51 = vld [vmem:[%s14573_s23 + $0x11a0] sm:$0xff]  ;;  %v10919_v5 = vcombine.high %v3339_v55, %v3343_v63  ;;  %v3351_v58 = vld [vmem:[%s14573_s23 + $0xf0] sm:$0xff] }
 0x5ad   : > { %7176 = vmatpush1.bf16.msra.mxu0 %v11020_v37  ;;  %v5515_v8 = vadd.f32 %v15493_v46, %v5473_v23  ;;  %v5475_v53 = vpop.f32.mrb[34].mxu0  ;;  %v15635_v46 = vpack.c.bf16 %v15081_v47, %v15081_v47  ;;  %v11202_v37 = vld [vmem:[%s14573_s23 + $0x1180] sm:$0xff]  ;;  %v10918_v18 = vcombine.low %v3339_v55, %v3343_v63  ;;  %v10927_v23 = vcombine.high %v3347_v17, %v3351_v58 }
 0x5ae   : > { %11164 = vmatprep.subr.msk.bf16.mxu0 %vm5166_vm5, %v11157_v7  ;;  %v5476_v32 = vpop.f32.mrb[35].mxu0  ;;  %v11458_v7 = vcombine.low %v11194_v54, %v11198_v24  ;;  %v3359_v53 = vld [vmem:[%s14573_s23 + $0x130] sm:$0xff]  ;;  %v10926_v48 = vcombine.low %v3347_v17, %v3351_v58  ;;  %v11226_v49 = vld [vmem:[%s14573_s23 + $0x1240] sm:$0xff] }
 0x5af   : > { %7463 = vmatpush1.bf16.msra.mxu1 %v11152_v14  ;;  %v11467_v14 = vcombine.high %v11202_v37, %v11206_v51  ;;  %v11218_v32 = vld [vmem:[%s14573_s23 + $0x1200] sm:$0xff]  ;;  %v3371_v24 = vld [vmem:[%s14573_s23 + $0x190] sm:$0xff] }
 0x5b0   : > { %7178 = vmatmul.mubr.bf16.vlgmr.msra.gmra.mrb[56].mxu0 %v15533_v38  ;;  %9118 = vmatprep.subr.bf16.mxu1 %v11435_v25  ;;  %v11466_v25 = vcombine.low %v11202_v37, %v11206_v51  ;;  %v11234_v55 = vld [vmem:[%s14573_s23 + $0x1280] sm:$0xff]  ;;  %v3379_v37 = vld [vmem:[%s14573_s23 + $0x1d0] sm:$0xff] }
 0x5b1   : > { %7228 = vmatpush1.bf16.msra.mxu0 %v7005_v33  ;;  %7259 = vmatprep.mubr.bf16.mxu0 %v12869_v2  ;;  %v11222_v33 = vld [vmem:[%s14573_s23 + $0x1220] sm:$0xff]  ;;  %v3383_v51 = vld [vmem:[%s14573_s23 + $0x1f0] sm:$0xff] }
 0x5b2   : > { %7465 = vmatmul.mubr.bf16.vlgmr.msra.gmra.mrb[32].mxu1 %v15374_v56  ;;  %7268 = vmatprep.subr.bf16.mxu0 %v10903_v12  ;;  %v11482_v54 = vcombine.low %v11218_v32, %v11222_v33  ;;  %v11238_v63 = vld [vmem:[%s14573_s23 + $0x12a0] sm:$0xff] }
 0x5b3   : > { %9119 = vmatpush1.bf16.msra.mxu1 %v11434_v39  ;;  %9150 = vmatprep.mubr.bf16.mxu1 %v15635_v46  ;;  %v5553_v41 = vpop.f32.mrb[36].mxu0  ;;  %v11242_v17 = vld [vmem:[%s14573_s23 + $0x12c0] sm:$0xff] }
 0x5b4   : > { %v15644_v47 = vadd.f32 %v5553_v41, %v5513_v35  ;;  %v5555_v50 = vpop.f32.mrb[37].mxu0  ;;  %9120 = vmatprep.subr.bf16.mxu1 %v11443_v27  ;;  %v11214_v35 = vld [vmem:[%s14573_s23 + $0x11e0] sm:$0xff]  ;;  %v3363_v27 = vld [vmem:[%s14573_s23 + $0x150] sm:$0xff]  ;;  %v11483_v41 = vcombine.high %v11218_v32, %v11222_v33 }
 0x5b5   : > { %v15646_v61 = vadd.f32 %v5555_v50, %v5515_v8  ;;  %v5557_v56 = vpop.f32.mrb[38].mxu0  ;;  %v3355_v8 = vld [vmem:[%s14573_s23 + $0x110] sm:$0xff]  ;;  %v11475_v10 = vcombine.high %v11210_v20, %v11214_v35  ;;  %v11474_v39 = vcombine.low %v11210_v20, %v11214_v35  ;;  %v11230_v50 = vld [vmem:[%s14573_s23 + $0x1260] sm:$0xff] }
 0x5b6   : > { %v5558_v57 = vpop.f32.mrb[39].mxu0  ;;  %v10935_v12 = vcombine.high %v3355_v8, %v3359_v53  ;;  %v11246_v58 = vld [vmem:[%s14573_s23 + $0x12e0] sm:$0xff]  ;;  %v3387_v20 = vld [vmem:[%s14573_s23 + $0x210] sm:$0xff] }
 0x5b7   : > { %9121 = vmatpush1.bf16.msra.mxu1 %v11442_v22  ;;  %v10934_v22 = vcombine.low %v3355_v8, %v3359_v53  ;;  %v3375_v57 = vld [vmem:[%s14573_s23 + $0x1b0] sm:$0xff]  ;;  %v11250_v8 = vld [vmem:[%s14573_s23 + $0x1300] sm:$0xff] }
 0x5b8   : > { %11165 = vmatmul.mubr.msk.bf16.vlgmr.msra.gmra.mrb[60].mxu0 %vm5162_vm6, %v15553_v4  ;;  %9122 = vmatprep.subr.bf16.mxu1 %v11451_v0  ;;  %v3391_v35 = vld [vmem:[%s14573_s23 + $0x230] sm:$0xff]  ;;  %v11254_v53 = vld [vmem:[%s14573_s23 + $0x1320] sm:$0xff] }
 0x5b9   : > { %7269 = vmatpush1.bf16.msra.mxu0 %v10902_v52  ;;  %7300 = vmatprep.mubr.bf16.mxu0 %v15449_v16  ;;  %v10943_v52 = vcombine.high %v3363_v27, %v3367_v19  ;;  %v3395_v32 = vld [vmem:[%s14573_s23 + $0x250] sm:$0xff] }
 0x5ba   : > { %7270 = vmatprep.subr.bf16.mxu0 %v10911_v40  ;;  %v11491_v40 = vcombine.high %v11226_v49, %v11230_v50  ;;  %v3399_v33 = vld [vmem:[%s14573_s23 + $0x270] sm:$0xff] }
 0x5bb   : > { %9123 = vmatpush1.bf16.msra.mxu1 %v11450_v45  ;;  %v10942_v45 = vcombine.low %v3363_v27, %v3367_v19  ;;  %v11258_v27 = vld [vmem:[%s14573_s23 + $0x1340] sm:$0xff] }
 0x5bc   : > { %9124 = vmatprep.subr.bf16.mxu1 %v11459_v1  ;;  %v10951_v1 = vcombine.high %v3371_v24, %v3375_v57  ;;  %v11262_v19 = vld [vmem:[%s14573_s23 + $0x1360] sm:$0xff] }
 0x5bd   : > { %7271 = vmatpush1.bf16.msra.mxu0 %v10910_v36  ;;  %v11490_v36 = vcombine.low %v11226_v49, %v11230_v50  ;;  %v3403_v49 = vld [vmem:[%s14573_s23 + $0x290] sm:$0xff] }
 0x5be   : > { %7272 = vmatprep.subr.bf16.mxu0 %v10919_v5  ;;  %v11499_v5 = vcombine.high %v11234_v55, %v11238_v63  ;;  %v3407_v50 = vld [vmem:[%s14573_s23 + $0x2b0] sm:$0xff] }
 0x5bf   : > { %9125 = vmatpush1.bf16.msra.mxu1 %v11458_v7  ;;  %v10950_v7 = vcombine.low %v3371_v24, %v3375_v57  ;;  %v10983_v24 = vcombine.high %v3403_v49, %v3407_v50  ;;  %v11522_v57 = vcombine.low %v11258_v27, %v11262_v19 }
 0x5c0   : > { %9126 = vmatprep.subr.bf16.mxu1 %v11467_v14  ;;  %v10959_v14 = vcombine.high %v3379_v37, %v3383_v51 }
 0x5c1   : > { %7273 = vmatpush1.bf16.msra.mxu0 %v10918_v18  ;;  %v11498_v18 = vcombine.low %v11234_v55, %v11238_v63  ;;  %v10982_v63 = vcombine.low %v3403_v49, %v3407_v50 }
 0x5c2   : > { %7274 = vmatprep.subr.bf16.mxu0 %v10927_v23  ;;  %v11507_v23 = vcombine.high %v11242_v17, %v11246_v58 }
 0x5c3   : > { %9127 = vmatpush1.bf16.msra.mxu1 %v11466_v25  ;;  %v10958_v25 = vcombine.low %v3379_v37, %v3383_v51 }
 0x5c4   : > { %v15667_v28 = vpop.f32.mrb[20].mxu1  ;;  %9128 = vmatprep.subr.bf16.mxu1 %v11475_v10  ;;  %v10967_v10 = vcombine.high %v3387_v20, %v3391_v35 }
 0x5c5   : > { %7275 = vmatpush1.bf16.msra.mxu0 %v10926_v48  ;;  %v15669_v44 = vpop.f32.mrb[21].mxu1  ;;  %v11506_v48 = vcombine.low %v11242_v17, %v11246_v58 }
 0x5c6   : > { %7276 = vmatprep.subr.bf16.mxu0 %v10935_v12  ;;  %v7101_v0 = vpop.f32.mrb[22].mxu1  ;;  %v11515_v12 = vcombine.high %v11250_v8, %v11254_v53 }
 0x5c7   : > { %9129 = vmatpush1.bf16.msra.mxu1 %v11474_v39  ;;  %v7102_v56 = vpop.f32.mrb[23].mxu1  ;;  %v10966_v39 = vcombine.low %v3387_v20, %v3391_v35  ;;  %v11523_v0 = vcombine.high %v11258_v27, %v11262_v19 }
 0x5c8   : > { %9130 = vmatprep.subr.bf16.mxu1 %v11483_v41  ;;  %v10975_v41 = vcombine.high %v3395_v32, %v3399_v33  ;;  %v11266_v56 = vld [vmem:[%s14573_s23 + $0x1380] sm:$0xff] }
 0x5c9   : > { %7277 = vmatpush1.bf16.msra.mxu0 %v10934_v22  ;;  %v11514_v22 = vcombine.low %v11250_v8, %v11254_v53 }
 0x5ca   : > { %7278 = vmatprep.subr.bf16.mxu0 %v10943_v52  ;;  %v10974_v52 = vcombine.low %v3395_v32, %v3399_v33 }
 0x5cb   : > { %9131 = vmatpush1.bf16.msra.mxu1 %v11482_v54  ;;  %v11270_v54 = vld [vmem:[%s14573_s23 + $0x13a0] sm:$0xff] }
 0x5cc   : > { %9132 = vmatprep.subr.bf16.mxu1 %v11491_v40  ;;  %v3411_v40 = vld [vmem:[%s14573_s23 + $0x2d0] sm:$0xff]  ;;  %v11531_v55 = vcombine.high %v11266_v56, %v11270_v54  ;;  %v11530_v51 = vcombine.low %v11266_v56, %v11270_v54 }
 0x5cd   : > { %7279 = vmatpush1.bf16.msra.mxu0 %v10942_v45  ;;  %v3415_v45 = vld [vmem:[%s14573_s23 + $0x2f0] sm:$0xff] }
 0x5ce   : > { %7280 = vmatprep.subr.bf16.mxu0 %v10951_v1  ;;  %v11274_v1 = vld [vmem:[%s14573_s23 + $0x13c0] sm:$0xff]  ;;  %v10991_v37 = vcombine.high %v3411_v40, %v3415_v45  ;;  %v10990_v58 = vcombine.low %v3411_v40, %v3415_v45  ;;  %v11303_v40 = vld [vmem:[%s14573_s23 + $0x14a8] sm:$0xff] }
 0x5cf   : > { %9133 = vmatpush1.bf16.msra.mxu1 %v11490_v36  ;;  %v11278_v36 = vld [vmem:[%s14573_s23 + $0x13e0] sm:$0xff] }
 0x5d0   : > { %9134 = vmatprep.subr.bf16.mxu1 %v11499_v5  ;;  %v3419_v5 = vld [vmem:[%s14573_s23 + $0x310] sm:$0xff]  ;;  %v11539_v17 = vcombine.high %v11274_v1, %v11278_v36  ;;  %v11538_v35 = vcombine.low %v11274_v1, %v11278_v36  ;;  %v15717_v1 = vpack.c.bf16 %v15073_v42, %v15073_v42  ;;  %v3324_v42 = vld [vmem:[%s14573_s23 + $0x18] sm:$0xff] }
 0x5d1   : > { %7281 = vmatpush1.bf16.msra.mxu0 %v10950_v7  ;;  %v3423_v7 = vld [vmem:[%s14573_s23 + $0x330] sm:$0xff] }
 0x5d2   : > { %7282 = vmatprep.subr.bf16.mxu0 %v10959_v14  ;;  %v11282_v14 = vld [vmem:[%s14573_s23 + $0x1400] sm:$0xff]  ;;  %v10999_v20 = vcombine.high %v3419_v5, %v3423_v7  ;;  %v10998_v53 = vcombine.low %v3419_v5, %v3423_v7 }
 0x5d3   : > { %9135 = vmatpush1.bf16.msra.mxu1 %v11498_v18  ;;  %v11286_v18 = vld [vmem:[%s14573_s23 + $0x1420] sm:$0xff] }
 0x5d4   : > { %9136 = vmatprep.subr.bf16.mxu1 %v11507_v23  ;;  %v3427_v23 = vld [vmem:[%s14573_s23 + $0x350] sm:$0xff]  ;;  %v11547_v8 = vcombine.high %v11282_v14, %v11286_v18  ;;  %v11546_v33 = vcombine.low %v11282_v14, %v11286_v18 }
 0x5d5   : > { %7283 = vmatpush1.bf16.msra.mxu0 %v10958_v25  ;;  %v3431_v25 = vld [vmem:[%s14573_s23 + $0x370] sm:$0xff] }
 0x5d6   : > { %7284 = vmatprep.subr.bf16.mxu0 %v10967_v10  ;;  %v11290_v10 = vld [vmem:[%s14573_s23 + $0x1440] sm:$0xff]  ;;  %v11007_v32 = vcombine.high %v3427_v23, %v3431_v25  ;;  %v11006_v19 = vcombine.low %v3427_v23, %v3431_v25  ;;  %v11307_v23 = vld [vmem:[%s14573_s23 + $0x14c8] sm:$0xff] }
 0x5d7   : > { %9137 = vmatpush1.bf16.msra.mxu1 %v11506_v48  ;;  %v11294_v48 = vld [vmem:[%s14573_s23 + $0x1460] sm:$0xff]  ;;  %v11311_v25 = vld [vmem:[%s14573_s23 + $0x14e8] sm:$0xff] }
 0x5d8   : > { %9138 = vmatprep.subr.bf16.mxu1 %v11515_v12  ;;  %v3435_v12 = vld [vmem:[%s14573_s23 + $0x390] sm:$0xff]  ;;  %v11555_v27 = vcombine.high %v11290_v10, %v11294_v48  ;;  %v11554_v50 = vcombine.low %v11290_v10, %v11294_v48 }
 0x5d9   : > { %7285 = vmatpush1.bf16.msra.mxu0 %v10966_v39  ;;  %v3439_v39 = vld [vmem:[%s14573_s23 + $0x3b0] sm:$0xff] }
 0x5da   : > { %7286 = vmatprep.subr.bf16.mxu0 %v10975_v41  ;;  %v11426_v41 = vld [vmem:[%s14573_s23 + $0x1880] sm:$0xff]  ;;  %v11015_v49 = vcombine.high %v3435_v12, %v3439_v39 }
 0x5db   : > { %9139 = vmatpush1.bf16.msra.mxu1 %v11514_v22  ;;  %v11430_v22 = vld [vmem:[%s14573_s23 + $0x18a0] sm:$0x33] }
 0x5dc   : > { %9140 = vmatprep.subr.bf16.mxu1 %v11523_v0  ;;  %v3443_v0 = vld [vmem:[%s14573_s23 + $0x3d0] sm:$0xff]  ;;  %v11691_v56 = vcombine.high %v11426_v41, %v11430_v22  ;;  %v11690_v54 = vcombine.low %v11426_v41, %v11430_v22 }
 0x5dd   : > { %7287 = vmatpush1.bf16.msra.mxu0 %v10974_v52  ;;  %v3447_v52 = vld [vmem:[%s14573_s23 + $0x3f0] sm:$0xff] }
 0x5de   : > { %7288 = vmatprep.subr.bf16.mxu0 %v10983_v24  ;;  %v11014_v24 = vcombine.low %v3435_v12, %v3439_v39  ;;  %v11023_v45 = vcombine.high %v3443_v0, %v3447_v52  ;;  %v9095_v36 = vsel %vm5166_vm5, %v11690_v54, 0  ;;  %v11319_v12 = vld [vmem:[%s14573_s23 + $0x1528] sm:$0xff] }
 0x5df   : > { %9141 = vmatpush1.bf16.msra.mxu1 %v11522_v57  ;;  %v11299_v57 = vld [vmem:[%s14573_s23 + $0x1488] sm:$0xff] }
 0x5e0   : > { %9142 = vmatprep.subr.bf16.mxu1 %v11531_v55  ;;  %v3579_v55 = vld [vmem:[%s14573_s23 + $0x810] sm:$0xff]  ;;  %v11564_v48 = vcombine.low %v11299_v57, %v11303_v40 }
 0x5e1   : > { %7289 = vmatpush1.bf16.msra.mxu0 %v10982_v63  ;;  %v3583_v63 = vld [vmem:[%s14573_s23 + $0x830] sm:$0x33] }
 0x5e2   : > { %7290 = vmatprep.subr.bf16.mxu0 %v10991_v37  ;;  %v11565_v37 = vcombine.high %v11299_v57, %v11303_v40  ;;  %v11159_v5 = vcombine.high %v3579_v55, %v3583_v63  ;;  %v11158_v7 = vcombine.low %v3579_v55, %v3583_v63  ;;  %v3340_v40 = vld [vmem:[%s14573_s23 + $0x98] sm:$0xff] }
 0x5e3   : > { %9143 = vmatpush1.bf16.msra.mxu1 %v11530_v51  ;;  %v11022_v51 = vcombine.low %v3443_v0, %v3447_v52  ;;  %v11323_v52 = vld [vmem:[%s14573_s23 + $0x1548] sm:$0xff] }
 0x5e4   : > { %9144 = vmatprep.subr.bf16.mxu1 %v11539_v17 }
 0x5e5   : > { %7291 = vmatpush1.bf16.msra.mxu0 %v10990_v58  ;;  %v3328_v58 = vld [vmem:[%s14573_s23 + $0x38] sm:$0xff] }
 0x5e6   : > { %7292 = vmatprep.subr.bf16.mxu0 %v10999_v20  ;;  %v10905_v10 = vcombine.high %v3324_v42, %v3328_v58 }
 0x5e7   : > { %9145 = vmatpush1.bf16.msra.mxu1 %v11538_v35 }
 0x5e8   : > { %9146 = vmatprep.subr.bf16.mxu1 %v11547_v8 }
 0x5e9   : > { %7293 = vmatpush1.bf16.msra.mxu0 %v10998_v53  ;;  %v7011_v53 = vsel %vm5166_vm5, %v11158_v7, 0  ;;  %v3348_v7 = vld [vmem:[%s14573_s23 + $0xd8] sm:$0xff] }
 0x5ea   : > { %7294 = vmatprep.subr.bf16.mxu0 %v11007_v32  ;;  %v15738_v32 = vpack.c.bf16 %v15139_v9, %v15139_v9  ;;  %v3336_v9 = vld [vmem:[%s14573_s23 + $0x78] sm:$0xff] }
 0x5eb   : > { %9147 = vmatpush1.bf16.msra.mxu1 %v11546_v33  ;;  %v11315_v33 = vld [vmem:[%s14573_s23 + $0x1508] sm:$0xff] }
 0x5ec   : > { %9148 = vmatprep.subr.bf16.mxu1 %v11555_v27  ;;  %v3332_v27 = vld [vmem:[%s14573_s23 + $0x58] sm:$0xff]  ;;  %v11581_v22 = vcombine.high %v11315_v33, %v11319_v12  ;;  %v11580_v57 = vcombine.low %v11315_v33, %v11319_v12  ;;  %v11347_v33 = vld [vmem:[%s14573_s23 + $0x1608] sm:$0xff] }
 0x5ed   : > { %7295 = vmatpush1.bf16.msra.mxu0 %v11006_v19  ;;  %v10912_v63 = vcombine.low %v3332_v27, %v3336_v9  ;;  %v11351_v12 = vld [vmem:[%s14573_s23 + $0x1628] sm:$0xff] }
 0x5ee   : > { %7296 = vmatprep.subr.bf16.mxu0 %v11015_v49 }
 0x5ef   : > { %9149 = vmatpush1.bf16.msra.mxu1 %v11554_v50  ;;  %v10904_v50 = vcombine.low %v3324_v42, %v3328_v58 }
 0x5f0   : > { %11698 = vmatprep.subr.msk.bf16.mxu1 %vm5166_vm5, %v11691_v56  ;;  %v11327_v56 = vld [vmem:[%s14573_s23 + $0x1568] sm:$0xff] }
 0x5f1   : > { %7297 = vmatpush1.bf16.msra.mxu0 %v11014_v24  ;;  %v10913_v24 = vcombine.high %v3332_v27, %v3336_v9  ;;  %v11589_v55 = vcombine.high %v11323_v52, %v11327_v56  ;;  %v3364_v27 = vld [vmem:[%s14573_s23 + $0x158] sm:$0xff] }
 0x5f2   : > { %7298 = vmatprep.subr.bf16.mxu0 %v11023_v45  ;;  %9151 = vmatmul.mubr.bf16.vlgmr.msra.gmra.mrb[36].mxu1 %v15717_v1  ;;  %v3344_v45 = vld [vmem:[%s14573_s23 + $0xb8] sm:$0xff] }
 0x5f3   : > { %v5594_v17 = vpop.f32.mrb[40].mxu0  ;;  %9201 = vmatpush1.bf16.msra.mxu1 %v9095_v36  ;;  %9232 = vmatprep.mubr.bf16.mxu1 %v12869_v2  ;;  %v11331_v36 = vld [vmem:[%s14573_s23 + $0x1588] sm:$0xff]  ;;  %v3368_v9 = vld [vmem:[%s14573_s23 + $0x178] sm:$0xff] }
 0x5f4   : > { %v5636_v14 = vadd.f32 %v15582_v3, %v5594_v17  ;;  %v5596_v18 = vpop.f32.mrb[41].mxu0  ;;  %9282 = vmatprep.subr.bf16.mxu1 %v11565_v37  ;;  %v15734_v3 = vpack.c.bf16 %v14978_v43, %v14978_v43  ;;  %v11572_v43 = vcombine.low %v11307_v23, %v11311_v25  ;;  %v11335_v37 = vld [vmem:[%s14573_s23 + $0x15a8] sm:$0xff]  ;;  %v3352_v17 = vld [vmem:[%s14573_s23 + $0xf8] sm:$0xff] }
 0x5f5   : > { %7299 = vmatpush1.bf16.msra.mxu0 %v11022_v51  ;;  %v5638_v20 = vadd.f32 %v15584_v31, %v5596_v18  ;;  %v5598_v35 = vpop.f32.mrb[42].mxu0  ;;  %v11573_v31 = vcombine.high %v11307_v23, %v11311_v25  ;;  %v10921_v51 = vcombine.high %v3340_v40, %v3344_v45  ;;  %v11597_v58 = vcombine.high %v11331_v36, %v11335_v37  ;;  %v11339_v18 = vld [vmem:[%s14573_s23 + $0x15c8] sm:$0xff] }
 0x5f6   : > { %11166 = vmatprep.subr.msk.bf16.mxu0 %vm5166_vm5, %v11159_v5  ;;  %v5599_v8 = vpop.f32.mrb[43].mxu0  ;;  %v11588_v5 = vcombine.low %v11323_v52, %v11327_v56  ;;  %v10929_v23 = vcombine.high %v3348_v7, %v3352_v17  ;;  %v10945_v52 = vcombine.high %v3364_v27, %v3368_v9  ;;  %v11612_v56 = vcombine.low %v11347_v33, %v11351_v12 }
 0x5f7   : > { %v11596_v8 = vcombine.low %v11331_v36, %v11335_v37  ;;  %v3380_v37 = vld [vmem:[%s14573_s23 + $0x1d8] sm:$0xff] }
 0x5f8   : > { %7301 = vmatmul.mubr.bf16.vlgmr.msra.gmra.mrb[64].mxu0 %v15533_v38 }
 0x5f9   : > { %7351 = vmatpush1.bf16.msra.mxu0 %v7011_v53  ;;  %7382 = vmatprep.mubr.bf16.mxu0 %v12869_v2  ;;  %v3356_v53 = vld [vmem:[%s14573_s23 + $0x118] sm:$0xff] }
 0x5fa   : > { %11699 = vmatmul.mubr.msk.bf16.vlgmr.msra.gmra.mrb[40].mxu1 %vm5162_vm6, %v15734_v3  ;;  %7391 = vmatprep.subr.bf16.mxu0 %v10905_v10  ;;  %v3360_v10 = vld [vmem:[%s14573_s23 + $0x138] sm:$0xff] }
 0x5fb   : > { %9283 = vmatpush1.bf16.msra.mxu1 %v11564_v48  ;;  %v5676_v39 = vpop.f32.mrb[44].mxu0  ;;  %9314 = vmatprep.mubr.bf16.mxu1 %v15738_v32 }
 0x5fc   : > { %v15748_v19 = vadd.f32 %v5676_v39, %v5636_v14  ;;  %v5678_v41 = vpop.f32.mrb[45].mxu0  ;;  %9284 = vmatprep.subr.bf16.mxu1 %v11573_v31  ;;  %v10920_v14 = vcombine.low %v3340_v40, %v3344_v45  ;;  %v10928_v31 = vcombine.low %v3348_v7, %v3352_v17  ;;  %v10937_v39 = vcombine.high %v3356_v53, %v3360_v10  ;;  %v11363_v45 = vld [vmem:[%s14573_s23 + $0x1688] sm:$0xff] }
 0x5fd   : > { %v15750_v49 = vadd.f32 %v5678_v41, %v5638_v20  ;;  %v5680_v0 = vpop.f32.mrb[46].mxu0  ;;  %v11343_v20 = vld [vmem:[%s14573_s23 + $0x15e8] sm:$0xff]  ;;  %v11613_v41 = vcombine.high %v11347_v33, %v11351_v12  ;;  %v10944_v40 = vcombine.low %v3364_v27, %v3368_v9  ;;  %v3400_v33 = vld [vmem:[%s14573_s23 + $0x278] sm:$0xff] }
 0x5fe   : > { %v5681_v54 = vpop.f32.mrb[47].mxu0  ;;  %v11605_v48 = vcombine.high %v11339_v18, %v11343_v20  ;;  %v11359_v0 = vld [vmem:[%s14573_s23 + $0x1668] sm:$0xff] }
 0x5ff   : > { %9285 = vmatpush1.bf16.msra.mxu1 %v11572_v43  ;;  %v11604_v43 = vcombine.low %v11339_v18, %v11343_v20  ;;  %v3372_v54 = vld [vmem:[%s14573_s23 + $0x198] sm:$0xff]  ;;  %v11371_v17 = vld [vmem:[%s14573_s23 + $0x16c8] sm:$0xff] }
 0x600   : > { %11167 = vmatmul.mubr.msk.bf16.vlgmr.msra.gmra.mrb[68].mxu0 %vm5162_vm6, %v15553_v4  ;;  %9286 = vmatprep.subr.bf16.mxu1 %v11581_v22  ;;  %v10936_v22 = vcombine.low %v3356_v53, %v3360_v10  ;;  %v3388_v20 = vld [vmem:[%s14573_s23 + $0x218] sm:$0xff]  ;;  %v11383_v53 = vld [vmem:[%s14573_s23 + $0x1728] sm:$0xff] }
 0x601   : > { %7392 = vmatpush1.bf16.msra.mxu0 %v10904_v50  ;;  %7423 = vmatprep.mubr.bf16.mxu0 %v15449_v16  ;;  %v11355_v50 = vld [vmem:[%s14573_s23 + $0x1648] sm:$0xff] }
 0x602   : > { %7393 = vmatprep.subr.bf16.mxu0 %v10913_v24  ;;  %v3376_v24 = vld [vmem:[%s14573_s23 + $0x1b8] sm:$0xff]  ;;  %v11620_v36 = vcombine.low %v11355_v50, %v11359_v0  ;;  %v11391_v27 = vld [vmem:[%s14573_s23 + $0x1768] sm:$0xff] }
 0x603   : > { %9287 = vmatpush1.bf16.msra.mxu1 %v11580_v57  ;;  %v11621_v57 = vcombine.high %v11355_v50, %v11359_v0  ;;  %v10952_v7 = vcombine.low %v3372_v54, %v3376_v24  ;;  %v3408_v50 = vld [vmem:[%s14573_s23 + $0x2b8] sm:$0xff] }
 0x604   : > { %v15763_v42 = vpop.f32.mrb[24].mxu1  ;;  %9288 = vmatprep.subr.bf16.mxu1 %v11589_v55  ;;  %v11367_v55 = vld [vmem:[%s14573_s23 + $0x16a8] sm:$0xff] }
 0x605   : > { %7394 = vmatpush1.bf16.msra.mxu0 %v10912_v63  ;;  %v15765_v16 = vpop.f32.mrb[25].mxu1  ;;  %v10953_v63 = vcombine.high %v3372_v54, %v3376_v24  ;;  %v11628_v18 = vcombine.low %v11363_v45, %v11367_v55  ;;  %v11399_v54 = vld [vmem:[%s14573_s23 + $0x17a8] sm:$0xff] }
 0x606   : > { %7395 = vmatprep.subr.bf16.mxu0 %v10921_v51  ;;  %v7224_v35 = vpop.f32.mrb[26].mxu1  ;;  %v3384_v51 = vld [vmem:[%s14573_s23 + $0x1f8] sm:$0xff] }
 0x607   : > { %9289 = vmatpush1.bf16.msra.mxu1 %v11588_v5  ;;  %v7225_v25 = vpop.f32.mrb[27].mxu1  ;;  %v11629_v5 = vcombine.high %v11363_v45, %v11367_v55  ;;  %v3392_v35 = vld [vmem:[%s14573_s23 + $0x238] sm:$0xff] }
 0x608   : > { %9290 = vmatprep.subr.bf16.mxu1 %v11597_v58  ;;  %v11375_v58 = vld [vmem:[%s14573_s23 + $0x16e8] sm:$0xff]  ;;  %v10960_v25 = vcombine.low %v3380_v37, %v3384_v51  ;;  %v10969_v10 = vcombine.high %v3388_v20, %v3392_v35  ;;  %v3416_v45 = vld [vmem:[%s14573_s23 + $0x2f8] sm:$0xff] }
 0x609   : > { %7396 = vmatpush1.bf16.msra.mxu0 %v10920_v14  ;;  %v10961_v14 = vcombine.high %v3380_v37, %v3384_v51  ;;  %v11407_v37 = vld [vmem:[%s14573_s23 + $0x17e8] sm:$0xff] }
 0x60a   : > { %7397 = vmatprep.subr.bf16.mxu0 %v10929_v23  ;;  %v11637_v23 = vcombine.high %v11371_v17, %v11375_v58 }
 0x60b   : > { %9291 = vmatpush1.bf16.msra.mxu1 %v11596_v8  ;;  %v11379_v8 = vld [vmem:[%s14573_s23 + $0x1708] sm:$0xff] }
 0x60c   : > { %9292 = vmatprep.subr.bf16.mxu1 %v11605_v48  ;;  %v11636_v48 = vcombine.low %v11371_v17, %v11375_v58  ;;  %v11645_v12 = vcombine.high %v11379_v8, %v11383_v53  ;;  %v3424_v17 = vld [vmem:[%s14573_s23 + $0x338] sm:$0xff] }
 0x60d   : > { %7398 = vmatpush1.bf16.msra.mxu0 %v10928_v31  ;;  %v3396_v31 = vld [vmem:[%s14573_s23 + $0x258] sm:$0xff] }
 0x60e   : > { %7399 = vmatprep.subr.bf16.mxu0 %v10937_v39  ;;  %v10968_v39 = vcombine.low %v3388_v20, %v3392_v35  ;;  %v10977_v9 = vcombine.high %v3396_v31, %v3400_v33  ;;  %v11415_v20 = vld [vmem:[%s14573_s23 + $0x1828] sm:$0xff] }
 0x60f   : > { %9293 = vmatpush1.bf16.msra.mxu1 %v11604_v43  ;;  %v11387_v43 = vld [vmem:[%s14573_s23 + $0x1748] sm:$0xff] }
 0x610   : > { %9294 = vmatprep.subr.bf16.mxu1 %v11613_v41  ;;  %v11644_v41 = vcombine.low %v11379_v8, %v11383_v53  ;;  %v11653_v0 = vcombine.high %v11387_v43, %v11391_v27  ;;  %v3432_v8 = vld [vmem:[%s14573_s23 + $0x378] sm:$0xff] }
 0x611   : > { %7400 = vmatpush1.bf16.msra.mxu0 %v10936_v22  ;;  %v3404_v22 = vld [vmem:[%s14573_s23 + $0x298] sm:$0xff] }
 0x612   : > { %7401 = vmatprep.subr.bf16.mxu0 %v10945_v52  ;;  %v10976_v52 = vcombine.low %v3396_v31, %v3400_v33  ;;  %v10985_v24 = vcombine.high %v3404_v22, %v3408_v50  ;;  %v11423_v31 = vld [vmem:[%s14573_s23 + $0x1868] sm:$0xff] }
 0x613   : > { %9295 = vmatpush1.bf16.msra.mxu1 %v11612_v56  ;;  %v11395_v56 = vld [vmem:[%s14573_s23 + $0x1788] sm:$0xff] }
 0x614   : > { %9296 = vmatprep.subr.bf16.mxu1 %v11621_v57  ;;  %v11652_v57 = vcombine.low %v11387_v43, %v11391_v27  ;;  %v11661_v55 = vcombine.high %v11395_v56, %v11399_v54  ;;  %v3440_v43 = vld [vmem:[%s14573_s23 + $0x3b8] sm:$0xff] }
 0x615   : > { %7402 = vmatpush1.bf16.msra.mxu0 %v10944_v40  ;;  %v3412_v40 = vld [vmem:[%s14573_s23 + $0x2d8] sm:$0xff] }
 0x616   : > { %7403 = vmatprep.subr.bf16.mxu0 %v10953_v63  ;;  %v10984_v63 = vcombine.low %v3404_v22, %v3408_v50  ;;  %v10993_v51 = vcombine.high %v3412_v40, %v3416_v45  ;;  %v11176_v22 = vld [vmem:[%s14573_s23 + $0x10b0] sm:$0xff] }
 0x617   : > { %9297 = vmatpush1.bf16.msra.mxu1 %v11620_v36  ;;  %v11403_v36 = vld [vmem:[%s14573_s23 + $0x17c8] sm:$0xff] }
 0x618   : > { %9298 = vmatprep.subr.bf16.mxu1 %v11629_v5  ;;  %v11660_v5 = vcombine.low %v11395_v56, %v11399_v54  ;;  %v11669_v58 = vcombine.high %v11403_v36, %v11407_v37  ;;  %v3448_v56 = vld [vmem:[%s14573_s23 + $0x3f8] sm:$0xff] }
 0x619   : > { %7404 = vmatpush1.bf16.msra.mxu0 %v10952_v7  ;;  %v3420_v7 = vld [vmem:[%s14573_s23 + $0x318] sm:$0xff] }
 0x61a   : > { %7405 = vmatprep.subr.bf16.mxu0 %v10961_v14  ;;  %v10992_v14 = vcombine.low %v3412_v40, %v3416_v45  ;;  %v11001_v35 = vcombine.high %v3420_v7, %v3424_v17  ;;  %v11184_v40 = vld [vmem:[%s14573_s23 + $0x10f0] sm:$0xff] }
 0x61b   : > { %9299 = vmatpush1.bf16.msra.mxu1 %v11628_v18  ;;  %v11411_v18 = vld [vmem:[%s14573_s23 + $0x1808] sm:$0xff] }
 0x61c   : > { %9300 = vmatprep.subr.bf16.mxu1 %v11637_v23  ;;  %v11668_v23 = vcombine.low %v11403_v36, %v11407_v37  ;;  %v11677_v53 = vcombine.high %v11411_v18, %v11415_v20  ;;  %v3584_v36 = vld [vmem:[%s14573_s23 + $0x838] sm:$0x33]  ;;  %v15821_v37 = vpack.c.bf16 %v15150_v15, %v15150_v15 }
 0x61d   : > { %7406 = vmatpush1.bf16.msra.mxu0 %v10960_v25  ;;  %v3428_v25 = vld [vmem:[%s14573_s23 + $0x358] sm:$0xff] }
 0x61e   : > { %7407 = vmatprep.subr.bf16.mxu0 %v10969_v10  ;;  %v11000_v10 = vcombine.low %v3420_v7, %v3424_v17  ;;  %v11009_v33 = vcombine.high %v3428_v25, %v3432_v8  ;;  %v11188_v7 = vld [vmem:[%s14573_s23 + $0x1110] sm:$0xff] }
 0x61f   : > { %9301 = vmatpush1.bf16.msra.mxu1 %v11636_v48  ;;  %v11419_v48 = vld [vmem:[%s14573_s23 + $0x1848] sm:$0xff]  ;;  %v11192_v17 = vld [vmem:[%s14573_s23 + $0x1130] sm:$0xff] }
 0x620   : > { %9302 = vmatprep.subr.bf16.mxu1 %v11645_v12  ;;  %v11676_v12 = vcombine.low %v11411_v18, %v11415_v20  ;;  %v11685_v27 = vcombine.high %v11419_v48, %v11423_v31  ;;  %v11298_v20 = vld [vmem:[%s14573_s23 + $0x1480] sm:$0xff] }
 0x621   : > { %7408 = vmatpush1.bf16.msra.mxu0 %v10968_v39  ;;  %v3436_v39 = vld [vmem:[%s14573_s23 + $0x398] sm:$0xff] }
 0x622   : > { %7409 = vmatprep.subr.bf16.mxu0 %v10977_v9  ;;  %v11008_v9 = vcombine.low %v3428_v25, %v3432_v8  ;;  %v11017_v50 = vcombine.high %v3436_v39, %v3440_v43  ;;  %v11455_v8 = vcombine.high %v11188_v7, %v11192_v17 }
 0x623   : > { %9303 = vmatpush1.bf16.msra.mxu1 %v11644_v41  ;;  %v11172_v41 = vld [vmem:[%s14573_s23 + $0x1090] sm:$0xff] }
 0x624   : > { %9304 = vmatprep.subr.bf16.mxu1 %v11653_v0  ;;  %v11684_v0 = vcombine.low %v11419_v48, %v11423_v31  ;;  %v11439_v54 = vcombine.high %v11172_v41, %v11176_v22  ;;  %v11196_v48 = vld [vmem:[%s14573_s23 + $0x1150] sm:$0xff] }
 0x625   : > { %7410 = vmatpush1.bf16.msra.mxu0 %v10976_v52  ;;  %v3444_v52 = vld [vmem:[%s14573_s23 + $0x3d8] sm:$0xff]  ;;  %v11200_v31 = vld [vmem:[%s14573_s23 + $0x1170] sm:$0xff] }
 0x626   : > { %7411 = vmatprep.subr.bf16.mxu0 %v10985_v24  ;;  %v11016_v24 = vcombine.low %v3436_v39, %v3440_v43  ;;  %v11025_v45 = vcombine.high %v3444_v52, %v3448_v56  ;;  %v11454_v43 = vcombine.low %v11188_v7, %v11192_v17  ;;  %v11314_v7 = vld [vmem:[%s14573_s23 + $0x1500] sm:$0xff] }
 0x627   : > { %9305 = vmatpush1.bf16.msra.mxu1 %v11652_v57  ;;  %v11180_v57 = vld [vmem:[%s14573_s23 + $0x10d0] sm:$0xff]  ;;  %v11318_v17 = vld [vmem:[%s14573_s23 + $0x1520] sm:$0xff] }
 0x628   : > { %9306 = vmatprep.subr.bf16.mxu1 %v11661_v55  ;;  %v11438_v55 = vcombine.low %v11172_v41, %v11176_v22  ;;  %v11446_v15 = vcombine.low %v11180_v57, %v11184_v40  ;;  %v11208_v41 = vld [vmem:[%s14573_s23 + $0x11b0] sm:$0xff]  ;;  %v11462_v22 = vcombine.low %v11196_v48, %v11200_v31 }
 0x629   : > { %7412 = vmatpush1.bf16.msra.mxu0 %v10984_v63  ;;  %v3580_v63 = vld [vmem:[%s14573_s23 + $0x818] sm:$0xff] }
 0x62a   : > { %7413 = vmatprep.subr.bf16.mxu0 %v10993_v51  ;;  %v11447_v51 = vcombine.high %v11180_v57, %v11184_v40  ;;  %v11212_v40 = vld [vmem:[%s14573_s23 + $0x11d0] sm:$0xff] }
 0x62b   : > { %9307 = vmatpush1.bf16.msra.mxu1 %v11660_v5  ;;  %v11024_v5 = vcombine.low %v3444_v52, %v3448_v56 }
 0x62c   : > { %9308 = vmatprep.subr.bf16.mxu1 %v11669_v58  ;;  %v11161_v58 = vcombine.high %v3580_v63, %v3584_v36 }
 0x62d   : > { %7414 = vmatpush1.bf16.msra.mxu0 %v10992_v14  ;;  %v11160_v14 = vcombine.low %v3580_v63, %v3584_v36 }
 0x62e   : > { %7415 = vmatprep.subr.bf16.mxu0 %v11001_v35  ;;  %v11302_v35 = vld [vmem:[%s14573_s23 + $0x14a0] sm:$0xff] }
 0x62f   : > { %9309 = vmatpush1.bf16.msra.mxu1 %v11668_v23 }
 0x630   : > { %9310 = vmatprep.subr.bf16.mxu1 %v11677_v53 }
 0x631   : > { %7416 = vmatpush1.bf16.msra.mxu0 %v11000_v10 }
 0x632   : > { %7417 = vmatprep.subr.bf16.mxu0 %v11009_v33 }
 0x633   : > { %9311 = vmatpush1.bf16.msra.mxu1 %v11676_v12  ;;  %v7017_v12 = vsel %vm5166_vm5, %v11160_v14, 0 }
 0x634   : > { %9312 = vmatprep.subr.bf16.mxu1 %v11685_v27 }
 0x635   : > { %7418 = vmatpush1.bf16.msra.mxu0 %v11008_v9  ;;  %v11204_v9 = vld [vmem:[%s14573_s23 + $0x1190] sm:$0xff] }
 0x636   : > { %7419 = vmatprep.subr.bf16.mxu0 %v11017_v50  ;;  %v11306_v50 = vld [vmem:[%s14573_s23 + $0x14c0] sm:$0xff] }
 0x637   : > { %9313 = vmatpush1.bf16.msra.mxu1 %v11684_v0  ;;  %v11310_v0 = vld [vmem:[%s14573_s23 + $0x14e0] sm:$0xff] }
 0x638   : > { %9364 = vmatprep.subr.bf16.mxu1 %v11439_v54  ;;  %v11562_v54 = vcombine.low %v11298_v20, %v11302_v35  ;;  %v11571_v36 = vcombine.high %v11306_v50, %v11310_v0 }
 0x639   : > { %7420 = vmatpush1.bf16.msra.mxu0 %v11016_v24 }
 0x63a   : > { %7421 = vmatprep.subr.bf16.mxu0 %v11025_v45  ;;  %9315 = vmatmul.mubr.bf16.vlgmr.msra.gmra.mrb[44].mxu1 %v15821_v37  ;;  %v11216_v45 = vld [vmem:[%s14573_s23 + $0x11f0] sm:$0xff] }
 0x63b   : > { %v7056_v18 = vpop.f32.mrb[48].mxu0  ;;  %9365 = vmatpush1.bf16.msra.mxu1 %v11438_v55  ;;  %9396 = vmatprep.mubr.bf16.mxu1 %v15635_v46  ;;  %v11479_v14 = vcombine.high %v11212_v40, %v11216_v45 }
 0x63c   : > { %v7057_v23 = vadd.f32 %v7056_v18, %v15447_v21  ;;  %v7058_v25 = vpop.f32.mrb[49].mxu0  ;;  %9366 = vmatprep.subr.bf16.mxu1 %v11447_v51  ;;  %v11563_v21 = vcombine.high %v11298_v20, %v11302_v35  ;;  %v11570_v18 = vcombine.low %v11306_v50, %v11310_v0  ;;  %v11224_v20 = vld [vmem:[%s14573_s23 + $0x1230] sm:$0xff]  ;;  %v11579_v35 = vcombine.high %v11314_v7, %v11318_v17 }
 0x63d   : > { %7422 = vmatpush1.bf16.msra.mxu0 %v11024_v5  ;;  %v7059_v53 = vadd.f32 %v7058_v25, %v15454_v34  ;;  %v7060_v10 = vpop.f32.mrb[50].mxu0  ;;  %v11463_v34 = vcombine.high %v11196_v48, %v11200_v31  ;;  %v11470_v5 = vcombine.low %v11204_v9, %v11208_v41  ;;  %v11322_v25 = vld [vmem:[%s14573_s23 + $0x1540] sm:$0xff]  ;;  %v11232_v48 = vld [vmem:[%s14573_s23 + $0x1270] sm:$0xff] }
 0x63e   : > { %11168 = vmatprep.subr.msk.bf16.mxu0 %vm5166_vm5, %v11161_v58  ;;  %v7061_v33 = vpop.f32.mrb[51].mxu0  ;;  %v7098_v39 = vadd.f32 %v15667_v28, %v7057_v23  ;;  %v11478_v23 = vcombine.low %v11212_v40, %v11216_v45  ;;  %v11228_v10 = vld [vmem:[%s14573_s23 + $0x1250] sm:$0xff]  ;;  %v11346_v40 = vld [vmem:[%s14573_s23 + $0x1600] sm:$0xff] }
 0x63f   : > { %9367 = vmatpush1.bf16.msra.mxu1 %v11446_v15  ;;  %v7100_v27 = vadd.f32 %v15669_v44, %v7059_v53  ;;  %v11220_v15 = vld [vmem:[%s14573_s23 + $0x1210] sm:$0xff]  ;;  %v11578_v53 = vcombine.low %v11314_v7, %v11318_v17  ;;  %v11350_v45 = vld [vmem:[%s14573_s23 + $0x1620] sm:$0xff] }
 0x640   : > { %7424 = vmatmul.mubr.bf16.vlgmr.msra.gmra.mrb[72].mxu0 %v15533_v38  ;;  %9368 = vmatprep.subr.bf16.mxu1 %v11455_v8  ;;  %v11471_v38 = vcombine.high %v11204_v9, %v11208_v41  ;;  %v11326_v8 = vld [vmem:[%s14573_s23 + $0x1560] sm:$0xff]  ;;  %v11486_v33 = vcombine.low %v11220_v15, %v11224_v20  ;;  %v11494_v41 = vcombine.low %v11228_v10, %v11232_v48 }
 0x641   : > { %7474 = vmatpush1.bf16.msra.mxu0 %v7017_v12  ;;  %7505 = vmatprep.mubr.bf16.mxu0 %v12869_v2  ;;  %v11587_v31 = vcombine.high %v11322_v25, %v11326_v8  ;;  %v11330_v12 = vld [vmem:[%s14573_s23 + $0x1580] sm:$0xff]  ;;  %v11611_v7 = vcombine.high %v11346_v40, %v11350_v45 }
 0x642   : > { %9159 = vmatprep.subr.bf16.mxu0 %v11563_v21  ;;  %v11495_v21 = vcombine.high %v11228_v10, %v11232_v48  ;;  %v11268_v48 = vld [vmem:[%s14573_s23 + $0x1390] sm:$0xff] }
 0x643   : > { %v7138_v28 = vpop.f32.mrb[52].mxu0  ;;  %9369 = vmatpush1.bf16.msra.mxu1 %v11454_v43  ;;  %v11586_v43 = vcombine.low %v11322_v25, %v11326_v8  ;;  %v11362_v8 = vld [vmem:[%s14573_s23 + $0x1680] sm:$0xff] }
 0x644   : > { %v15843_v52 = vadd.f32 %v7138_v28, %v7098_v39  ;;  %v7140_v44 = vpop.f32.mrb[53].mxu0  ;;  %9370 = vmatprep.subr.bf16.mxu1 %v11463_v34  ;;  %v11334_v39 = vld [vmem:[%s14573_s23 + $0x15a0] sm:$0xff]  ;;  %v11240_v34 = vld [vmem:[%s14573_s23 + $0x12b0] sm:$0xff] }
 0x645   : > { %v15845_v56 = vadd.f32 %v7140_v44, %v7100_v27  ;;  %v7142_v24 = vpop.f32.mrb[54].mxu0  ;;  %v15847_v57 = vpop.f32.mrb[28].mxu1  ;;  %v11236_v27 = vld [vmem:[%s14573_s23 + $0x1290] sm:$0xff]  ;;  %v11595_v9 = vcombine.high %v11330_v12, %v11334_v39  ;;  %v11338_v28 = vld [vmem:[%s14573_s23 + $0x15c0] sm:$0xff]  ;;  %v11594_v0 = vcombine.low %v11330_v12, %v11334_v39 }
 0x646   : > { %v7143_v55 = vpop.f32.mrb[55].mxu0  ;;  %v15851_v63 = vpop.f32.mrb[29].mxu1  ;;  %v11503_v50 = vcombine.high %v11236_v27, %v11240_v34  ;;  %v11244_v44 = vld [vmem:[%s14573_s23 + $0x12d0] sm:$0xff]  ;;  %v11502_v24 = vcombine.low %v11236_v27, %v11240_v34  ;;  %v11370_v39 = vld [vmem:[%s14573_s23 + $0x16c0] sm:$0xff] }
 0x647   : > { %9371 = vmatpush1.bf16.msra.mxu1 %v11462_v22  ;;  %v7347_v51 = vpop.f32.mrb[30].mxu1  ;;  %v11342_v22 = vld [vmem:[%s14573_s23 + $0x15e0] sm:$0xff]  ;;  %v11276_v34 = vld [vmem:[%s14573_s23 + $0x13d0] sm:$0xff] }
 0x648   : > { %11169 = vmatmul.mubr.msk.bf16.vlgmr.msra.gmra.mrb[76].mxu0 %vm5162_vm6, %v15553_v4  ;;  %v7348_v58 = vpop.f32.mrb[31].mxu1  ;;  %9372 = vmatprep.subr.bf16.mxu1 %v11471_v38  ;;  %v11487_v4 = vcombine.high %v11220_v15, %v11224_v20  ;;  %v11248_v38 = vld [vmem:[%s14573_s23 + $0x12f0] sm:$0xff]  ;;  %v11610_v15 = vcombine.low %v11346_v40, %v11350_v45  ;;  %v11386_v45 = vld [vmem:[%s14573_s23 + $0x1740] sm:$0xff] }
 0x649   : > { %9160 = vmatpush1.bf16.msra.mxu0 %v11562_v54  ;;  %9191 = vmatprep.mubr.bf16.mxu0 %v15738_v32  ;;  %v11603_v54 = vcombine.high %v11338_v28, %v11342_v22  ;;  %v11511_v55 = vcombine.high %v11244_v44, %v11248_v38  ;;  %v11252_v51 = vld [vmem:[%s14573_s23 + $0x1310] sm:$0xff]  ;;  %v11510_v17 = vcombine.low %v11244_v44, %v11248_v38  ;;  %v11354_v58 = vld [vmem:[%s14573_s23 + $0x1640] sm:$0xff] }
 0x64a   : > { %9161 = vmatprep.subr.bf16.mxu0 %v11571_v36  ;;  %v11602_v36 = vcombine.low %v11338_v28, %v11342_v22  ;;  %v11260_v20 = vld [vmem:[%s14573_s23 + $0x1350] sm:$0xff]  ;;  %v11378_v22 = vld [vmem:[%s14573_s23 + $0x1700] sm:$0xff] }
 0x64b   : > { %9373 = vmatpush1.bf16.msra.mxu1 %v11470_v5  ;;  %v11256_v5 = vld [vmem:[%s14573_s23 + $0x1330] sm:$0xff] }
 0x64c   : > { %9374 = vmatprep.subr.bf16.mxu1 %v11479_v14  ;;  %v11358_v14 = vld [vmem:[%s14573_s23 + $0x1660] sm:$0xff]  ;;  %v11518_v25 = vcombine.low %v11252_v51, %v11256_v5  ;;  %v11284_v38 = vld [vmem:[%s14573_s23 + $0x1410] sm:$0xff] }
 0x64d   : > { %9162 = vmatpush1.bf16.msra.mxu0 %v11570_v18  ;;  %v11519_v18 = vcombine.high %v11252_v51, %v11256_v5  ;;  %v11618_v10 = vcombine.low %v11354_v58, %v11358_v14  ;;  %v11292_v5 = vld [vmem:[%s14573_s23 + $0x1450] sm:$0xff] }
 0x64e   : > { %9163 = vmatprep.subr.bf16.mxu0 %v11579_v35  ;;  %v11264_v35 = vld [vmem:[%s14573_s23 + $0x1370] sm:$0xff] }
 0x64f   : > { %9375 = vmatpush1.bf16.msra.mxu1 %v11478_v23  ;;  %v11619_v23 = vcombine.high %v11354_v58, %v11358_v14  ;;  %v11526_v12 = vcombine.low %v11260_v20, %v11264_v35  ;;  %v11394_v14 = vld [vmem:[%s14573_s23 + $0x1780] sm:$0xff] }
 0x650   : > { %9376 = vmatprep.subr.bf16.mxu1 %v11487_v4  ;;  %v11366_v4 = vld [vmem:[%s14573_s23 + $0x16a0] sm:$0xff] }
 0x651   : > { %9164 = vmatpush1.bf16.msra.mxu0 %v11578_v53  ;;  %v11527_v53 = vcombine.high %v11260_v20, %v11264_v35  ;;  %v11626_v27 = vcombine.low %v11362_v8, %v11366_v4  ;;  %v11428_v35 = vld [vmem:[%s14573_s23 + $0x1890] sm:$0xff] }
 0x652   : > { %9165 = vmatprep.subr.bf16.mxu0 %v11587_v31  ;;  %v11272_v31 = vld [vmem:[%s14573_s23 + $0x13b0] sm:$0xff] }
 0x653   : > { %9377 = vmatpush1.bf16.msra.mxu1 %v11486_v33  ;;  %v11627_v33 = vcombine.high %v11362_v8, %v11366_v4  ;;  %v11534_v28 = vcombine.low %v11268_v48, %v11272_v31  ;;  %v11402_v4 = vld [vmem:[%s14573_s23 + $0x17c0] sm:$0xff] }
 0x654   : > { %9378 = vmatprep.subr.bf16.mxu1 %v11495_v21  ;;  %v11374_v21 = vld [vmem:[%s14573_s23 + $0x16e0] sm:$0xff] }
 0x655   : > { %9166 = vmatpush1.bf16.msra.mxu0 %v11586_v43  ;;  %v11535_v43 = vcombine.high %v11268_v48, %v11272_v31  ;;  %v11634_v44 = vcombine.low %v11370_v39, %v11374_v21 }
 0x656   : > { %9167 = vmatprep.subr.bf16.mxu0 %v11595_v9  ;;  %v11280_v9 = vld [vmem:[%s14573_s23 + $0x13f0] sm:$0xff] }
 0x657   : > { %9379 = vmatpush1.bf16.msra.mxu1 %v11494_v41  ;;  %v11635_v41 = vcombine.high %v11370_v39, %v11374_v21  ;;  %v11542_v40 = vcombine.low %v11276_v34, %v11280_v9  ;;  %v11410_v21 = vld [vmem:[%s14573_s23 + $0x1800] sm:$0xff] }
 0x658   : > { %9380 = vmatprep.subr.bf16.mxu1 %v11503_v50  ;;  %v11382_v50 = vld [vmem:[%s14573_s23 + $0x1720] sm:$0xff] }
 0x659   : > { %9168 = vmatpush1.bf16.msra.mxu0 %v11594_v0  ;;  %v11543_v0 = vcombine.high %v11276_v34, %v11280_v9  ;;  %v11642_v51 = vcombine.low %v11378_v22, %v11382_v50 }
 0x65a   : > { %9169 = vmatprep.subr.bf16.mxu0 %v11603_v54  ;;  %v11288_v54 = vld [vmem:[%s14573_s23 + $0x1430] sm:$0xff] }
 0x65b   : > { %9381 = vmatpush1.bf16.msra.mxu1 %v11502_v24  ;;  %v11643_v24 = vcombine.high %v11378_v22, %v11382_v50  ;;  %v11550_v58 = vcombine.low %v11284_v38, %v11288_v54  ;;  %v11422_v22 = vld [vmem:[%s14573_s23 + $0x1860] sm:$0xff] }
 0x65c   : > { %9382 = vmatprep.subr.bf16.mxu1 %v11511_v55  ;;  %v11390_v55 = vld [vmem:[%s14573_s23 + $0x1760] sm:$0xff] }
 0x65d   : > { %9170 = vmatpush1.bf16.msra.mxu0 %v11602_v36  ;;  %v11551_v36 = vcombine.high %v11284_v38, %v11288_v54  ;;  %v11650_v20 = vcombine.low %v11386_v45, %v11390_v55 }
 0x65e   : > { %9171 = vmatprep.subr.bf16.mxu0 %v11611_v7  ;;  %v11296_v7 = vld [vmem:[%s14573_s23 + $0x1470] sm:$0xff] }
 0x65f   : > { %9383 = vmatpush1.bf16.msra.mxu1 %v11510_v17  ;;  %v11651_v17 = vcombine.high %v11386_v45, %v11390_v55  ;;  %v11558_v8 = vcombine.low %v11292_v5, %v11296_v7 }
 0x660   : > { %9384 = vmatprep.subr.bf16.mxu1 %v11519_v18  ;;  %v11398_v18 = vld [vmem:[%s14573_s23 + $0x17a0] sm:$0xff] }
 0x661   : > { %9172 = vmatpush1.bf16.msra.mxu0 %v11610_v15  ;;  %v11559_v15 = vcombine.high %v11292_v5, %v11296_v7  ;;  %v11658_v31 = vcombine.low %v11394_v14, %v11398_v18 }
 0x662   : > { %9173 = vmatprep.subr.bf16.mxu0 %v11619_v23  ;;  %v11432_v23 = vld [vmem:[%s14573_s23 + $0x18b0] sm:$0x33] }
 0x663   : > { %9385 = vmatpush1.bf16.msra.mxu1 %v11518_v25  ;;  %v11659_v25 = vcombine.high %v11394_v14, %v11398_v18  ;;  %v11694_v48 = vcombine.low %v11428_v35, %v11432_v23  ;;  %v11183_v14 = vld [vmem:[%s14573_s23 + $0x10e8] sm:$0xff] }
 0x664   : > { %9386 = vmatprep.subr.bf16.mxu1 %v11527_v53  ;;  %v11406_v53 = vld [vmem:[%s14573_s23 + $0x17e0] sm:$0xff] }
 0x665   : > { %9174 = vmatpush1.bf16.msra.mxu0 %v11618_v10  ;;  %v11695_v10 = vcombine.high %v11428_v35, %v11432_v23  ;;  %v11667_v39 = vcombine.high %v11402_v4, %v11406_v53  ;;  %v11666_v9 = vcombine.low %v11402_v4, %v11406_v53  ;;  %v11325_v4 = vld [vmem:[%s14573_s23 + $0x1558] sm:$0xff] }
 0x666   : > { %9175 = vmatprep.subr.bf16.mxu0 %v11627_v33  ;;  %v11301_v33 = vld [vmem:[%s14573_s23 + $0x1498] sm:$0xff] }
 0x667   : > { %9387 = vmatpush1.bf16.msra.mxu1 %v11526_v12  ;;  %v11305_v12 = vld [vmem:[%s14573_s23 + $0x14b8] sm:$0xff] }
 0x668   : > { %9388 = vmatprep.subr.bf16.mxu1 %v11535_v43  ;;  %v11414_v43 = vld [vmem:[%s14573_s23 + $0x1820] sm:$0xff]  ;;  %v11569_v34 = vcombine.high %v11301_v33, %v11305_v12  ;;  %v11568_v54 = vcombine.low %v11301_v33, %v11305_v12  ;;  %v11329_v53 = vld [vmem:[%s14573_s23 + $0x1578] sm:$0xff] }
 0x669   : > { %9176 = vmatpush1.bf16.msra.mxu0 %v11626_v27  ;;  %v9107_v27 = vsel %vm5166_vm5, %v11694_v48, 0  ;;  %v11674_v50 = vcombine.low %v11410_v21, %v11414_v43 }
 0x66a   : > { %9177 = vmatprep.subr.bf16.mxu0 %v11635_v41  ;;  %v11675_v41 = vcombine.high %v11410_v21, %v11414_v43  ;;  %v11191_v21 = vld [vmem:[%s14573_s23 + $0x1128] sm:$0xff] }
 0x66b   : > { %9389 = vmatpush1.bf16.msra.mxu1 %v11534_v28  ;;  %v11418_v28 = vld [vmem:[%s14573_s23 + $0x1840] sm:$0xff] }
 0x66c   : > { %9390 = vmatprep.subr.bf16.mxu1 %v11543_v0  ;;  %v11309_v0 = vld [vmem:[%s14573_s23 + $0x14d8] sm:$0xff]  ;;  %v11683_v38 = vcombine.high %v11418_v28, %v11422_v22  ;;  %v11682_v55 = vcombine.low %v11418_v28, %v11422_v22  ;;  %v11592_v28 = vcombine.low %v11325_v4, %v11329_v53  ;;  %v11195_v22 = vld [vmem:[%s14573_s23 + $0x1148] sm:$0xff] }
 0x66d   : > { %9178 = vmatpush1.bf16.msra.mxu0 %v11634_v44  ;;  %v11313_v44 = vld [vmem:[%s14573_s23 + $0x14f8] sm:$0xff] }
 0x66e   : > { %9179 = vmatprep.subr.bf16.mxu0 %v11643_v24  ;;  %v11171_v24 = vld [vmem:[%s14573_s23 + $0x1088] sm:$0xff]  ;;  %v11577_v45 = vcombine.high %v11309_v0, %v11313_v44 }
 0x66f   : > { %9391 = vmatpush1.bf16.msra.mxu1 %v11542_v40  ;;  %v11175_v40 = vld [vmem:[%s14573_s23 + $0x10a8] sm:$0xff] }
 0x670   : > { %9392 = vmatprep.subr.bf16.mxu1 %v11551_v36  ;;  %v11317_v36 = vld [vmem:[%s14573_s23 + $0x1518] sm:$0xff]  ;;  %v11437_v5 = vcombine.high %v11171_v24, %v11175_v40 }
 0x671   : > { %9180 = vmatpush1.bf16.msra.mxu0 %v11642_v51  ;;  %v11321_v51 = vld [vmem:[%s14573_s23 + $0x1538] sm:$0xff] }
 0x672   : > { %9181 = vmatprep.subr.bf16.mxu0 %v11651_v17  ;;  %v11576_v17 = vcombine.low %v11309_v0, %v11313_v44  ;;  %v11584_v12 = vcombine.low %v11317_v36, %v11321_v51 }
 0x673   : > { %9393 = vmatpush1.bf16.msra.mxu1 %v11550_v58  ;;  %v11179_v58 = vld [vmem:[%s14573_s23 + $0x10c8] sm:$0xff] }
 0x674   : > { %9394 = vmatprep.subr.bf16.mxu1 %v11559_v15 }
 0x675   : > { %9182 = vmatpush1.bf16.msra.mxu0 %v11650_v20  ;;  %v11585_v20 = vcombine.high %v11317_v36, %v11321_v51 }
 0x676   : > { %9183 = vmatprep.subr.bf16.mxu0 %v11659_v25  ;;  %v11436_v25 = vcombine.low %v11171_v24, %v11175_v40 }
 0x677   : > { %9395 = vmatpush1.bf16.msra.mxu1 %v11558_v8 }
 0x678   : > { %11702 = vmatprep.subr.msk.bf16.mxu1 %vm5166_vm5, %v11695_v10 }
 0x679   : > { %9184 = vmatpush1.bf16.msra.mxu0 %v11658_v31 }
 0x67a   : > { %9185 = vmatprep.subr.bf16.mxu0 %v11667_v39  ;;  %9397 = vmatmul.mubr.bf16.vlgmr.msra.gmra.mrb[48].mxu1 %v15717_v1  ;;  %v11187_v39 = vld [vmem:[%s14573_s23 + $0x1108] sm:$0xff] }
 0x67b   : > { %9447 = vmatpush1.bf16.msra.mxu1 %v9107_v27  ;;  %9478 = vmatprep.mubr.bf16.mxu1 %v12869_v2  ;;  %v11593_v27 = vcombine.high %v11325_v4, %v11329_v53  ;;  %v11452_v40 = vcombine.low %v11187_v39, %v11191_v21 }
 0x67c   : > { %9528 = vmatprep.subr.bf16.mxu1 %v11569_v34  ;;  %v11444_v34 = vcombine.low %v11179_v58, %v11183_v14 }
 0x67d   : > { %9186 = vmatpush1.bf16.msra.mxu0 %v11666_v9  ;;  %v11333_v9 = vld [vmem:[%s14573_s23 + $0x1598] sm:$0xff] }
 0x67e   : > { %9187 = vmatprep.subr.bf16.mxu0 %v11675_v41  ;;  %v11453_v41 = vcombine.high %v11187_v39, %v11191_v21 }
 0x681   : > { %9188 = vmatpush1.bf16.msra.mxu0 %v11674_v50  ;;  %v11199_v50 = vld [vmem:[%s14573_s23 + $0x1168] sm:$0xff] }
 0x682   : > { %9189 = vmatprep.subr.bf16.mxu0 %v11683_v38  ;;  %11703 = vmatmul.mubr.msk.bf16.vlgmr.msra.gmra.mrb[52].mxu1 %vm5162_vm6, %v15734_v3  ;;  %v11461_v51 = vcombine.high %v11195_v22, %v11199_v50 }
 0x683   : > { %v7179_v7 = vpop.f32.mrb[56].mxu0  ;;  %9529 = vmatpush1.bf16.msra.mxu1 %v11568_v54  ;;  %9560 = vmatprep.mubr.bf16.mxu1 %v15738_v32 }
 0x684   : > { %v7180_v18 = vadd.f32 %v7179_v7, %v15547_v26  ;;  %v7181_v15 = vpop.f32.mrb[57].mxu0  ;;  %9530 = vmatprep.subr.bf16.mxu1 %v11577_v45  ;;  %v11445_v26 = vcombine.high %v11179_v58, %v11183_v14  ;;  %v11341_v45 = vld [vmem:[%s14573_s23 + $0x15d8] sm:$0xff]  ;;  %v11203_v7 = vld [vmem:[%s14573_s23 + $0x1188] sm:$0xff]  ;;  %v11460_v14 = vcombine.low %v11195_v22, %v11199_v50 }
 0x685   : > { %9190 = vmatpush1.bf16.msra.mxu0 %v11682_v55  ;;  %v7182_v35 = vadd.f32 %v7181_v15, %v15549_v30  ;;  %v7183_v23 = vpop.f32.mrb[58].mxu0  ;;  %v15925_v8 = vpop.f32.mrb[32].mxu1  ;;  %v11345_v55 = vld [vmem:[%s14573_s23 + $0x15f8] sm:$0xff] }
 0x686   : > { %9241 = vmatprep.subr.bf16.mxu0 %v11437_v5  ;;  %v7184_v10 = vpop.f32.mrb[59].mxu0  ;;  %v15929_v48 = vpop.f32.mrb[33].mxu1  ;;  %v7221_v31 = vadd.f32 %v15763_v42, %v7180_v18  ;;  %v11337_v42 = vld [vmem:[%s14573_s23 + $0x15b8] sm:$0xff]  ;;  %v11609_v58 = vcombine.high %v11341_v45, %v11345_v55  ;;  %v11211_v23 = vld [vmem:[%s14573_s23 + $0x11c8] sm:$0xff] }
 0x687   : > { %9531 = vmatpush1.bf16.msra.mxu1 %v11576_v17  ;;  %v7470_v33 = vpop.f32.mrb[34].mxu1  ;;  %v7223_v30 = vadd.f32 %v15765_v16, %v7182_v35  ;;  %v11601_v38 = vcombine.high %v11333_v9, %v11337_v42  ;;  %v11600_v5 = vcombine.low %v11333_v9, %v11337_v42  ;;  %v11207_v17 = vld [vmem:[%s14573_s23 + $0x11a8] sm:$0xff]  ;;  %v11349_v18 = vld [vmem:[%s14573_s23 + $0x1618] sm:$0xff]  ;;  %v11608_v35 = vcombine.low %v11341_v45, %v11345_v55 }
 0x688   : > { %9192 = vmatmul.mubr.bf16.vlgmr.msra.gmra.mrb[80].mxu0 %v15821_v37  ;;  %v7471_v43 = vpop.f32.mrb[35].mxu1  ;;  %9532 = vmatprep.subr.bf16.mxu1 %v11585_v20  ;;  %v11353_v15 = vld [vmem:[%s14573_s23 + $0x1638] sm:$0xff]  ;;  %v11469_v20 = vcombine.high %v11203_v7, %v11207_v17  ;;  %v11468_v53 = vcombine.low %v11203_v7, %v11207_v17  ;;  %v11227_v42 = vld [vmem:[%s14573_s23 + $0x1248] sm:$0xff] }
 0x689   : > { %9242 = vmatpush1.bf16.msra.mxu0 %v11436_v25  ;;  %9273 = vmatprep.mubr.bf16.mxu0 %v15635_v46  ;;  %v11215_v25 = vld [vmem:[%s14573_s23 + $0x11e8] sm:$0xff]  ;;  %v11617_v4 = vcombine.high %v11349_v18, %v11353_v15  ;;  %v11357_v10 = vld [vmem:[%s14573_s23 + $0x1658] sm:$0xff]  ;;  %v11616_v33 = vcombine.low %v11349_v18, %v11353_v15 }
 0x68a   : > { %9243 = vmatprep.subr.bf16.mxu0 %v11445_v26  ;;  %v11361_v26 = vld [vmem:[%s14573_s23 + $0x1678] sm:$0xff]  ;;  %v11476_v21 = vcombine.low %v11211_v23, %v11215_v25  ;;  %v11243_v17 = vld [vmem:[%s14573_s23 + $0x12c8] sm:$0xff] }
 0x68b   : > { %v7261_v16 = vpop.f32.mrb[60].mxu0  ;;  %9533 = vmatpush1.bf16.msra.mxu1 %v11584_v12  ;;  %v11219_v12 = vld [vmem:[%s14573_s23 + $0x1208] sm:$0xff]  ;;  %v11625_v39 = vcombine.high %v11357_v10, %v11361_v26  ;;  %v11365_v43 = vld [vmem:[%s14573_s23 + $0x1698] sm:$0xff]  ;;  %v11624_v9 = vcombine.low %v11357_v10, %v11361_v26 }
 0x68c   : > { %v15941_v0 = vadd.f32 %v7261_v16, %v7221_v31  ;;  %v7263_v44 = vpop.f32.mrb[61].mxu0  ;;  %9534 = vmatprep.subr.bf16.mxu1 %v11593_v27  ;;  %v11477_v31 = vcombine.high %v11211_v23, %v11215_v25  ;;  %v11369_v27 = vld [vmem:[%s14573_s23 + $0x16b8] sm:$0xff]  ;;  %v11251_v25 = vld [vmem:[%s14573_s23 + $0x1308] sm:$0xff] }
 0x68d   : > { %9244 = vmatpush1.bf16.msra.mxu0 %v11444_v34  ;;  %v15943_v54 = vadd.f32 %v7263_v44, %v7223_v30  ;;  %v7265_v24 = vpop.f32.mrb[62].mxu0  ;;  %v11223_v30 = vld [vmem:[%s14573_s23 + $0x1228] sm:$0xff]  ;;  %v11633_v16 = vcombine.high %v11365_v43, %v11369_v27  ;;  %v11373_v22 = vld [vmem:[%s14573_s23 + $0x16d8] sm:$0xff] }
 0x68e   : > { %9245 = vmatprep.subr.bf16.mxu0 %v11453_v41  ;;  %v7266_v36 = vpop.f32.mrb[63].mxu0  ;;  %v11485_v34 = vcombine.high %v11219_v12, %v11223_v30  ;;  %v11231_v41 = vld [vmem:[%s14573_s23 + $0x1268] sm:$0xff]  ;;  %v11377_v50 = vld [vmem:[%s14573_s23 + $0x16f8] sm:$0xff] }
 0x68f   : > { %9535 = vmatpush1.bf16.msra.mxu1 %v11592_v28  ;;  %v11484_v28 = vcombine.low %v11219_v12, %v11223_v30  ;;  %v11493_v44 = vcombine.high %v11227_v42, %v11231_v41  ;;  %v11235_v24 = vld [vmem:[%s14573_s23 + $0x1288] sm:$0xff]  ;;  %v11641_v45 = vcombine.high %v11373_v22, %v11377_v50  ;;  %v11492_v55 = vcombine.low %v11227_v42, %v11231_v41  ;;  %v11381_v36 = vld [vmem:[%s14573_s23 + $0x1718] sm:$0xff] }
 0x690   : > { %9536 = vmatprep.subr.bf16.mxu1 %v11601_v38  ;;  %v11632_v38 = vcombine.low %v11365_v43, %v11369_v27  ;;  %v11640_v7 = vcombine.low %v11373_v22, %v11377_v50  ;;  %v11389_v15 = vld [vmem:[%s14573_s23 + $0x1758] sm:$0xff]  ;;  %v11259_v30 = vld [vmem:[%s14573_s23 + $0x1348] sm:$0xff] }
 0x691   : > { %9246 = vmatpush1.bf16.msra.mxu0 %v11452_v40  ;;  %v11239_v40 = vld [vmem:[%s14573_s23 + $0x12a8] sm:$0xff]  ;;  %v11397_v26 = vld [vmem:[%s14573_s23 + $0x1798] sm:$0xff] }
 0x692   : > { %9247 = vmatprep.subr.bf16.mxu0 %v11461_v51  ;;  %v11385_v51 = vld [vmem:[%s14573_s23 + $0x1738] sm:$0xff]  ;;  %v11500_v18 = vcombine.low %v11235_v24, %v11239_v40  ;;  %v11267_v41 = vld [vmem:[%s14573_s23 + $0x1388] sm:$0xff] }
 0x693   : > { %9537 = vmatpush1.bf16.msra.mxu1 %v11600_v5  ;;  %v11501_v5 = vcombine.high %v11235_v24, %v11239_v40  ;;  %v11648_v23 = vcombine.low %v11381_v36, %v11385_v51  ;;  %v11405_v27 = vld [vmem:[%s14573_s23 + $0x17d8] sm:$0xff]  ;;  %v11275_v40 = vld [vmem:[%s14573_s23 + $0x13c8] sm:$0xff] }
 0x694   : > { %9538 = vmatprep.subr.bf16.mxu1 %v11609_v58  ;;  %v11247_v58 = vld [vmem:[%s14573_s23 + $0x12e8] sm:$0xff]  ;;  %v11413_v50 = vld [vmem:[%s14573_s23 + $0x1818] sm:$0xff] }
 0x695   : > { %9248 = vmatpush1.bf16.msra.mxu0 %v11460_v14  ;;  %v11649_v14 = vcombine.high %v11381_v36, %v11385_v51  ;;  %v11508_v10 = vcombine.low %v11243_v17, %v11247_v58  ;;  %v11421_v51 = vld [vmem:[%s14573_s23 + $0x1858] sm:$0xff] }
 0x696   : > { %9249 = vmatprep.subr.bf16.mxu0 %v11469_v20  ;;  %v11393_v20 = vld [vmem:[%s14573_s23 + $0x1778] sm:$0xff] }
 0x697   : > { %9539 = vmatpush1.bf16.msra.mxu1 %v11608_v35  ;;  %v11509_v35 = vcombine.high %v11243_v17, %v11247_v58  ;;  %v11656_v12 = vcombine.low %v11389_v15, %v11393_v20  ;;  %v11283_v58 = vld [vmem:[%s14573_s23 + $0x1408] sm:$0xff] }
 0x698   : > { %9540 = vmatprep.subr.bf16.mxu1 %v11617_v4  ;;  %v11255_v4 = vld [vmem:[%s14573_s23 + $0x1328] sm:$0xff] }
 0x699   : > { %9250 = vmatpush1.bf16.msra.mxu0 %v11468_v53  ;;  %v11657_v53 = vcombine.high %v11389_v15, %v11393_v20  ;;  %v11516_v43 = vcombine.low %v11251_v25, %v11255_v4 }
 0x69a   : > { %9251 = vmatprep.subr.bf16.mxu0 %v11477_v31  ;;  %v11401_v31 = vld [vmem:[%s14573_s23 + $0x17b8] sm:$0xff] }
 0x69b   : > { %9541 = vmatpush1.bf16.msra.mxu1 %v11616_v33  ;;  %v11517_v33 = vcombine.high %v11251_v25, %v11255_v4  ;;  %v11664_v42 = vcombine.low %v11397_v26, %v11401_v31  ;;  %v11295_v25 = vld [vmem:[%s14573_s23 + $0x1468] sm:$0xff] }
 0x69c   : > { %9542 = vmatprep.subr.bf16.mxu1 %v11625_v39  ;;  %v11263_v39 = vld [vmem:[%s14573_s23 + $0x1368] sm:$0xff] }
 0x69d   : > { %9252 = vmatpush1.bf16.msra.mxu0 %v11476_v21  ;;  %v11665_v21 = vcombine.high %v11397_v26, %v11401_v31  ;;  %v11524_v22 = vcombine.low %v11259_v30, %v11263_v39  ;;  %v11431_v26 = vld [vmem:[%s14573_s23 + $0x18a8] sm:$0x33] }
 0x69e   : > { %9253 = vmatprep.subr.bf16.mxu0 %v11485_v34  ;;  %v11409_v34 = vld [vmem:[%s14573_s23 + $0x17f8] sm:$0xff] }
 0x69f   : > { %9543 = vmatpush1.bf16.msra.mxu1 %v11624_v9  ;;  %v11525_v9 = vcombine.high %v11259_v30, %v11263_v39  ;;  %v11672_v24 = vcombine.low %v11405_v27, %v11409_v34  ;;  %v11300_v30 = vld [vmem:[%s14573_s23 + $0x1490] sm:$0xff] }
 0x6a0   : > { %9544 = vmatprep.subr.bf16.mxu1 %v11633_v16  ;;  %v11271_v16 = vld [vmem:[%s14573_s23 + $0x13a8] sm:$0xff]  ;;  %v11304_v39 = vld [vmem:[%s14573_s23 + $0x14b0] sm:$0xff] }
 0x6a1   : > { %9254 = vmatpush1.bf16.msra.mxu0 %v11484_v28  ;;  %v11673_v28 = vcombine.high %v11405_v27, %v11409_v34  ;;  %v11532_v36 = vcombine.low %v11267_v41, %v11271_v16  ;;  %v11567_v34 = vcombine.high %v11300_v30, %v11304_v39 }
 0x6a2   : > { %9255 = vmatprep.subr.bf16.mxu0 %v11493_v44  ;;  %v11417_v44 = vld [vmem:[%s14573_s23 + $0x1838] sm:$0xff] }
 0x6a3   : > { %9545 = vmatpush1.bf16.msra.mxu1 %v11632_v38  ;;  %v11533_v38 = vcombine.high %v11267_v41, %v11271_v16  ;;  %v11680_v17 = vcombine.low %v11413_v50, %v11417_v44  ;;  %v11308_v16 = vld [vmem:[%s14573_s23 + $0x14d0] sm:$0xff] }
 0x6a4   : > { %9546 = vmatprep.subr.bf16.mxu1 %v11641_v45  ;;  %v11279_v45 = vld [vmem:[%s14573_s23 + $0x13e8] sm:$0xff] }
 0x6a5   : > { %9256 = vmatpush1.bf16.msra.mxu0 %v11492_v55  ;;  %v11681_v55 = vcombine.high %v11413_v50, %v11417_v44  ;;  %v11540_v15 = vcombine.low %v11275_v40, %v11279_v45 }
 0x6a6   : > { %9257 = vmatprep.subr.bf16.mxu0 %v11501_v5  ;;  %v11425_v5 = vld [vmem:[%s14573_s23 + $0x1878] sm:$0xff] }
 0x6a7   : > { %9547 = vmatpush1.bf16.msra.mxu1 %v11640_v7  ;;  %v11541_v7 = vcombine.high %v11275_v40, %v11279_v45 }
 0x6a8   : > { %9548 = vmatprep.subr.bf16.mxu1 %v11649_v14  ;;  %v11287_v14 = vld [vmem:[%s14573_s23 + $0x1428] sm:$0xff] }
 0x6a9   : > { %9258 = vmatpush1.bf16.msra.mxu0 %v11500_v18  ;;  %v11689_v18 = vcombine.high %v11421_v51, %v11425_v5  ;;  %v11549_v20 = vcombine.high %v11283_v58, %v11287_v14  ;;  %v11548_v4 = vcombine.low %v11283_v58, %v11287_v14 }
 0x6aa   : > { %9259 = vmatprep.subr.bf16.mxu0 %v11509_v35  ;;  %v11688_v35 = vcombine.low %v11421_v51, %v11425_v5 }
 0x6ab   : > { %9549 = vmatpush1.bf16.msra.mxu1 %v11648_v23  ;;  %v11291_v23 = vld [vmem:[%s14573_s23 + $0x1448] sm:$0xff] }
 0x6ac   : > { %9550 = vmatprep.subr.bf16.mxu1 %v11657_v53  ;;  %v11557_v53 = vcombine.high %v11291_v23, %v11295_v25  ;;  %v11556_v31 = vcombine.low %v11291_v23, %v11295_v25 }
 0x6ad   : > { %9260 = vmatpush1.bf16.msra.mxu0 %v11508_v10  ;;  %v11427_v10 = vld [vmem:[%s14573_s23 + $0x1888] sm:$0xff] }
 0x6ae   : > { %9261 = vmatprep.subr.bf16.mxu0 %v11517_v33  ;;  %v11693_v33 = vcombine.high %v11427_v10, %v11431_v26 }
 0x6af   : > { %9551 = vmatpush1.bf16.msra.mxu1 %v11656_v12  ;;  %v11692_v12 = vcombine.low %v11427_v10, %v11431_v26  ;;  %v11336_v10 = vld [vmem:[%s14573_s23 + $0x15b0] sm:$0xff] }
 0x6b0   : > { %9552 = vmatprep.subr.bf16.mxu1 %v11665_v21 }
 0x6b1   : > { %9262 = vmatpush1.bf16.msra.mxu0 %v11516_v43  ;;  %v9101_v43 = vsel %vm5166_vm5, %v11692_v12, 0  ;;  %v11344_v12 = vld [vmem:[%s14573_s23 + $0x15f0] sm:$0xff] }
 0x6b2   : > { %9263 = vmatprep.subr.bf16.mxu0 %v11525_v9 }
 0x6b3   : > { %9553 = vmatpush1.bf16.msra.mxu1 %v11664_v42 }
 0x6b4   : > { %9554 = vmatprep.subr.bf16.mxu1 %v11673_v28  ;;  %v11312_v28 = vld [vmem:[%s14573_s23 + $0x14f0] sm:$0xff] }
 0x6b5   : > { %9264 = vmatpush1.bf16.msra.mxu0 %v11524_v22  ;;  %v11574_v58 = vcombine.low %v11308_v16, %v11312_v28 }
 0x6b6   : > { %9265 = vmatprep.subr.bf16.mxu0 %v11533_v38 }
 0x6b7   : > { %9555 = vmatpush1.bf16.msra.mxu1 %v11672_v24  ;;  %v11566_v24 = vcombine.low %v11300_v30, %v11304_v39 }
 0x6b8   : > { %9556 = vmatprep.subr.bf16.mxu1 %v11681_v55 }
 0x6b9   : > { %9266 = vmatpush1.bf16.msra.mxu0 %v11532_v36  ;;  %v11575_v36 = vcombine.high %v11308_v16, %v11312_v28  ;;  %v11360_v16 = vld [vmem:[%s14573_s23 + $0x1670] sm:$0xff] }
 0x6ba   : > { %9267 = vmatprep.subr.bf16.mxu0 %v11541_v7 }
 0x6bb   : > { %9557 = vmatpush1.bf16.msra.mxu1 %v11680_v17  ;;  %v11316_v17 = vld [vmem:[%s14573_s23 + $0x1510] sm:$0xff] }
 0x6bc   : > { %9558 = vmatprep.subr.bf16.mxu1 %v11689_v18 }
 0x6bd   : > { %9268 = vmatpush1.bf16.msra.mxu0 %v11540_v15  ;;  %v11324_v15 = vld [vmem:[%s14573_s23 + $0x1550] sm:$0xff] }
 0x6be   : > { %9269 = vmatprep.subr.bf16.mxu0 %v11549_v20 }
 0x6bf   : > { %9559 = vmatpush1.bf16.msra.mxu1 %v11688_v35 }
 0x6c1   : > { %9270 = vmatpush1.bf16.msra.mxu0 %v11548_v4 }
 0x6c2   : > { %9271 = vmatprep.subr.bf16.mxu0 %v11557_v53  ;;  %9561 = vmatmul.mubr.bf16.vlgmr.msra.gmra.mrb[56].mxu1 %v15821_v37  ;;  %v11332_v53 = vld [vmem:[%s14573_s23 + $0x1590] sm:$0xff] }
 0x6c3   : > { %v11598_v30 = vcombine.low %v11332_v53, %v11336_v10 }
 0x6c5   : > { %9272 = vmatpush1.bf16.msra.mxu0 %v11556_v31  ;;  %v15996_v21 = vpop.f32.mrb[36].mxu1  ;;  %v11599_v31 = vcombine.high %v11332_v53, %v11336_v10 }
 0x6c6   : > { %11700 = vmatprep.subr.msk.bf16.mxu0 %vm5166_vm5, %v11693_v33  ;;  %v16000_v27 = vpop.f32.mrb[37].mxu1  ;;  %v11340_v33 = vld [vmem:[%s14573_s23 + $0x15d0] sm:$0xff] }
 0x6c7   : > { %v9156_v9 = vpop.f32.mrb[38].mxu1  ;;  %v11607_v39 = vcombine.high %v11340_v33, %v11344_v12 }
 0x6c8   : > { %9274 = vmatmul.mubr.bf16.vlgmr.msra.gmra.mrb[84].mxu0 %v15717_v1  ;;  %v9157_v42 = vpop.f32.mrb[39].mxu1  ;;  %v11606_v9 = vcombine.low %v11340_v33, %v11344_v12 }
 0x6c9   : > { %9324 = vmatpush1.bf16.msra.mxu0 %v9101_v43  ;;  %9355 = vmatprep.mubr.bf16.mxu0 %v12869_v2  ;;  %v11348_v43 = vld [vmem:[%s14573_s23 + $0x1610] sm:$0xff] }
 0x6ca   : > { %9405 = vmatprep.subr.bf16.mxu0 %v11567_v34  ;;  %v11352_v34 = vld [vmem:[%s14573_s23 + $0x1630] sm:$0xff] }
 0x6cb   : > { %v7302_v41 = vpop.f32.mrb[64].mxu0  ;;  %v11615_v42 = vcombine.high %v11348_v43, %v11352_v34  ;;  %v11614_v28 = vcombine.low %v11348_v43, %v11352_v34 }
 0x6cc   : > { %v7303_v22 = vadd.f32 %v7302_v41, %v15644_v47  ;;  %v7304_v50 = vpop.f32.mrb[65].mxu0  ;;  %v11320_v47 = vld [vmem:[%s14573_s23 + $0x1530] sm:$0xff] }
 0x6cd   : > { %v7305_v44 = vadd.f32 %v7304_v50, %v15646_v61  ;;  %v7306_v38 = vpop.f32.mrb[66].mxu0  ;;  %v16008_v40 = vpop.f32.mrb[40].mxu1  ;;  %v11583_v14 = vcombine.high %v11316_v17, %v11320_v47  ;;  %v11582_v25 = vcombine.low %v11316_v17, %v11320_v47  ;;  %v11356_v41 = vld [vmem:[%s14573_s23 + $0x1650] sm:$0xff] }
 0x6ce   : > { %v7307_v45 = vpop.f32.mrb[67].mxu0  ;;  %v16010_v55 = vpop.f32.mrb[41].mxu1  ;;  %v7344_v51 = vadd.f32 %v15847_v57, %v7303_v22  ;;  %v11328_v57 = vld [vmem:[%s14573_s23 + $0x1570] sm:$0xff]  ;;  %v11623_v22 = vcombine.high %v11356_v41, %v11360_v16  ;;  %v11622_v38 = vcombine.low %v11356_v41, %v11360_v16 }
 0x6cf   : > { %v9238_v5 = vpop.f32.mrb[42].mxu1  ;;  %v7346_v7 = vadd.f32 %v15851_v63, %v7305_v44  ;;  %v11591_v4 = vcombine.high %v11324_v15, %v11328_v57  ;;  %v11590_v26 = vcombine.low %v11324_v15, %v11328_v57  ;;  %v11364_v50 = vld [vmem:[%s14573_s23 + $0x1690] sm:$0xff] }
 0x6d0   : > { %11701 = vmatmul.mubr.msk.bf16.vlgmr.msra.gmra.mrb[88].mxu0 %vm5162_vm6, %v15734_v3  ;;  %v9239_v61 = vpop.f32.mrb[43].mxu1  ;;  %v11368_v44 = vld [vmem:[%s14573_s23 + $0x16b0] sm:$0xff] }
 0x6d1   : > { %9406 = vmatpush1.bf16.msra.mxu0 %v11566_v24  ;;  %9437 = vmatprep.mubr.bf16.mxu0 %v15738_v32  ;;  %v11631_v24 = vcombine.high %v11364_v50, %v11368_v44  ;;  %v11372_v45 = vld [vmem:[%s14573_s23 + $0x16d0] sm:$0xff] }
 0x6d2   : > { %9407 = vmatprep.subr.bf16.mxu0 %v11575_v36  ;;  %v11376_v36 = vld [vmem:[%s14573_s23 + $0x16f0] sm:$0xff] }
 0x6d3   : > { %v7384_v18 = vpop.f32.mrb[68].mxu0  ;;  %v11639_v5 = vcombine.high %v11372_v45, %v11376_v36  ;;  %v11384_v17 = vld [vmem:[%s14573_s23 + $0x1730] sm:$0xff]  ;;  %v11638_v47 = vcombine.low %v11372_v45, %v11376_v36  ;;  %v11189_v36 = vld [vmem:[%s14573_s23 + $0x1118] sm:$0xff] }
 0x6d4   : > { %v16021_v20 = vadd.f32 %v7384_v18, %v7344_v51  ;;  %v7386_v63 = vpop.f32.mrb[69].mxu0  ;;  %v11630_v51 = vcombine.low %v11364_v50, %v11368_v44  ;;  %v11396_v57 = vld [vmem:[%s14573_s23 + $0x1790] sm:$0xff] }
 0x6d5   : > { %9408 = vmatpush1.bf16.msra.mxu0 %v11574_v58  ;;  %v16023_v35 = vadd.f32 %v7386_v63, %v7346_v7  ;;  %v7388_v23 = vpop.f32.mrb[70].mxu0  ;;  %v11380_v7 = vld [vmem:[%s14573_s23 + $0x1710] sm:$0xff] }
 0x6d6   : > { %9409 = vmatprep.subr.bf16.mxu0 %v11583_v14  ;;  %v7389_v32 = vpop.f32.mrb[71].mxu0  ;;  %v11647_v61 = vcombine.high %v11380_v7, %v11384_v17  ;;  %v11388_v58 = vld [vmem:[%s14573_s23 + $0x1750] sm:$0xff]  ;;  %v11646_v18 = vcombine.low %v11380_v7, %v11384_v17 }
 0x6d7   : > { %v11392_v14 = vld [vmem:[%s14573_s23 + $0x1770] sm:$0xff] }
 0x6d8   : > { %v11655_v15 = vcombine.high %v11388_v58, %v11392_v14  ;;  %v11400_v63 = vld [vmem:[%s14573_s23 + $0x17b0] sm:$0xff]  ;;  %v11654_v23 = vcombine.low %v11388_v58, %v11392_v14  ;;  %v11201_v58 = vld [vmem:[%s14573_s23 + $0x1178] sm:$0xff] }
 0x6d9   : > { %9410 = vmatpush1.bf16.msra.mxu0 %v11582_v25  ;;  %v11663_v25 = vcombine.high %v11396_v57, %v11400_v63  ;;  %v11404_v32 = vld [vmem:[%s14573_s23 + $0x17d0] sm:$0xff]  ;;  %v11662_v53 = vcombine.low %v11396_v57, %v11400_v63 }
 0x6da   : > { %9411 = vmatprep.subr.bf16.mxu0 %v11591_v4  ;;  %v11408_v4 = vld [vmem:[%s14573_s23 + $0x17f0] sm:$0xff] }
 0x6db   : > { %v11671_v10 = vcombine.high %v11404_v32, %v11408_v4  ;;  %v11670_v33 = vcombine.low %v11404_v32, %v11408_v4  ;;  %v11205_v32 = vld [vmem:[%s14573_s23 + $0x1198] sm:$0xff] }
 0x6dc   : > { %v11209_v4 = vld [vmem:[%s14573_s23 + $0x11b8] sm:$0xff] }
 0x6dd   : > { %9412 = vmatpush1.bf16.msra.mxu0 %v11590_v26  ;;  %v11412_v26 = vld [vmem:[%s14573_s23 + $0x1810] sm:$0xff] }
 0x6de   : > { %9413 = vmatprep.subr.bf16.mxu0 %v11599_v31  ;;  %v11416_v31 = vld [vmem:[%s14573_s23 + $0x1830] sm:$0xff] }
 0x6df   : > { %v11679_v12 = vcombine.high %v11412_v26, %v11416_v31  ;;  %v11678_v43 = vcombine.low %v11412_v26, %v11416_v31  ;;  %v11217_v26 = vld [vmem:[%s14573_s23 + $0x11f8] sm:$0xff] }
 0x6e1   : > { %9414 = vmatpush1.bf16.msra.mxu0 %v11598_v30  ;;  %v11420_v30 = vld [vmem:[%s14573_s23 + $0x1850] sm:$0xff] }
 0x6e2   : > { %9415 = vmatprep.subr.bf16.mxu0 %v11607_v39  ;;  %v11424_v39 = vld [vmem:[%s14573_s23 + $0x1870] sm:$0xff] }
 0x6e3   : > { %v11687_v34 = vcombine.high %v11420_v30, %v11424_v39  ;;  %v11686_v41 = vcombine.low %v11420_v30, %v11424_v39 }
 0x6e5   : > { %9416 = vmatpush1.bf16.msra.mxu0 %v11606_v9  ;;  %v11173_v9 = vld [vmem:[%s14573_s23 + $0x1098] sm:$0xff] }
 0x6e6   : > { %9417 = vmatprep.subr.bf16.mxu0 %v11615_v42  ;;  %v11177_v42 = vld [vmem:[%s14573_s23 + $0x10b8] sm:$0xff] }
 0x6e7   : > { %v11441_v16 = vcombine.high %v11173_v9, %v11177_v42  ;;  %v11440_v50 = vcombine.low %v11173_v9, %v11177_v42 }
 0x6e9   : > { %9418 = vmatpush1.bf16.msra.mxu0 %v11614_v28  ;;  %v11181_v28 = vld [vmem:[%s14573_s23 + $0x10d8] sm:$0xff] }
 0x6ea   : > { %9419 = vmatprep.subr.bf16.mxu0 %v11623_v22  ;;  %v11185_v22 = vld [vmem:[%s14573_s23 + $0x10f8] sm:$0xff] }
 0x6eb   : > { %v11448_v7 = vcombine.low %v11181_v28, %v11185_v22 }
 0x6ed   : > { %9420 = vmatpush1.bf16.msra.mxu0 %v11622_v38 }
 0x6ee   : > { %9421 = vmatprep.subr.bf16.mxu0 %v11631_v24  ;;  %v11449_v24 = vcombine.high %v11181_v28, %v11185_v22 }
 0x6f1   : > { %9422 = vmatpush1.bf16.msra.mxu0 %v11630_v51  ;;  %v11193_v51 = vld [vmem:[%s14573_s23 + $0x1138] sm:$0xff] }
 0x6f2   : > { %9423 = vmatprep.subr.bf16.mxu0 %v11639_v5  ;;  %v11457_v17 = vcombine.high %v11189_v36, %v11193_v51  ;;  %v11456_v57 = vcombine.low %v11189_v36, %v11193_v51  ;;  %v11245_v51 = vld [vmem:[%s14573_s23 + $0x12d8] sm:$0xff] }
 0x6f5   : > { %9424 = vmatpush1.bf16.msra.mxu0 %v11638_v47 }
 0x6f6   : > { %9425 = vmatprep.subr.bf16.mxu0 %v11647_v61  ;;  %v11197_v61 = vld [vmem:[%s14573_s23 + $0x1158] sm:$0xff] }
 0x6f9   : > { %9426 = vmatpush1.bf16.msra.mxu0 %v11646_v18 }
 0x6fa   : > { %9427 = vmatprep.subr.bf16.mxu0 %v11655_v15 }
 0x6fd   : > { %9428 = vmatpush1.bf16.msra.mxu0 %v11654_v23 }
 0x6fe   : > { %9429 = vmatprep.subr.bf16.mxu0 %v11663_v25 }
 0x701   : > { %9430 = vmatpush1.bf16.msra.mxu0 %v11662_v53  ;;  %v11473_v53 = vcombine.high %v11205_v32, %v11209_v4 }
 0x702   : > { %9431 = vmatprep.subr.bf16.mxu0 %v11671_v10 }
 0x705   : > { %9432 = vmatpush1.bf16.msra.mxu0 %v11670_v33 }
 0x706   : > { %9433 = vmatprep.subr.bf16.mxu0 %v11679_v12  ;;  %v11472_v12 = vcombine.low %v11205_v32, %v11209_v4  ;;  %v11277_v32 = vld [vmem:[%s14573_s23 + $0x13d8] sm:$0xff] }
 0x707   : > { %v11281_v4 = vld [vmem:[%s14573_s23 + $0x13f8] sm:$0xff] }
 0x709   : > { %9434 = vmatpush1.bf16.msra.mxu0 %v11678_v43  ;;  %v11221_v43 = vld [vmem:[%s14573_s23 + $0x1218] sm:$0xff] }
 0x70a   : > { %9435 = vmatprep.subr.bf16.mxu0 %v11687_v34  ;;  %v11225_v34 = vld [vmem:[%s14573_s23 + $0x1238] sm:$0xff] }
 0x70b   : > { %v11489_v42 = vcombine.high %v11221_v43, %v11225_v34  ;;  %v11488_v28 = vcombine.low %v11221_v43, %v11225_v34  ;;  %v11429_v43 = vld [vmem:[%s14573_s23 + $0x1898] sm:$0xff] }
 0x70c   : > { %v11433_v34 = vld [vmem:[%s14573_s23 + $0x18b8] sm:$0x33] }
 0x70d   : > { %9436 = vmatpush1.bf16.msra.mxu0 %v11686_v41  ;;  %v16053_v44 = vpop.f32.mrb[44].mxu1  ;;  %v11229_v41 = vld [vmem:[%s14573_s23 + $0x1258] sm:$0xff] }
 0x70e   : > { %9487 = vmatprep.subr.bf16.mxu0 %v11441_v16  ;;  %v16055_v38 = vpop.f32.mrb[45].mxu1  ;;  %v11233_v16 = vld [vmem:[%s14573_s23 + $0x1278] sm:$0xff] }
 0x70f   : > { %v9320_v45 = vpop.f32.mrb[46].mxu1  ;;  %v11497_v22 = vcombine.high %v11229_v41, %v11233_v16 }
 0x710   : > { %9438 = vmatmul.mubr.bf16.vlgmr.msra.gmra.mrb[92].mxu0 %v15821_v37  ;;  %v9321_v5 = vpop.f32.mrb[47].mxu1  ;;  %v11496_v45 = vcombine.low %v11229_v41, %v11233_v16  ;;  %v11696_v41 = vcombine.low %v11429_v43, %v11433_v34 }
 0x711   : > { %9488 = vmatpush1.bf16.msra.mxu0 %v11440_v50  ;;  %9519 = vmatprep.mubr.bf16.mxu0 %v15635_v46  ;;  %v11465_v46 = vcombine.high %v11197_v61, %v11201_v58  ;;  %v11237_v50 = vld [vmem:[%s14573_s23 + $0x1298] sm:$0xff] }
 0x712   : > { %9489 = vmatprep.subr.bf16.mxu0 %v11449_v24  ;;  %v11241_v24 = vld [vmem:[%s14573_s23 + $0x12b8] sm:$0xff] }
 0x713   : > { %v7425_v47 = vpop.f32.mrb[72].mxu0  ;;  %v11505_v36 = vcombine.high %v11237_v50, %v11241_v24  ;;  %v11249_v5 = vld [vmem:[%s14573_s23 + $0x12f8] sm:$0xff] }
 0x714   : > { %v7426_v14 = vadd.f32 %v7425_v47, %v15748_v19  ;;  %v7427_v18 = vpop.f32.mrb[73].mxu0  ;;  %v11464_v19 = vcombine.low %v11197_v61, %v11201_v58  ;;  %v11253_v47 = vld [vmem:[%s14573_s23 + $0x1318] sm:$0xff]  ;;  %v11512_v58 = vcombine.low %v11245_v51, %v11249_v5 }
 0x715   : > { %9490 = vmatpush1.bf16.msra.mxu0 %v11448_v7  ;;  %v7428_v15 = vadd.f32 %v7427_v18, %v15750_v49  ;;  %v7429_v37 = vpop.f32.mrb[74].mxu0  ;;  %v11213_v49 = vld [vmem:[%s14573_s23 + $0x11d8] sm:$0xff]  ;;  %v11504_v7 = vcombine.low %v11237_v50, %v11241_v24 }
 0x716   : > { %v7430_v63 = vpop.f32.mrb[75].mxu0  ;;  %9491 = vmatprep.subr.bf16.mxu0 %v11457_v17  ;;  %v7467_v23 = vadd.f32 %v15925_v8, %v7426_v14  ;;  %v11481_v39 = vcombine.high %v11213_v49, %v11217_v26  ;;  %v11480_v9 = vcombine.low %v11213_v49, %v11217_v26  ;;  %v11513_v17 = vcombine.high %v11245_v51, %v11249_v5  ;;  %v11257_v61 = vld [vmem:[%s14573_s23 + $0x1338] sm:$0xff] }
 0x717   : > { %v7469_v25 = vadd.f32 %v15929_v48, %v7428_v15  ;;  %v11521_v14 = vcombine.high %v11253_v47, %v11257_v61  ;;  %v11261_v18 = vld [vmem:[%s14573_s23 + $0x1358] sm:$0xff]  ;;  %v11520_v37 = vcombine.low %v11253_v47, %v11257_v61  ;;  %v11544_v26 = vcombine.low %v11277_v32, %v11281_v4 }
 0x718   : > { %v11265_v15 = vld [vmem:[%s14573_s23 + $0x1378] sm:$0xff] }
 0x719   : > { %9492 = vmatpush1.bf16.msra.mxu0 %v11456_v57  ;;  %v11529_v57 = vcombine.high %v11261_v18, %v11265_v15  ;;  %v11269_v63 = vld [vmem:[%s14573_s23 + $0x1398] sm:$0xff] }
 0x71a   : > { %9493 = vmatprep.subr.bf16.mxu0 %v11465_v46  ;;  %v11273_v46 = vld [vmem:[%s14573_s23 + $0x13b8] sm:$0xff] }
 0x71b   : > { %v7507_v10 = vpop.f32.mrb[76].mxu0  ;;  %v11289_v49 = vld [vmem:[%s14573_s23 + $0x1438] sm:$0xff] }
 0x71c   : > { %v16071_v31 = vadd.f32 %v7507_v10, %v7467_v23  ;;  %v7509_v33 = vpop.f32.mrb[77].mxu0  ;;  %v11528_v23 = vcombine.low %v11261_v18, %v11265_v15  ;;  %v11285_v10 = vld [vmem:[%s14573_s23 + $0x1418] sm:$0xff] }
 0x71d   : > { %9494 = vmatpush1.bf16.msra.mxu0 %v11464_v19  ;;  %v16073_v8 = vadd.f32 %v7509_v33, %v7469_v25  ;;  %v7511_v48 = vpop.f32.mrb[78].mxu0  ;;  %v11537_v25 = vcombine.high %v11269_v63, %v11273_v46  ;;  %v11536_v19 = vcombine.low %v11269_v63, %v11273_v46  ;;  %v11553_v33 = vcombine.high %v11285_v10, %v11289_v49 }
 0x71e   : > { %v7512_v30 = vpop.f32.mrb[79].mxu0  ;;  %9495 = vmatprep.subr.bf16.mxu0 %v11473_v53  ;;  %v11545_v53 = vcombine.high %v11277_v32, %v11281_v4  ;;  %v11293_v48 = vld [vmem:[%s14573_s23 + $0x1458] sm:$0xff] }
 0x71f   : > { %v11552_v30 = vcombine.low %v11285_v10, %v11289_v49 }
 0x721   : > { %9496 = vmatpush1.bf16.msra.mxu0 %v11472_v12  ;;  %v11297_v12 = vld [vmem:[%s14573_s23 + $0x1478] sm:$0xff]  ;;  %s9846_s23 = sshll.u32 %s16202_s18, 3 }
 0x722   : > { %9497 = vmatprep.subr.bf16.mxu0 %v11481_v39  ;;  %v11561_v39 = vcombine.high %v11293_v48, %v11297_v12  ;;  %s421_s28 = scalar_lea.vmem %s16197_s8, %s9846_s23  ;;  %s425_s12 = scalar_lea.vmem %s16198_s9, %s9846_s23 }
 0x723   : > { %v16125_v18 = vld [vmem:[%s425_s12] sm:$0xff] }
 0x724   : > { %v9685_v46 = vrot.slane %v16125_v18, %v15044_v13 }
 0x725   : > { %9498 = vmatpush1.bf16.msra.mxu0 %v11480_v9  ;;  %v11560_v9 = vcombine.low %v11293_v48, %v11297_v12 }
 0x726   : > { %9499 = vmatprep.subr.bf16.mxu0 %v11489_v42  ;;  %v11697_v42 = vcombine.high %v11429_v43, %v11433_v34 }
 0x729   : > { %9500 = vmatpush1.bf16.msra.mxu0 %v11488_v28  ;;  %v9113_v28 = vsel %vm5166_vm5, %v11696_v41, 0 }
 0x72a   : > { %9501 = vmatprep.subr.bf16.mxu0 %v11497_v22 }
 0x72d   : > { %9502 = vmatpush1.bf16.msra.mxu0 %v11496_v45 }
 0x72e   : > { %9503 = vmatprep.subr.bf16.mxu0 %v11505_v36 }
 0x731   : > { %9504 = vmatpush1.bf16.msra.mxu0 %v11504_v7 }
 0x732   : > { %9505 = vmatprep.subr.bf16.mxu0 %v11513_v17 }
 0x735   : > { %9506 = vmatpush1.bf16.msra.mxu0 %v11512_v58 }
 0x736   : > { %9507 = vmatprep.subr.bf16.mxu0 %v11521_v14 }
 0x739   : > { %9508 = vmatpush1.bf16.msra.mxu0 %v11520_v37 }
 0x73a   : > { %9509 = vmatprep.subr.bf16.mxu0 %v11529_v57 }
 0x73d   : > { %9510 = vmatpush1.bf16.msra.mxu0 %v11528_v23 }
 0x73e   : > { %9511 = vmatprep.subr.bf16.mxu0 %v11537_v25 }
 0x741   : > { %9512 = vmatpush1.bf16.msra.mxu0 %v11536_v19 }
 0x742   : > { %9513 = vmatprep.subr.bf16.mxu0 %v11545_v53 }
 0x745   : > { %9514 = vmatpush1.bf16.msra.mxu0 %v11544_v26 }
 0x746   : > { %9515 = vmatprep.subr.bf16.mxu0 %v11553_v33 }
 0x749   : > { %9516 = vmatpush1.bf16.msra.mxu0 %v11552_v30 }
 0x74a   : > { %9517 = vmatprep.subr.bf16.mxu0 %v11561_v39 }
 0x74d   : > { %9518 = vmatpush1.bf16.msra.mxu0 %v11560_v9  ;;  %v16097_v16 = vpop.f32.mrb[48].mxu1 }
 0x74e   : > { %11704 = vmatprep.subr.msk.bf16.mxu0 %vm5166_vm5, %v11697_v42  ;;  %v16101_v22 = vpop.f32.mrb[49].mxu1 }
 0x74f   : > { %v9402_v50 = vpop.f32.mrb[50].mxu1 }
 0x750   : > { %9520 = vmatmul.mubr.bf16.vlgmr.msra.gmra.mrb[96].mxu0 %v15717_v1  ;;  %v9403_v24 = vpop.f32.mrb[51].mxu1  ;;  %v16115_v1 = vld [vmem:[%s421_s28] sm:$0xff] }
 0x751   : > { %9570 = vmatpush1.bf16.msra.mxu0 %v9113_v28  ;;  %9601 = vmatprep.mubr.bf16.mxu0 %v12869_v2  ;;  %v9623_v58 = vrot.slane %v16115_v1, %v13063_v6  ;;  %v9627_v37 = vrot.slane %v16115_v1, %v15044_v13  ;;  %v9631_v43 = vrot.slane %v16115_v1, %v15094_v60 }
 0x752   : > { %v9635_v42 = vrot.slane %v16115_v1, %v15097_v62 }
 0x755   : > { %v16105_v45 = vpop.f32.mrb[52].mxu1 }
 0x756   : > { %v16108_v36 = vpop.f32.mrb[53].mxu1 }
 0x757   : > { %v9484_v51 = vpop.f32.mrb[54].mxu1 }
 0x758   : > { %11705 = vmatmul.mubr.msk.bf16.vlgmr.msra.gmra.mrb[100].mxu0 %vm5162_vm6, %v15734_v3  ;;  %v9485_v5 = vpop.f32.mrb[55].mxu1 }
 0x759   : > { %v9693_v5 = vrot.slane %v16125_v18, %v15097_v62 }
 0x75b   : > { %v9193_v7 = vpop.f32.mrb[80].mxu0 }
 0x75c   : > { %v9194_v2 = vadd.f32 %v9193_v7, %v15996_v21  ;;  %v9195_v17 = vpop.f32.mrb[81].mxu0 }
 0x75d   : > { %v9196_v47 = vadd.f32 %v9195_v17, %v16000_v27  ;;  %v9197_v61 = vpop.f32.mrb[82].mxu0  ;;  %v9681_v27 = vrot.slane %v16125_v18, %v13063_v6 }
 0x75e   : > { %v9235_v3 = vadd.f32 %v16008_v40, %v9194_v2  ;;  %v9198_v14 = vpop.f32.mrb[83].mxu0 }
 0x75f   : > { %v9237_v15 = vadd.f32 %v16010_v55, %v9196_v47 }
 0x760   : > { %v9610_v57 = vadd.f32 %v9235_v3, %v15843_v52 }
 0x761   : > { %v9611_v21 = vadd.f32 %v9237_v15, %v15845_v56 }
 0x762   : > { %v9660_v63 = vadd.f32 %v9623_v58, %v9610_v57 }
 0x763   : > { %v9661_v40 = vadd.f32 %v9627_v37, %v9611_v21  ;;  %v9639_v21 = vrot.slane %v16115_v1, %v14925_v11 }
 0x764   : > { %v9668_v23 = vmax.f32 %v9660_v63, 0.0 }
 0x765   : > { %v9669_v25 = vmax.f32 %v9661_v40, 0.0 }
 0x766   : > { %v9718_v32 = vmul.f32 %v9681_v27, %v9668_v23 }
 0x767   : > { %v9719_v55 = vmul.f32 %v9685_v46, %v9669_v25 }
 0x768   : > { %v9727_v4 = vsel %vm9726_vm7, %v9718_v32, 0.0 }
 0x769   : > { %v9728_v19 = vsel %vm9726_vm7, %v9719_v55, 0.0 }
 0x76a   : > { %v9729_v52 = vadd.f32 %v9728_v19, %v9727_v4 }
 0x795   : > { %v9562_v53 = vpop.f32.mrb[56].mxu1 }
 0x796   : > { %v9564_v56 = vpop.f32.mrb[57].mxu1 }
 0x797   : > { %v9566_v10 = vpop.f32.mrb[58].mxu1 }
 0x798   : > { %v9567_v49 = vpop.f32.mrb[59].mxu1 }
 0x79b   : > { %v9275_v26 = vpop.f32.mrb[84].mxu0 }
 0x79c   : > { %v9317_v6 = vadd.f32 %v16053_v44, %v9275_v26  ;;  %v9277_v33 = vpop.f32.mrb[85].mxu0 }
 0x79d   : > { %v9319_v13 = vadd.f32 %v16055_v38, %v9277_v33  ;;  %v9279_v48 = vpop.f32.mrb[86].mxu0  ;;  %v9689_v38 = vrot.slane %v16125_v18, %v15094_v60 }
 0x79e   : > { %v9280_v12 = vpop.f32.mrb[87].mxu0 }
 0x7a3   : > { %v9357_v30 = vpop.f32.mrb[88].mxu0 }
 0x7a4   : > { %v9358_v39 = vadd.f32 %v9357_v30, %v9317_v6  ;;  %v9359_v34 = vpop.f32.mrb[89].mxu0 }
 0x7a5   : > { %v9360_v9 = vadd.f32 %v9359_v34, %v9319_v13  ;;  %v9361_v41 = vpop.f32.mrb[90].mxu0  ;;  %v9651_v34 = vrot.slane %v16115_v1, %v13071_v29 }
 0x7a6   : > { %v9612_v28 = vadd.f32 %v9358_v39, %v15941_v0  ;;  %v9362_v50 = vpop.f32.mrb[91].mxu0 }
 0x7a7   : > { %v9613_v44 = vadd.f32 %v9360_v9, %v15943_v54  ;;  %v9642_v54 = vsub.s32 5, %v13057_v59  ;;  %v9709_v50 = vrot.slane %v16125_v18, %v13071_v29 }
 0x7a8   : > { %v9662_v24 = vadd.f32 %v9631_v43, %v9612_v28 }
 0x7a9   : > { %v9663_v51 = vadd.f32 %v9635_v42, %v9613_v44  ;;  %v9643_v40 = vrot.slane %v16115_v1, %v9642_v54  ;;  %v9701_v32 = vrot.slane %v16125_v18, %v9642_v54 }
 0x7aa   : > { %v9670_v7 = vmax.f32 %v9662_v24, 0.0 }
 0x7ab   : > { %v9671_v2 = vmax.f32 %v9663_v51, 0.0 }
 0x7ac   : > { %v9720_v17 = vmul.f32 %v9689_v38, %v9670_v7 }
 0x7ad   : > { %v9721_v47 = vmul.f32 %v9693_v5, %v9671_v2 }
 0x7ae   : > { %v9730_v61 = vsel %vm9726_vm7, %v9720_v17, 0.0 }
 0x7af   : > { %v9731_v3 = vadd.f32 %v9730_v61, %v9729_v52  ;;  %v9732_v0 = vsel %vm9726_vm7, %v9721_v47, 0.0 }
 0x7b1   : > { %v9733_v58 = vadd.f32 %v9732_v0, %v9731_v3 }
 0x7e3   : > { %v9439_v14 = vpop.f32.mrb[92].mxu0 }
 0x7e4   : > { %v9440_v15 = vadd.f32 %v9439_v14, %v16097_v16  ;;  %v9441_v60 = vpop.f32.mrb[93].mxu0  ;;  %v9697_v16 = vrot.slane %v16125_v18, %v14925_v11  ;;  %v9646_v11 = vsub.s32 6, %v13057_v59 }
 0x7e5   : > { %v9442_v37 = vadd.f32 %v9441_v60, %v16101_v22  ;;  %v9443_v57 = vpop.f32.mrb[94].mxu0 }
 0x7e6   : > { %v9481_v62 = vadd.f32 %v16105_v45, %v9440_v15  ;;  %v9444_v63 = vpop.f32.mrb[95].mxu0  ;;  %v9647_v30 = vrot.slane %v16115_v1, %v9646_v11  ;;  %v9705_v59 = vrot.slane %v16125_v18, %v9646_v11 }
 0x7e7   : > { %v9483_v27 = vadd.f32 %v16108_v36, %v9442_v37 }
 0x7e8   : > { %v9614_v46 = vadd.f32 %v9481_v62, %v16021_v20 }
 0x7e9   : > { %v9615_v23 = vadd.f32 %v9483_v27, %v16023_v35 }
 0x7ea   : > { %v9664_v25 = vadd.f32 %v9639_v21, %v9614_v46 }
 0x7eb   : > { %v9665_v22 = vadd.f32 %v9643_v40, %v9615_v23 }
 0x7ec   : > { %v9672_v45 = vmax.f32 %v9664_v25, 0.0 }
 0x7ed   : > { %v9673_v55 = vmax.f32 %v9665_v22, 0.0 }
 0x7ee   : > { %v9722_v4 = vmul.f32 %v9697_v16, %v9672_v45 }
 0x7ef   : > { %v9723_v19 = vmul.f32 %v9701_v32, %v9673_v55 }
 0x7f0   : > { %v9734_v52 = vsel %vm9726_vm7, %v9722_v4, 0.0 }
 0x7f1   : > { %v9735_v36 = vadd.f32 %v9734_v52, %v9733_v58  ;;  %v9736_v10 = vsel %vm9726_vm7, %v9723_v19, 0.0 }
 0x7f3   : > { %v9737_v49 = vadd.f32 %v9736_v10, %v9735_v36 }
 0x823   : > { %v9521_v20 = vpop.f32.mrb[96].mxu0 }
 0x824   : > { %v9563_v26 = vadd.f32 %v9562_v53, %v9521_v20  ;;  %v9523_v35 = vpop.f32.mrb[97].mxu0 }
 0x825   : > { %v9565_v6 = vadd.f32 %v9564_v56, %v9523_v35  ;;  %v9525_v33 = vpop.f32.mrb[98].mxu0 }
 0x826   : > { %v9526_v13 = vpop.f32.mrb[99].mxu0 }
 0x82b   : > { %v9603_v48 = vpop.f32.mrb[100].mxu0 }
 0x82c   : > { %v9604_v12 = vadd.f32 %v9603_v48, %v9563_v26  ;;  %v9605_v39 = vpop.f32.mrb[101].mxu0 }
 0x82d   : > { %v9606_v43 = vadd.f32 %v9605_v39, %v9565_v6  ;;  %v9607_v9 = vpop.f32.mrb[102].mxu0 }
 0x82e   : > { %v9616_v42 = vadd.f32 %v9604_v12, %v16071_v31  ;;  %v9608_v53 = vpop.f32.mrb[103].mxu0 }
 0x82f   : > { %v9617_v56 = vadd.f32 %v9606_v43, %v16073_v8  ;;  %v11706_v8 = vld [vmem:[%s428_s15] ss:$0 sm:$0xff] }
 0x830   : > { %v9666_v41 = vadd.f32 %v9647_v30, %v9616_v42 }
 0x831   : > { %v9667_v28 = vadd.f32 %v9651_v34, %v9617_v56 }
 0x832   : > { %v9674_v44 = vmax.f32 %v9666_v41, 0.0 }
 0x833   : > { %v9675_v24 = vmax.f32 %v9667_v28, 0.0 }
 0x834   : > { %v9724_v38 = vmul.f32 %v9705_v59, %v9674_v44 }
 0x835   : > { %v9725_v51 = vmul.f32 %v9709_v50, %v9675_v24 }
 0x836   : > { %v9738_v1 = vsel %vm9726_vm7, %v9724_v38, 0.0 }
 0x837   : > { %v9739_v5 = vadd.f32 %v9738_v1, %v9737_v49  ;;  %v9740_v31 = vsel %vm9726_vm7, %v9725_v51, 0.0 }
 0x839   : > { %v9741_v7 = vadd.f32 %v9740_v31, %v9739_v5 }
 0x83b   : > { %9742 = vadd.xlane.f32.xlu0 %v9741_v7 }
 0x8c8   : > { %v9743_v29 = vpop.xlane.xlu0 %9742 }
 0x8c9   : > { %v9751_v18 = vadd.f32 %v11706_v8, %v9743_v29 }
 0x8cb   : > { %9753 = vst.msk [vmem:[%s432_s21] sm:$0x3] %vm9752_vm8, %v9751_v18 }
 0x8cc PF: > { %s21_s17 = sadd.s32 1, %s12867_s17  }
 0x8cd   : > { %p18_p4 = scmp.ge.s32.totalorder %s21_s17, 4  }
 0x8cf   :  { %20 = sbr.rel (!%p18_p4) target bundleno = 1 (0x1), region = 139 }

</bundles_post_ra>
